<compile_context>
chip_gen: v5e
topology: v5e:2x2
jax: 0.10.0
libtpu: 0.0.40
codegen_flags: <defaults>
</compile_context>

<pallas_src>
import functools
import math

import jax
import jax.numpy as jnp
from jax import lax
from jax.experimental import pallas as pl
from jax.experimental.pallas import tpu as pltpu


_GATE_DILATIONS = (8, 4, 2)      # DSConv3x3 dilations inside FISAF.gate
_MAX_DIL = max(_GATE_DILATIONS)
_EPS = 1e-5
_SQRT1_2 = 0.7071067811865476


def _gelu(x):
    # exact (erf) GELU, like nn.GELU()
    return 0.5 * x * (1.0 + lax.erf(x * _SQRT1_2))


def _act(x, act):
    if act == "relu":
        return jnp.maximum(x, 0.0)
    if act == "relu_sigmoid":
        # gate tail: the final ConvBNReLU's ReLU, then nn.Sigmoid()
        # (matches the PyTorch module: DSConv3x3(..., relu=True) then Sigmoid)
        return jax.nn.sigmoid(jnp.maximum(x, 0.0))
    if act == "gelu":
        return _gelu(x)
    raise ValueError(act)


def _maxoff(W):
    """Largest |tap offset| in flattened (h*W + w) space, rounded to a lane tile."""
    need = _MAX_DIL * W + _MAX_DIL
    return ((need + 127) // 128) * 128


def _pick_batch_block(B, CM):
    """Images per grid step: divides B, keeps grid >= 2 (v7x), bounds the rows."""
    if B <= 1:
        return 1
    best = 1
    for bb in range(1, B // 2 + 1):
        if B % bb == 0 and bb * CM <= 256:
            best = bb
    return best


# ----------------------------------------------------------------------------
# fused kernel: one grid step == Bb images, full FISAF forward in VMEM
# ----------------------------------------------------------------------------
def _fisaf_kernel(df_ref, sf_ref, dww_ref, dwb_ref, pww_ref, pwb_ref,
                  o_ref, xpad_ref, *, Bb, C, H, W):
    CM = 2 * C
    R = Bb * CM                       # stacked rows: per image [SF/SA ; DF/DA]
    HW = H * W
    OFF = _maxoff(W)
    PADW = HW + 2 * OFF

    # Halo: the columns [0:OFF) and [OFF+HW:PADW) are NEVER written below (only
    # the interior [OFF:OFF+HW) is), so they must simply be zero when read.
    # Zero them every step (only the halo, not the whole scratch): a step-0-only
    # init would break on megacore parts where a core never runs step 0.
    halo0 = jnp.zeros((R, OFF), jnp.float32)
    xpad_ref[:, 0:OFF] = halo0
    xpad_ref[:, OFF + HW:PADW] = halo0

    # per-lane column index w = pos % W  (W is a power of two at these shapes)
    col = lax.broadcasted_iota(jnp.int32, (1, HW), 1)
    wcol = jnp.bitwise_and(col, W - 1) if (W & (W - 1)) == 0 else col % W

    def dw_pass(li, d, act):
        """3x3 depthwise conv (dilation d, 'same') + folded BN + activation over
        the full stacked slab already staged in xpad_ref[0:R, OFF:OFF+HW].

        Vertical out-of-range taps land in the zero halo; horizontal ones are
        killed by the per-lane column masks."""
        w9 = dww_ref[li]                               # (R, 9), host-tiled per image
        sh = dwb_ref[li]                               # (R, 1)
        m_neg = (wcol >= d).astype(jnp.float32)        # valid lanes for dj = -d
        m_pos = (wcol < (W - d)).astype(jnp.float32)   # valid lanes for dj = +d
        acc = jnp.zeros((R, HW), jnp.float32)
        for i in range(3):                             # static 9-tap unroll
            for j in range(3):
                dj = (j - 1) * d
                off = (i - 1) * d * W + dj
                tap = xpad_ref[0:R, OFF + off:OFF + off + HW]
                if dj < 0:
                    tap = tap * m_neg
                elif dj > 0:
                    tap = tap * m_pos
                acc = acc + tap * w9[:, i * 3 + j:i * 3 + j + 1]
        return _act(acc + sh, act)

    def pw_images(x, li, act):
        """1x1 conv + folded BN + activation: one MXU dot per image (the MXU is
        otherwise idle here).  The packed (CM, CM) weight is block-diagonal for
        the gate layers and zero-padded beyond Cout for conv_c1 / conv_c2."""
        wT = pww_ref[li]                               # (CM, CM)
        sh = pwb_ref[li]                               # (CM, 1)
        out = []
        for b in range(Bb):
            xb = x[b * CM:(b + 1) * CM, :]
            yb = jnp.dot(wT, xb, preferred_element_type=jnp.float32)
            out.append(_act(yb + sh, act))
        return out                                     # Bb x (CM, HW)

    def stage(slabs):
        """Write per-image slabs into the depthwise scratch interior."""
        for b in range(Bb):
            xpad_ref[b * CM:(b + 1) * CM, OFF:OFF + HW] = slabs[b]

    # Stage gate input: per image the rows are [SF (C rows) ; DF (C rows)], so
    # after the gate the slab is already torch.cat([SA, DA], dim=1).
    for b in range(Bb):
        base = b * CM
        xpad_ref[base:base + C, OFF:OFF + HW] = sf_ref[b]
        xpad_ref[base + C:base + CM, OFF:OFF + HW] = df_ref[b]

    # gate: 3x DSConv3x3 (d = 8, 4, 2); shared weights -> both branches fused
    n = len(_GATE_DILATIONS)
    sa_da = None
    for li, d in enumerate(_GATE_DILATIONS):
        h = dw_pass(li, d, "relu")
        sa_da = pw_images(h, li, "relu_sigmoid" if li == n - 1 else "relu")
        stage(sa_da)

    # conv_c1: DWPW(2C -> C) + GELU  (valid rows [0:C] per image, rest exactly 0)
    h = dw_pass(3, 1, "gelu")
    stage(pw_images(h, 3, "gelu"))

    # conv_c2: DWPW(C -> 2) + GELU   (valid rows [0:2] per image)
    h = dw_pass(4, 1, "gelu")
    w12 = pw_images(h, 4, "gelu")

    # fusion: w1*DA + w2*SA + (w1*DA)*(w2*SA)
    for b in range(Bb):
        SA = sa_da[b][0:C, :]
        DA = sa_da[b][C:CM, :]
        w1 = w12[b][0:1, :]
        w2 = w12[b][1:2, :]
        a1 = w1 * DA
        a2 = w2 * SA
        o_ref[b] = (a1 + a2 + a1 * a2).astype(o_ref.dtype)


# ----------------------------------------------------------------------------
# wrapper
# ----------------------------------------------------------------------------
@jax.jit
def fisaf_forward(params, DF, SF):
    """DF, SF: NCHW (B, C, H, W) float32. Returns NCHW (B, C, H, W)."""
    B, C, H, W = DF.shape
    HW = H * W
    CM = 2 * C
    OFF = _maxoff(W)
    PADW = HW + 2 * OFF
    Bb = _pick_batch_block(B, CM)
    G = B // Bb
    R = Bb * CM

    df = DF.reshape(B, C, HW)          # contiguous reshape: free, keeps NCHW layout
    sf = SF.reshape(B, C, HW)

    # Host-side per-image tiling of the depthwise params (tiny, once per call)
    dw_w = jnp.tile(params["dw_w"], (1, Bb, 1))       # (5, R, 9)
    dw_b = jnp.tile(params["dw_b"], (1, Bb, 1))       # (5, R, 1)

    kernel = functools.partial(_fisaf_kernel, Bb=Bb, C=C, H=H, W=W)
    out = pl.pallas_call(
        kernel,
        out_shape=jax.ShapeDtypeStruct((B, C, HW), jnp.float32),
        grid=(G,),
        in_specs=[
            pl.BlockSpec((Bb, C, HW), lambda g: (g, 0, 0)),     # DF slab
            pl.BlockSpec((Bb, C, HW), lambda g: (g, 0, 0)),     # SF slab
            pl.BlockSpec((5, R, 9), lambda g: (0, 0, 0)),       # dw weights (folded, tiled)
            pl.BlockSpec((5, R, 1), lambda g: (0, 0, 0)),       # dw shifts
            pl.BlockSpec((5, CM, CM), lambda g: (0, 0, 0)),     # pw weights (folded)
            pl.BlockSpec((5, CM, 1), lambda g: (0, 0, 0)),      # pw shifts
        ],
        out_specs=pl.BlockSpec((Bb, C, HW), lambda g: (g, 0, 0)),
        scratch_shapes=[pltpu.VMEM((R, PADW), jnp.float32)],
        compiler_params=pltpu.CompilerParams(
            dimension_semantics=("parallel",)),                 # v7x: steps across TCs
    )(df, sf, dw_w, dw_b, params["pw_w"], params["pw_b"])
    return out.reshape(B, C, H, W)


# ----------------------------------------------------------------------------
# parameter construction (deterministic, BatchNorm folded — inference mode)
# ----------------------------------------------------------------------------
def _fold_bn(keys, bias, C):
    gamma = jax.random.uniform(keys[0], (C,), jnp.float32, 0.5, 1.5)
    beta = jax.random.normal(keys[1], (C,), jnp.float32) * 0.1
    mean = jax.random.normal(keys[2], (C,), jnp.float32) * 0.1
    var = jax.random.uniform(keys[3], (C,), jnp.float32, 0.5, 1.5)
    scale = gamma / jnp.sqrt(var + _EPS)
    shift = beta + (bias - mean) * scale
    return scale, shift


def _dw_params(key, C, bias):
    ks = jax.random.split(key, 6)
    w = jax.random.normal(ks[0], (C, 9), jnp.float32) * 0.3
    b = (jax.random.normal(ks[1], (C,), jnp.float32) * 0.1
         if bias else jnp.zeros((C,), jnp.float32))
    scale, shift = _fold_bn(ks[2:6], b, C)
    return w * scale[:, None], shift[:, None]               # (C, 9), (C, 1)


def _pw_params(key, Cin, Cout, bias):
    ks = jax.random.split(key, 6)
    wT = jax.random.normal(ks[0], (Cout, Cin), jnp.float32) / math.sqrt(Cin)
    b = (jax.random.normal(ks[1], (Cout,), jnp.float32) * 0.1
         if bias else jnp.zeros((Cout,), jnp.float32))
    scale, shift = _fold_bn(ks[2:6], b, Cout)
    return wT * scale[:, None], shift[:, None]               # (Cout, Cin), (Cout, 1)


def init_params(key, C):
    """Packed, BN-folded params for the fused kernel.

    Layers 0..2: gate DSConv3x3 (dw + pw, bias=False). ONE shared module is
                 applied to both SF and DF (as in the PyTorch reference), so the
                 dw rows are duplicated across the two sublane halves and the pw
                 weight is packed block-diagonally for the fused 2C-row slab.
    Layer  3   : conv_c1  DWPWConv(2C -> C, bias=True).
    Layer  4   : conv_c2  DWPWConv(C  -> 2, bias=True).
    """
    CM = 2 * C
    dw_w = jnp.zeros((5, CM, 9), jnp.float32)
    dw_b = jnp.zeros((5, CM, 1), jnp.float32)
    pw_w = jnp.zeros((5, CM, CM), jnp.float32)
    pw_b = jnp.zeros((5, CM, 1), jnp.float32)
    ks = jax.random.split(key, 10)

    for li in range(3):                                      # gate (shared weights)
        w9, s9 = _dw_params(ks[2 * li], C, False)
        wT, sT = _pw_params(ks[2 * li + 1], C, C, False)
        dw_w = dw_w.at[li, :C].set(w9).at[li, C:CM].set(w9)
        dw_b = dw_b.at[li, :C].set(s9).at[li, C:CM].set(s9)
        pw_w = pw_w.at[li, :C, :C].set(wT).at[li, C:CM, C:CM].set(wT)
        pw_b = pw_b.at[li, :C].set(sT).at[li, C:CM].set(sT)

    w9, s9 = _dw_params(ks[6], CM, True)                     # conv_c1 dw (2C ch)
    wT, sT = _pw_params(ks[7], CM, C, True)                  # conv_c1 pw (2C -> C)
    dw_w = dw_w.at[3, :CM].set(w9)
    dw_b = dw_b.at[3, :CM].set(s9)
    pw_w = pw_w.at[3, :C, :CM].set(wT)
    pw_b = pw_b.at[3, :C].set(sT)

    w9, s9 = _dw_params(ks[8], C, True)                      # conv_c2 dw (C ch)
    wT, sT = _pw_params(ks[9], C, 2, True)                   # conv_c2 pw (C -> 2)
    dw_w = dw_w.at[4, :C].set(w9)
    dw_b = dw_b.at[4, :C].set(s9)
    pw_w = pw_w.at[4, :2, :C].set(wT)
    pw_b = pw_b.at[4, :2].set(sT)
    return {"dw_w": dw_w, "dw_b": dw_b, "pw_w": pw_w, "pw_b": pw_b}


# ----------------------------------------------------------------------------
# pure-JAX reference (independent conv path) for a structural sanity check
# ----------------------------------------------------------------------------
def _ref_dw(x, w9, sh, d):
    Cg = x.shape[1]
    w = w9.reshape(Cg, 1, 3, 3)
    y = lax.conv_general_dilated(
        x, w, window_strides=(1, 1), padding=((d, d), (d, d)),
        rhs_dilation=(d, d), dimension_numbers=("NCHW", "OIHW", "NCHW"),
        feature_group_count=Cg, precision=lax.Precision.HIGHEST)
    return y + sh.reshape(1, Cg, 1, 1)


def _ref_pw(x, wT, sh):
    y = jnp.einsum("oi,bihw->bohw", wT, x, precision=lax.Precision.HIGHEST)
    return y + sh.reshape(1, wT.shape[0], 1, 1)


def fisaf_reference(params, DF, SF):
    C = DF.shape[1]
    CM = 2 * C
    dw_w, dw_b = params["dw_w"], params["dw_b"]
    pw_w, pw_b = params["pw_w"], params["pw_b"]

    def gate(x):
        for li, d in enumerate(_GATE_DILATIONS):
            x = jnp.maximum(_ref_dw(x, dw_w[li, :C], dw_b[li, :C], d), 0.0)
            x = jnp.maximum(_ref_pw(x, pw_w[li, :C, :C], pw_b[li, :C]), 0.0)
        return jax.nn.sigmoid(x)

    SA = gate(SF)
    DA = gate(DF)
    sd = jnp.concatenate([SA, DA], axis=1)
    sd = _gelu(_ref_dw(sd, dw_w[3, :CM], dw_b[3, :CM], 1))
    sd = _gelu(_ref_pw(sd, pw_w[3, :C, :CM], pw_b[3, :C]))
    sd = _gelu(_ref_dw(sd, dw_w[4, :C], dw_b[4, :C], 1))
    sd = _gelu(_ref_pw(sd, pw_w[4, :2, :C], pw_b[4, :2]))
    w1 = sd[:, 0:1]
    w2 = sd[:, 1:2]
    a = w1 * DA
    b = w2 * SA
    return a + b + a * b


# ----------------------------------------------------------------------------
if __name__ == "__main__":
    key = jax.random.PRNGKey(0)
    kp, kd, ks = jax.random.split(key, 3)

    B, C, H, W = 4, 8, 16, 16          # Bb=2 per step -> grid=(2,) (both v7x TCs busy)
    params = init_params(kp, C)

    DF = jax.random.normal(kd, (B, C, H, W), jnp.float32)
    SF = jax.random.normal(ks, (B, C, H, W), jnp.float32)

    out = fisaf_forward(params, DF, SF)
    out = jax.block_until_ready(out)

    assert out.shape == (B, C, H, W), out.shape
    assert bool(jnp.all(jnp.isfinite(out)))

    # structural sanity check vs. an independent pure-JAX reference
    ref = fisaf_reference(params, DF, SF)
    num = jnp.sqrt(jnp.sum((out - ref) ** 2))
    den = jnp.sqrt(jnp.sum(ref ** 2)) + 1e-12
    rel = float(num / den)
    maxdiff = float(jnp.max(jnp.abs(out - ref)))
    assert rel < 0.03 and maxdiff < 0.1, (rel, maxdiff)

    print("KERNEL_OK")
</pallas_src>

<mosaic_0001>
module attributes {stable_mosaic.version = 11 : i64} {
  func.func @_fisaf_kernel(%arg0: i32, %arg1: memref<2x8x256xf32, #tpu.memory_space<vmem>>, %arg2: memref<2x8x256xf32, #tpu.memory_space<vmem>>, %arg3: memref<5x32x9xf32, #tpu.memory_space<vmem>>, %arg4: memref<5x32x1xf32, #tpu.memory_space<vmem>>, %arg5: memref<5x16x16xf32, #tpu.memory_space<vmem>>, %arg6: memref<5x16x1xf32, #tpu.memory_space<vmem>>, %arg7: memref<2x8x256xf32, #tpu.memory_space<vmem>>, %arg8: memref<32x768xf32, #tpu.memory_space<vmem>>) attributes {dimension_semantics = [#tpu.dimension_semantics<parallel>], iteration_bounds = array<i64: 2>, scalar_prefetch = 0 : i64, scratch_operands = 1 : i64, tpu.core_type = #tpu.core_type<tc>, window_params = [{transform_indices = @transform_0, window_bounds = array<i64: 2, 8, 256>}, {transform_indices = @transform_1, window_bounds = array<i64: 2, 8, 256>}, {pipeline_mode = #tpu.pipeline_mode<synchronous>, transform_indices = @transform_2, window_bounds = array<i64: 5, 32, 9>}, {pipeline_mode = #tpu.pipeline_mode<synchronous>, transform_indices = @transform_3, window_bounds = array<i64: 5, 32, 1>}, {pipeline_mode = #tpu.pipeline_mode<synchronous>, transform_indices = @transform_4, window_bounds = array<i64: 5, 16, 16>}, {pipeline_mode = #tpu.pipeline_mode<synchronous>, transform_indices = @transform_5, window_bounds = array<i64: 5, 16, 1>}, {transform_indices = @transform_6, window_bounds = array<i64: 2, 8, 256>}]} {
    %cst = arith.constant 0.000000e+00 : f32
    %0 = vector.broadcast %cst : f32 to vector<32x256xf32>
    %c0 = arith.constant 0 : index
    %c0_0 = arith.constant 0 : index
    %1 = vector.load %arg8[%c0, %c0_0] : memref<32x768xf32, #tpu.memory_space<vmem>>, vector<32x256xf32>
    tpu.vector_store %arg8[%c0, %c0_0], %0 {strides = array<i32>} : memref<32x768xf32, #tpu.memory_space<vmem>>, vector<32x256xf32>,
    %c0_1 = arith.constant 0 : index
    %c512 = arith.constant 512 : index
    %2 = vector.load %arg8[%c0_1, %c512] : memref<32x768xf32, #tpu.memory_space<vmem>>, vector<32x256xf32>
    tpu.vector_store %arg8[%c0_1, %c512], %0 {strides = array<i32>} : memref<32x768xf32, #tpu.memory_space<vmem>>, vector<32x256xf32>,
    %3 = tpu.iota {dimensions = array<i32: 1>} : vector<1x256xi32>
    %c15_i32 = arith.constant 15 : i32
    %4 = vector.broadcast %c15_i32 : i32 to vector<1x256xi32>
    %5 = arith.andi %3, %4 : vector<1x256xi32>
    %c0_2 = arith.constant 0 : index
    %c0_3 = arith.constant 0 : index
    %c0_4 = arith.constant 0 : index
    %6 = vector.load %arg2[%c0_2, %c0_3, %c0_4] : memref<2x8x256xf32, #tpu.memory_space<vmem>>, vector<1x8x256xf32>
    %7 = vector.shape_cast %6 : vector<1x8x256xf32> to vector<8x256xf32>
    %c0_5 = arith.constant 0 : index
    %c256 = arith.constant 256 : index
    %8 = vector.load %arg8[%c0_5, %c256] : memref<32x768xf32, #tpu.memory_space<vmem>>, vector<8x256xf32>
    tpu.vector_store %arg8[%c0_5, %c256], %7 {strides = array<i32>} : memref<32x768xf32, #tpu.memory_space<vmem>>, vector<8x256xf32>,
    %c0_6 = arith.constant 0 : index
    %c0_7 = arith.constant 0 : index
    %c0_8 = arith.constant 0 : index
    %9 = vector.load %arg1[%c0_6, %c0_7, %c0_8] : memref<2x8x256xf32, #tpu.memory_space<vmem>>, vector<1x8x256xf32>
    %10 = vector.shape_cast %9 : vector<1x8x256xf32> to vector<8x256xf32>
    %c8 = arith.constant 8 : index
    %c256_9 = arith.constant 256 : index
    %11 = vector.load %arg8[%c8, %c256_9] : memref<32x768xf32, #tpu.memory_space<vmem>>, vector<8x256xf32>
    tpu.vector_store %arg8[%c8, %c256_9], %10 {strides = array<i32>} : memref<32x768xf32, #tpu.memory_space<vmem>>, vector<8x256xf32>,
    %c1 = arith.constant 1 : index
    %c0_10 = arith.constant 0 : index
    %c0_11 = arith.constant 0 : index
    %12 = vector.load %arg2[%c1, %c0_10, %c0_11] : memref<2x8x256xf32, #tpu.memory_space<vmem>>, vector<1x8x256xf32>
    %13 = vector.shape_cast %12 : vector<1x8x256xf32> to vector<8x256xf32>
    %c16 = arith.constant 16 : index
    %c256_12 = arith.constant 256 : index
    %14 = vector.load %arg8[%c16, %c256_12] : memref<32x768xf32, #tpu.memory_space<vmem>>, vector<8x256xf32>
    tpu.vector_store %arg8[%c16, %c256_12], %13 {strides = array<i32>} : memref<32x768xf32, #tpu.memory_space<vmem>>, vector<8x256xf32>,
    %c1_13 = arith.constant 1 : index
    %c0_14 = arith.constant 0 : index
    %c0_15 = arith.constant 0 : index
    %15 = vector.load %arg1[%c1_13, %c0_14, %c0_15] : memref<2x8x256xf32, #tpu.memory_space<vmem>>, vector<1x8x256xf32>
    %16 = vector.shape_cast %15 : vector<1x8x256xf32> to vector<8x256xf32>
    %c24 = arith.constant 24 : index
    %c256_16 = arith.constant 256 : index
    %17 = vector.load %arg8[%c24, %c256_16] : memref<32x768xf32, #tpu.memory_space<vmem>>, vector<8x256xf32>
    tpu.vector_store %arg8[%c24, %c256_16], %16 {strides = array<i32>} : memref<32x768xf32, #tpu.memory_space<vmem>>, vector<8x256xf32>,
    %c0_17 = arith.constant 0 : index
    %c0_18 = arith.constant 0 : index
    %c0_19 = arith.constant 0 : index
    %18 = vector.load %arg3[%c0_17, %c0_18, %c0_19] : memref<5x32x9xf32, #tpu.memory_space<vmem>>, vector<1x32x9xf32>
    %19 = vector.shape_cast %18 : vector<1x32x9xf32> to vector<32x9xf32>
    %c0_20 = arith.constant 0 : index
    %c0_21 = arith.constant 0 : index
    %c0_22 = arith.constant 0 : index
    %20 = vector.load %arg4[%c0_20, %c0_21, %c0_22] : memref<5x32x1xf32, #tpu.memory_space<vmem>>, vector<1x32x1xf32>
    %21 = vector.shape_cast %20 : vector<1x32x1xf32> to vector<32x1xf32>
    %c8_i32 = arith.constant 8 : i32
    %22 = vector.broadcast %c8_i32 : i32 to vector<1x256xi32>
    %23 = arith.cmpi sge, %5, %22 : vector<1x256xi32>
    %24 = arith.extui %23 : vector<1x256xi1> to vector<1x256xi32>
    %25 = arith.sitofp %24 : vector<1x256xi32> to vector<1x256xf32>
    %c8_i32_23 = arith.constant 8 : i32
    %26 = vector.broadcast %c8_i32_23 : i32 to vector<1x256xi32>
    %27 = arith.cmpi slt, %5, %26 : vector<1x256xi32>
    %28 = arith.extui %27 : vector<1x256xi1> to vector<1x256xi32>
    %29 = arith.sitofp %28 : vector<1x256xi32> to vector<1x256xf32>
    %cst_24 = arith.constant 0.000000e+00 : f32
    %30 = vector.broadcast %cst_24 : f32 to vector<32x256xf32>
    %c0_25 = arith.constant 0 : index
    %c120 = arith.constant 120 : index
    %31 = vector.load %arg8[%c0_25, %c120] : memref<32x768xf32, #tpu.memory_space<vmem>>, vector<32x256xf32>
    %32 = vector.broadcast %25 : vector<1x256xf32> to vector<32x256xf32>
    %33 = arith.mulf %31, %32 : vector<32x256xf32>
    %34 = vector.extract_strided_slice %19 {offsets = [0, 0], sizes = [32, 1], strides = [1, 1]} : vector<32x9xf32> to vector<32x1xf32>
    %35 = vector.broadcast %34 : vector<32x1xf32> to vector<32x256xf32>
    %36 = arith.mulf %33, %35 : vector<32x256xf32>
    %37 = arith.addf %30, %36 : vector<32x256xf32>
    %c0_26 = arith.constant 0 : index
    %c128 = arith.constant 128 : index
    %38 = vector.load %arg8[%c0_26, %c128] : memref<32x768xf32, #tpu.memory_space<vmem>>, vector<32x256xf32>
    %39 = vector.extract_strided_slice %19 {offsets = [0, 1], sizes = [32, 1], strides = [1, 1]} : vector<32x9xf32> to vector<32x1xf32>
    %40 = vector.broadcast %39 : vector<32x1xf32> to vector<32x256xf32>
    %41 = arith.mulf %38, %40 : vector<32x256xf32>
    %42 = arith.addf %37, %41 : vector<32x256xf32>
    %c0_27 = arith.constant 0 : index
    %c136 = arith.constant 136 : index
    %43 = vector.load %arg8[%c0_27, %c136] : memref<32x768xf32, #tpu.memory_space<vmem>>, vector<32x256xf32>
    %44 = vector.broadcast %29 : vector<1x256xf32> to vector<32x256xf32>
    %45 = arith.mulf %43, %44 : vector<32x256xf32>
    %46 = vector.extract_strided_slice %19 {offsets = [0, 2], sizes = [32, 1], strides = [1, 1]} : vector<32x9xf32> to vector<32x1xf32>
    %47 = vector.broadcast %46 : vector<32x1xf32> to vector<32x256xf32>
    %48 = arith.mulf %45, %47 : vector<32x256xf32>
    %49 = arith.addf %42, %48 : vector<32x256xf32>
    %c0_28 = arith.constant 0 : index
    %c248 = arith.constant 248 : index
    %50 = vector.load %arg8[%c0_28, %c248] : memref<32x768xf32, #tpu.memory_space<vmem>>, vector<32x256xf32>
    %51 = vector.broadcast %25 : vector<1x256xf32> to vector<32x256xf32>
    %52 = arith.mulf %50, %51 : vector<32x256xf32>
    %53 = vector.extract_strided_slice %19 {offsets = [0, 3], sizes = [32, 1], strides = [1, 1]} : vector<32x9xf32> to vector<32x1xf32>
    %54 = vector.broadcast %53 : vector<32x1xf32> to vector<32x256xf32>
    %55 = arith.mulf %52, %54 : vector<32x256xf32>
    %56 = arith.addf %49, %55 : vector<32x256xf32>
    %c0_29 = arith.constant 0 : index
    %c256_30 = arith.constant 256 : index
    %57 = vector.load %arg8[%c0_29, %c256_30] : memref<32x768xf32, #tpu.memory_space<vmem>>, vector<32x256xf32>
    %58 = vector.extract_strided_slice %19 {offsets = [0, 4], sizes = [32, 1], strides = [1, 1]} : vector<32x9xf32> to vector<32x1xf32>
    %59 = vector.broadcast %58 : vector<32x1xf32> to vector<32x256xf32>
    %60 = arith.mulf %57, %59 : vector<32x256xf32>
    %61 = arith.addf %56, %60 : vector<32x256xf32>
    %c0_31 = arith.constant 0 : index
    %c264 = arith.constant 264 : index
    %62 = vector.load %arg8[%c0_31, %c264] : memref<32x768xf32, #tpu.memory_space<vmem>>, vector<32x256xf32>
    %63 = vector.broadcast %29 : vector<1x256xf32> to vector<32x256xf32>
    %64 = arith.mulf %62, %63 : vector<32x256xf32>
    %65 = vector.extract_strided_slice %19 {offsets = [0, 5], sizes = [32, 1], strides = [1, 1]} : vector<32x9xf32> to vector<32x1xf32>
    %66 = vector.broadcast %65 : vector<32x1xf32> to vector<32x256xf32>
    %67 = arith.mulf %64, %66 : vector<32x256xf32>
    %68 = arith.addf %61, %67 : vector<32x256xf32>
    %c0_32 = arith.constant 0 : index
    %c376 = arith.constant 376 : index
    %69 = vector.load %arg8[%c0_32, %c376] : memref<32x768xf32, #tpu.memory_space<vmem>>, vector<32x256xf32>
    %70 = vector.broadcast %25 : vector<1x256xf32> to vector<32x256xf32>
    %71 = arith.mulf %69, %70 : vector<32x256xf32>
    %72 = vector.extract_strided_slice %19 {offsets = [0, 6], sizes = [32, 1], strides = [1, 1]} : vector<32x9xf32> to vector<32x1xf32>
    %73 = vector.broadcast %72 : vector<32x1xf32> to vector<32x256xf32>
    %74 = arith.mulf %71, %73 : vector<32x256xf32>
    %75 = arith.addf %68, %74 : vector<32x256xf32>
    %c0_33 = arith.constant 0 : index
    %c384 = arith.constant 384 : index
    %76 = vector.load %arg8[%c0_33, %c384] : memref<32x768xf32, #tpu.memory_space<vmem>>, vector<32x256xf32>
    %77 = vector.extract_strided_slice %19 {offsets = [0, 7], sizes = [32, 1], strides = [1, 1]} : vector<32x9xf32> to vector<32x1xf32>
    %78 = vector.broadcast %77 : vector<32x1xf32> to vector<32x256xf32>
    %79 = arith.mulf %76, %78 : vector<32x256xf32>
    %80 = arith.addf %75, %79 : vector<32x256xf32>
    %c0_34 = arith.constant 0 : index
    %c392 = arith.constant 392 : index
    %81 = vector.load %arg8[%c0_34, %c392] : memref<32x768xf32, #tpu.memory_space<vmem>>, vector<32x256xf32>
    %82 = vector.broadcast %29 : vector<1x256xf32> to vector<32x256xf32>
    %83 = arith.mulf %81, %82 : vector<32x256xf32>
    %84 = vector.extract_strided_slice %19 {offsets = [0, 8], sizes = [32, 1], strides = [1, 1]} : vector<32x9xf32> to vector<32x1xf32>
    %85 = vector.broadcast %84 : vector<32x1xf32> to vector<32x256xf32>
    %86 = arith.mulf %83, %85 : vector<32x256xf32>
    %87 = arith.addf %80, %86 : vector<32x256xf32>
    %88 = vector.broadcast %21 : vector<32x1xf32> to vector<32x256xf32>
    %89 = arith.addf %87, %88 : vector<32x256xf32>
    %cst_35 = arith.constant 0.000000e+00 : f32
    %90 = vector.broadcast %cst_35 : f32 to vector<32x256xf32>
    %91 = arith.maximumf %89, %90 : vector<32x256xf32>
    %c0_36 = arith.constant 0 : index
    %c0_37 = arith.constant 0 : index
    %c0_38 = arith.constant 0 : index
    %92 = vector.load %arg5[%c0_36, %c0_37, %c0_38] : memref<5x16x16xf32, #tpu.memory_space<vmem>>, vector<1x16x16xf32>
    %93 = vector.shape_cast %92 : vector<1x16x16xf32> to vector<16x16xf32>
    %c0_39 = arith.constant 0 : index
    %c0_40 = arith.constant 0 : index
    %c0_41 = arith.constant 0 : index
    %94 = vector.load %arg6[%c0_39, %c0_40, %c0_41] : memref<5x16x1xf32, #tpu.memory_space<vmem>>, vector<1x16x1xf32>
    %95 = vector.shape_cast %94 : vector<1x16x1xf32> to vector<16x1xf32>
    %96 = vector.extract_strided_slice %91 {offsets = [0, 0], sizes = [16, 256], strides = [1, 1]} : vector<32x256xf32> to vector<16x256xf32>
    %cst_42 = arith.constant dense<0.000000e+00> : vector<16x256xf32>
    %97 = tpu.matmul %93, %96, %cst_42 {dimension_numbers = #tpu.dot_dimension_numbers<[1], [0], [0], [1], [0, 0, 1, 1], [], []>} : vector<16x16xf32>, vector<16x256xf32>, vector<16x256xf32> -> vector<16x256xf32>
    %98 = vector.broadcast %95 : vector<16x1xf32> to vector<16x256xf32>
    %99 = arith.addf %97, %98 : vector<16x256xf32>
    %cst_43 = arith.constant 0.000000e+00 : f32
    %100 = vector.broadcast %cst_43 : f32 to vector<16x256xf32>
    %101 = arith.maximumf %99, %100 : vector<16x256xf32>
    %102 = vector.extract_strided_slice %91 {offsets = [16, 0], sizes = [16, 256], strides = [1, 1]} : vector<32x256xf32> to vector<16x256xf32>
    %cst_44 = arith.constant dense<0.000000e+00> : vector<16x256xf32>
    %103 = tpu.matmul %93, %102, %cst_44 {dimension_numbers = #tpu.dot_dimension_numbers<[1], [0], [0], [1], [0, 0, 1, 1], [], []>} : vector<16x16xf32>, vector<16x256xf32>, vector<16x256xf32> -> vector<16x256xf32>
    %104 = vector.broadcast %95 : vector<16x1xf32> to vector<16x256xf32>
    %105 = arith.addf %103, %104 : vector<16x256xf32>
    %cst_45 = arith.constant 0.000000e+00 : f32
    %106 = vector.broadcast %cst_45 : f32 to vector<16x256xf32>
    %107 = arith.maximumf %105, %106 : vector<16x256xf32>
    %c0_46 = arith.constant 0 : index
    %c256_47 = arith.constant 256 : index
    %108 = vector.load %arg8[%c0_46, %c256_47] : memref<32x768xf32, #tpu.memory_space<vmem>>, vector<16x256xf32>
    tpu.vector_store %arg8[%c0_46, %c256_47], %101 {strides = array<i32>} : memref<32x768xf32, #tpu.memory_space<vmem>>, vector<16x256xf32>,
    %c16_48 = arith.constant 16 : index
    %c256_49 = arith.constant 256 : index
    %109 = vector.load %arg8[%c16_48, %c256_49] : memref<32x768xf32, #tpu.memory_space<vmem>>, vector<16x256xf32>
    tpu.vector_store %arg8[%c16_48, %c256_49], %107 {strides = array<i32>} : memref<32x768xf32, #tpu.memory_space<vmem>>, vector<16x256xf32>,
    %c1_50 = arith.constant 1 : index
    %c0_51 = arith.constant 0 : index
    %c0_52 = arith.constant 0 : index
    %110 = vector.load %arg3[%c1_50, %c0_51, %c0_52] : memref<5x32x9xf32, #tpu.memory_space<vmem>>, vector<1x32x9xf32>
    %111 = vector.shape_cast %110 : vector<1x32x9xf32> to vector<32x9xf32>
    %c1_53 = arith.constant 1 : index
    %c0_54 = arith.constant 0 : index
    %c0_55 = arith.constant 0 : index
    %112 = vector.load %arg4[%c1_53, %c0_54, %c0_55] : memref<5x32x1xf32, #tpu.memory_space<vmem>>, vector<1x32x1xf32>
    %113 = vector.shape_cast %112 : vector<1x32x1xf32> to vector<32x1xf32>
    %c4_i32 = arith.constant 4 : i32
    %114 = vector.broadcast %c4_i32 : i32 to vector<1x256xi32>
    %115 = arith.cmpi sge, %5, %114 : vector<1x256xi32>
    %116 = arith.extui %115 : vector<1x256xi1> to vector<1x256xi32>
    %117 = arith.sitofp %116 : vector<1x256xi32> to vector<1x256xf32>
    %c12_i32 = arith.constant 12 : i32
    %118 = vector.broadcast %c12_i32 : i32 to vector<1x256xi32>
    %119 = arith.cmpi slt, %5, %118 : vector<1x256xi32>
    %120 = arith.extui %119 : vector<1x256xi1> to vector<1x256xi32>
    %121 = arith.sitofp %120 : vector<1x256xi32> to vector<1x256xf32>
    %cst_56 = arith.constant 0.000000e+00 : f32
    %122 = vector.broadcast %cst_56 : f32 to vector<32x256xf32>
    %c0_57 = arith.constant 0 : index
    %c188 = arith.constant 188 : index
    %123 = vector.load %arg8[%c0_57, %c188] : memref<32x768xf32, #tpu.memory_space<vmem>>, vector<32x256xf32>
    %124 = vector.broadcast %117 : vector<1x256xf32> to vector<32x256xf32>
    %125 = arith.mulf %123, %124 : vector<32x256xf32>
    %126 = vector.extract_strided_slice %111 {offsets = [0, 0], sizes = [32, 1], strides = [1, 1]} : vector<32x9xf32> to vector<32x1xf32>
    %127 = vector.broadcast %126 : vector<32x1xf32> to vector<32x256xf32>
    %128 = arith.mulf %125, %127 : vector<32x256xf32>
    %129 = arith.addf %122, %128 : vector<32x256xf32>
    %c0_58 = arith.constant 0 : index
    %c192 = arith.constant 192 : index
    %130 = vector.load %arg8[%c0_58, %c192] : memref<32x768xf32, #tpu.memory_space<vmem>>, vector<32x256xf32>
    %131 = vector.extract_strided_slice %111 {offsets = [0, 1], sizes = [32, 1], strides = [1, 1]} : vector<32x9xf32> to vector<32x1xf32>
    %132 = vector.broadcast %131 : vector<32x1xf32> to vector<32x256xf32>
    %133 = arith.mulf %130, %132 : vector<32x256xf32>
    %134 = arith.addf %129, %133 : vector<32x256xf32>
    %c0_59 = arith.constant 0 : index
    %c196 = arith.constant 196 : index
    %135 = vector.load %arg8[%c0_59, %c196] : memref<32x768xf32, #tpu.memory_space<vmem>>, vector<32x256xf32>
    %136 = vector.broadcast %121 : vector<1x256xf32> to vector<32x256xf32>
    %137 = arith.mulf %135, %136 : vector<32x256xf32>
    %138 = vector.extract_strided_slice %111 {offsets = [0, 2], sizes = [32, 1], strides = [1, 1]} : vector<32x9xf32> to vector<32x1xf32>
    %139 = vector.broadcast %138 : vector<32x1xf32> to vector<32x256xf32>
    %140 = arith.mulf %137, %139 : vector<32x256xf32>
    %141 = arith.addf %134, %140 : vector<32x256xf32>
    %c0_60 = arith.constant 0 : index
    %c252 = arith.constant 252 : index
    %142 = vector.load %arg8[%c0_60, %c252] : memref<32x768xf32, #tpu.memory_space<vmem>>, vector<32x256xf32>
    %143 = vector.broadcast %117 : vector<1x256xf32> to vector<32x256xf32>
    %144 = arith.mulf %142, %143 : vector<32x256xf32>
    %145 = vector.extract_strided_slice %111 {offsets = [0, 3], sizes = [32, 1], strides = [1, 1]} : vector<32x9xf32> to vector<32x1xf32>
    %146 = vector.broadcast %145 : vector<32x1xf32> to vector<32x256xf32>
    %147 = arith.mulf %144, %146 : vector<32x256xf32>
    %148 = arith.addf %141, %147 : vector<32x256xf32>
    %c0_61 = arith.constant 0 : index
    %c256_62 = arith.constant 256 : index
    %149 = vector.load %arg8[%c0_61, %c256_62] : memref<32x768xf32, #tpu.memory_space<vmem>>, vector<32x256xf32>
    %150 = vector.extract_strided_slice %111 {offsets = [0, 4], sizes = [32, 1], strides = [1, 1]} : vector<32x9xf32> to vector<32x1xf32>
    %151 = vector.broadcast %150 : vector<32x1xf32> to vector<32x256xf32>
    %152 = arith.mulf %149, %151 : vector<32x256xf32>
    %153 = arith.addf %148, %152 : vector<32x256xf32>
    %c0_63 = arith.constant 0 : index
    %c260 = arith.constant 260 : index
    %154 = vector.load %arg8[%c0_63, %c260] : memref<32x768xf32, #tpu.memory_space<vmem>>, vector<32x256xf32>
    %155 = vector.broadcast %121 : vector<1x256xf32> to vector<32x256xf32>
    %156 = arith.mulf %154, %155 : vector<32x256xf32>
    %157 = vector.extract_strided_slice %111 {offsets = [0, 5], sizes = [32, 1], strides = [1, 1]} : vector<32x9xf32> to vector<32x1xf32>
    %158 = vector.broadcast %157 : vector<32x1xf32> to vector<32x256xf32>
    %159 = arith.mulf %156, %158 : vector<32x256xf32>
    %160 = arith.addf %153, %159 : vector<32x256xf32>
    %c0_64 = arith.constant 0 : index
    %c316 = arith.constant 316 : index
    %161 = vector.load %arg8[%c0_64, %c316] : memref<32x768xf32, #tpu.memory_space<vmem>>, vector<32x256xf32>
    %162 = vector.broadcast %117 : vector<1x256xf32> to vector<32x256xf32>
    %163 = arith.mulf %161, %162 : vector<32x256xf32>
    %164 = vector.extract_strided_slice %111 {offsets = [0, 6], sizes = [32, 1], strides = [1, 1]} : vector<32x9xf32> to vector<32x1xf32>
    %165 = vector.broadcast %164 : vector<32x1xf32> to vector<32x256xf32>
    %166 = arith.mulf %163, %165 : vector<32x256xf32>
    %167 = arith.addf %160, %166 : vector<32x256xf32>
    %c0_65 = arith.constant 0 : index
    %c320 = arith.constant 320 : index
    %168 = vector.load %arg8[%c0_65, %c320] : memref<32x768xf32, #tpu.memory_space<vmem>>, vector<32x256xf32>
    %169 = vector.extract_strided_slice %111 {offsets = [0, 7], sizes = [32, 1], strides = [1, 1]} : vector<32x9xf32> to vector<32x1xf32>
    %170 = vector.broadcast %169 : vector<32x1xf32> to vector<32x256xf32>
    %171 = arith.mulf %168, %170 : vector<32x256xf32>
    %172 = arith.addf %167, %171 : vector<32x256xf32>
    %c0_66 = arith.constant 0 : index
    %c324 = arith.constant 324 : index
    %173 = vector.load %arg8[%c0_66, %c324] : memref<32x768xf32, #tpu.memory_space<vmem>>, vector<32x256xf32>
    %174 = vector.broadcast %121 : vector<1x256xf32> to vector<32x256xf32>
    %175 = arith.mulf %173, %174 : vector<32x256xf32>
    %176 = vector.extract_strided_slice %111 {offsets = [0, 8], sizes = [32, 1], strides = [1, 1]} : vector<32x9xf32> to vector<32x1xf32>
    %177 = vector.broadcast %176 : vector<32x1xf32> to vector<32x256xf32>
    %178 = arith.mulf %175, %177 : vector<32x256xf32>
    %179 = arith.addf %172, %178 : vector<32x256xf32>
    %180 = vector.broadcast %113 : vector<32x1xf32> to vector<32x256xf32>
    %181 = arith.addf %179, %180 : vector<32x256xf32>
    %cst_67 = arith.constant 0.000000e+00 : f32
    %182 = vector.broadcast %cst_67 : f32 to vector<32x256xf32>
    %183 = arith.maximumf %181, %182 : vector<32x256xf32>
    %c1_68 = arith.constant 1 : index
    %c0_69 = arith.constant 0 : index
    %c0_70 = arith.constant 0 : index
    %184 = vector.load %arg5[%c1_68, %c0_69, %c0_70] : memref<5x16x16xf32, #tpu.memory_space<vmem>>, vector<1x16x16xf32>
    %185 = vector.shape_cast %184 : vector<1x16x16xf32> to vector<16x16xf32>
    %c1_71 = arith.constant 1 : index
    %c0_72 = arith.constant 0 : index
    %c0_73 = arith.constant 0 : index
    %186 = vector.load %arg6[%c1_71, %c0_72, %c0_73] : memref<5x16x1xf32, #tpu.memory_space<vmem>>, vector<1x16x1xf32>
    %187 = vector.shape_cast %186 : vector<1x16x1xf32> to vector<16x1xf32>
    %188 = vector.extract_strided_slice %183 {offsets = [0, 0], sizes = [16, 256], strides = [1, 1]} : vector<32x256xf32> to vector<16x256xf32>
    %cst_74 = arith.constant dense<0.000000e+00> : vector<16x256xf32>
    %189 = tpu.matmul %185, %188, %cst_74 {dimension_numbers = #tpu.dot_dimension_numbers<[1], [0], [0], [1], [0, 0, 1, 1], [], []>} : vector<16x16xf32>, vector<16x256xf32>, vector<16x256xf32> -> vector<16x256xf32>
    %190 = vector.broadcast %187 : vector<16x1xf32> to vector<16x256xf32>
    %191 = arith.addf %189, %190 : vector<16x256xf32>
    %cst_75 = arith.constant 0.000000e+00 : f32
    %192 = vector.broadcast %cst_75 : f32 to vector<16x256xf32>
    %193 = arith.maximumf %191, %192 : vector<16x256xf32>
    %194 = vector.extract_strided_slice %183 {offsets = [16, 0], sizes = [16, 256], strides = [1, 1]} : vector<32x256xf32> to vector<16x256xf32>
    %cst_76 = arith.constant dense<0.000000e+00> : vector<16x256xf32>
    %195 = tpu.matmul %185, %194, %cst_76 {dimension_numbers = #tpu.dot_dimension_numbers<[1], [0], [0], [1], [0, 0, 1, 1], [], []>} : vector<16x16xf32>, vector<16x256xf32>, vector<16x256xf32> -> vector<16x256xf32>
    %196 = vector.broadcast %187 : vector<16x1xf32> to vector<16x256xf32>
    %197 = arith.addf %195, %196 : vector<16x256xf32>
    %cst_77 = arith.constant 0.000000e+00 : f32
    %198 = vector.broadcast %cst_77 : f32 to vector<16x256xf32>
    %199 = arith.maximumf %197, %198 : vector<16x256xf32>
    %c0_78 = arith.constant 0 : index
    %c256_79 = arith.constant 256 : index
    %200 = vector.load %arg8[%c0_78, %c256_79] : memref<32x768xf32, #tpu.memory_space<vmem>>, vector<16x256xf32>
    tpu.vector_store %arg8[%c0_78, %c256_79], %193 {strides = array<i32>} : memref<32x768xf32, #tpu.memory_space<vmem>>, vector<16x256xf32>,
    %c16_80 = arith.constant 16 : index
    %c256_81 = arith.constant 256 : index
    %201 = vector.load %arg8[%c16_80, %c256_81] : memref<32x768xf32, #tpu.memory_space<vmem>>, vector<16x256xf32>
    tpu.vector_store %arg8[%c16_80, %c256_81], %199 {strides = array<i32>} : memref<32x768xf32, #tpu.memory_space<vmem>>, vector<16x256xf32>,
    %c2 = arith.constant 2 : index
    %c0_82 = arith.constant 0 : index
    %c0_83 = arith.constant 0 : index
    %202 = vector.load %arg3[%c2, %c0_82, %c0_83] : memref<5x32x9xf32, #tpu.memory_space<vmem>>, vector<1x32x9xf32>
    %203 = vector.shape_cast %202 : vector<1x32x9xf32> to vector<32x9xf32>
    %c2_84 = arith.constant 2 : index
    %c0_85 = arith.constant 0 : index
    %c0_86 = arith.constant 0 : index
    %204 = vector.load %arg4[%c2_84, %c0_85, %c0_86] : memref<5x32x1xf32, #tpu.memory_space<vmem>>, vector<1x32x1xf32>
    %205 = vector.shape_cast %204 : vector<1x32x1xf32> to vector<32x1xf32>
    %c2_i32 = arith.constant 2 : i32
    %206 = vector.broadcast %c2_i32 : i32 to vector<1x256xi32>
    %207 = arith.cmpi sge, %5, %206 : vector<1x256xi32>
    %208 = arith.extui %207 : vector<1x256xi1> to vector<1x256xi32>
    %209 = arith.sitofp %208 : vector<1x256xi32> to vector<1x256xf32>
    %c14_i32 = arith.constant 14 : i32
    %210 = vector.broadcast %c14_i32 : i32 to vector<1x256xi32>
    %211 = arith.cmpi slt, %5, %210 : vector<1x256xi32>
    %212 = arith.extui %211 : vector<1x256xi1> to vector<1x256xi32>
    %213 = arith.sitofp %212 : vector<1x256xi32> to vector<1x256xf32>
    %cst_87 = arith.constant 0.000000e+00 : f32
    %214 = vector.broadcast %cst_87 : f32 to vector<32x256xf32>
    %c0_88 = arith.constant 0 : index
    %c222 = arith.constant 222 : index
    %215 = vector.load %arg8[%c0_88, %c222] : memref<32x768xf32, #tpu.memory_space<vmem>>, vector<32x256xf32>
    %216 = vector.broadcast %209 : vector<1x256xf32> to vector<32x256xf32>
    %217 = arith.mulf %215, %216 : vector<32x256xf32>
    %218 = vector.extract_strided_slice %203 {offsets = [0, 0], sizes = [32, 1], strides = [1, 1]} : vector<32x9xf32> to vector<32x1xf32>
    %219 = vector.broadcast %218 : vector<32x1xf32> to vector<32x256xf32>
    %220 = arith.mulf %217, %219 : vector<32x256xf32>
    %221 = arith.addf %214, %220 : vector<32x256xf32>
    %c0_89 = arith.constant 0 : index
    %c224 = arith.constant 224 : index
    %222 = vector.load %arg8[%c0_89, %c224] : memref<32x768xf32, #tpu.memory_space<vmem>>, vector<32x256xf32>
    %223 = vector.extract_strided_slice %203 {offsets = [0, 1], sizes = [32, 1], strides = [1, 1]} : vector<32x9xf32> to vector<32x1xf32>
    %224 = vector.broadcast %223 : vector<32x1xf32> to vector<32x256xf32>
    %225 = arith.mulf %222, %224 : vector<32x256xf32>
    %226 = arith.addf %221, %225 : vector<32x256xf32>
    %c0_90 = arith.constant 0 : index
    %c226 = arith.constant 226 : index
    %227 = vector.load %arg8[%c0_90, %c226] : memref<32x768xf32, #tpu.memory_space<vmem>>, vector<32x256xf32>
    %228 = vector.broadcast %213 : vector<1x256xf32> to vector<32x256xf32>
    %229 = arith.mulf %227, %228 : vector<32x256xf32>
    %230 = vector.extract_strided_slice %203 {offsets = [0, 2], sizes = [32, 1], strides = [1, 1]} : vector<32x9xf32> to vector<32x1xf32>
    %231 = vector.broadcast %230 : vector<32x1xf32> to vector<32x256xf32>
    %232 = arith.mulf %229, %231 : vector<32x256xf32>
    %233 = arith.addf %226, %232 : vector<32x256xf32>
    %c0_91 = arith.constant 0 : index
    %c254 = arith.constant 254 : index
    %234 = vector.load %arg8[%c0_91, %c254] : memref<32x768xf32, #tpu.memory_space<vmem>>, vector<32x256xf32>
    %235 = vector.broadcast %209 : vector<1x256xf32> to vector<32x256xf32>
    %236 = arith.mulf %234, %235 : vector<32x256xf32>
    %237 = vector.extract_strided_slice %203 {offsets = [0, 3], sizes = [32, 1], strides = [1, 1]} : vector<32x9xf32> to vector<32x1xf32>
    %238 = vector.broadcast %237 : vector<32x1xf32> to vector<32x256xf32>
    %239 = arith.mulf %236, %238 : vector<32x256xf32>
    %240 = arith.addf %233, %239 : vector<32x256xf32>
    %c0_92 = arith.constant 0 : index
    %c256_93 = arith.constant 256 : index
    %241 = vector.load %arg8[%c0_92, %c256_93] : memref<32x768xf32, #tpu.memory_space<vmem>>, vector<32x256xf32>
    %242 = vector.extract_strided_slice %203 {offsets = [0, 4], sizes = [32, 1], strides = [1, 1]} : vector<32x9xf32> to vector<32x1xf32>
    %243 = vector.broadcast %242 : vector<32x1xf32> to vector<32x256xf32>
    %244 = arith.mulf %241, %243 : vector<32x256xf32>
    %245 = arith.addf %240, %244 : vector<32x256xf32>
    %c0_94 = arith.constant 0 : index
    %c258 = arith.constant 258 : index
    %246 = vector.load %arg8[%c0_94, %c258] : memref<32x768xf32, #tpu.memory_space<vmem>>, vector<32x256xf32>
    %247 = vector.broadcast %213 : vector<1x256xf32> to vector<32x256xf32>
    %248 = arith.mulf %246, %247 : vector<32x256xf32>
    %249 = vector.extract_strided_slice %203 {offsets = [0, 5], sizes = [32, 1], strides = [1, 1]} : vector<32x9xf32> to vector<32x1xf32>
    %250 = vector.broadcast %249 : vector<32x1xf32> to vector<32x256xf32>
    %251 = arith.mulf %248, %250 : vector<32x256xf32>
    %252 = arith.addf %245, %251 : vector<32x256xf32>
    %c0_95 = arith.constant 0 : index
    %c286 = arith.constant 286 : index
    %253 = vector.load %arg8[%c0_95, %c286] : memref<32x768xf32, #tpu.memory_space<vmem>>, vector<32x256xf32>
    %254 = vector.broadcast %209 : vector<1x256xf32> to vector<32x256xf32>
    %255 = arith.mulf %253, %254 : vector<32x256xf32>
    %256 = vector.extract_strided_slice %203 {offsets = [0, 6], sizes = [32, 1], strides = [1, 1]} : vector<32x9xf32> to vector<32x1xf32>
    %257 = vector.broadcast %256 : vector<32x1xf32> to vector<32x256xf32>
    %258 = arith.mulf %255, %257 : vector<32x256xf32>
    %259 = arith.addf %252, %258 : vector<32x256xf32>
    %c0_96 = arith.constant 0 : index
    %c288 = arith.constant 288 : index
    %260 = vector.load %arg8[%c0_96, %c288] : memref<32x768xf32, #tpu.memory_space<vmem>>, vector<32x256xf32>
    %261 = vector.extract_strided_slice %203 {offsets = [0, 7], sizes = [32, 1], strides = [1, 1]} : vector<32x9xf32> to vector<32x1xf32>
    %262 = vector.broadcast %261 : vector<32x1xf32> to vector<32x256xf32>
    %263 = arith.mulf %260, %262 : vector<32x256xf32>
    %264 = arith.addf %259, %263 : vector<32x256xf32>
    %c0_97 = arith.constant 0 : index
    %c290 = arith.constant 290 : index
    %265 = vector.load %arg8[%c0_97, %c290] : memref<32x768xf32, #tpu.memory_space<vmem>>, vector<32x256xf32>
    %266 = vector.broadcast %213 : vector<1x256xf32> to vector<32x256xf32>
    %267 = arith.mulf %265, %266 : vector<32x256xf32>
    %268 = vector.extract_strided_slice %203 {offsets = [0, 8], sizes = [32, 1], strides = [1, 1]} : vector<32x9xf32> to vector<32x1xf32>
    %269 = vector.broadcast %268 : vector<32x1xf32> to vector<32x256xf32>
    %270 = arith.mulf %267, %269 : vector<32x256xf32>
    %271 = arith.addf %264, %270 : vector<32x256xf32>
    %272 = vector.broadcast %205 : vector<32x1xf32> to vector<32x256xf32>
    %273 = arith.addf %271, %272 : vector<32x256xf32>
    %cst_98 = arith.constant 0.000000e+00 : f32
    %274 = vector.broadcast %cst_98 : f32 to vector<32x256xf32>
    %275 = arith.maximumf %273, %274 : vector<32x256xf32>
    %c2_99 = arith.constant 2 : index
    %c0_100 = arith.constant 0 : index
    %c0_101 = arith.constant 0 : index
    %276 = vector.load %arg5[%c2_99, %c0_100, %c0_101] : memref<5x16x16xf32, #tpu.memory_space<vmem>>, vector<1x16x16xf32>
    %277 = vector.shape_cast %276 : vector<1x16x16xf32> to vector<16x16xf32>
    %c2_102 = arith.constant 2 : index
    %c0_103 = arith.constant 0 : index
    %c0_104 = arith.constant 0 : index
    %278 = vector.load %arg6[%c2_102, %c0_103, %c0_104] : memref<5x16x1xf32, #tpu.memory_space<vmem>>, vector<1x16x1xf32>
    %279 = vector.shape_cast %278 : vector<1x16x1xf32> to vector<16x1xf32>
    %280 = vector.extract_strided_slice %275 {offsets = [0, 0], sizes = [16, 256], strides = [1, 1]} : vector<32x256xf32> to vector<16x256xf32>
    %cst_105 = arith.constant dense<0.000000e+00> : vector<16x256xf32>
    %281 = tpu.matmul %277, %280, %cst_105 {dimension_numbers = #tpu.dot_dimension_numbers<[1], [0], [0], [1], [0, 0, 1, 1], [], []>} : vector<16x16xf32>, vector<16x256xf32>, vector<16x256xf32> -> vector<16x256xf32>
    %282 = vector.broadcast %279 : vector<16x1xf32> to vector<16x256xf32>
    %283 = arith.addf %281, %282 : vector<16x256xf32>
    %cst_106 = arith.constant 0.000000e+00 : f32
    %284 = vector.broadcast %cst_106 : f32 to vector<16x256xf32>
    %285 = arith.maximumf %283, %284 : vector<16x256xf32>
    %286 = arith.negf %285 : vector<16x256xf32>
    %287 = math.exp %286 : vector<16x256xf32>
    %cst_107 = arith.constant 1.000000e+00 : f32
    %288 = vector.broadcast %cst_107 : f32 to vector<16x256xf32>
    %289 = arith.addf %288, %287 : vector<16x256xf32>
    %290 = arith.divf %288, %289 : vector<16x256xf32>
    %291 = vector.extract_strided_slice %275 {offsets = [16, 0], sizes = [16, 256], strides = [1, 1]} : vector<32x256xf32> to vector<16x256xf32>
    %cst_108 = arith.constant dense<0.000000e+00> : vector<16x256xf32>
    %292 = tpu.matmul %277, %291, %cst_108 {dimension_numbers = #tpu.dot_dimension_numbers<[1], [0], [0], [1], [0, 0, 1, 1], [], []>} : vector<16x16xf32>, vector<16x256xf32>, vector<16x256xf32> -> vector<16x256xf32>
    %293 = vector.broadcast %279 : vector<16x1xf32> to vector<16x256xf32>
    %294 = arith.addf %292, %293 : vector<16x256xf32>
    %cst_109 = arith.constant 0.000000e+00 : f32
    %295 = vector.broadcast %cst_109 : f32 to vector<16x256xf32>
    %296 = arith.maximumf %294, %295 : vector<16x256xf32>
    %297 = arith.negf %296 : vector<16x256xf32>
    %298 = math.exp %297 : vector<16x256xf32>
    %cst_110 = arith.constant 1.000000e+00 : f32
    %299 = vector.broadcast %cst_110 : f32 to vector<16x256xf32>
    %300 = arith.addf %299, %298 : vector<16x256xf32>
    %301 = arith.divf %299, %300 : vector<16x256xf32>
    %c0_111 = arith.constant 0 : index
    %c256_112 = arith.constant 256 : index
    %302 = vector.load %arg8[%c0_111, %c256_112] : memref<32x768xf32, #tpu.memory_space<vmem>>, vector<16x256xf32>
    tpu.vector_store %arg8[%c0_111, %c256_112], %290 {strides = array<i32>} : memref<32x768xf32, #tpu.memory_space<vmem>>, vector<16x256xf32>,
    %c16_113 = arith.constant 16 : index
    %c256_114 = arith.constant 256 : index
    %303 = vector.load %arg8[%c16_113, %c256_114] : memref<32x768xf32, #tpu.memory_space<vmem>>, vector<16x256xf32>
    tpu.vector_store %arg8[%c16_113, %c256_114], %301 {strides = array<i32>} : memref<32x768xf32, #tpu.memory_space<vmem>>, vector<16x256xf32>,
    %c3 = arith.constant 3 : index
    %c0_115 = arith.constant 0 : index
    %c0_116 = arith.constant 0 : index
    %304 = vector.load %arg3[%c3, %c0_115, %c0_116] : memref<5x32x9xf32, #tpu.memory_space<vmem>>, vector<1x32x9xf32>
    %305 = vector.shape_cast %304 : vector<1x32x9xf32> to vector<32x9xf32>
    %c3_117 = arith.constant 3 : index
    %c0_118 = arith.constant 0 : index
    %c0_119 = arith.constant 0 : index
    %306 = vector.load %arg4[%c3_117, %c0_118, %c0_119] : memref<5x32x1xf32, #tpu.memory_space<vmem>>, vector<1x32x1xf32>
    %307 = vector.shape_cast %306 : vector<1x32x1xf32> to vector<32x1xf32>
    %c1_i32 = arith.constant 1 : i32
    %308 = vector.broadcast %c1_i32 : i32 to vector<1x256xi32>
    %309 = arith.cmpi sge, %5, %308 : vector<1x256xi32>
    %310 = arith.extui %309 : vector<1x256xi1> to vector<1x256xi32>
    %311 = arith.sitofp %310 : vector<1x256xi32> to vector<1x256xf32>
    %c15_i32_120 = arith.constant 15 : i32
    %312 = vector.broadcast %c15_i32_120 : i32 to vector<1x256xi32>
    %313 = arith.cmpi slt, %5, %312 : vector<1x256xi32>
    %314 = arith.extui %313 : vector<1x256xi1> to vector<1x256xi32>
    %315 = arith.sitofp %314 : vector<1x256xi32> to vector<1x256xf32>
    %cst_121 = arith.constant 0.000000e+00 : f32
    %316 = vector.broadcast %cst_121 : f32 to vector<32x256xf32>
    %c0_122 = arith.constant 0 : index
    %c239 = arith.constant 239 : index
    %317 = vector.load %arg8[%c0_122, %c239] : memref<32x768xf32, #tpu.memory_space<vmem>>, vector<32x256xf32>
    %318 = vector.broadcast %311 : vector<1x256xf32> to vector<32x256xf32>
    %319 = arith.mulf %317, %318 : vector<32x256xf32>
    %320 = vector.extract_strided_slice %305 {offsets = [0, 0], sizes = [32, 1], strides = [1, 1]} : vector<32x9xf32> to vector<32x1xf32>
    %321 = vector.broadcast %320 : vector<32x1xf32> to vector<32x256xf32>
    %322 = arith.mulf %319, %321 : vector<32x256xf32>
    %323 = arith.addf %316, %322 : vector<32x256xf32>
    %c0_123 = arith.constant 0 : index
    %c240 = arith.constant 240 : index
    %324 = vector.load %arg8[%c0_123, %c240] : memref<32x768xf32, #tpu.memory_space<vmem>>, vector<32x256xf32>
    %325 = vector.extract_strided_slice %305 {offsets = [0, 1], sizes = [32, 1], strides = [1, 1]} : vector<32x9xf32> to vector<32x1xf32>
    %326 = vector.broadcast %325 : vector<32x1xf32> to vector<32x256xf32>
    %327 = arith.mulf %324, %326 : vector<32x256xf32>
    %328 = arith.addf %323, %327 : vector<32x256xf32>
    %c0_124 = arith.constant 0 : index
    %c241 = arith.constant 241 : index
    %329 = vector.load %arg8[%c0_124, %c241] : memref<32x768xf32, #tpu.memory_space<vmem>>, vector<32x256xf32>
    %330 = vector.broadcast %315 : vector<1x256xf32> to vector<32x256xf32>
    %331 = arith.mulf %329, %330 : vector<32x256xf32>
    %332 = vector.extract_strided_slice %305 {offsets = [0, 2], sizes = [32, 1], strides = [1, 1]} : vector<32x9xf32> to vector<32x1xf32>
    %333 = vector.broadcast %332 : vector<32x1xf32> to vector<32x256xf32>
    %334 = arith.mulf %331, %333 : vector<32x256xf32>
    %335 = arith.addf %328, %334 : vector<32x256xf32>
    %c0_125 = arith.constant 0 : index
    %c255 = arith.constant 255 : index
    %336 = vector.load %arg8[%c0_125, %c255] : memref<32x768xf32, #tpu.memory_space<vmem>>, vector<32x256xf32>
    %337 = vector.broadcast %311 : vector<1x256xf32> to vector<32x256xf32>
    %338 = arith.mulf %336, %337 : vector<32x256xf32>
    %339 = vector.extract_strided_slice %305 {offsets = [0, 3], sizes = [32, 1], strides = [1, 1]} : vector<32x9xf32> to vector<32x1xf32>
    %340 = vector.broadcast %339 : vector<32x1xf32> to vector<32x256xf32>
    %341 = arith.mulf %338, %340 : vector<32x256xf32>
    %342 = arith.addf %335, %341 : vector<32x256xf32>
    %c0_126 = arith.constant 0 : index
    %c256_127 = arith.constant 256 : index
    %343 = vector.load %arg8[%c0_126, %c256_127] : memref<32x768xf32, #tpu.memory_space<vmem>>, vector<32x256xf32>
    %344 = vector.extract_strided_slice %305 {offsets = [0, 4], sizes = [32, 1], strides = [1, 1]} : vector<32x9xf32> to vector<32x1xf32>
    %345 = vector.broadcast %344 : vector<32x1xf32> to vector<32x256xf32>
    %346 = arith.mulf %343, %345 : vector<32x256xf32>
    %347 = arith.addf %342, %346 : vector<32x256xf32>
    %c0_128 = arith.constant 0 : index
    %c257 = arith.constant 257 : index
    %348 = vector.load %arg8[%c0_128, %c257] : memref<32x768xf32, #tpu.memory_space<vmem>>, vector<32x256xf32>
    %349 = vector.broadcast %315 : vector<1x256xf32> to vector<32x256xf32>
    %350 = arith.mulf %348, %349 : vector<32x256xf32>
    %351 = vector.extract_strided_slice %305 {offsets = [0, 5], sizes = [32, 1], strides = [1, 1]} : vector<32x9xf32> to vector<32x1xf32>
    %352 = vector.broadcast %351 : vector<32x1xf32> to vector<32x256xf32>
    %353 = arith.mulf %350, %352 : vector<32x256xf32>
    %354 = arith.addf %347, %353 : vector<32x256xf32>
    %c0_129 = arith.constant 0 : index
    %c271 = arith.constant 271 : index
    %355 = vector.load %arg8[%c0_129, %c271] : memref<32x768xf32, #tpu.memory_space<vmem>>, vector<32x256xf32>
    %356 = vector.broadcast %311 : vector<1x256xf32> to vector<32x256xf32>
    %357 = arith.mulf %355, %356 : vector<32x256xf32>
    %358 = vector.extract_strided_slice %305 {offsets = [0, 6], sizes = [32, 1], strides = [1, 1]} : vector<32x9xf32> to vector<32x1xf32>
    %359 = vector.broadcast %358 : vector<32x1xf32> to vector<32x256xf32>
    %360 = arith.mulf %357, %359 : vector<32x256xf32>
    %361 = arith.addf %354, %360 : vector<32x256xf32>
    %c0_130 = arith.constant 0 : index
    %c272 = arith.constant 272 : index
    %362 = vector.load %arg8[%c0_130, %c272] : memref<32x768xf32, #tpu.memory_space<vmem>>, vector<32x256xf32>
    %363 = vector.extract_strided_slice %305 {offsets = [0, 7], sizes = [32, 1], strides = [1, 1]} : vector<32x9xf32> to vector<32x1xf32>
    %364 = vector.broadcast %363 : vector<32x1xf32> to vector<32x256xf32>
    %365 = arith.mulf %362, %364 : vector<32x256xf32>
    %366 = arith.addf %361, %365 : vector<32x256xf32>
    %c0_131 = arith.constant 0 : index
    %c273 = arith.constant 273 : index
    %367 = vector.load %arg8[%c0_131, %c273] : memref<32x768xf32, #tpu.memory_space<vmem>>, vector<32x256xf32>
    %368 = vector.broadcast %315 : vector<1x256xf32> to vector<32x256xf32>
    %369 = arith.mulf %367, %368 : vector<32x256xf32>
    %370 = vector.extract_strided_slice %305 {offsets = [0, 8], sizes = [32, 1], strides = [1, 1]} : vector<32x9xf32> to vector<32x1xf32>
    %371 = vector.broadcast %370 : vector<32x1xf32> to vector<32x256xf32>
    %372 = arith.mulf %369, %371 : vector<32x256xf32>
    %373 = arith.addf %366, %372 : vector<32x256xf32>
    %374 = vector.broadcast %307 : vector<32x1xf32> to vector<32x256xf32>
    %375 = arith.addf %373, %374 : vector<32x256xf32>
    %cst_132 = arith.constant 5.000000e-01 : f32
    %376 = vector.broadcast %cst_132 : f32 to vector<32x256xf32>
    %377 = arith.mulf %376, %375 : vector<32x256xf32>
    %cst_133 = arith.constant 0.707106769 : f32
    %378 = vector.broadcast %cst_133 : f32 to vector<32x256xf32>
    %379 = arith.mulf %375, %378 : vector<32x256xf32>
    %380 = math.erf %379 : vector<32x256xf32>
    %cst_134 = arith.constant 1.000000e+00 : f32
    %381 = vector.broadcast %cst_134 : f32 to vector<32x256xf32>
    %382 = arith.addf %381, %380 : vector<32x256xf32>
    %383 = arith.mulf %377, %382 : vector<32x256xf32>
    %c3_135 = arith.constant 3 : index
    %c0_136 = arith.constant 0 : index
    %c0_137 = arith.constant 0 : index
    %384 = vector.load %arg5[%c3_135, %c0_136, %c0_137] : memref<5x16x16xf32, #tpu.memory_space<vmem>>, vector<1x16x16xf32>
    %385 = vector.shape_cast %384 : vector<1x16x16xf32> to vector<16x16xf32>
    %c3_138 = arith.constant 3 : index
    %c0_139 = arith.constant 0 : index
    %c0_140 = arith.constant 0 : index
    %386 = vector.load %arg6[%c3_138, %c0_139, %c0_140] : memref<5x16x1xf32, #tpu.memory_space<vmem>>, vector<1x16x1xf32>
    %387 = vector.shape_cast %386 : vector<1x16x1xf32> to vector<16x1xf32>
    %388 = vector.extract_strided_slice %383 {offsets = [0, 0], sizes = [16, 256], strides = [1, 1]} : vector<32x256xf32> to vector<16x256xf32>
    %cst_141 = arith.constant dense<0.000000e+00> : vector<16x256xf32>
    %389 = tpu.matmul %385, %388, %cst_141 {dimension_numbers = #tpu.dot_dimension_numbers<[1], [0], [0], [1], [0, 0, 1, 1], [], []>} : vector<16x16xf32>, vector<16x256xf32>, vector<16x256xf32> -> vector<16x256xf32>
    %390 = vector.broadcast %387 : vector<16x1xf32> to vector<16x256xf32>
    %391 = arith.addf %389, %390 : vector<16x256xf32>
    %cst_142 = arith.constant 5.000000e-01 : f32
    %392 = vector.broadcast %cst_142 : f32 to vector<16x256xf32>
    %393 = arith.mulf %392, %391 : vector<16x256xf32>
    %cst_143 = arith.constant 0.707106769 : f32
    %394 = vector.broadcast %cst_143 : f32 to vector<16x256xf32>
    %395 = arith.mulf %391, %394 : vector<16x256xf32>
    %396 = math.erf %395 : vector<16x256xf32>
    %cst_144 = arith.constant 1.000000e+00 : f32
    %397 = vector.broadcast %cst_144 : f32 to vector<16x256xf32>
    %398 = arith.addf %397, %396 : vector<16x256xf32>
    %399 = arith.mulf %393, %398 : vector<16x256xf32>
    %400 = vector.extract_strided_slice %383 {offsets = [16, 0], sizes = [16, 256], strides = [1, 1]} : vector<32x256xf32> to vector<16x256xf32>
    %cst_145 = arith.constant dense<0.000000e+00> : vector<16x256xf32>
    %401 = tpu.matmul %385, %400, %cst_145 {dimension_numbers = #tpu.dot_dimension_numbers<[1], [0], [0], [1], [0, 0, 1, 1], [], []>} : vector<16x16xf32>, vector<16x256xf32>, vector<16x256xf32> -> vector<16x256xf32>
    %402 = vector.broadcast %387 : vector<16x1xf32> to vector<16x256xf32>
    %403 = arith.addf %401, %402 : vector<16x256xf32>
    %cst_146 = arith.constant 5.000000e-01 : f32
    %404 = vector.broadcast %cst_146 : f32 to vector<16x256xf32>
    %405 = arith.mulf %404, %403 : vector<16x256xf32>
    %cst_147 = arith.constant 0.707106769 : f32
    %406 = vector.broadcast %cst_147 : f32 to vector<16x256xf32>
    %407 = arith.mulf %403, %406 : vector<16x256xf32>
    %408 = math.erf %407 : vector<16x256xf32>
    %cst_148 = arith.constant 1.000000e+00 : f32
    %409 = vector.broadcast %cst_148 : f32 to vector<16x256xf32>
    %410 = arith.addf %409, %408 : vector<16x256xf32>
    %411 = arith.mulf %405, %410 : vector<16x256xf32>
    %c0_149 = arith.constant 0 : index
    %c256_150 = arith.constant 256 : index
    %412 = vector.load %arg8[%c0_149, %c256_150] : memref<32x768xf32, #tpu.memory_space<vmem>>, vector<16x256xf32>
    tpu.vector_store %arg8[%c0_149, %c256_150], %399 {strides = array<i32>} : memref<32x768xf32, #tpu.memory_space<vmem>>, vector<16x256xf32>,
    %c16_151 = arith.constant 16 : index
    %c256_152 = arith.constant 256 : index
    %413 = vector.load %arg8[%c16_151, %c256_152] : memref<32x768xf32, #tpu.memory_space<vmem>>, vector<16x256xf32>
    tpu.vector_store %arg8[%c16_151, %c256_152], %411 {strides = array<i32>} : memref<32x768xf32, #tpu.memory_space<vmem>>, vector<16x256xf32>,
    %c4 = arith.constant 4 : index
    %c0_153 = arith.constant 0 : index
    %c0_154 = arith.constant 0 : index
    %414 = vector.load %arg3[%c4, %c0_153, %c0_154] : memref<5x32x9xf32, #tpu.memory_space<vmem>>, vector<1x32x9xf32>
    %415 = vector.shape_cast %414 : vector<1x32x9xf32> to vector<32x9xf32>
    %c4_155 = arith.constant 4 : index
    %c0_156 = arith.constant 0 : index
    %c0_157 = arith.constant 0 : index
    %416 = vector.load %arg4[%c4_155, %c0_156, %c0_157] : memref<5x32x1xf32, #tpu.memory_space<vmem>>, vector<1x32x1xf32>
    %417 = vector.shape_cast %416 : vector<1x32x1xf32> to vector<32x1xf32>
    %c1_i32_158 = arith.constant 1 : i32
    %418 = vector.broadcast %c1_i32_158 : i32 to vector<1x256xi32>
    %419 = arith.cmpi sge, %5, %418 : vector<1x256xi32>
    %420 = arith.extui %419 : vector<1x256xi1> to vector<1x256xi32>
    %421 = arith.sitofp %420 : vector<1x256xi32> to vector<1x256xf32>
    %c15_i32_159 = arith.constant 15 : i32
    %422 = vector.broadcast %c15_i32_159 : i32 to vector<1x256xi32>
    %423 = arith.cmpi slt, %5, %422 : vector<1x256xi32>
    %424 = arith.extui %423 : vector<1x256xi1> to vector<1x256xi32>
    %425 = arith.sitofp %424 : vector<1x256xi32> to vector<1x256xf32>
    %cst_160 = arith.constant 0.000000e+00 : f32
    %426 = vector.broadcast %cst_160 : f32 to vector<32x256xf32>
    %c0_161 = arith.constant 0 : index
    %c239_162 = arith.constant 239 : index
    %427 = vector.load %arg8[%c0_161, %c239_162] : memref<32x768xf32, #tpu.memory_space<vmem>>, vector<32x256xf32>
    %428 = vector.broadcast %421 : vector<1x256xf32> to vector<32x256xf32>
    %429 = arith.mulf %427, %428 : vector<32x256xf32>
    %430 = vector.extract_strided_slice %415 {offsets = [0, 0], sizes = [32, 1], strides = [1, 1]} : vector<32x9xf32> to vector<32x1xf32>
    %431 = vector.broadcast %430 : vector<32x1xf32> to vector<32x256xf32>
    %432 = arith.mulf %429, %431 : vector<32x256xf32>
    %433 = arith.addf %426, %432 : vector<32x256xf32>
    %c0_163 = arith.constant 0 : index
    %c240_164 = arith.constant 240 : index
    %434 = vector.load %arg8[%c0_163, %c240_164] : memref<32x768xf32, #tpu.memory_space<vmem>>, vector<32x256xf32>
    %435 = vector.extract_strided_slice %415 {offsets = [0, 1], sizes = [32, 1], strides = [1, 1]} : vector<32x9xf32> to vector<32x1xf32>
    %436 = vector.broadcast %435 : vector<32x1xf32> to vector<32x256xf32>
    %437 = arith.mulf %434, %436 : vector<32x256xf32>
    %438 = arith.addf %433, %437 : vector<32x256xf32>
    %c0_165 = arith.constant 0 : index
    %c241_166 = arith.constant 241 : index
    %439 = vector.load %arg8[%c0_165, %c241_166] : memref<32x768xf32, #tpu.memory_space<vmem>>, vector<32x256xf32>
    %440 = vector.broadcast %425 : vector<1x256xf32> to vector<32x256xf32>
    %441 = arith.mulf %439, %440 : vector<32x256xf32>
    %442 = vector.extract_strided_slice %415 {offsets = [0, 2], sizes = [32, 1], strides = [1, 1]} : vector<32x9xf32> to vector<32x1xf32>
    %443 = vector.broadcast %442 : vector<32x1xf32> to vector<32x256xf32>
    %444 = arith.mulf %441, %443 : vector<32x256xf32>
    %445 = arith.addf %438, %444 : vector<32x256xf32>
    %c0_167 = arith.constant 0 : index
    %c255_168 = arith.constant 255 : index
    %446 = vector.load %arg8[%c0_167, %c255_168] : memref<32x768xf32, #tpu.memory_space<vmem>>, vector<32x256xf32>
    %447 = vector.broadcast %421 : vector<1x256xf32> to vector<32x256xf32>
    %448 = arith.mulf %446, %447 : vector<32x256xf32>
    %449 = vector.extract_strided_slice %415 {offsets = [0, 3], sizes = [32, 1], strides = [1, 1]} : vector<32x9xf32> to vector<32x1xf32>
    %450 = vector.broadcast %449 : vector<32x1xf32> to vector<32x256xf32>
    %451 = arith.mulf %448, %450 : vector<32x256xf32>
    %452 = arith.addf %445, %451 : vector<32x256xf32>
    %c0_169 = arith.constant 0 : index
    %c256_170 = arith.constant 256 : index
    %453 = vector.load %arg8[%c0_169, %c256_170] : memref<32x768xf32, #tpu.memory_space<vmem>>, vector<32x256xf32>
    %454 = vector.extract_strided_slice %415 {offsets = [0, 4], sizes = [32, 1], strides = [1, 1]} : vector<32x9xf32> to vector<32x1xf32>
    %455 = vector.broadcast %454 : vector<32x1xf32> to vector<32x256xf32>
    %456 = arith.mulf %453, %455 : vector<32x256xf32>
    %457 = arith.addf %452, %456 : vector<32x256xf32>
    %c0_171 = arith.constant 0 : index
    %c257_172 = arith.constant 257 : index
    %458 = vector.load %arg8[%c0_171, %c257_172] : memref<32x768xf32, #tpu.memory_space<vmem>>, vector<32x256xf32>
    %459 = vector.broadcast %425 : vector<1x256xf32> to vector<32x256xf32>
    %460 = arith.mulf %458, %459 : vector<32x256xf32>
    %461 = vector.extract_strided_slice %415 {offsets = [0, 5], sizes = [32, 1], strides = [1, 1]} : vector<32x9xf32> to vector<32x1xf32>
    %462 = vector.broadcast %461 : vector<32x1xf32> to vector<32x256xf32>
    %463 = arith.mulf %460, %462 : vector<32x256xf32>
    %464 = arith.addf %457, %463 : vector<32x256xf32>
    %c0_173 = arith.constant 0 : index
    %c271_174 = arith.constant 271 : index
    %465 = vector.load %arg8[%c0_173, %c271_174] : memref<32x768xf32, #tpu.memory_space<vmem>>, vector<32x256xf32>
    %466 = vector.broadcast %421 : vector<1x256xf32> to vector<32x256xf32>
    %467 = arith.mulf %465, %466 : vector<32x256xf32>
    %468 = vector.extract_strided_slice %415 {offsets = [0, 6], sizes = [32, 1], strides = [1, 1]} : vector<32x9xf32> to vector<32x1xf32>
    %469 = vector.broadcast %468 : vector<32x1xf32> to vector<32x256xf32>
    %470 = arith.mulf %467, %469 : vector<32x256xf32>
    %471 = arith.addf %464, %470 : vector<32x256xf32>
    %c0_175 = arith.constant 0 : index
    %c272_176 = arith.constant 272 : index
    %472 = vector.load %arg8[%c0_175, %c272_176] : memref<32x768xf32, #tpu.memory_space<vmem>>, vector<32x256xf32>
    %473 = vector.extract_strided_slice %415 {offsets = [0, 7], sizes = [32, 1], strides = [1, 1]} : vector<32x9xf32> to vector<32x1xf32>
    %474 = vector.broadcast %473 : vector<32x1xf32> to vector<32x256xf32>
    %475 = arith.mulf %472, %474 : vector<32x256xf32>
    %476 = arith.addf %471, %475 : vector<32x256xf32>
    %c0_177 = arith.constant 0 : index
    %c273_178 = arith.constant 273 : index
    %477 = vector.load %arg8[%c0_177, %c273_178] : memref<32x768xf32, #tpu.memory_space<vmem>>, vector<32x256xf32>
    %478 = vector.broadcast %425 : vector<1x256xf32> to vector<32x256xf32>
    %479 = arith.mulf %477, %478 : vector<32x256xf32>
    %480 = vector.extract_strided_slice %415 {offsets = [0, 8], sizes = [32, 1], strides = [1, 1]} : vector<32x9xf32> to vector<32x1xf32>
    %481 = vector.broadcast %480 : vector<32x1xf32> to vector<32x256xf32>
    %482 = arith.mulf %479, %481 : vector<32x256xf32>
    %483 = arith.addf %476, %482 : vector<32x256xf32>
    %484 = vector.broadcast %417 : vector<32x1xf32> to vector<32x256xf32>
    %485 = arith.addf %483, %484 : vector<32x256xf32>
    %cst_179 = arith.constant 5.000000e-01 : f32
    %486 = vector.broadcast %cst_179 : f32 to vector<32x256xf32>
    %487 = arith.mulf %486, %485 : vector<32x256xf32>
    %cst_180 = arith.constant 0.707106769 : f32
    %488 = vector.broadcast %cst_180 : f32 to vector<32x256xf32>
    %489 = arith.mulf %485, %488 : vector<32x256xf32>
    %490 = math.erf %489 : vector<32x256xf32>
    %cst_181 = arith.constant 1.000000e+00 : f32
    %491 = vector.broadcast %cst_181 : f32 to vector<32x256xf32>
    %492 = arith.addf %491, %490 : vector<32x256xf32>
    %493 = arith.mulf %487, %492 : vector<32x256xf32>
    %c4_182 = arith.constant 4 : index
    %c0_183 = arith.constant 0 : index
    %c0_184 = arith.constant 0 : index
    %494 = vector.load %arg5[%c4_182, %c0_183, %c0_184] : memref<5x16x16xf32, #tpu.memory_space<vmem>>, vector<1x16x16xf32>
    %495 = vector.shape_cast %494 : vector<1x16x16xf32> to vector<16x16xf32>
    %c4_185 = arith.constant 4 : index
    %c0_186 = arith.constant 0 : index
    %c0_187 = arith.constant 0 : index
    %496 = vector.load %arg6[%c4_185, %c0_186, %c0_187] : memref<5x16x1xf32, #tpu.memory_space<vmem>>, vector<1x16x1xf32>
    %497 = vector.shape_cast %496 : vector<1x16x1xf32> to vector<16x1xf32>
    %498 = vector.extract_strided_slice %493 {offsets = [0, 0], sizes = [16, 256], strides = [1, 1]} : vector<32x256xf32> to vector<16x256xf32>
    %cst_188 = arith.constant dense<0.000000e+00> : vector<16x256xf32>
    %499 = tpu.matmul %495, %498, %cst_188 {dimension_numbers = #tpu.dot_dimension_numbers<[1], [0], [0], [1], [0, 0, 1, 1], [], []>} : vector<16x16xf32>, vector<16x256xf32>, vector<16x256xf32> -> vector<16x256xf32>
    %500 = vector.broadcast %497 : vector<16x1xf32> to vector<16x256xf32>
    %501 = arith.addf %499, %500 : vector<16x256xf32>
    %cst_189 = arith.constant 5.000000e-01 : f32
    %502 = vector.broadcast %cst_189 : f32 to vector<16x256xf32>
    %503 = arith.mulf %502, %501 : vector<16x256xf32>
    %cst_190 = arith.constant 0.707106769 : f32
    %504 = vector.broadcast %cst_190 : f32 to vector<16x256xf32>
    %505 = arith.mulf %501, %504 : vector<16x256xf32>
    %506 = math.erf %505 : vector<16x256xf32>
    %cst_191 = arith.constant 1.000000e+00 : f32
    %507 = vector.broadcast %cst_191 : f32 to vector<16x256xf32>
    %508 = arith.addf %507, %506 : vector<16x256xf32>
    %509 = arith.mulf %503, %508 : vector<16x256xf32>
    %510 = vector.extract_strided_slice %493 {offsets = [16, 0], sizes = [16, 256], strides = [1, 1]} : vector<32x256xf32> to vector<16x256xf32>
    %cst_192 = arith.constant dense<0.000000e+00> : vector<16x256xf32>
    %511 = tpu.matmul %495, %510, %cst_192 {dimension_numbers = #tpu.dot_dimension_numbers<[1], [0], [0], [1], [0, 0, 1, 1], [], []>} : vector<16x16xf32>, vector<16x256xf32>, vector<16x256xf32> -> vector<16x256xf32>
    %512 = vector.broadcast %497 : vector<16x1xf32> to vector<16x256xf32>
    %513 = arith.addf %511, %512 : vector<16x256xf32>
    %cst_193 = arith.constant 5.000000e-01 : f32
    %514 = vector.broadcast %cst_193 : f32 to vector<16x256xf32>
    %515 = arith.mulf %514, %513 : vector<16x256xf32>
    %cst_194 = arith.constant 0.707106769 : f32
    %516 = vector.broadcast %cst_194 : f32 to vector<16x256xf32>
    %517 = arith.mulf %513, %516 : vector<16x256xf32>
    %518 = math.erf %517 : vector<16x256xf32>
    %cst_195 = arith.constant 1.000000e+00 : f32
    %519 = vector.broadcast %cst_195 : f32 to vector<16x256xf32>
    %520 = arith.addf %519, %518 : vector<16x256xf32>
    %521 = arith.mulf %515, %520 : vector<16x256xf32>
    %522 = vector.extract_strided_slice %290 {offsets = [0, 0], sizes = [8, 256], strides = [1, 1]} : vector<16x256xf32> to vector<8x256xf32>
    %523 = vector.extract_strided_slice %290 {offsets = [8, 0], sizes = [8, 256], strides = [1, 1]} : vector<16x256xf32> to vector<8x256xf32>
    %524 = vector.extract_strided_slice %509 {offsets = [0, 0], sizes = [1, 256], strides = [1, 1]} : vector<16x256xf32> to vector<1x256xf32>
    %525 = vector.extract_strided_slice %509 {offsets = [1, 0], sizes = [1, 256], strides = [1, 1]} : vector<16x256xf32> to vector<1x256xf32>
    %526 = vector.broadcast %524 : vector<1x256xf32> to vector<8x256xf32>
    %527 = arith.mulf %526, %523 : vector<8x256xf32>
    %528 = vector.broadcast %525 : vector<1x256xf32> to vector<8x256xf32>
    %529 = arith.mulf %528, %522 : vector<8x256xf32>
    %530 = arith.addf %527, %529 : vector<8x256xf32>
    %531 = arith.mulf %527, %529 : vector<8x256xf32>
    %532 = arith.addf %530, %531 : vector<8x256xf32>
    %c0_196 = arith.constant 0 : index
    %c0_197 = arith.constant 0 : index
    %c0_198 = arith.constant 0 : index
    %533 = vector.load %arg7[%c0_196, %c0_197, %c0_198] : memref<2x8x256xf32, #tpu.memory_space<vmem>>, vector<1x8x256xf32>
    %534 = vector.shape_cast %533 : vector<1x8x256xf32> to vector<8x256xf32>
    %535 = vector.shape_cast %532 : vector<8x256xf32> to vector<1x8x256xf32>
    tpu.vector_store %arg7[%c0_196, %c0_197, %c0_198], %535 {strides = array<i32>} : memref<2x8x256xf32, #tpu.memory_space<vmem>>, vector<1x8x256xf32>,
    %536 = vector.extract_strided_slice %301 {offsets = [0, 0], sizes = [8, 256], strides = [1, 1]} : vector<16x256xf32> to vector<8x256xf32>
    %537 = vector.extract_strided_slice %301 {offsets = [8, 0], sizes = [8, 256], strides = [1, 1]} : vector<16x256xf32> to vector<8x256xf32>
    %538 = vector.extract_strided_slice %521 {offsets = [0, 0], sizes = [1, 256], strides = [1, 1]} : vector<16x256xf32> to vector<1x256xf32>
    %539 = vector.extract_strided_slice %521 {offsets = [1, 0], sizes = [1, 256], strides = [1, 1]} : vector<16x256xf32> to vector<1x256xf32>
    %540 = vector.broadcast %538 : vector<1x256xf32> to vector<8x256xf32>
    %541 = arith.mulf %540, %537 : vector<8x256xf32>
    %542 = vector.broadcast %539 : vector<1x256xf32> to vector<8x256xf32>
    %543 = arith.mulf %542, %536 : vector<8x256xf32>
    %544 = arith.addf %541, %543 : vector<8x256xf32>
    %545 = arith.mulf %541, %543 : vector<8x256xf32>
    %546 = arith.addf %544, %545 : vector<8x256xf32>
    %c1_199 = arith.constant 1 : index
    %c0_200 = arith.constant 0 : index
    %c0_201 = arith.constant 0 : index
    %547 = vector.load %arg7[%c1_199, %c0_200, %c0_201] : memref<2x8x256xf32, #tpu.memory_space<vmem>>, vector<1x8x256xf32>
    %548 = vector.shape_cast %547 : vector<1x8x256xf32> to vector<8x256xf32>
    %549 = vector.shape_cast %546 : vector<8x256xf32> to vector<1x8x256xf32>
    tpu.vector_store %arg7[%c1_199, %c0_200, %c0_201], %549 {strides = array<i32>} : memref<2x8x256xf32, #tpu.memory_space<vmem>>, vector<1x8x256xf32>,
    return
  }
  func.func @transform_0(%arg0: i32) -> (i32, i32, i32) {
    %c0_i32 = arith.constant 0 : i32
    %c0_i32_0 = arith.constant 0 : i32
    %c0_i32_1 = arith.constant 0 : i32
    return %arg0, %c0_i32, %c0_i32_0 : i32, i32, i32
  }
  func.func @transform_1(%arg0: i32) -> (i32, i32, i32) {
    %c0_i32 = arith.constant 0 : i32
    %c0_i32_0 = arith.constant 0 : i32
    %c0_i32_1 = arith.constant 0 : i32
    return %arg0, %c0_i32, %c0_i32_0 : i32, i32, i32
  }
  func.func @transform_2(%arg0: i32) -> (i32, i32, i32) {
    %c0_i32 = arith.constant 0 : i32
    %c0_i32_0 = arith.constant 0 : i32
    %c0_i32_1 = arith.constant 0 : i32
    %c0_i32_2 = arith.constant 0 : i32
    return %c0_i32, %c0_i32_0, %c0_i32_1 : i32, i32, i32
  }
  func.func @transform_3(%arg0: i32) -> (i32, i32, i32) {
    %c0_i32 = arith.constant 0 : i32
    %c0_i32_0 = arith.constant 0 : i32
    %c0_i32_1 = arith.constant 0 : i32
    %c0_i32_2 = arith.constant 0 : i32
    return %c0_i32, %c0_i32_0, %c0_i32_1 : i32, i32, i32
  }
  func.func @transform_4(%arg0: i32) -> (i32, i32, i32) {
    %c0_i32 = arith.constant 0 : i32
    %c0_i32_0 = arith.constant 0 : i32
    %c0_i32_1 = arith.constant 0 : i32
    %c0_i32_2 = arith.constant 0 : i32
    return %c0_i32, %c0_i32_0, %c0_i32_1 : i32, i32, i32
  }
  func.func @transform_5(%arg0: i32) -> (i32, i32, i32) {
    %c0_i32 = arith.constant 0 : i32
    %c0_i32_0 = arith.constant 0 : i32
    %c0_i32_1 = arith.constant 0 : i32
    %c0_i32_2 = arith.constant 0 : i32
    return %c0_i32, %c0_i32_0, %c0_i32_1 : i32, i32, i32
  }
  func.func @transform_6(%arg0: i32) -> (i32, i32, i32) {
    %c0_i32 = arith.constant 0 : i32
    %c0_i32_0 = arith.constant 0 : i32
    %c0_i32_1 = arith.constant 0 : i32
    return %arg0, %c0_i32, %c0_i32_0 : i32, i32, i32
  }
}

</mosaic_0001>

<bundles_post_ra>
// kernel: fisaf_forward.1
= control target key start
LH: loop header
LB: loop body
LE: loop exit
PB: predicated region body
PF: predicated region fallthrough
CT: control target
= control target key end

     0   :  { %s8560_s21 = smov 0   ;;  %s14502_s0 = inlined_call_operand.vmem [shape: f32[4,8,256], index: 0, kind: input, shape index: {}]   ;;  %s14503_s1 = inlined_call_operand.vmem [shape: f32[4,8,256], index: 1, kind: input, shape index: {}]   ;;  %s14504_s2 = inlined_call_operand.vmem [shape: f32[5,32,9], index: 2, kind: input, shape index: {}]   ;;  %s14505_s3 = inlined_call_operand.vmem [shape: f32[5,32,1], index: 3, kind: input, shape index: {}]   ;;  %s14506_s4 = inlined_call_operand.vmem [shape: f32[5,16,16], index: 4, kind: input, shape index: {}]   ;;  %s14507_s5 = inlined_call_operand.vmem [shape: f32[5,16,1], index: 5, kind: input, shape index: {}]   ;;  %s14508_s6 = inlined_call_operand.vmem [shape: f32[4,8,256], index: 6, kind: output, shape index: {}]  }
   0x1 LB: > { %s7777_s22 = sadd.s32 4294967295, %s8487_s21   ;;  %p7781_p0 = scmp.ge.s32.totalorder %s8487_s21, 1  ;;  %s8487_s21 = sphi %s8560_s21, %s16_s21  }
   0x2   : > { %p226_p1 = scmp.lt.s32.totalorder %s8487_s21, 3 }
   0x4   : > { %p227_p2 = pnand %p7781_p0, %p226_p1 }
   0x6   : > { %230 = sbr.rel (%p227_p2) target bundleno = 5724 (0x165c), region = 44 }
   0xb   : > { %v8571_v0 = vld [vmem:[%s14504_s2 + $0x18] sm:$0xff]  ;;  %v8576_v1 = vld [vmem:[%s14504_s2 + $0x8] sm:$0xff]  ;;  %v301_v2 = vlaneseq  ;;  %v14521_v3 = vmov 0   ;;  %v14519_v5 = vmov 1   ;;  %v8591_v9 = vld [vmem:[%s14504_s2 + $0x10] sm:$0xff]  ;;  %v14517_v10 = vmov 0.0  }
   0xc   : > { %7995 = vset.pattern.permute.xlu2 %v14521_v3  ;;  %7994 = vset.pattern.permute.xlu1 %v14521_v3  ;;  %v8597_v12 = vld [vmem:[%s14504_s2] sm:$0xff]  ;;  %s8492_s7 = smov 120   ;;  %v14515_v18 = vmov 2   ;;  %s8494_s8 = smov 8   ;;  %v14513_v19 = vmov 3   ;;  %v14511_v20 = vmov 4  }
   0xd   : > { %396 = vperm.xlu2 %7995, %v8571_v0   ;;  %386 = vperm.xlu1 %7994, %v8576_v1   ;;  %v302_v4 = vand.u32 127, %v301_v2  ;;  %s7782_s9 = sshll.u32 %s7777_s22, 1  ;;  %s8497_s17 = smov 112   ;;  %vm517_vm4 = vcmask 64512   ;;  %vm362_vm5 = vcmask 982016   ;;  %vm598_vm6 = vcmask 916480  }
   0xe   : > { %8003 = vset.pattern.permute.xlu0 %v14519_v5  ;;  %p265_p3 = scmp.lt.s32.totalorder %s7782_s9, 3  ;;  %vm1211_vm9 = vcmask 130048   ;;  %s8503_s22 = smov 124   ;;  %vm1556_vm12 = vcmask 556032   ;;  %vm1517_vm13 = vcmask 1014784   ;;  %vm1878_vm14 = vcmask 31744  }
   0xf   : > { %v303_v6 = vadd.s32 128, %v302_v4  ;;  %v8583_v7 = vand.u32 15, %v302_v4  ;;  %s8504_s23 = smov 4   ;;  %s8505_s26 = smov 68   ;;  %vm1392_vm15 = vcmask 490496  }
  0x10   : > { %s15307_s9 = smov (!%p265_p3, %s7782_s9), 3  ;;  %s8506_s27 = smov 64  }
  0x11   : > { %14749 = vst [vmem:[#allocation3_spill] sm:$0xff] %v8583_v7  ;;  %v8585_v8 = vand.u32 15, %v303_v6  ;;  %vm332_vm0 = vcmp.ge.s32.totalorder %v8583_v7, 8  ;;  %vm338_vm2 = vcmp.lt.s32.totalorder %v8583_v7, 8  ;;  %s8639_s10 = sshll.u32 %s15307_s9, 4  ;;  %s8502_s9 = smov 60  }
  0x12   : > { %v7795_v11 = vsel %vm332_vm0, 1.0, %v14517_v10  ;;  %v7797_v15 = vsel %vm338_vm2, 1.0, %v14517_v10  ;;  %s8645_s13 = scalar_lea.vmem %s14503_s1, %s8639_s10  ;;  %s8668_s16 = scalar_lea.vmem %s14502_s0, %s8639_s10  ;;  %vm1753_vm0 = vcmask 523264  }
  0x13   : > { %14750 = vst [vmem:[#allocation4_spill] sm:$0xff] %v8585_v8  ;;  %vm333_vm1 = vcmp.ge.s32.totalorder %v8585_v8, 8  ;;  %vm339_vm3 = vcmp.lt.s32.totalorder %v8585_v8, 8  ;;  %v8648_v22 = vld [vmem:[%s8645_s13] sm:$0xff]  ;;  %v8675_v38 = vld [vmem:[%s8668_s16 + $0x10] sm:$0xff]  ;;  %v8692_v47 = vld [vmem:[%s8645_s13 + $0x8] sm:$0xff] }
  0x14   : > { %v7796_v13 = vsel %vm333_vm1, 1.0, %v14517_v10  ;;  %v7798_v16 = vsel %vm339_vm3, 1.0, %v14517_v10  ;;  %v8671_v34 = vld [vmem:[%s8668_s16] sm:$0xff]  ;;  %v8684_v41 = vld [vmem:[%s8645_s13 + $0x10] sm:$0xff]  ;;  %v8728_v63 = vld [vmem:[%s8668_s16 + $0x8] sm:$0xff]  ;;  %s8507_s28 = smov 56  }
  0x15   : > { %7996 = vset.pattern.permute.xlu2 %v14519_v5  ;;  %391 = vperm.xlu1 %7994, %v8591_v9   ;;  %v7998_v14 = vpack.i.bf16 %v7796_v13, %v7795_v11  ;;  %v8004_v17 = vpack.i.bf16 %v7798_v16, %v7797_v15  ;;  %v8740_v15 = vld [vmem:[%s8645_s13 + $0x18] sm:$0xff]  ;;  %vm1959_vm1 = vcmask 457728   ;;  %s8508_s20 = smov 94   ;;  %s8509_s14 = smov 126  }
  0x16   : > { %424 = vperm.xlu2 %7996, %v8597_v12   ;;  %s8512_s18 = smov 96   ;;  %s8513_s19 = smov 92  }
  0x17   : > { %7999 = vrot.lane.b32.xlu0 %v7998_v14, %s8492_s7  ;;  %v14509_v14 = vmov 5   ;;  %s8518_s29 = smov 1   ;;  %s8520_s13 = smov 15  }
  0x18   : > { %s8522_s15 = smov 110   ;;  %s8524_s30 = smov 17  }
  0x1d   : > { %7997 = vset.pattern.permute.xlu1 %v14519_v5 }
  0x1e   : > { %428 = vperm.xlu1 %7997, %v8576_v1   ;;  %432 = vperm.xlu2 %7996, %v8591_v9  }
  0x1f   : > { %436 = vperm.xlu0 %8003, %v8571_v0  }
  0x26   : > { %8009 = vset.pattern.permute.xlu2 %v14515_v18  ;;  %8005 = vrot.lane.b32.xlu1 %v8004_v17, %s8494_s8 }
  0x27   : > { %535 = vperm.xlu2 %8009, %v8597_v12   ;;  %8010 = vset.pattern.permute.xlu0 %v14515_v18 }
  0x28   : > { %539 = vperm.xlu0 %8010, %v8576_v1   ;;  %8011 = vset.pattern.permute.xlu1 %v14515_v18 }
  0x2e   : > { %543 = vperm.xlu1 %8011, %v8591_v9  }
  0x2f   : > { %547 = vperm.xlu2 %8009, %v8571_v0  }
  0x30   : > { %8014 = vset.pattern.permute.xlu0 %v14513_v19 }
  0x31   : > { %652 = vperm.xlu0 %8014, %v8591_v9  }
  0x36   : > { %8012 = vset.pattern.permute.xlu1 %v14513_v19 }
  0x37   : > { %8013 = vset.pattern.permute.xlu2 %v14513_v19  ;;  %644 = vperm.xlu1 %8012, %v8597_v12  }
  0x38   : > { %648 = vperm.xlu2 %8013, %v8576_v1  }
  0x39   : > { %8017 = vset.pattern.permute.xlu0 %v14511_v20 }
  0x3a   : > { %696 = vperm.xlu0 %8017, %v8571_v0  }
  0x3f   : > { %656 = vperm.xlu1 %8012, %v8571_v0  }
  0x40   : > { %8015 = vset.pattern.permute.xlu2 %v14511_v20 }
  0x41   : > { %684 = vperm.xlu2 %8015, %v8597_v12  }
  0x42   : > { %8020 = vset.pattern.permute.xlu0 %v14509_v14 }
  0x47   : > { %8016 = vset.pattern.permute.xlu1 %v14511_v20 }
  0x48   : > { %688 = vperm.xlu1 %8016, %v8576_v1  }
  0x49   : > { %692 = vperm.xlu2 %8015, %v8591_v9  }
  0x50   : > { %8018 = vset.pattern.permute.xlu1 %v14509_v14 }
  0x51   : > { %8019 = vset.pattern.permute.xlu2 %v14509_v14 }
  0x67   : > { %v8637_v21 = vpop.permute.xlu2 %396 }
  0x70   : > { %v425_v23 = vpop.permute.xlu2 %424 }
  0x71   : > { %v439_v24 = vmul.f32 0.0, %v425_v23  ;;  %v440_v25 = vmul.f32 %v425_v23, %v8648_v22 }
  0x73   : > { %455 = vrot.lane.b32.xlu1 %v439_v24, %s8492_s7  ;;  %457 = vrot.lane.b32.xlu2 %v440_v25, %s8492_s7 }
  0x78   : > { %v433_v26 = vpop.permute.xlu2 %432 }
  0x79   : > { %v443_v27 = vmul.f32 0.0, %v433_v26  ;;  %v444_v44 = vmul.f32 %v8684_v41, %v433_v26 }
  0x7b   : > { %463 = vrot.lane.b32.xlu0 %v443_v27, %s8492_s7  ;;  %v8752_v27 = vld [vmem:[%s8668_s16 + $0x18] sm:$0xff]  ;;  %s8511_s16 = smov 98  }
  0x7f   : > { %v8654_v28 = vpop.permute.xlu1 %386 }
  0x81   : > { %v8656_v29 = vpop.permute.xlu2 %535 }
  0x87   : > { %v8658_v30 = vpop.permute.xlu1 %391 }
  0x89   : > { %v8660_v31 = vpop.permute.xlu0 %7999  ;;  %v8662_v32 = vpop.permute.xlu2 %547 }
  0x90   : > { %v429_v33 = vpop.permute.xlu1 %428 }
  0x91   : > { %v441_v35 = vmul.f32 0.0, %v429_v33  ;;  %v442_v36 = vmul.f32 %v429_v33, %v8671_v34  ;;  %v437_v37 = vpop.permute.xlu0 %436 }
  0x92   : > { %v446_v39 = vmul.f32 %v8675_v38, %v437_v37  ;;  %v8678_v40 = vpop.permute.xlu2 %648  ;;  %v445_v42 = vmul.f32 0.0, %v437_v37 }
  0x93   : > { %459 = vrot.lane.b32.xlu1 %v441_v35, %s8492_s7  ;;  %461 = vrot.lane.b32.xlu2 %v442_v36, %s8492_s7 }
  0x94   : > { %469 = vrot.lane.b32.xlu0 %v446_v39, %s8492_s7 }
  0x98   : > { %v8006_v43 = vpop.permute.xlu1 %8005 }
  0x99   : > { %v8689_v46 = vunpack.i.l.bf16 %v8006_v43  ;;  %v8714_v56 = vunpack.i.h.bf16 %v8006_v43 }
  0x9a   : > { %v540_v2 = vpop.permute.xlu0 %539 }
  0x9b   : > { %v685_v45 = vpop.permute.xlu2 %684  ;;  %465 = vrot.lane.b32.xlu1 %v444_v44, %s8492_s7  ;;  %467 = vrot.lane.b32.xlu2 %v445_v42, %s8492_s7  ;;  %v8698_v50 = vmul.f32 %v8689_v46, %v8671_v34  ;;  %v8702_v52 = vmul.f32 %v8689_v46, %v8648_v22  ;;  %v8706_v53 = vmul.f32 %v8689_v46, %v8684_v41  ;;  %v522_v58 = vmul.f32 0.0, %v8689_v46 }
  0x9c   : > { %v699_v48 = vmul.f32 %v685_v45, %v8648_v22  ;;  %v700_v49 = vmul.f32 %v685_v45, %v8692_v47  ;;  %v8710_v54 = vmul.f32 %v8689_v46, %v8675_v38  ;;  %v524_v59 = vmul.f32 %v8714_v56, %v8692_v47 }
  0x9d   : > { %v550_v61 = vmul.f32 %v8656_v29, %v522_v58  ;;  %v527_v4 = vmul.f32 %v8714_v56, %v8728_v63  ;;  %v553_v11 = vmul.f32 %v540_v2, %v522_v58  ;;  %v530_v16 = vmul.f32 %v8714_v56, %v8740_v15 }
  0x9e   : > { %v552_v62 = vmul.f32 %v8656_v29, %v524_v59  ;;  %v8749_v25 = vsel %vm517_vm4, %v8689_v46, %v8714_v56  ;;  %v533_v36 = vmul.f32 %v8714_v56, %v8752_v27  ;;  %v559_v37 = vmul.f32 %v8662_v32, %v522_v58 }
  0x9f   : > { %v555_v13 = vmul.f32 %v540_v2, %v527_v4  ;;  %v523_v35 = vmul.f32 %v8749_v25, %v8648_v22  ;;  %v526_v45 = vmul.f32 %v8749_v25, %v8671_v34  ;;  %v532_v59 = vmul.f32 %v8675_v38, %v8749_v25 }
  0xa0   : > { %v544_v51 = vpop.permute.xlu1 %543  ;;  %v561_v42 = vmul.f32 %v8662_v32, %v533_v36  ;;  %v772_v18 = vmul.f32 %v8749_v25, %v8692_v47 }
  0xa1   : > { %v556_v17 = vmul.f32 %v544_v51, %v522_v58  ;;  %v558_v26 = vmul.f32 %v544_v51, %v530_v16  ;;  %v551_v39 = vmul.f32 %v8656_v29, %v523_v35  ;;  %v529_v29 = vmul.f32 %v8684_v41, %v8749_v25 }
  0xa3   : > { %v693_v55 = vpop.permute.xlu2 %692  ;;  %715 = vrot.lane.b32.xlu1 %v699_v48, %s8492_s7  ;;  %717 = vrot.lane.b32.xlu2 %v700_v49, %s8492_s7  ;;  %v8756_v33 = vpop.permute.xlu0 %652  ;;  %v554_v49 = vmul.f32 %v540_v2, %v526_v45  ;;  %v557_v58 = vmul.f32 %v544_v51, %v529_v29 }
  0xa4   : > { %v703_v57 = vmul.f32 %v8684_v41, %v693_v55 }
  0xa6   : > { %723 = vrot.lane.b32.xlu0 %v703_v57, %s8492_s7  ;;  %v704_v57 = vmul.f32 %v8740_v15, %v693_v55 }
  0xa9   : > { %v8721_v60 = vpop.permute.xlu1 %644 }
  0xab   : > { %574 = vrot.lane.b32.xlu1 %v550_v61, %s8497_s17  ;;  %v560_v61 = vmul.f32 %v8662_v32, %v532_v59 }
  0xac   : > { %v697_v44 = vpop.permute.xlu0 %696 }
  0xad   : > { %v706_v48 = vmul.f32 %v8752_v27, %v697_v44 }
  0xae   : > { %578 = vrot.lane.b32.xlu0 %v552_v62, %s8497_s17  ;;  %v705_v62 = vmul.f32 %v8675_v38, %v697_v44 }
  0xb1   : > { %v8732_v6 = vpop.permute.xlu1 %656 }
  0xb3   : > { %580 = vrot.lane.b32.xlu1 %v553_v11, %s8497_s17 }
  0xb6   : > { %584 = vrot.lane.b32.xlu0 %v555_v13, %s8497_s17 }
  0xba   : > { %v689_v23 = vpop.permute.xlu1 %688 }
  0xbb   : > { %v702_v24 = vmul.f32 %v689_v23, %v8728_v63  ;;  %586 = vrot.lane.b32.xlu1 %v556_v17, %s8497_s17  ;;  %v701_v43 = vmul.f32 %v689_v23, %v8671_v34 }
  0xbd   : > { %721 = vrot.lane.b32.xlu2 %v702_v24, %s8492_s7 }
  0xbe   : > { %590 = vrot.lane.b32.xlu0 %v558_v26, %s8497_s17 }
  0xc3   : > { %592 = vrot.lane.b32.xlu1 %v559_v37, %s8497_s17 }
  0xc5   : > { %576 = vrot.lane.b32.xlu2 %v551_v39, %s8497_s17 }
  0xc6   : > { %596 = vrot.lane.b32.xlu0 %v561_v42, %s8497_s17 }
  0xcb   : > { %719 = vrot.lane.b32.xlu1 %v701_v43, %s8492_s7 }
  0xcd   : > { %582 = vrot.lane.b32.xlu2 %v554_v49, %s8497_s17  ;;  %v8790_v51 = vpop.permute.xlu2 %457 }
  0xce   : > { %729 = vrot.lane.b32.xlu0 %v706_v48, %s8492_s7  ;;  %14751 = vst [vmem:[#allocation5_spill] sm:$0xff] %v8790_v51 }
  0xd3   : > { %725 = vrot.lane.b32.xlu1 %v704_v57, %s8492_s7 }
  0xd5   : > { %588 = vrot.lane.b32.xlu2 %v557_v58, %s8497_s17 }
  0xd6   : > { %792 = vperm.xlu0 %8020, %v8591_v9  }
  0xdb   : > { %784 = vperm.xlu1 %8018, %v8597_v12  }
  0xdd   : > { %594 = vrot.lane.b32.xlu2 %v560_v61, %s8497_s17  ;;  %v14524_v61 = vmov 6  }
  0xde   : > { %8021 = vset.pattern.permute.xlu0 %v14524_v61 }
  0xe3   : > { %796 = vperm.xlu1 %8018, %v8571_v0  }
  0xe5   : > { %727 = vrot.lane.b32.xlu2 %v705_v62, %s8492_s7  ;;  %v8794_v2 = vpop.permute.xlu1 %455 }
  0xeb   : > { %8022 = vset.pattern.permute.xlu1 %v14524_v61 }
  0xed   : > { %788 = vperm.xlu2 %8019, %v8576_v1   ;;  %v8792_v55 = vpop.permute.xlu2 %461  ;;  %v8800_v32 = vpop.permute.xlu0 %463 }
  0xf5   : > { %v8796_v4 = vpop.permute.xlu2 %467  ;;  %8023 = vset.pattern.permute.xlu2 %v14524_v61 }
  0xfd   : > { %v8804_v16 = vpop.permute.xlu2 %717 }
 0x105   : > { %v8798_v11 = vpop.permute.xlu1 %459 }
 0x106   : > { %v8806_v17 = vpop.permute.xlu0 %469 }
 0x10d   : > { %v8802_v13 = vpop.permute.xlu1 %465 }
 0x115   : > { %v8808_v23 = vpop.permute.xlu1 %715 }
 0x117   : > { %v8810_v24 = vpop.permute.xlu2 %721 }
 0x118   : > { %14752 = vst [vmem:[#allocation6_spill] sm:$0xff] %v8810_v24  ;;  %v8812_v26 = vpop.permute.xlu0 %723 }
 0x119   : > { %14753 = vst [vmem:[#allocation7_spill] sm:$0xff] %v8812_v26 }
 0x11d   : > { %v8814_v35 = vpop.permute.xlu1 %574 }
 0x11f   : > { %v8816_v36 = vpop.permute.xlu2 %576 }
 0x120   : > { %14754 = vst [vmem:[#allocation8_spill] sm:$0xff] %v8816_v36  ;;  %v8818_v37 = vpop.permute.xlu0 %578 }
 0x121   : > { %14755 = vst [vmem:[#allocation9_spill] sm:$0xff] %v8818_v37 }
 0x125   : > { %v8820_v39 = vpop.permute.xlu1 %580 }
 0x127   : > { %v8822_v42 = vpop.permute.xlu2 %582 }
 0x128   : > { %v8824_v43 = vpop.permute.xlu0 %584 }
 0x12d   : > { %v8826_v44 = vpop.permute.xlu1 %586 }
 0x12f   : > { %v8828_v45 = vpop.permute.xlu2 %588 }
 0x130   : > { %v8830_v48 = vpop.permute.xlu0 %590 }
 0x131   : > { %14756 = vst [vmem:[#allocation10_spill] sm:$0xff] %v8830_v48 }
 0x135   : > { %v8832_v49 = vpop.permute.xlu1 %592 }
 0x136   : > { %14757 = vst [vmem:[#allocation11_spill] sm:$0xff] %v8832_v49 }
 0x137   : > { %v8834_v29 = vpop.permute.xlu2 %594 }
 0x138   : > { %14758 = vst [vmem:[#allocation12_spill] sm:$0xff] %v8834_v29  ;;  %v8836_v57 = vpop.permute.xlu0 %596 }
 0x139   : > { %14759 = vst [vmem:[#allocation13_spill] sm:$0xff] %v8836_v57 }
 0x13d   : > { %v8838_v58 = vpop.permute.xlu1 %719 }
 0x13e   : > { %14760 = vst [vmem:[#allocation14_spill] sm:$0xff] %v8838_v58 }
 0x13f   : > { %v8840_v59 = vpop.permute.xlu2 %727 }
 0x140   : > { %14761 = vst [vmem:[#allocation15_spill] sm:$0xff] %v8840_v59  ;;  %v8845_v62 = vpop.permute.xlu0 %729 }
 0x141   : > { %14762 = vst [vmem:[#allocation16_spill] sm:$0xff] %v8845_v62 }
 0x145   : > { %v8847_v14 = vpop.permute.xlu1 %725 }
 0x146   : > { %14763 = vst [vmem:[#allocation17_spill] sm:$0xff] %v8847_v14 }
 0x147   : > { %v789_v20 = vpop.permute.xlu2 %788 }
 0x148   : > { %v802_v19 = vmul.f32 %v789_v20, %v8698_v50  ;;  %v793_v10 = vpop.permute.xlu0 %792  ;;  %v8859_v50 = vmul.f32 0.0, %v8714_v56 }
 0x149   : > { %v805_v61 = vmul.f32 %v793_v10, %v8706_v53 }
 0x14a   : > { %829 = vrot.lane.b32.xlu0 %v802_v19, %s8497_s17  ;;  %v775_v19 = vmul.f32 %v8749_v25, %v8728_v63  ;;  %v804_v53 = vmul.f32 %v789_v20, %v8859_v50 }
 0x14d   : > { %v785_v5 = vpop.permute.xlu1 %784 }
 0x14e   : > { %v800_v3 = vmul.f32 %v785_v5, %v772_v18  ;;  %v799_v59 = vmul.f32 %v785_v5, %v8702_v52  ;;  %v801_v62 = vmul.f32 %v785_v5, %v8859_v50  ;;  %v803_v18 = vmul.f32 %v789_v20, %v775_v19 }
 0x14f   : > { %v778_v52 = vmul.f32 %v8740_v15, %v8749_v25  ;;  %v781_v5 = vmul.f32 %v8752_v27, %v8749_v25 }
 0x150   : > { %825 = vrot.lane.b32.xlu1 %v800_v3, %s8497_s17  ;;  %823 = vrot.lane.b32.xlu2 %v799_v59, %s8497_s17  ;;  %v807_v59 = vmul.f32 %v793_v10, %v8859_v50 }
 0x151   : > { %v806_v56 = vmul.f32 %v793_v10, %v778_v52 }
 0x152   : > { %835 = vrot.lane.b32.xlu0 %v805_v61, %s8497_s17  ;;  %v14528_v61 = vmov 7  }
 0x155   : > { %v797_v14 = vpop.permute.xlu1 %796 }
 0x156   : > { %v808_v3 = vmul.f32 %v797_v14, %v8710_v54  ;;  %v809_v54 = vmul.f32 %v797_v14, %v781_v5  ;;  %v810_v20 = vmul.f32 %v797_v14, %v8859_v50 }
 0x158   : > { %827 = vrot.lane.b32.xlu2 %v801_v62, %s8497_s17  ;;  %831 = vrot.lane.b32.xlu1 %v803_v18, %s8497_s17 }
 0x15a   : > { %841 = vrot.lane.b32.xlu0 %v808_v3, %s8497_s17 }
 0x160   : > { %833 = vrot.lane.b32.xlu2 %v804_v53, %s8497_s17  ;;  %837 = vrot.lane.b32.xlu1 %v806_v56, %s8497_s17 }
 0x162   : > { %892 = vperm.xlu0 %8021, %v8597_v12  }
 0x168   : > { %839 = vrot.lane.b32.xlu2 %v807_v59, %s8497_s17  ;;  %843 = vrot.lane.b32.xlu1 %v809_v54, %s8497_s17 }
 0x16a   : > { %8025 = vset.pattern.permute.xlu0 %v14528_v61 }
 0x16b   : > { %936 = vperm.xlu0 %8025, %v8576_v1  }
 0x170   : > { %845 = vrot.lane.b32.xlu2 %v810_v20, %s8497_s17  ;;  %896 = vperm.xlu1 %8022, %v8576_v1  }
 0x178   : > { %900 = vperm.xlu2 %8023, %v8591_v9   ;;  %904 = vperm.xlu1 %8022, %v8571_v0  }
 0x180   : > { %8024 = vset.pattern.permute.xlu2 %v14528_v61  ;;  %8026 = vset.pattern.permute.xlu1 %v14528_v61  ;;  %v14534_v61 = vmov 8  }
 0x181   : > { %932 = vperm.xlu2 %8024, %v8597_v12   ;;  %940 = vperm.xlu1 %8026, %v8591_v9  }
 0x182   : > { %8027 = vset.pattern.permute.xlu0 %v14534_v61 }
 0x189   : > { %944 = vperm.xlu2 %8024, %v8571_v0   ;;  %8029 = vset.pattern.permute.xlu1 %v14534_v61 }
 0x191   : > { %8030 = vset.pattern.permute.xlu2 %v14534_v61 }
 0x1aa   : > { %v8891_v10 = vpop.permute.xlu2 %823 }
 0x1b2   : > { %v8893_v14 = vpop.permute.xlu2 %827 }
 0x1b3   : > { %14764 = vst [vmem:[#allocation18_spill] sm:$0xff] %v8893_v14 }
 0x1ba   : > { %v8895_v62 = vpop.permute.xlu2 %833 }
 0x1bb   : > { %14765 = vst [vmem:[#allocation19_spill] sm:$0xff] %v8895_v62 }
 0x1bc   : > { %v8897_v19 = vpop.permute.xlu0 %829 }
 0x1bd   : > { %14766 = vst [vmem:[#allocation20_spill] sm:$0xff] %v8897_v19 }
 0x1c2   : > { %v8899_v18 = vpop.permute.xlu1 %825  ;;  %v8901_v3 = vpop.permute.xlu2 %839 }
 0x1c3   : > { %14767 = vst [vmem:[#allocation21_spill] sm:$0xff] %v8901_v3 }
 0x1c4   : > { %v8903_v52 = vpop.permute.xlu0 %835 }
 0x1c5   : > { %14768 = vst [vmem:[#allocation22_spill] sm:$0xff] %v8903_v52 }
 0x1ca   : > { %v8905_v53 = vpop.permute.xlu1 %831  ;;  %v8907_v56 = vpop.permute.xlu2 %845 }
 0x1cb   : > { %14769 = vst [vmem:[#allocation23_spill] sm:$0xff] %v8905_v53 }
 0x1cc   : > { %14770 = vst [vmem:[#allocation24_spill] sm:$0xff] %v8907_v56  ;;  %v8909_v5 = vpop.permute.xlu0 %841 }
 0x1cd   : > { %14771 = vst [vmem:[#allocation25_spill] sm:$0xff] %v8909_v5 }
 0x1d2   : > { %v8911_v59 = vpop.permute.xlu1 %837  ;;  %v8913_v54 = vpop.permute.xlu2 %900 }
 0x1d3   : > { %14772 = vst [vmem:[#allocation26_spill] sm:$0xff] %v8911_v59 }
 0x1d4   : > { %14773 = vst [vmem:[#allocation27_spill] sm:$0xff] %v8913_v54  ;;  %v8915_v20 = vpop.permute.xlu0 %892 }
 0x1da   : > { %v8920_v62 = vpop.permute.xlu1 %843 }
 0x1db   : > { %14774 = vst [vmem:[#allocation28_spill] sm:$0xff] %v8920_v62  ;;  %v933_v14 = vpop.permute.xlu2 %932 }
 0x1dc   : > { %v947_v56 = vmul.f32 %v933_v14, %v8692_v47  ;;  %v948_v3 = vmul.f32 0.0, %v933_v14 }
 0x1dd   : > { %v937_v5 = vpop.permute.xlu0 %936 }
 0x1de   : > { %v949_v52 = vmul.f32 %v937_v5, %v8728_v63  ;;  %963 = vrot.lane.b32.xlu1 %v947_v56, %s8492_s7  ;;  %965 = vrot.lane.b32.xlu2 %v948_v3, %s8492_s7  ;;  %v950_v54 = vmul.f32 0.0, %v937_v5 }
 0x1e0   : > { %967 = vrot.lane.b32.xlu0 %v949_v52, %s8492_s7  ;;  %v14777_v52 = vmov 0  }
 0x1e2   : > { %v8927_v59 = vpop.permute.xlu1 %896 }
 0x1e3   : > { %14775 = vst [vmem:[#allocation29_spill] sm:$0xff] %v8927_v59  ;;  %v945_v61 = vpop.permute.xlu2 %944 }
 0x1e4   : > { %v953_v19 = vmul.f32 %v8752_v27, %v945_v61  ;;  %v954_v3 = vmul.f32 0.0, %v945_v61 }
 0x1e6   : > { %969 = vrot.lane.b32.xlu1 %v950_v54, %s8492_s7 }
 0x1ea   : > { %v8930_v62 = vpop.permute.xlu1 %904 }
 0x1eb   : > { %14776 = vst [vmem:[#allocation30_spill] sm:$0xff] %v8930_v62 }
 0x1ee   : > { %975 = vrot.lane.b32.xlu1 %v953_v19, %s8492_s7 }
 0x1f3   : > { %v941_v14 = vpop.permute.xlu1 %940 }
 0x1f4   : > { %v951_v53 = vmul.f32 %v8740_v15, %v941_v14  ;;  %v952_v56 = vmul.f32 0.0, %v941_v14 }
 0x1f6   : > { %973 = vrot.lane.b32.xlu0 %v952_v56, %s8492_s7  ;;  %971 = vrot.lane.b32.xlu2 %v951_v53, %s8492_s7 }
 0x1f7   : > { %1036 = vperm.xlu1 %8029, %v8576_v1  }
 0x1fe   : > { %1032 = vperm.xlu0 %8027, %v8597_v12   ;;  %977 = vrot.lane.b32.xlu2 %v954_v3, %s8492_s7 }
 0x1ff   : > { %1044 = vperm.xlu1 %8029, %v8571_v0  }
 0x206   : > { %8028 = vset.pattern.permute.xlu0 %v14777_v52  ;;  %1040 = vperm.xlu2 %8030, %v8591_v9   ;;  %v1020_v9 = vmul.f32 0.0, %v8749_v25  ;;  %v1022_v25 = vmul.f32 %v8689_v46, %v8728_v63 }
 0x207   : > { %381 = vperm.xlu0 %8028, %v8597_v12   ;;  %8032 = vset.pattern.permute.xlu1 %v14777_v52  ;;  %v1019_v12 = vmul.f32 %v8689_v46, %v8692_v47 }
 0x20e   : > { %8031 = vset.pattern.permute.xlu2 %v14777_v52 }
 0x238   : > { %v8948_v1 = vpop.permute.xlu2 %965 }
 0x239   : > { %14779 = vst [vmem:[#allocation32_spill] sm:$0xff] %v8948_v1 }
 0x250   : > { %v8946_v19 = vpop.permute.xlu1 %963  ;;  %v8956_v0 = vpop.permute.xlu2 %971 }
 0x251   : > { %14778 = vst [vmem:[#allocation31_spill] sm:$0xff] %v8946_v19 }
 0x252   : > { %v8950_v61 = vpop.permute.xlu0 %967  ;;  %14783 = vst [vmem:[#allocation36_spill] sm:$0xff] %v8956_v0 }
 0x253   : > { %14780 = vst [vmem:[#allocation33_spill] sm:$0xff] %v8950_v61 }
 0x258   : > { %v8952_v53 = vpop.permute.xlu1 %969  ;;  %v8966_v61 = vpop.permute.xlu2 %977 }
 0x259   : > { %14781 = vst [vmem:[#allocation34_spill] sm:$0xff] %v8952_v53 }
 0x25a   : > { %14785 = vst [vmem:[#allocation38_spill] sm:$0xff] %v8966_v61  ;;  %v599_v61 = vsel %vm598_vm6, %v8814_v35, %v8816_v36 }
 0x260   : > { %v8958_v54 = vpop.permute.xlu1 %975 }
 0x261   : > { %14784 = vst [vmem:[#allocation37_spill] sm:$0xff] %v8958_v54 }
 0x268   : > { %v8954_v5 = vpop.permute.xlu0 %973 }
 0x269   : > { %14782 = vst [vmem:[#allocation35_spill] sm:$0xff] %v8954_v5  ;;  %v1037_v5 = vpop.permute.xlu1 %1036 }
 0x26a   : > { %v1051_v54 = vmul.f32 %v1037_v5, %v1020_v9  ;;  %v1050_v0 = vmul.f32 %v1037_v5, %v1022_v25  ;;  %v1052_v53 = vmul.f32 %v1037_v5, %v8859_v50 }
 0x270   : > { %v1033_v14 = vpop.permute.xlu0 %1032 }
 0x271   : > { %v1048_v56 = vmul.f32 %v1033_v14, %v1020_v9  ;;  %v1047_v3 = vmul.f32 %v1033_v14, %v1019_v12  ;;  %v1049_v52 = vmul.f32 %v1033_v14, %v8859_v50  ;;  %v1041_v12 = vpop.permute.xlu2 %1040  ;;  %v1025_v14 = vmul.f32 %v8689_v46, %v8740_v15  ;;  %v1045_v5 = vpop.permute.xlu1 %1044 }
 0x272   : > { %v1058_v25 = vmul.f32 %v1045_v5, %v8859_v50 }
 0x273   : > { %1073 = vrot.lane.b32.xlu0 %v1048_v56, %s8497_s17  ;;  %1071 = vrot.lane.b32.xlu2 %v1047_v3, %s8497_s17  ;;  %v1054_v56 = vmul.f32 %v1041_v12, %v1020_v9  ;;  %v1055_v3 = vmul.f32 %v1041_v12, %v8859_v50  ;;  %v331_v50 = vld [vmem:[%s14505_s3 + $0x18] sm:$0xff] }
 0x274   : > { %1075 = vrot.lane.b32.xlu1 %v1049_v52, %s8497_s17  ;;  %v1053_v52 = vmul.f32 %v1041_v12, %v1025_v14  ;;  %v329_v12 = vld [vmem:[%s14505_s3 + $0x8] sm:$0xff]  ;;  %v328_v14 = vld [vmem:[%s14505_s3] sm:$0xff] }
 0x27b   : > { %1079 = vrot.lane.b32.xlu0 %v1051_v54, %s8497_s17  ;;  %1077 = vrot.lane.b32.xlu2 %v1050_v0, %s8497_s17  ;;  %v1028_v0 = vmul.f32 %v8689_v46, %v8752_v27  ;;  %v1057_v54 = vmul.f32 %v1045_v5, %v1020_v9  ;;  %v330_v46 = vld [vmem:[%s14505_s3 + $0x10] sm:$0xff]  ;;  %v1173_v9 = vld [vmem:[%s14507_s5] sm:$0xff] }
 0x27c   : > { %1081 = vrot.lane.b32.xlu1 %v1052_v53, %s8497_s17 }
 0x27d   : > { %v1056_v53 = vmul.f32 %v1045_v5, %v1028_v0  ;;  %v8001_v5 = vunpack.i.l.bf16 %v8660_v31 }
 0x27f   : > { %v9050_v1 = vmul.f32 %v8001_v5, %v8684_v41 }
 0x283   : > { %1085 = vrot.lane.b32.xlu0 %v1054_v56, %s8497_s17  ;;  %1083 = vrot.lane.b32.xlu2 %v1053_v52, %s8497_s17  ;;  %v14786_v56 = vmov 1   ;;  %v1174_v52 = vld [vmem:[%s14507_s5 + $0x8] sm:$0xff] }
 0x284   : > { %1087 = vrot.lane.b32.xlu1 %v1055_v3, %s8497_s17  ;;  %v8002_v3 = vunpack.i.h.bf16 %v8660_v31 }
 0x286   : > { %v363_v0 = vsel %vm362_vm5, %v8001_v5, %v8002_v3  ;;  %v372_v58 = vmul.f32 %v8002_v3, %v8671_v34  ;;  %v642_v36 = vmul.f32 %v8002_v3, %v8752_v27  ;;  %v9042_v57 = vmul.f32 0.0, %v8002_v3 }
 0x287   : > { %v632_v59 = vmul.f32 %v363_v0, %v8648_v22 }
 0x289   : > { %v660_v24 = vmul.f32 %v8721_v60, %v632_v59 }
 0x28b   : > { %1091 = vrot.lane.b32.xlu0 %v1057_v54, %s8497_s17  ;;  %1089 = vrot.lane.b32.xlu2 %v1056_v53, %s8497_s17  ;;  %v9009_v54 = vpop.permute.xlu0 %381  ;;  %v367_v53 = vmul.f32 0.0, %v8001_v5 }
 0x28c   : > { %1093 = vrot.lane.b32.xlu1 %v1058_v25, %s8497_s17  ;;  %v368_v25 = vmul.f32 0.0, %v363_v0 }
 0x28d   : > { %v659_v26 = vmul.f32 %v8721_v60, %v367_v53  ;;  %v405_v37 = vmul.f32 %v8658_v30, %v367_v53 }
 0x28e   : > { %v403_v59 = vmul.f32 %v8654_v28, %v368_v25 }
 0x293   : > { %1134 = vperm.xlu0 %8028, %v329_v12   ;;  %1129 = vperm.xlu2 %8031, %v328_v14   ;;  %v399_v14 = vmul.f32 %v9009_v54, %v367_v53 }
 0x294   : > { %1139 = vperm.xlu1 %8032, %v330_v46   ;;  %v400_v46 = vmul.f32 %v9009_v54, %v368_v25 }
 0x295   : > { %v487_v31 = vadd.f32 %v8794_v2, %v399_v14  ;;  %v638_v14 = vmul.f32 %v8684_v41, %v363_v0 }
 0x297   : > { %v619_v8 = vadd.f32 %v8814_v35, %v487_v31  ;;  %v408_v35 = vmul.f32 %v8637_v21, %v367_v53  ;;  %v375_v31 = vmul.f32 %v8002_v3, %v8684_v41  ;;  %v879_v41 = vmul.f32 %v8001_v5, %v8648_v22 }
 0x299   : > { %v671_v49 = vadd.f32 %v659_v26, %v619_v8  ;;  %v407_v8 = vmul.f32 %v8658_v30, %v375_v31  ;;  %v880_v26 = vmul.f32 %v363_v0, %v8692_v47  ;;  %v665_v31 = vmul.f32 %v8756_v33, %v367_v53 }
 0x29b   : > { %1144 = vperm.xlu2 %8031, %v331_v50   ;;  %8069 = vset.pattern.permute.xlu0 %v14786_v56  ;;  %v471_v50 = vsel %vm362_vm5, %v8794_v2, %v8790_v51  ;;  %v639_v56 = vmul.f32 %v8002_v3, %v8740_v15  ;;  %v635_v2 = vmul.f32 %v363_v0, %v8671_v34 }
 0x29c   : > { %1177 = vperm.xlu1 %8032, %v1173_v9   ;;  %v488_v9 = vadd.f32 %v471_v50, %v400_v46  ;;  %v633_v46 = vmul.f32 %v8002_v3, %v8692_v47  ;;  %v378_v50 = vmul.f32 %v8002_v3, %v8675_v38  ;;  %v9053_v51 = vmul.f32 %v8678_v40, %v367_v53 }
 0x29d   : > { %v9056_v48 = vmul.f32 %v8678_v40, %v635_v2  ;;  %v9072_v2 = vmul.f32 %v8001_v5, %v8671_v34  ;;  %v666_v47 = vmul.f32 %v8756_v33, %v638_v14  ;;  %v9088_v34 = vmul.f32 %v8756_v33, %v639_v56 }
 0x29e   : > { %v620_v7 = vadd.f32 %v599_v61, %v488_v9  ;;  %v402_v61 = vmul.f32 %v8654_v28, %v367_v53  ;;  %v404_v9 = vmul.f32 %v8654_v28, %v372_v58  ;;  %v410_v19 = vmul.f32 %v8637_v21, %v378_v50 }
 0x29f   : > { %v731_v28 = vsel %vm362_vm5, %v8808_v23, %v8804_v16  ;;  %v369_v50 = vmul.f32 %v8002_v3, %v8648_v22  ;;  %v602_v22 = vsel %vm598_vm6, %v8822_v42, %v8824_v43  ;;  %v493_v56 = vadd.f32 %v8800_v32, %v405_v37 }
 0x2a0   : > { %v672_v29 = vadd.f32 %v660_v24, %v620_v7  ;;  %v406_v7 = vmul.f32 %v8658_v30, %v368_v25  ;;  %v9076_v30 = vmul.f32 %v363_v0, %v8728_v63  ;;  %v492_v33 = vadd.f32 %v8792_v55, %v404_v9 }
 0x2a1   : > { %v473_v43 = vsel %vm362_vm5, %v8800_v32, %v8802_v13  ;;  %v474_v32 = vsel %vm362_vm5, %v8796_v4, %v8806_v17 }
 0x2a2   : > { %v494_v9 = vadd.f32 %v473_v43, %v406_v7  ;;  %v14796_v7 = vld [vmem:[#allocation13_spill] sm:$0xff] }
 0x2a3   : > { %1182 = vperm.xlu2 %8031, %v1174_v52   ;;  %v636_v52 = vmul.f32 %v8002_v3, %v8728_v63  ;;  %v9094_v63 = vmul.f32 %v8732_v6, %v367_v53  ;;  %v496_v3 = vadd.f32 %v8796_v4, %v408_v35  ;;  %v908_v53 = vmul.f32 %v8915_v20, %v880_v26 }
 0x2a5   : > { %v664_v58 = vmul.f32 %v8678_v40, %v636_v52  ;;  %v747_v40 = vadd.f32 %v8808_v23, %v671_v49  ;;  %v9079_v52 = vmul.f32 %v8001_v5, %v8675_v38  ;;  %v9091_v23 = vmul.f32 %v8721_v60, %v633_v46 }
 0x2a6   : > { %v472_v60 = vsel %vm362_vm5, %v8798_v11, %v8792_v55  ;;  %v624_v5 = vadd.f32 %v602_v22, %v492_v33  ;;  %v401_v55 = vmul.f32 %v9009_v54, %v369_v50  ;;  %v603_v54 = vsel %vm598_vm6, %v8826_v44, %v8828_v45  ;;  %v14792_v33 = vld [vmem:[#allocation31_spill] sm:$0xff] }
 0x2a7   : > { %v867_v49 = vadd.f32 %v8891_v10, %v747_v40  ;;  %v491_v14 = vadd.f32 %v472_v60, %v403_v59  ;;  %v495_v59 = vadd.f32 %v8802_v13, %v407_v8  ;;  %v14789_v40 = vld [vmem:[#allocation10_spill] sm:$0xff]  ;;  %v626_v22 = vadd.f32 %v603_v54, %v494_v9 }
 0x2a8   : > { %v676_v26 = vadd.f32 %v664_v58, %v624_v5  ;;  %v604_v4 = vsel %vm598_vm6, %v8828_v45, %v14789_v40 }
 0x2a9   : > { %v627_v5 = vadd.f32 %v604_v4, %v495_v59  ;;  %v678_v9 = vadd.f32 %v666_v47, %v626_v22  ;;  %v14800_v59 = vld [vmem:[#allocation7_spill] sm:$0xff] }
 0x2ab   : > { %v679_v4 = vadd.f32 %v9088_v34, %v627_v5 }
 0x2cd   : > { %v9011_v12 = vpop.permute.xlu2 %1071 }
 0x2ce   : > { %14787 = vst [vmem:[#allocation39_spill] sm:$0xff] %v9011_v12  ;;  %v9046_v12 = vmul.f32 %v8637_v21, %v368_v25  ;;  %v9065_v21 = vmul.f32 %v8740_v15, %v363_v0  ;;  %v748_v25 = vadd.f32 %v731_v28, %v672_v29  ;;  %v9082_v15 = vmul.f32 %v8752_v27, %v363_v0 }
 0x2cf   : > { %v847_v27 = vsel %vm598_vm6, %v8891_v10, %v8899_v18  ;;  %v490_v10 = vadd.f32 %v8798_v11, %v402_v61 }
 0x2d0   : > { %v868_v29 = vadd.f32 %v847_v27, %v748_v25  ;;  %v14790_v25 = vld [vmem:[#allocation5_spill] sm:$0xff]  ;;  %v14791_v27 = vld [vmem:[#allocation32_spill] sm:$0xff] }
 0x2d1   : > { %v622_v28 = vadd.f32 %v8820_v39, %v490_v10  ;;  %v489_v50 = vadd.f32 %v14790_v25, %v401_v55  ;;  %v979_v60 = vsel %vm362_vm5, %v14792_v33, %v14791_v27 }
 0x2d2   : > { %v920_v35 = vadd.f32 %v908_v53, %v868_v29  ;;  %v14797_v29 = vld [vmem:[#allocation9_spill] sm:$0xff] }
 0x2d3   : > { %v674_v53 = vadd.f32 %v9053_v51, %v622_v28 }
 0x2d5   : > { %v9024_v62 = vpop.permute.xlu2 %1077 }
 0x2d6   : > { %14788 = vst [vmem:[#allocation40_spill] sm:$0xff] %v9024_v62  ;;  %v641_v62 = vmul.f32 %v8675_v38, %v363_v0  ;;  %v907_v0 = vmul.f32 %v8915_v20, %v879_v41 }
 0x2d8   : > { %v9097_v38 = vmul.f32 %v8732_v6, %v641_v62  ;;  %v670_v62 = vmul.f32 %v8732_v6, %v642_v36  ;;  %v601_v6 = vsel %vm598_vm6, %v8820_v39, %v8822_v42  ;;  %v625_v36 = vadd.f32 %v8826_v44, %v493_v56  ;;  %v14795_v39 = vld [vmem:[#allocation11_spill] sm:$0xff]  ;;  %v14798_v56 = vld [vmem:[#allocation8_spill] sm:$0xff] }
 0x2d9   : > { %v919_v11 = vadd.f32 %v907_v0, %v867_v49  ;;  %v498_v42 = vadd.f32 %v8806_v17, %v410_v19  ;;  %v623_v41 = vadd.f32 %v601_v6, %v491_v14  ;;  %v14793_v17 = vld [vmem:[#allocation39_spill] sm:$0xff]  ;;  %v14794_v19 = vld [vmem:[#allocation12_spill] sm:$0xff]  ;;  %v497_v49 = vadd.f32 %v474_v32, %v9046_v12 }
 0x2da   : > { %v677_v44 = vadd.f32 %v665_v31, %v625_v36  ;;  %v605_v58 = vsel %vm598_vm6, %v14795_v39, %v14794_v19  ;;  %v606_v45 = vsel %vm598_vm6, %v14794_v19, %v14796_v7  ;;  %v996_v31 = vadd.f32 %v979_v60, %v920_v35 }
 0x2db   : > { %v995_v8 = vadd.f32 %v14792_v33, %v919_v11  ;;  %v600_v43 = vsel %vm598_vm6, %v14798_v56, %v14797_v29  ;;  %v628_v0 = vadd.f32 %v14795_v39, %v496_v3  ;;  %v629_v6 = vadd.f32 %v605_v58, %v497_v49  ;;  %v14799_v11 = vld [vmem:[#allocation6_spill] sm:$0xff]  ;;  %v14807_v39 = vld [vmem:[#allocation17_spill] sm:$0xff] }
 0x2dc   : > { %v621_v55 = vadd.f32 %v600_v43, %v489_v50  ;;  %v630_v36 = vadd.f32 %v606_v45, %v498_v42  ;;  %v675_v54 = vadd.f32 %v9056_v48, %v623_v41  ;;  %v752_v35 = vadd.f32 %v14799_v11, %v676_v26  ;;  %v14801_v48 = vld [vmem:[#allocation3_spill] sm:$0xff]  ;;  %v14802_v41 = vld [vmem:[#allocation4_spill] sm:$0xff]  ;;  %v14803_v26 = vld [vmem:[#allocation14_spill] sm:$0xff] }
 0x2dd   : > { %v9068_v24 = vpop.permute.xlu2 %1083  ;;  %v1115_v10 = vadd.f32 %v14793_v17, %v995_v8  ;;  %v753_v40 = vadd.f32 %v14800_v59, %v677_v44  ;;  %v680_v42 = vadd.f32 %v9094_v63, %v628_v0  ;;  %vm1362_vm7 = vcmp.ge.s32.totalorder %v14801_v48, 4  ;;  %v14805_v63 = vld [vmem:[#allocation16_spill] sm:$0xff]  ;;  %v14808_v8 = vld [vmem:[#allocation23_spill] sm:$0xff]  ;;  %v14810_v56 = vld [vmem:[#allocation26_spill] sm:$0xff] }
 0x2de   : > { %vm1363_vm8 = vcmp.ge.s32.totalorder %v14802_v41, 4  ;;  %v732_v47 = vsel %vm362_vm5, %v14803_v26, %v14799_v11  ;;  %v673_v25 = vadd.f32 %v9091_v23, %v621_v55  ;;  %v682_v22 = vadd.f32 %v670_v62, %v630_v36  ;;  %v14811_v43 = vld [vmem:[#allocation22_spill] sm:$0xff]  ;;  %v14812_v0 = vld [vmem:[#allocation21_spill] sm:$0xff] }
 0x2df   : > { %v681_v33 = vadd.f32 %v9097_v38, %v629_v6  ;;  %v14804_v60 = vmov 0.0   ;;  %v733_v58 = vsel %vm362_vm5, %v14800_v59, %v14807_v39  ;;  %v750_v23 = vadd.f32 %v14803_v26, %v674_v53  ;;  %v14813_v11 = vld [vmem:[#allocation18_spill] sm:$0xff] }
 0x2e0   : > { %v7816_v34 = vsel %vm1363_vm8, 1.0, %v14804_v60  ;;  %v751_v62 = vadd.f32 %v732_v47, %v675_v54  ;;  %v758_v29 = vadd.f32 %v14805_v63, %v682_v22  ;;  %v851_v5 = vsel %vm598_vm6, %v14811_v43, %v14810_v56  ;;  %v14817_v22 = vld [vmem:[#allocation28_spill] sm:$0xff] }
 0x2e1   : > { %v852_v55 = vsel %vm598_vm6, %v14810_v56, %v14812_v0  ;;  %v755_v6 = vadd.f32 %v14807_v39, %v679_v4  ;;  %v848_v59 = vsel %vm598_vm6, %v8899_v18, %v14813_v11  ;;  %v14816_v18 = vld [vmem:[#allocation24_spill] sm:$0xff]  ;;  %vm1368_vm10 = vcmp.lt.s32.totalorder %v14801_v48, 12 }
 0x2e2   : > { %vm1369_vm11 = vcmp.lt.s32.totalorder %v14802_v41, 12  ;;  %vm2639_vm8 = vcmask 1031168  }
 0x2e5   : > { %v9124_v37 = vpop.permute.xlu0 %1073  ;;  %v9126_v46 = vpop.permute.xlu2 %1089 }
 0x2e6   : > { %v9134_v61 = vpop.permute.xlu1 %1075  ;;  %v1095_v13 = vsel %vm598_vm6, %v14793_v17, %v9124_v37  ;;  %v7815_v17 = vsel %vm1362_vm7, 1.0, %v14804_v60  ;;  %vm2678_vm7 = vcmask 801792  }
 0x2e7   : > { %v1116_v14 = vadd.f32 %v1095_v13, %v996_v31  ;;  %v14806_v13 = vld [vmem:[#allocation15_spill] sm:$0xff]  ;;  %v9191_v45 = vpack.i.bf16 %v7816_v34, %v7815_v17  ;;  %v14809_v31 = vld [vmem:[#allocation20_spill] sm:$0xff] }
 0x2e8   : > { %v734_v19 = vsel %vm362_vm5, %v14806_v13, %v14805_v63  ;;  %v756_v38 = vadd.f32 %v14806_v13, %v680_v42  ;;  %v849_v49 = vsel %vm598_vm6, %v14809_v31, %v14808_v8  ;;  %v870_v36 = vadd.f32 %v14809_v31, %v750_v23  ;;  %v14819_v63 = vld [vmem:[#allocation25_spill] sm:$0xff] }
 0x2e9   : > { %v757_v53 = vadd.f32 %v734_v19, %v681_v33  ;;  %v14818_v33 = vld [vmem:[#allocation29_spill] sm:$0xff]  ;;  %v853_v13 = vsel %vm598_vm6, %v14819_v63, %v14817_v22  ;;  %v14820_v19 = vld [vmem:[#allocation30_spill] sm:$0xff] }
 0x2ea   : > { %v910_v17 = vmul.f32 %v14818_v33, %v9072_v2  ;;  %v918_v39 = vmul.f32 %v14820_v19, %v9042_v57  ;;  %v916_v2 = vmul.f32 %v14820_v19, %v9079_v52  ;;  %v917_v23 = vmul.f32 %v14820_v19, %v9082_v15 }
 0x2ec   : > { %v922_v56 = vadd.f32 %v910_v17, %v870_v36 }
 0x2ed   : > { %v9165_v12 = vpop.permute.xlu0 %1079  ;;  %v9167_v32 = vpop.permute.xlu2 %1129 }
 0x2ee   : > { %v9170_v3 = vpop.permute.xlu1 %1081  ;;  %v1147_v51 = vadd.f32 %v9167_v32, %v1115_v10  ;;  %v1148_v28 = vadd.f32 %v9167_v32, %v1116_v14  ;;  %v749_v10 = vadd.f32 %v8804_v16, %v673_v25  ;;  %v754_v14 = vadd.f32 %v733_v58, %v678_v9  ;;  %v14815_v9 = vld [vmem:[#allocation27_spill] sm:$0xff] }
 0x2ef   : > { %v871_v16 = vadd.f32 %v849_v49, %v751_v62  ;;  %v875_v25 = vadd.f32 %v852_v55, %v755_v6  ;;  %v913_v4 = vmul.f32 %v14815_v9, %v9050_v1  ;;  %v911_v1 = vmul.f32 %v14818_v33, %v9076_v30  ;;  %v14821_v55 = vld [vmem:[#allocation34_spill] sm:$0xff] }
 0x2f0   : > { %v1159_v50 = vmax.f32 %v1147_v51, 0.0  ;;  %v1160_v44 = vmax.f32 %v1148_v28, 0.0  ;;  %v873_v51 = vadd.f32 %v14811_v43, %v753_v40  ;;  %v14814_v28 = vld [vmem:[#allocation19_spill] sm:$0xff]  ;;  %v874_v47 = vadd.f32 %v851_v5, %v754_v14  ;;  %v14823_v14 = vld [vmem:[#allocation36_spill] sm:$0xff] }
 0x2f1   : > { %v850_v42 = vsel %vm598_vm6, %v14808_v8, %v14814_v28  ;;  %v854_v40 = vsel %vm598_vm6, %v14817_v22, %v14816_v18  ;;  %v869_v34 = vadd.f32 %v848_v59, %v749_v10  ;;  %v876_v62 = vadd.f32 %v14819_v63, %v756_v38  ;;  %v14822_v10 = vld [vmem:[#allocation33_spill] sm:$0xff]  ;;  %v14824_v38 = vld [vmem:[#allocation38_spill] sm:$0xff]  ;;  %v14827_v18 = vld [vmem:[#allocation40_spill] sm:$0xff] }
 0x2f2   : > { %v8033_v7 = vpack.i.bf16 %v1160_v44, %v1159_v50  ;;  %v914_v50 = vmul.f32 %v14815_v9, %v9065_v21  ;;  %v915_v44 = vmul.f32 %v14815_v9, %v9042_v57  ;;  %v912_v21 = vmul.f32 %v14818_v33, %v9042_v57 }
 0x2f3   : > { %v872_v58 = vadd.f32 %v850_v42, %v752_v35  ;;  %v878_v8 = vadd.f32 %v854_v40, %v758_v29  ;;  %v925_v30 = vadd.f32 %v913_v4, %v873_v51  ;;  %v877_v49 = vadd.f32 %v853_v13, %v757_v53  ;;  %v14825_v29 = vld [vmem:[#allocation37_spill] sm:$0xff] }
 0x2f4   : > { %8034 = vrot.lane.b32.xlu0 %v8033_v7, %s8494_s8  ;;  %v909_v7 = vmul.f32 %v8915_v20, %v9042_v57  ;;  %v926_v31 = vadd.f32 %v914_v50, %v874_v47  ;;  %v927_v43 = vadd.f32 %v915_v44, %v875_v25  ;;  %v923_v0 = vadd.f32 %v911_v1, %v871_v16  ;;  %v14826_v25 = vld [vmem:[#allocation35_spill] sm:$0xff] }
 0x2f5   : > { %v1086_v54 = vpop.permute.xlu0 %1085  ;;  %v924_v35 = vadd.f32 %v912_v21, %v872_v58  ;;  %v980_v57 = vsel %vm362_vm5, %v14822_v10, %v14821_v55  ;;  %v930_v20 = vadd.f32 %v918_v39, %v878_v8  ;;  %v1001_v6 = vadd.f32 %v14823_v14, %v925_v30  ;;  %v1145_v17 = vpop.permute.xlu2 %1144 }
 0x2f6   : > { %v1088_v26 = vpop.permute.xlu1 %1087  ;;  %v921_v5 = vadd.f32 %v909_v7, %v869_v34  ;;  %v928_v15 = vadd.f32 %v916_v2, %v876_v62  ;;  %v929_v11 = vadd.f32 %v917_v23, %v877_v49  ;;  %v982_v59 = vsel %vm362_vm5, %v14825_v29, %v14824_v38 }
 0x2f7   : > { %v998_v36 = vadd.f32 %v14822_v10, %v922_v56  ;;  %v1000_v51 = vadd.f32 %v14821_v55, %v924_v35  ;;  %v1006_v28 = vadd.f32 %v14824_v38, %v930_v20  ;;  %v1096_v42 = vsel %vm598_vm6, %v9124_v37, %v9134_v61 }
 0x2f8   : > { %v999_v16 = vadd.f32 %v980_v57, %v923_v0  ;;  %v1004_v47 = vadd.f32 %v14825_v29, %v928_v15  ;;  %v981_v9 = vsel %vm362_vm5, %v14823_v14, %v14826_v25  ;;  %v997_v4 = vadd.f32 %v14791_v27, %v921_v5  ;;  %v9288_v29 = vld [vmem:[%s14504_s2 + $0x20] sm:$0xff] }
 0x2f9   : > { %v1005_v50 = vadd.f32 %v982_v59, %v929_v11  ;;  %v1003_v44 = vadd.f32 %v14826_v25, %v927_v43  ;;  %v1097_v22 = vsel %vm598_vm6, %v14827_v18, %v9165_v12  ;;  %v1098_v37 = vsel %vm598_vm6, %v9165_v12, %v9170_v3  ;;  %v9293_v59 = vld [vmem:[%s14504_s2 + $0x28] sm:$0xff] }
 0x2fa   : > { %v1117_v61 = vadd.f32 %v1096_v42, %v997_v4  ;;  %v1099_v40 = vsel %vm598_vm6, %v9068_v24, %v1086_v54  ;;  %v1100_v33 = vsel %vm598_vm6, %v1086_v54, %v1088_v26  ;;  %v1002_v34 = vadd.f32 %v981_v9, %v926_v31 }
 0x2fb   : > { %v1118_v63 = vadd.f32 %v14827_v18, %v998_v36  ;;  %v1124_v13 = vadd.f32 %v9126_v46, %v1004_v47  ;;  %v1121_v21 = vadd.f32 %v9068_v24, %v1001_v6  ;;  %v1119_v12 = vadd.f32 %v1097_v22, %v999_v16 }
 0x2fc   : > { %v1120_v3 = vadd.f32 %v1098_v37, %v1000_v51  ;;  %v1149_v19 = vadd.f32 %v9167_v32, %v1117_v61  ;;  %v1122_v39 = vadd.f32 %v1099_v40, %v1002_v34  ;;  %v1123_v58 = vadd.f32 %v1100_v33, %v1003_v44 }
 0x2fd   : > { %v1092_v52 = vpop.permute.xlu0 %1091  ;;  %v1156_v54 = vadd.f32 %v1145_v17, %v1124_v13  ;;  %v14828_v36 = vmov 1   ;;  %v14829_v51 = vmov 2   ;;  %v14830_v42 = vmov 3   ;;  %v9332_v9 = vpop.permute.xlu2 %1182 }
 0x2fe   : > { %v1094_v53 = vpop.permute.xlu1 %1093  ;;  %v1101_v27 = vsel %vm598_vm6, %v9126_v46, %v1092_v52  ;;  %v1161_v56 = vmax.f32 %v1149_v19, 0.0  ;;  %v14831_v16 = vmov 4   ;;  %v14832_v47 = vmov 5   ;;  %v1171_v19 = vld [vmem:[%s14506_s4] sm:$0xff] }
 0x2ff   : > { %v1102_v1 = vsel %vm598_vm6, %v1092_v52, %v1094_v53  ;;  %v1125_v26 = vadd.f32 %v1101_v27, %v1005_v50  ;;  %v1168_v55 = vmax.f32 %v1156_v54, 0.0  ;;  %v9301_v53 = vld [vmem:[%s14504_s2 + $0x38] sm:$0xff]  ;;  %v14833_v25 = vmov 6  }
 0x300   : > { %v1126_v2 = vadd.f32 %v1102_v1, %v1006_v28  ;;  %v9311_v28 = vld [vmem:[%s14504_s2 + $0x30] sm:$0xff] }
 0x301   : > { %v1157_v20 = vadd.f32 %v1145_v17, %v1125_v26 }
 0x302   : > { %v1158_v52 = vadd.f32 %v1145_v17, %v1126_v2  ;;  %v7818_v2 = vsel %vm1369_vm11, 1.0, %v14804_v60  ;;  %vm3118_vm11 = vcmask 244736  }
 0x303   : > { %v1169_v15 = vmax.f32 %v1157_v20, 0.0 }
 0x304   : > { %v1170_v11 = vmax.f32 %v1158_v52, 0.0 }
 0x305   : > { %v1135_v7 = vpop.permute.xlu0 %1134 }
 0x306   : > { %v1140_v23 = vpop.permute.xlu1 %1139  ;;  %v1150_v62 = vadd.f32 %v1135_v7, %v1118_v63  ;;  %v1151_v8 = vadd.f32 %v1135_v7, %v1119_v12  ;;  %v1152_v30 = vadd.f32 %v1135_v7, %v1120_v3  ;;  %v8058_v38 = vpack.i.bf16 %v1170_v11, %v1169_v15 }
 0x307   : > { %v1153_v31 = vadd.f32 %v1140_v23, %v1121_v21  ;;  %v1154_v46 = vadd.f32 %v1140_v23, %v1122_v39  ;;  %v1155_v49 = vadd.f32 %v1140_v23, %v1123_v58  ;;  %v7817_v7 = vsel %vm1368_vm10, 1.0, %v14804_v60 }
 0x308   : > { %v1162_v43 = vmax.f32 %v1150_v62, 0.0  ;;  %v1163_v24 = vmax.f32 %v1151_v8, 0.0  ;;  %v1164_v5 = vmax.f32 %v1152_v30, 0.0  ;;  %v8090_v23 = vpack.i.bf16 %v7818_v2, %v7817_v7 }
 0x309   : > { %v1165_v0 = vmax.f32 %v1153_v31, 0.0  ;;  %v1166_v35 = vmax.f32 %v1154_v46, 0.0  ;;  %v1167_v32 = vmax.f32 %v1155_v49, 0.0  ;;  %vm3000_vm10 = vcmask 15360  }
 0x30a   : > { %v8038_v10 = vpack.i.bf16 %v1162_v43, %v1161_v56  ;;  %v8043_v57 = vpack.i.bf16 %v1164_v5, %v1163_v24  ;;  %v1172_v56 = vld [vmem:[%s14506_s4 + $0x8] sm:$0xff] }
 0x30b   : > { %v8048_v14 = vpack.i.bf16 %v1166_v35, %v1165_v0  ;;  %v8053_v6 = vpack.i.bf16 %v1168_v55, %v1167_v32 }
 0x30c   : > { %8039 = vrot.lane.b32.xlu1 %v8038_v10, %s8494_s8  ;;  %8044 = vrot.lane.b32.xlu2 %v8043_v57, %s8494_s8 }
 0x30d   : > { %8049 = vrot.lane.b32.xlu0 %v8048_v14, %s8494_s8 }
 0x30e   : > { %v9337_v33 = vpop.permute.xlu1 %1177 }
 0x314   : > { %8054 = vrot.lane.b32.xlu1 %v8053_v6, %s8494_s8  ;;  %8059 = vrot.lane.b32.xlu2 %v8058_v38, %s8494_s8  ;;  %s8510_s8 = smov 2  }
 0x315   : > { %8064 = vrot.lane.b32.xlu0 %v9191_v45, %s8502_s9 }
 0x31c   : > { %1411 = vperm.xlu1 %8032, %v9288_v29   ;;  %1416 = vperm.xlu2 %8031, %v9293_v59  }
 0x31d   : > { %1458 = vperm.xlu0 %8069, %v9293_v59  }
 0x324   : > { %1426 = vperm.xlu1 %8032, %v9301_v53   ;;  %8068 = vset.pattern.permute.xlu2 %v14828_v36 }
 0x325   : > { %1454 = vperm.xlu2 %8068, %v9288_v29   ;;  %8077 = vset.pattern.permute.xlu0 %v14829_v51 }
 0x326   : > { %1578 = vperm.xlu0 %8077, %v9293_v59  }
 0x32c   : > { %8070 = vset.pattern.permute.xlu1 %v14828_v36 }
 0x32d   : > { %1462 = vperm.xlu1 %8070, %v9311_v28   ;;  %1466 = vperm.xlu2 %8068, %v9301_v53  }
 0x32e   : > { %8085 = vset.pattern.permute.xlu0 %v14830_v42 }
 0x32f   : > { %1694 = vperm.xlu0 %8085, %v9293_v59  }
 0x335   : > { %8076 = vset.pattern.permute.xlu2 %v14829_v51  ;;  %8078 = vset.pattern.permute.xlu1 %v14829_v51 }
 0x336   : > { %1574 = vperm.xlu2 %8076, %v9288_v29  }
 0x337   : > { %8089 = vset.pattern.permute.xlu0 %v14831_v16 }
 0x338   : > { %1795 = vperm.xlu0 %8089, %v9311_v28  }
 0x33e   : > { %1586 = vperm.xlu2 %8076, %v9301_v53  }
 0x340   : > { %8095 = vset.pattern.permute.xlu0 %v14832_v47 }
 0x341   : > { %1896 = vperm.xlu0 %8095, %v9288_v29  }
 0x346   : > { %8084 = vset.pattern.permute.xlu2 %v14830_v42 }
 0x347   : > { %1690 = vperm.xlu2 %8084, %v9288_v29  }
 0x349   : > { %8099 = vset.pattern.permute.xlu0 %v14833_v25 }
 0x34f   : > { %1702 = vperm.xlu2 %8084, %v9301_v53  }
 0x357   : > { %8088 = vset.pattern.permute.xlu2 %v14831_v16 }
 0x358   : > { %1791 = vperm.xlu2 %8088, %v9293_v59  }
 0x360   : > { %8097 = vset.pattern.permute.xlu2 %v14832_v47 }
 0x361   : > { %8091 = vrot.lane.b32.xlu2 %v8090_v23, %s8504_s23  ;;  %s8514_s23 = smov 30  }
 0x366   : > { %v8045_v4 = vpop.permute.xlu2 %8044  ;;  %v8035_v17 = vpop.permute.xlu0 %8034 }
 0x367   : > { %v8047_v50 = vunpack.i.h.bf16 %v8045_v4  ;;  %v8046_v44 = vunpack.i.l.bf16 %v8045_v4  ;;  %v8037_v63 = vunpack.i.h.bf16 %v8035_v17  ;;  %v8036_v13 = vunpack.i.l.bf16 %v8035_v17 }
 0x369   : > { %v1206_v18 = vsel %vm517_vm4, %v8046_v44, %v8047_v50  ;;  %v1203_v26 = vsel %vm517_vm4, %v8036_v13, %v8037_v63  ;;  %1904 = vperm.xlu2 %8097, %v9311_v28  }
 0x36a   : > { %1255 = vmatpush.msra.mxu1 %v1206_v18 }
 0x36e   : > { %v8060_v22 = vpop.permute.xlu2 %8059 }
 0x36f   : > { %v8062_v37 = vunpack.i.h.bf16 %v8060_v22  ;;  %v8061_v61 = vunpack.i.l.bf16 %v8060_v22 }
 0x371   : > { %v1289_v40 = vsel %vm517_vm4, %v8061_v61, %v8062_v37  ;;  %8098 = vset.pattern.permute.xlu2 %v14833_v25 }
 0x372   : > { %1331 = vmatpush.msra.mxu3 %v1289_v40 }
 0x376   : > { %v9339_v27 = vpop.permute.xlu2 %1416 }
 0x37e   : > { %v8040_v34 = vpop.permute.xlu1 %8039 }
 0x37f   : > { %v8042_v1 = vunpack.i.h.bf16 %v8040_v34  ;;  %v8041_v21 = vunpack.i.l.bf16 %v8040_v34  ;;  %v8050_v12 = vpop.permute.xlu0 %8049  ;;  %v9341_v3 = vpop.permute.xlu2 %1454 }
 0x380   : > { %v1469_v39 = vmul.f32 0.0, %v9341_v3  ;;  %v8052_v8 = vunpack.i.h.bf16 %v8050_v12  ;;  %v8051_v30 = vunpack.i.l.bf16 %v8050_v12 }
 0x381   : > { %v1205_v58 = vsel %vm517_vm4, %v8042_v1, %v8046_v44  ;;  %v1204_v54 = vsel %vm517_vm4, %v8037_v63, %v8041_v21 }
 0x382   : > { %1232 = vmatpush.msra.mxu0 %v1205_v58  ;;  %1256 = vmatpush.msra.mxu1 %v1204_v54  ;;  %v1286_v5 = vsel %vm517_vm4, %v8051_v30, %v8052_v8 }
 0x383   : > { %7801 = vmatmul.msk.f32.vlgmr.msra.gmra.mxu1 %vm1211_vm9, %v1171_v19  ;;  %1493 = vrot.lane.b32.xlu1 %v1469_v39, %s8503_s22 }
 0x384   : > { %1233 = vmatpush.msra.mxu0 %v1203_v26 }
 0x385   : > { %7799 = vmatmul.msk.f32.vlgmr.msra.gmra.mxu0 %vm1211_vm9, %v1171_v19 }
 0x386   : > { %v8055_v62 = vpop.permute.xlu1 %8054 }
 0x387   : > { %v9357_v31 = vpop.permute.xlu0 %8064  ;;  %v8057_v46 = vunpack.i.h.bf16 %v8055_v62  ;;  %v8056_v49 = vunpack.i.l.bf16 %v8055_v62  ;;  %v9385_v20 = vpop.permute.xlu2 %1466 }
 0x388   : > { %v1478_v52 = vmul.f32 0.0, %v9385_v20 }
 0x389   : > { %v1288_v43 = vsel %vm517_vm4, %v8057_v46, %v8061_v61  ;;  %v1287_v24 = vsel %vm517_vm4, %v8052_v8, %v8056_v49 }
 0x38a   : > { %1308 = vmatpush.msra.mxu2 %v1288_v43  ;;  %1332 = vmatpush.msra.mxu3 %v1287_v24 }
 0x38b   : > { %7802 = vmatmul.msk.f32.gmra.mxu1 %vm1211_vm9, %v1172_v56  ;;  %7805 = vmatmul.msk.f32.vlgmr.msra.gmra.mxu3 %vm1211_vm9, %v1171_v19 }
 0x38c   : > { %1309 = vmatpush.msra.mxu2 %v1286_v5 }
 0x38d   : > { %7800 = vmatmul.msk.f32.gmra.mxu0 %vm1211_vm9, %v1172_v56  ;;  %7803 = vmatmul.msk.f32.vlgmr.msra.gmra.mxu2 %vm1211_vm9, %v1171_v19 }
 0x38e   : > { %v9369_v0 = vpop.permute.xlu1 %1411 }
 0x38f   : > { %v9372_v35 = vpop.permute.xlu0 %1458 }
 0x390   : > { %v1472_v32 = vmul.f32 0.0, %v9372_v35  ;;  %v9424_v21 = vpop.permute.xlu2 %1574 }
 0x392   : > { %1499 = vrot.lane.b32.xlu1 %v1472_v32, %s8503_s22 }
 0x393   : > { %7806 = vmatmul.msk.f32.gmra.mxu3 %vm1211_vm9, %v1172_v56 }
 0x395   : > { %7804 = vmatmul.msk.f32.gmra.mxu2 %vm1211_vm9, %v1172_v56 }
 0x396   : > { %v9378_v55 = vpop.permute.xlu1 %1426 }
 0x398   : > { %v9430_v19 = vpop.permute.xlu0 %1578  ;;  %v9438_v26 = vpop.permute.xlu2 %1586 }
 0x39f   : > { %v9381_v10 = vpop.permute.xlu1 %1462 }
 0x3a0   : > { %v1475_v57 = vmul.f32 0.0, %v9381_v10 }
 0x3a1   : > { %v9458_v49 = vpop.permute.xlu0 %1694 }
 0x3a2   : > { %1505 = vrot.lane.b32.xlu1 %v1475_v57, %s8503_s22 }
 0x3aa   : > { %1511 = vrot.lane.b32.xlu1 %v1478_v52, %s8503_s22  ;;  %v9462_v43 = vpop.permute.xlu0 %1795 }
 0x3b2   : > { %8072 = vrot.lane.b32.xlu1 %v8090_v23, %s8505_s26  ;;  %v9448_v23 = vpop.permute.xlu2 %1690 }
 0x3ba   : > { %1582 = vperm.xlu1 %8078, %v9311_v28   ;;  %v9452_v8 = vpop.permute.xlu2 %1702 }
 0x3c2   : > { %8086 = vset.pattern.permute.xlu1 %v14830_v42  ;;  %v9456_v46 = vpop.permute.xlu2 %1791 }
 0x3f5   : > { %v9392_v6 = vpop.permute.xlu1 %1493 }
 0x400   : > { %v1258_v14 = vpop.f32.mrf.mxu1 }
 0x401   : > { %v1259_v15 = vadd.f32 %v1258_v14, %v9337_v33 }
 0x402   : > { %v1235_v11 = vpop.f32.mrf.mxu0 }
 0x403   : > { %v9395_v38 = vmax.f32 %v1259_v15, 0.0  ;;  %v1236_v4 = vadd.f32 %v1235_v11, %v9337_v33 }
 0x404   : > { %v9406_v22 = vpop.permute.xlu1 %1499 }
 0x405   : > { %v9398_v50 = vmax.f32 %v1236_v4, 0.0  ;;  %v1471_v44 = vmul.f32 %v9341_v3, %v9395_v38 }
 0x407   : > { %1497 = vrot.lane.b32.xlu0 %v1471_v44, %s8503_s22  ;;  %v1470_v18 = vmul.f32 %v9341_v3, %v9398_v50 }
 0x409   : > { %1495 = vrot.lane.b32.xlu2 %v1470_v18, %s8503_s22 }
 0x414   : > { %v9408_v37 = vpop.permute.xlu1 %1505 }
 0x41c   : > { %v9410_v61 = vpop.permute.xlu1 %1511 }
 0x41d   : > { %14834 = vst [vmem:[#allocation10_spill] sm:$0xff] %v9410_v61 }
 0x424   : > { %v8073_v40 = vpop.permute.xlu1 %8072 }
 0x425   : > { %v9412_v17 = vunpack.i.h.bf16 %v8073_v40  ;;  %v9414_v34 = vunpack.i.l.bf16 %v8073_v40 }
 0x427   : > { %v9419_v63 = vsel %vm1556_vm12, %v9414_v34, %v9412_v17  ;;  %v1561_v13 = vmul.f32 0.0, %v9414_v34  ;;  %v1563_v1 = vmul.f32 %v9412_v17, %v9395_v38 }
 0x429   : > { %v1589_v12 = vmul.f32 %v9424_v21, %v1561_v13  ;;  %v1591_v3 = vmul.f32 %v9424_v21, %v1563_v1  ;;  %v1592_v39 = vmul.f32 %v9430_v19, %v1561_v13  ;;  %v1598_v7 = vmul.f32 %v9438_v26, %v1561_v13  ;;  %v1334_v1 = vpop.f32.mrf.mxu3 }
 0x42b   : > { %1613 = vrot.lane.b32.xlu1 %v1589_v12, %s8492_s7  ;;  %1617 = vrot.lane.b32.xlu0 %v1591_v3, %s8492_s7  ;;  %v1335_v12 = vadd.f32 %v1334_v1, %v9337_v33 }
 0x42c   : > { %v9434_v58 = vpop.permute.xlu1 %1582 }
 0x42d   : > { %v1595_v54 = vmul.f32 %v9434_v58, %v1561_v13  ;;  %v9483_v13 = vpop.permute.xlu0 %1896 }
 0x433   : > { %1619 = vrot.lane.b32.xlu1 %v1592_v39, %s8492_s7 }
 0x43b   : > { %1625 = vrot.lane.b32.xlu1 %v1595_v54, %s8492_s7  ;;  %v9490_v54 = vmax.f32 %v1335_v12, 0.0 }
 0x43d   : > { %v1569_v1 = vmul.f32 %v9412_v17, %v9490_v54 }
 0x43f   : > { %v1597_v12 = vmul.f32 %v9434_v58, %v1569_v1 }
 0x443   : > { %1631 = vrot.lane.b32.xlu1 %v1598_v7, %s8492_s7  ;;  %v1261_v7 = vpop.f32.mrf.mxu1 }
 0x44b   : > { %8080 = vrot.lane.b32.xlu1 %v9191_v45, %s8503_s22  ;;  %v8092_v45 = vpop.permute.xlu2 %8091 }
 0x44c   : > { %v8094_v57 = vunpack.i.h.bf16 %v8092_v45  ;;  %v9466_v52 = vunpack.i.l.bf16 %v8092_v45 }
 0x44e   : > { %v9477_v18 = vsel %vm1878_vm14, %v9466_v52, %v8094_v57  ;;  %vm2514_vm14 = vcmask 769024  }
 0x44f   : > { %v1884_v40 = vmul.f32 %v9477_v18, %v9395_v38 }
 0x451   : > { %v1912_v39 = vmul.f32 %v9483_v13, %v1884_v40 }
 0x453   : > { %1698 = vperm.xlu1 %8086, %v9311_v28  }
 0x45b   : > { %8087 = vset.pattern.permute.xlu1 %v14831_v16 }
 0x49d   : > { %v9446_v2 = vpop.permute.xlu1 %1613 }
 0x4a5   : > { %v9450_v62 = vpop.permute.xlu1 %1619 }
 0x4a6   : > { %14835 = vst [vmem:[#allocation5_spill] sm:$0xff] %v9450_v62 }
 0x4ad   : > { %v9454_v30 = vpop.permute.xlu1 %1625 }
 0x4b5   : > { %v9460_v56 = vpop.permute.xlu1 %1631 }
 0x4b6   : > { %14836 = vst [vmem:[#allocation32_spill] sm:$0xff] %v9460_v56 }
 0x4bd   : > { %v8081_v24 = vpop.permute.xlu1 %8080 }
 0x4be   : > { %v9464_v5 = vunpack.i.h.bf16 %v8081_v24  ;;  %v8082_v32 = vunpack.i.l.bf16 %v8081_v24  ;;  %v1262_v24 = vadd.f32 %v1261_v7, %v9332_v9 }
 0x4c0   : > { %v9470_v14 = vsel %vm1517_vm13, %v8082_v32, %v9464_v5  ;;  %v1677_v15 = vmul.f32 0.0, %v8082_v32  ;;  %v1679_v11 = vmul.f32 %v9464_v5, %v9395_v38 }
 0x4c2   : > { %v1705_v4 = vmul.f32 %v9448_v23, %v1677_v15  ;;  %v1707_v44 = vmul.f32 %v9448_v23, %v1679_v11  ;;  %v1708_v3 = vmul.f32 %v9458_v49, %v1677_v15  ;;  %v1477_v11 = vmul.f32 %v9381_v10, %v9490_v54 }
 0x4c4   : > { %1729 = vrot.lane.b32.xlu1 %v1705_v4, %s8506_s27  ;;  %1733 = vrot.lane.b32.xlu0 %v1707_v44, %s8506_s27  ;;  %v9500_v4 = vmax.f32 %v1262_v24, 0.0  ;;  %v1714_v44 = vmul.f32 %v9452_v8, %v1677_v15 }
 0x4c5   : > { %v9492_v45 = vpop.permute.xlu1 %1698 }
 0x4c6   : > { %v1711_v32 = vmul.f32 %v9492_v45, %v1677_v15  ;;  %v1474_v40 = vmul.f32 %v9372_v35, %v9500_v4  ;;  %v1566_v7 = vmul.f32 %v9412_v17, %v9500_v4 }
 0x4c8   : > { %v1594_v24 = vmul.f32 %v9430_v19, %v1566_v7 }
 0x4cc   : > { %1735 = vrot.lane.b32.xlu1 %v1708_v3, %s8506_s27  ;;  %1937 = vrot.lane.b32.xlu0 %v1912_v39, %s8507_s28  ;;  %v1685_v3 = vmul.f32 %v9464_v5, %v9490_v54  ;;  %v1805_v39 = vmul.f32 %v9456_v46, %v9500_v4 }
 0x4ce   : > { %v1713_v15 = vmul.f32 %v9492_v45, %v1685_v3 }
 0x4d4   : > { %1741 = vrot.lane.b32.xlu1 %v1711_v32, %s8506_s27  ;;  %1509 = vrot.lane.b32.xlu0 %v1477_v11, %s8503_s22  ;;  %v1885_v32 = vmul.f32 0.0, %v8094_v57  ;;  %v1682_v11 = vmul.f32 %v9464_v5, %v9500_v4 }
 0x4dc   : > { %1747 = vrot.lane.b32.xlu1 %v1714_v44, %s8506_s27  ;;  %1503 = vrot.lane.b32.xlu0 %v1474_v40, %s8503_s22  ;;  %v1913_v44 = vmul.f32 %v9483_v13, %v1885_v32  ;;  %v1710_v40 = vmul.f32 %v9458_v49, %v1682_v11 }
 0x4e4   : > { %1787 = vperm.xlu1 %8087, %v9288_v29   ;;  %1629 = vrot.lane.b32.xlu0 %v1597_v12, %s8492_s7 }
 0x4ec   : > { %1799 = vperm.xlu1 %8087, %v9301_v53   ;;  %1745 = vrot.lane.b32.xlu0 %v1713_v15, %s8506_s27  ;;  %v1311_v15 = vpop.f32.mrf.mxu2 }
 0x4ed   : > { %v1312_v7 = vadd.f32 %v1311_v15, %v9337_v33 }
 0x4f4   : > { %8096 = vset.pattern.permute.xlu1 %v14832_v47  ;;  %1824 = vrot.lane.b32.xlu0 %v1805_v39, %s8502_s9 }
 0x4f5   : > { %1900 = vperm.xlu1 %8096, %v9293_v59  }
 0x4fc   : > { %1623 = vrot.lane.b32.xlu0 %v1594_v24, %s8492_s7 }
 0x4fd   : > { %1908 = vperm.xlu1 %8096, %v9301_v53  }
 0x504   : > { %1739 = vrot.lane.b32.xlu0 %v1710_v40, %s8506_s27  ;;  %v1562_v40 = vmul.f32 %v9419_v63, %v9398_v50 }
 0x505   : > { %1939 = vrot.lane.b32.xlu1 %v1913_v44, %s8507_s28  ;;  %v9547_v44 = vmax.f32 %v1312_v7, 0.0 }
 0x506   : > { %8100 = vset.pattern.permute.xlu1 %v14833_v25  ;;  %v1337_v25 = vpop.f32.mrf.mxu3  ;;  %v1590_v33 = vmul.f32 %v9424_v21, %v1562_v40 }
 0x507   : > { %v1806_v16 = vmul.f32 %v9462_v43, %v9547_v44  ;;  %v1338_v15 = vadd.f32 %v1337_v25, %v9332_v9 }
 0x509   : > { %v9559_v7 = vmax.f32 %v1338_v15, 0.0 }
 0x50b   : > { %v1480_v51 = vmul.f32 %v9385_v20, %v9559_v7 }
 0x536   : > { %v9534_v1 = vpop.permute.xlu1 %1729 }
 0x53e   : > { %v9536_v12 = vpop.permute.xlu1 %1735 }
 0x53f   : > { %14837 = vst [vmem:[#allocation31_spill] sm:$0xff] %v9536_v12 }
 0x546   : > { %v9538_v57 = vpop.permute.xlu1 %1741 }
 0x547   : > { %14838 = vst [vmem:[#allocation39_spill] sm:$0xff] %v9538_v57 }
 0x54e   : > { %v9540_v3 = vpop.permute.xlu1 %1747 }
 0x54f   : > { %14839 = vst [vmem:[#allocation12_spill] sm:$0xff] %v9540_v3 }
 0x556   : > { %v1788_v39 = vpop.permute.xlu1 %1787 }
 0x557   : > { %v1802_v24 = vmul.f32 %v1788_v39, %v9398_v50  ;;  %v1803_v11 = vmul.f32 %v1788_v39, %v9395_v38  ;;  %v1678_v39 = vmul.f32 %v9470_v14, %v9398_v50 }
 0x559   : > { %1820 = vrot.lane.b32.xlu1 %v1803_v11, %s8502_s9  ;;  %1818 = vrot.lane.b32.xlu2 %v1802_v24, %s8502_s9  ;;  %v1887_v24 = vmul.f32 %v9477_v18, %v9500_v4  ;;  %v1706_v21 = vmul.f32 %v9448_v23, %v1678_v39  ;;  %v9581_v39 = vpop.permute.xlu2 %1904 }
 0x55e   : > { %v1800_v47 = vpop.permute.xlu1 %1799 }
 0x55f   : > { %v1809_v11 = vmul.f32 %v1800_v47, %v9559_v7 }
 0x561   : > { %1826 = vrot.lane.b32.xlu1 %v1806_v16, %s8502_s9  ;;  %1615 = vrot.lane.b32.xlu2 %v1590_v33, %s8492_s7  ;;  %v1883_v16 = vmul.f32 %v9466_v52, %v9398_v50  ;;  %v1314_v33 = vpop.f32.mrf.mxu2 }
 0x562   : > { %v1315_v23 = vadd.f32 %v1314_v33, %v9332_v9 }
 0x563   : > { %v1911_v40 = vmul.f32 %v9483_v13, %v1883_v16  ;;  %v1919_v13 = vmul.f32 %v9581_v39, %v1885_v32 }
 0x567   : > { %v9564_v42 = vpop.permute.xlu1 %1900 }
 0x568   : > { %v1915_v25 = vmul.f32 %v9564_v42, %v1887_v24  ;;  %v1916_v15 = vmul.f32 %v9564_v42, %v1885_v32  ;;  %v9583_v24 = vmax.f32 %v1315_v23, 0.0  ;;  %v1688_v23 = vmul.f32 %v9464_v5, %v9559_v7 }
 0x569   : > { %1832 = vrot.lane.b32.xlu1 %v1809_v11, %s8502_s9  ;;  %1731 = vrot.lane.b32.xlu2 %v1706_v21, %s8506_s27  ;;  %v1476_v11 = vmul.f32 %v9381_v10, %v9547_v44  ;;  %v1807_v10 = vmul.f32 %v9462_v43, %v9490_v54  ;;  %v1890_v43 = vmul.f32 %v9477_v18, %v9490_v54 }
 0x56a   : > { %1943 = vrot.lane.b32.xlu0 %v1915_v25, %s8507_s28  ;;  %v1808_v21 = vmul.f32 %v1800_v47, %v9583_v24  ;;  %v1238_v25 = vpop.f32.mrf.mxu0 }
 0x56b   : > { %v1918_v5 = vmul.f32 %v9581_v39, %v1890_v43 }
 0x56f   : > { %v9592_v16 = vpop.permute.xlu1 %1908 }
 0x570   : > { %v1922_v33 = vmul.f32 %v9592_v16, %v1885_v32  ;;  %v1716_v32 = vmul.f32 %v9452_v8, %v1688_v23 }
 0x571   : > { %1945 = vrot.lane.b32.xlu1 %v1916_v15, %s8507_s28  ;;  %1935 = vrot.lane.b32.xlu2 %v1911_v40, %s8507_s28  ;;  %v1239_v40 = vadd.f32 %v1238_v25, %v9332_v9  ;;  %v1893_v25 = vmul.f32 %v9477_v18, %v9559_v7  ;;  %v14841_v18 = vmov 8  }
 0x572   : > { %1515 = vrot.lane.b32.xlu0 %v1480_v51, %s8503_s22  ;;  %v1572_v51 = vmul.f32 %v9412_v17, %v9559_v7 }
 0x573   : > { %v9604_v15 = vmax.f32 %v1239_v40, 0.0 }
 0x574   : > { %v1600_v47 = vmul.f32 %v9438_v26, %v1572_v51 }
 0x575   : > { %v1473_v9 = vmul.f32 %v9372_v35, %v9604_v15  ;;  %v1684_v35 = vmul.f32 %v9470_v14, %v9547_v44  ;;  %v1804_v40 = vmul.f32 %v9456_v46, %v9604_v15  ;;  %v9647_v46 = vpop.permute.xlu2 %1495  ;;  %v1681_v23 = vmul.f32 %v9470_v14, %v9604_v15 }
 0x576   : > { %v1886_v43 = vmul.f32 %v9466_v52, %v9604_v15 }
 0x577   : > { %v1712_v51 = vmul.f32 %v9492_v45, %v1684_v35  ;;  %v1565_v45 = vmul.f32 %v9419_v63, %v9604_v15  ;;  %v9670_v35 = vpop.permute.xlu1 %1939 }
 0x579   : > { %1951 = vrot.lane.b32.xlu1 %v1919_v13, %s8507_s28  ;;  %1507 = vrot.lane.b32.xlu2 %v1476_v11, %s8503_s22  ;;  %v1568_v13 = vmul.f32 %v9419_v63, %v9547_v44 }
 0x57a   : > { %1830 = vrot.lane.b32.xlu0 %v1808_v21, %s8502_s9  ;;  %v14840_v21 = vmov 7  }
 0x57b   : > { %v1596_v11 = vmul.f32 %v9434_v58, %v1568_v13  ;;  %v1921_v58 = vmul.f32 %v9592_v16, %v1893_v25  ;;  %v1914_v13 = vmul.f32 %v9564_v42, %v1886_v43 }
 0x581   : > { %1957 = vrot.lane.b32.xlu1 %v1922_v33, %s8507_s28  ;;  %1828 = vrot.lane.b32.xlu2 %v1807_v10, %s8502_s9  ;;  %v9636_v33 = vpop.permute.xlu0 %1497  ;;  %v1593_v10 = vmul.f32 %v9430_v19, %v1565_v45 }
 0x582   : > { %1635 = vrot.lane.b32.xlu0 %v1600_v47, %s8492_s7 }
 0x589   : > { %2013 = vperm.xlu1 %8100, %v9311_v28   ;;  %1501 = vrot.lane.b32.xlu2 %v1473_v9, %s8503_s22  ;;  %v9644_v47 = vpop.permute.xlu0 %1617  ;;  %v1709_v9 = vmul.f32 %v9458_v49, %v1681_v23  ;;  %v1479_v49 = vmul.f32 %v9385_v20, %v9583_v24  ;;  %v1687_v20 = vmul.f32 %v9470_v14, %v9583_v24 }
 0x58a   : > { %1751 = vrot.lane.b32.xlu0 %v1716_v32, %s8506_s27 }
 0x591   : > { %8101 = vset.pattern.permute.xlu1 %v14840_v21  ;;  %1627 = vrot.lane.b32.xlu2 %v1596_v11, %s8492_s7  ;;  %v9654_v32 = vpop.permute.xlu0 %1733 }
 0x592   : > { %2045 = vperm.xlu1 %8101, %v9288_v29   ;;  %1949 = vrot.lane.b32.xlu0 %v1918_v5, %s8507_s28 }
 0x599   : > { %1743 = vrot.lane.b32.xlu2 %v1712_v51, %s8506_s27  ;;  %v9665_v5 = vpop.permute.xlu0 %1937  ;;  %v1571_v51 = vmul.f32 %v9419_v63, %v9583_v24 }
 0x59a   : > { %2057 = vperm.xlu1 %8101, %v9301_v53   ;;  %1955 = vrot.lane.b32.xlu0 %v1921_v58, %s8507_s28 }
 0x59b   : > { %v1599_v42 = vmul.f32 %v9438_v26, %v1571_v51  ;;  %v1892_v51 = vmul.f32 %v9466_v52, %v9583_v24 }
 0x5a1   : > { %1822 = vrot.lane.b32.xlu2 %v1804_v40, %s8502_s9  ;;  %v9676_v58 = vpop.permute.xlu0 %1509 }
 0x5a2   : > { %2009 = vperm.xlu0 %8099, %v9293_v59   ;;  %8106 = vset.pattern.permute.xlu1 %v14841_v18 }
 0x5a9   : > { %1621 = vrot.lane.b32.xlu2 %v1593_v10, %s8492_s7  ;;  %v1715_v10 = vmul.f32 %v9452_v8, %v1687_v20  ;;  %v9687_v23 = vpop.permute.xlu0 %1503 }
 0x5aa   : > { %8103 = vset.pattern.permute.xlu0 %v14840_v21 }
 0x5ab   : > { %2053 = vperm.xlu0 %8103, %v9311_v28  }
 0x5b1   : > { %1737 = vrot.lane.b32.xlu2 %v1709_v9, %s8506_s27  ;;  %v1889_v9 = vmul.f32 %v9466_v52, %v9547_v44 }
 0x5b3   : > { %v9656_v19 = vpop.permute.xlu2 %1818  ;;  %8104 = vset.pattern.permute.xlu0 %v14841_v18 }
 0x5b9   : > { %1941 = vrot.lane.b32.xlu2 %v1914_v13, %s8507_s28  ;;  %v1917_v13 = vmul.f32 %v9581_v39, %v1889_v9 }
 0x5bb   : > { %v9663_v11 = vpop.permute.xlu2 %1615 }
 0x5c1   : > { %1513 = vrot.lane.b32.xlu2 %v1479_v49, %s8503_s22  ;;  %v9698_v49 = vpop.permute.xlu0 %1629 }
 0x5c2   : > { %14842 = vst [vmem:[#allocation11_spill] sm:$0xff] %v9698_v49 }
 0x5c3   : > { %v9672_v25 = vpop.permute.xlu2 %1731 }
 0x5c9   : > { %1633 = vrot.lane.b32.xlu2 %v1599_v42, %s8492_s7  ;;  %v1920_v42 = vmul.f32 %v9592_v16, %v1892_v51  ;;  %v9712_v39 = vpop.permute.xlu0 %1745 }
 0x5ca   : > { %14844 = vst [vmem:[#allocation9_spill] sm:$0xff] %v9712_v39 }
 0x5cb   : > { %v9680_v40 = vpop.permute.xlu1 %1820  ;;  %v9682_v45 = vpop.permute.xlu2 %1935 }
 0x5d1   : > { %1749 = vrot.lane.b32.xlu2 %v1715_v10, %s8506_s27  ;;  %v9719_v60 = vpop.permute.xlu0 %1824 }
 0x5d3   : > { %v9692_v43 = vpop.permute.xlu1 %1826  ;;  %v9694_v26 = vpop.permute.xlu2 %1507 }
 0x5d9   : > { %1947 = vrot.lane.b32.xlu2 %v1917_v13, %s8507_s28  ;;  %v9726_v51 = vpop.permute.xlu0 %1623 }
 0x5db   : > { %v9700_v14 = vpop.permute.xlu1 %1832  ;;  %v9702_v8 = vpop.permute.xlu2 %1828 }
 0x5dc   : > { %14843 = vst [vmem:[#allocation13_spill] sm:$0xff] %v9700_v14 }
 0x5e1   : > { %1953 = vrot.lane.b32.xlu2 %v1920_v42, %s8507_s28  ;;  %v9734_v48 = vpop.permute.xlu0 %1739 }
 0x5e3   : > { %v9708_v20 = vpop.permute.xlu1 %1945  ;;  %v9710_v10 = vpop.permute.xlu2 %1501 }
 0x5e9   : > { %2005 = vperm.xlu2 %8098, %v9288_v29  }
 0x5eb   : > { %v9715_v9 = vpop.permute.xlu1 %1951  ;;  %v9717_v13 = vpop.permute.xlu2 %1627 }
 0x5ec   : > { %14845 = vst [vmem:[#allocation8_spill] sm:$0xff] %v9715_v9 }
 0x5f1   : > { %2017 = vperm.xlu2 %8098, %v9301_v53  }
 0x5f3   : > { %v9722_v52 = vpop.permute.xlu1 %1957  ;;  %v9724_v16 = vpop.permute.xlu2 %1743 }
 0x5f4   : > { %14846 = vst [vmem:[#allocation6_spill] sm:$0xff] %v9722_v52 }
 0x5f5   : > { %14847 = vst [vmem:[#allocation7_spill] sm:$0xff] %v9724_v16 }
 0x5f9   : > { %8102 = vset.pattern.permute.xlu2 %v14840_v21  ;;  %v9743_v21 = vpop.permute.xlu0 %1943 }
 0x5fa   : > { %2049 = vperm.xlu2 %8102, %v9293_v59  }
 0x5fb   : > { %v9730_v42 = vpop.permute.xlu1 %2013  ;;  %v9732_v41 = vpop.permute.xlu2 %1822 }
 0x5fc   : > { %14848 = vst [vmem:[#allocation14_spill] sm:$0xff] %v9730_v42 }
 0x5fd   : > { %14849 = vst [vmem:[#allocation16_spill] sm:$0xff] %v9732_v41 }
 0x602   : > { %8107 = vset.pattern.permute.xlu2 %v14841_v18  ;;  %v9750_v18 = vpop.permute.xlu0 %1515 }
 0x603   : > { %v9737_v9 = vpop.permute.xlu2 %1621 }
 0x604   : > { %14850 = vst [vmem:[#allocation15_spill] sm:$0xff] %v9737_v9  ;;  %v2046_v3 = vpop.permute.xlu1 %2045 }
 0x605   : > { %v2060_v52 = vmul.f32 %v2046_v3, %v9398_v50  ;;  %v2061_v56 = vmul.f32 %v2046_v3, %v9395_v38  ;;  %v2062_v42 = vmul.f32 0.0, %v2046_v3 }
 0x607   : > { %2086 = vrot.lane.b32.xlu1 %v2061_v56, %s8503_s22  ;;  %2084 = vrot.lane.b32.xlu2 %v2060_v52, %s8503_s22 }
 0x60a   : > { %v9754_v39 = vpop.permute.xlu0 %1830 }
 0x60b   : > { %v9745_v61 = vpop.permute.xlu2 %1737  ;;  %14854 = vst [vmem:[#allocation26_spill] sm:$0xff] %v9754_v39 }
 0x60c   : > { %14851 = vst [vmem:[#allocation17_spill] sm:$0xff] %v9745_v61 }
 0x60f   : > { %2088 = vrot.lane.b32.xlu2 %v2062_v42, %s8503_s22 }
 0x612   : > { %v9758_v56 = vpop.permute.xlu0 %1635 }
 0x613   : > { %v9748_v41 = vpop.permute.xlu2 %1941  ;;  %14856 = vst [vmem:[#allocation21_spill] sm:$0xff] %v9758_v56 }
 0x614   : > { %14852 = vst [vmem:[#allocation23_spill] sm:$0xff] %v9748_v41 }
 0x61a   : > { %v9762_v16 = vpop.permute.xlu0 %1751 }
 0x61b   : > { %v9752_v12 = vpop.permute.xlu2 %1513  ;;  %14858 = vst [vmem:[#allocation19_spill] sm:$0xff] %v9762_v16 }
 0x61c   : > { %14853 = vst [vmem:[#allocation20_spill] sm:$0xff] %v9752_v12 }
 0x622   : > { %v9768_v42 = vpop.permute.xlu0 %1949 }
 0x623   : > { %v9756_v57 = vpop.permute.xlu2 %1633  ;;  %14861 = vst [vmem:[#allocation28_spill] sm:$0xff] %v9768_v42 }
 0x624   : > { %14855 = vst [vmem:[#allocation22_spill] sm:$0xff] %v9756_v57 }
 0x62a   : > { %v9772_v14 = vpop.permute.xlu0 %1955 }
 0x62b   : > { %v9760_v52 = vpop.permute.xlu2 %1749  ;;  %14862 = vst [vmem:[#allocation29_spill] sm:$0xff] %v9772_v14 }
 0x62c   : > { %14857 = vst [vmem:[#allocation18_spill] sm:$0xff] %v9760_v52 }
 0x632   : > { %v9776_v39 = vpop.permute.xlu0 %2009 }
 0x633   : > { %v9764_v3 = vpop.permute.xlu2 %1947  ;;  %14864 = vst [vmem:[#allocation30_spill] sm:$0xff] %v9776_v39  ;;  %v2058_v39 = vpop.permute.xlu1 %2057 }
 0x634   : > { %14859 = vst [vmem:[#allocation27_spill] sm:$0xff] %v9764_v3 }
 0x63a   : > { %v2054_v3 = vpop.permute.xlu0 %2053 }
 0x63b   : > { %v9766_v61 = vpop.permute.xlu2 %1953  ;;  %v2068_v42 = vmul.f32 0.0, %v2054_v3 }
 0x63c   : > { %14860 = vst [vmem:[#allocation24_spill] sm:$0xff] %v9766_v61  ;;  %v2066_v61 = vmul.f32 %v2054_v3, %v9547_v44 }
 0x643   : > { %v9770_v41 = vpop.permute.xlu2 %2005 }
 0x64b   : > { %v9774_v12 = vpop.permute.xlu2 %2017 }
 0x64c   : > { %14863 = vst [vmem:[#allocation25_spill] sm:$0xff] %v9774_v12  ;;  %v2067_v12 = vmul.f32 %v2054_v3, %v9490_v54 }
 0x654   : > { %v2050_v57 = vpop.permute.xlu2 %2049 }
 0x655   : > { %v2063_v56 = vmul.f32 %v2050_v57, %v9604_v15  ;;  %v2064_v52 = vmul.f32 %v2050_v57, %v9500_v4  ;;  %v2065_v16 = vmul.f32 0.0, %v2050_v57  ;;  %v2069_v57 = vmul.f32 %v2058_v39, %v9583_v24 }
 0x657   : > { %2092 = vrot.lane.b32.xlu1 %v2064_v52, %s8503_s22  ;;  %2090 = vrot.lane.b32.xlu0 %v2063_v56, %s8503_s22  ;;  %v2070_v52 = vmul.f32 %v2058_v39, %v9559_v7  ;;  %v2071_v56 = vmul.f32 0.0, %v2058_v39 }
 0x658   : > { %2094 = vrot.lane.b32.xlu2 %v2065_v16, %s8503_s22 }
 0x65f   : > { %2098 = vrot.lane.b32.xlu1 %v2067_v12, %s8503_s22  ;;  %2096 = vrot.lane.b32.xlu0 %v2066_v61, %s8503_s22  ;;  %v14865_v61 = vmov 0  }
 0x660   : > { %2100 = vrot.lane.b32.xlu2 %v2068_v42, %s8503_s22 }
 0x661   : > { %v9801_v12 = vpop.permute.xlu2 %2084 }
 0x667   : > { %2104 = vrot.lane.b32.xlu1 %v2070_v52, %s8503_s22  ;;  %2102 = vrot.lane.b32.xlu0 %v2069_v57, %s8503_s22 }
 0x668   : > { %2106 = vrot.lane.b32.xlu2 %v2071_v56, %s8503_s22  ;;  %v2140_v56 = vmul.f32 %v9414_v34, %v9398_v50 }
 0x669   : > { %v9805_v16 = vpop.permute.xlu2 %2088 }
 0x66f   : > { %2157 = vperm.xlu1 %8106, %v9293_v59   ;;  %2153 = vperm.xlu0 %8104, %v9288_v29  }
 0x670   : > { %2161 = vperm.xlu2 %8107, %v9311_v28  }
 0x677   : > { %2165 = vperm.xlu1 %8106, %v9301_v53   ;;  %8105 = vset.pattern.permute.xlu0 %v14865_v61 }
 0x678   : > { %1421 = vperm.xlu0 %8105, %v9311_v28   ;;  %8108 = vset.pattern.permute.xlu2 %v14865_v61 }
 0x679   : > { %v9803_v39 = vpop.permute.xlu1 %2086 }
 0x67f   : > { %8109 = vset.pattern.permute.xlu1 %v14865_v61  ;;  %v2142_v61 = vmul.f32 0.0, %v9412_v17  ;;  %v2144_v17 = vmul.f32 %v9419_v63, %v9500_v4 }
 0x6b2   : > { %v9811_v3 = vpop.permute.xlu2 %2094 }
 0x6b3   : > { %14868 = vst [vmem:[#allocation36_spill] sm:$0xff] %v9811_v3 }
 0x6ba   : > { %v9819_v57 = vpop.permute.xlu2 %2100 }
 0x6bb   : > { %14872 = vst [vmem:[#allocation40_spill] sm:$0xff] %v9819_v57 }
 0x6c9   : > { %v9807_v59 = vpop.permute.xlu1 %2092  ;;  %v9809_v29 = vpop.permute.xlu0 %2090 }
 0x6ca   : > { %14866 = vst [vmem:[#allocation34_spill] sm:$0xff] %v9807_v59 }
 0x6cb   : > { %14867 = vst [vmem:[#allocation33_spill] sm:$0xff] %v9809_v29  ;;  %v2141_v29 = vmul.f32 %v9419_v63, %v9395_v38 }
 0x6d1   : > { %v9813_v53 = vpop.permute.xlu0 %2096  ;;  %v9815_v42 = vpop.permute.xlu1 %2098 }
 0x6d2   : > { %14869 = vst [vmem:[#allocation38_spill] sm:$0xff] %v9813_v53 }
 0x6d3   : > { %14870 = vst [vmem:[#allocation37_spill] sm:$0xff] %v9815_v42  ;;  %v9829_v42 = vpop.permute.xlu2 %2106 }
 0x6d4   : > { %14874 = vst [vmem:[#allocation42_spill] sm:$0xff] %v9829_v42 }
 0x6d9   : > { %v9817_v28 = vpop.permute.xlu0 %2102  ;;  %v9821_v52 = vpop.permute.xlu1 %2104 }
 0x6da   : > { %14871 = vst [vmem:[#allocation35_spill] sm:$0xff] %v9817_v28 }
 0x6db   : > { %14873 = vst [vmem:[#allocation41_spill] sm:$0xff] %v9821_v52  ;;  %v2143_v52 = vmul.f32 %v9414_v34, %v9604_v15 }
 0x6e1   : > { %v2154_v59 = vpop.permute.xlu0 %2153  ;;  %v2158_v28 = vpop.permute.xlu1 %2157 }
 0x6e2   : > { %v2168_v3 = vmul.f32 %v2154_v59, %v2140_v56  ;;  %v2169_v14 = vmul.f32 %v2154_v59, %v2141_v29  ;;  %v2170_v53 = vmul.f32 %v2154_v59, %v2142_v61  ;;  %v2171_v57 = vmul.f32 %v2158_v28, %v2143_v52  ;;  %v2162_v59 = vpop.permute.xlu2 %2161 }
 0x6e3   : > { %v2172_v62 = vmul.f32 %v2158_v28, %v2144_v17  ;;  %v2173_v56 = vmul.f32 %v2158_v28, %v2142_v61  ;;  %v2147_v29 = vmul.f32 %v9419_v63, %v9490_v54  ;;  %v2176_v42 = vmul.f32 %v2162_v59, %v2142_v61 }
 0x6e4   : > { %2192 = vrot.lane.b32.xlu2 %v2168_v3, %s8492_s7  ;;  %2196 = vrot.lane.b32.xlu1 %v2170_v53, %s8492_s7 }
 0x6e5   : > { %2194 = vrot.lane.b32.xlu0 %v2169_v14, %s8492_s7  ;;  %v2146_v14 = vmul.f32 %v9414_v34, %v9547_v44  ;;  %v2175_v53 = vmul.f32 %v2162_v59, %v2147_v29 }
 0x6e7   : > { %v2174_v3 = vmul.f32 %v2162_v59, %v2146_v14  ;;  %v7821_v59 = vld [vmem:[%s14507_s5 + $0x10] sm:$0xff]  ;;  %v7822_v14 = vld [vmem:[%s14507_s5 + $0x18] sm:$0xff] }
 0x6e9   : > { %v2166_v28 = vpop.permute.xlu1 %2165 }
 0x6ec   : > { %2198 = vrot.lane.b32.xlu2 %v2171_v57, %s8492_s7  ;;  %2202 = vrot.lane.b32.xlu1 %v2173_v56, %s8492_s7  ;;  %v2150_v57 = vmul.f32 %v9419_v63, %v9559_v7  ;;  %v2179_v56 = vmul.f32 %v2166_v28, %v2142_v61  ;;  %v7812_v63 = vld [vmem:[%s14505_s3 + $0x28] sm:$0xff]  ;;  %v7814_v61 = vld [vmem:[%s14505_s3 + $0x38] sm:$0xff] }
 0x6ed   : > { %2200 = vrot.lane.b32.xlu0 %v2172_v62, %s8492_s7  ;;  %v2149_v62 = vmul.f32 %v9414_v34, %v9583_v24  ;;  %v7813_v34 = vld [vmem:[%s14505_s3 + $0x30] sm:$0xff] }
 0x6ee   : > { %v2178_v17 = vmul.f32 %v2166_v28, %v2150_v57 }
 0x6ef   : > { %v2177_v52 = vmul.f32 %v2166_v28, %v2149_v62 }
 0x6f4   : > { %2204 = vrot.lane.b32.xlu2 %v2174_v3, %s8492_s7  ;;  %2208 = vrot.lane.b32.xlu1 %v2176_v42, %s8492_s7  ;;  %v7811_v42 = vld [vmem:[%s14505_s3 + $0x20] sm:$0xff]  ;;  %v8066_v3 = vunpack.i.l.bf16 %v9357_v31 }
 0x6f5   : > { %2206 = vrot.lane.b32.xlu0 %v2175_v53, %s8492_s7  ;;  %v8067_v53 = vunpack.i.h.bf16 %v9357_v31 }
 0x6f6   : > { %v9877_v28 = vmul.f32 0.0, %v8066_v3 }
 0x6f7   : > { %v1393_v62 = vsel %vm1392_vm15, %v8066_v3, %v8067_v53 }
 0x6f8   : > { %v1398_v57 = vmul.f32 %v1393_v62, %v9398_v50  ;;  %v9890_v31 = vmul.f32 %v9339_v27, %v9877_v28  ;;  %v1401_v9 = vmul.f32 %v1393_v62, %v9604_v15 }
 0x6fc   : > { %2210 = vrot.lane.b32.xlu2 %v2177_v52, %s8492_s7  ;;  %2214 = vrot.lane.b32.xlu1 %v2179_v56, %s8492_s7  ;;  %v1399_v52 = vmul.f32 %v8067_v53, %v9395_v38 }
 0x6fd   : > { %2212 = vrot.lane.b32.xlu0 %v2178_v17, %s8492_s7  ;;  %v1402_v17 = vmul.f32 %v8067_v53, %v9500_v4 }
 0x704   : > { %2250 = vperm.xlu2 %8108, %v7811_v42   ;;  %2260 = vperm.xlu1 %8109, %v7813_v34   ;;  %v1518_v42 = vsel %vm1517_vm13, %v9392_v6, %v9647_v46  ;;  %v9892_v34 = vmul.f32 0.0, %v8067_v53  ;;  %v1430_v6 = vmul.f32 %v9369_v0, %v1398_v57 }
 0x705   : > { %2255 = vperm.xlu0 %8105, %v7812_v63   ;;  %v1429_v63 = vmul.f32 %v9369_v0, %v9877_v28 }
 0x706   : > { %14876 = vst [vmem:[#allocation44_spill] sm:$0xff] %v9892_v34 }
 0x707   : > { %v1538_v34 = vadd.f32 %v1518_v42, %v1429_v63  ;;  %v1992_v42 = vmul.f32 %v8066_v3, %v9398_v50  ;;  %v1422_v50 = vpop.permute.xlu0 %1421 }
 0x70c   : > { %2265 = vperm.xlu2 %8108, %v7814_v61   ;;  %2300 = vperm.xlu1 %8109, %v7821_v59   ;;  %v9898_v61 = vmul.f32 %v9378_v55, %v9877_v28  ;;  %v1519_v59 = vsel %vm1517_vm13, %v9647_v46, %v9636_v33  ;;  %v1993_v46 = vmul.f32 %v1393_v62, %v9395_v38 }
 0x70d   : > { %8146 = vset.pattern.permute.xlu0 %v14828_v36  ;;  %v1434_v36 = vmul.f32 %v9339_v27, %v1402_v17  ;;  %v1539_v49 = vadd.f32 %v1519_v59, %v1430_v6  ;;  %v9945_v6 = vmul.f32 %v1393_v62, %v9490_v54 }
 0x70e   : > { %14877 = vst [vmem:[#allocation45_spill] sm:$0xff] %v9898_v61  ;;  %v1638_v61 = vsel %vm362_vm5, %v9663_v11, %v9644_v47 }
 0x70f   : > { %v1658_v63 = vadd.f32 %v1638_v61, %v1539_v49  ;;  %v9942_v61 = vmul.f32 %v8066_v3, %v9547_v44 }
 0x714   : > { %2305 = vperm.xlu2 %8108, %v7822_v14   ;;  %v1431_v14 = vmul.f32 %v9369_v0, %v1399_v52  ;;  %v1543_v0 = vadd.f32 %v9687_v23, %v1434_v36  ;;  %v1754_v52 = vsel %vm1753_vm0, %v9534_v1, %v9672_v25  ;;  %v9929_v36 = vmul.f32 %v8066_v3, %v9604_v15 }
 0x715   : > { %v1433_v15 = vmul.f32 %v9339_v27, %v1401_v9 }
 0x716   : > { %v1540_v57 = vadd.f32 %v9636_v33, %v1431_v14  ;;  %v1662_v33 = vadd.f32 %v9726_v51, %v1543_v0  ;;  %v1405_v14 = vmul.f32 %v8067_v53, %v9490_v54  ;;  %v1961_v54 = vsel %vm1959_vm1, %v9665_v5, %v9670_v35 }
 0x717   : > { %v2021_v35 = vmul.f32 %v9770_v41, %v1993_v46 }
 0x718   : > { %v1659_v38 = vadd.f32 %v9644_v47, %v1540_v57 }
 0x71a   : > { %v1776_v47 = vadd.f32 %v9654_v32, %v1659_v38 }
 0x71c   : > { %v1852_v0 = vadd.f32 %v9680_v40, %v1776_v47 }
 0x73e   : > { %v9873_v29 = vpop.permute.xlu2 %2192 }
 0x746   : > { %v9883_v56 = vpop.permute.xlu2 %2198 }
 0x747   : > { %14875 = vst [vmem:[#allocation43_spill] sm:$0xff] %v9883_v56  ;;  %v1637_v56 = vsel %vm362_vm5, %v9446_v2, %v9663_v11  ;;  %v1755_v2 = vsel %vm1753_vm0, %v9672_v25, %v9654_v32  ;;  %v9923_v11 = vmul.f32 %v1393_v62, %v9500_v4  ;;  %v1834_v25 = vsel %vm1392_vm15, %v9656_v19, %v9680_v40 }
 0x748   : > { %v1657_v17 = vadd.f32 %v1637_v56, %v1538_v34  ;;  %v1408_v4 = vmul.f32 %v8067_v53, %v9559_v7  ;;  %v1407_v56 = vmul.f32 %v1393_v62, %v9583_v24  ;;  %v1779_v34 = vadd.f32 %v9734_v48, %v1662_v33 }
 0x749   : > { %v1775_v49 = vadd.f32 %v1755_v2, %v1658_v63  ;;  %v1404_v32 = vmul.f32 %v1393_v62, %v9547_v44  ;;  %v9959_v2 = vmul.f32 %v8066_v3, %v9583_v24  ;;  %v1963_v44 = vsel %vm1959_vm1, %v9743_v21, %v9708_v20 }
 0x74a   : > { %v1774_v1 = vadd.f32 %v1754_v52, %v1657_v17  ;;  %v9950_v52 = vmul.f32 %v1393_v62, %v9559_v7  ;;  %v1440_v27 = vmul.f32 %v9378_v55, %v1408_v4  ;;  %v9956_v9 = vmul.f32 %v9378_v55, %v1407_v56 }
 0x74b   : > { %v1851_v57 = vadd.f32 %v1834_v25, %v1775_v49  ;;  %v1855_v40 = vadd.f32 %v9719_v60, %v1779_v34  ;;  %v1520_v7 = vsel %vm1517_vm13, %v9406_v22, %v9710_v10  ;;  %v1960_v55 = vsel %vm1959_vm1, %v9682_v45, %v9665_v5  ;;  %v14879_v34 = vld [vmem:[#allocation15_spill] sm:$0xff]  ;;  %v14880_v49 = vld [vmem:[#allocation5_spill] sm:$0xff] }
 0x74c   : > { %v1850_v17 = vadd.f32 %v9656_v19, %v1774_v1  ;;  %v2020_v19 = vmul.f32 %v9770_v41, %v1992_v42  ;;  %v9977_v3 = vadd.f32 %v1961_v54, %v1852_v0  ;;  %v1522_v20 = vsel %vm1517_vm13, %v9408_v37, %v9694_v26  ;;  %v14882_v0 = vld [vmem:[#allocation26_spill] sm:$0xff] }
 0x74d   : > { %v1981_v53 = vadd.f32 %v1960_v55, %v1851_v57  ;;  %v1521_v22 = vsel %vm1517_vm13, %v9710_v10, %v9687_v23  ;;  %v1523_v5 = vsel %vm1517_vm13, %v9694_v26, %v9676_v58  ;;  %v9995_v46 = vadd.f32 %v1963_v44, %v1855_v40  ;;  %v14881_v57 = vld [vmem:[#allocation13_spill] sm:$0xff] }
 0x74e   : > { %v9931_v59 = vpop.permute.xlu2 %2204  ;;  %v1980_v24 = vadd.f32 %v9682_v45, %v1850_v17  ;;  %v9993_v45 = vsel %vm1392_vm15, %v9692_v43, %v9702_v8  ;;  %v1541_v42 = vadd.f32 %v1520_v7, %v9890_v31  ;;  %v2108_v23 = vsel %vm1517_vm13, %v9801_v12, %v9803_v39  ;;  %v14885_v55 = vld [vmem:[#allocation9_spill] sm:$0xff] }
 0x74f   : > { %v2109_v26 = vsel %vm1517_vm13, %v9803_v39, %v9805_v16  ;;  %v1435_v10 = vmul.f32 %v1422_v50, %v9877_v28  ;;  %v1436_v33 = vmul.f32 %v1422_v50, %v1404_v32  ;;  %v1542_v63 = vadd.f32 %v1521_v22, %v1433_v15  ;;  %v14878_v39 = vld [vmem:[#allocation11_spill] sm:$0xff]  ;;  %v14887_v22 = vld [vmem:[#allocation17_spill] sm:$0xff] }
 0x750   : > { %v2032_v1 = vadd.f32 %v2020_v19, %v1980_v24  ;;  %v2033_v25 = vadd.f32 %v2021_v35, %v1981_v53  ;;  %v1437_v4 = vmul.f32 %v1422_v50, %v1405_v14  ;;  %v1549_v31 = vadd.f32 %v9750_v18, %v1440_v27  ;;  %v14883_v32 = vld [vmem:[#allocation7_spill] sm:$0xff]  ;;  %v14886_v19 = vld [vmem:[#allocation21_spill] sm:$0xff] }
 0x751   : > { %v1641_v56 = vsel %vm362_vm5, %v9454_v30, %v9717_v13  ;;  %v1642_v28 = vsel %vm362_vm5, %v9717_v13, %v14878_v39  ;;  %v1639_v50 = vsel %vm362_vm5, %v14880_v49, %v14879_v34  ;;  %v10024_v30 = vsel %vm1392_vm15, %v14882_v0, %v14881_v57 }
 0x752   : > { %v2128_v15 = vadd.f32 %v2108_v23, %v2032_v1  ;;  %v2129_v14 = vadd.f32 %v2109_v26, %v2033_v25  ;;  %v1544_v27 = vadd.f32 %v1522_v20, %v1435_v10  ;;  %v1545_v54 = vadd.f32 %v1523_v5, %v1436_v33  ;;  %v14890_v23 = vld [vmem:[#allocation10_spill] sm:$0xff] }
 0x753   : > { %v1640_v13 = vsel %vm362_vm5, %v14879_v34, %v9726_v51  ;;  %v1546_v40 = vadd.f32 %v9676_v58, %v1437_v4  ;;  %v1759_v24 = vsel %vm1753_vm0, %v14883_v32, %v14885_v55  ;;  %v1668_v35 = vadd.f32 %v14886_v19, %v1549_v31  ;;  %v14889_v58 = vld [vmem:[#allocation20_spill] sm:$0xff] }
 0x754   : > { %v1660_v53 = vadd.f32 %v1639_v50, %v1541_v42  ;;  %v1757_v51 = vsel %vm1753_vm0, %v14887_v22, %v9734_v48  ;;  %v1524_v26 = vsel %vm1517_vm13, %v14890_v23, %v14889_v58  ;;  %v1661_v25 = vadd.f32 %v1640_v13, %v1542_v63  ;;  %v14891_v48 = vld [vmem:[#allocation22_spill] sm:$0xff]  ;;  %v14894_v13 = vld [vmem:[#allocation19_spill] sm:$0xff] }
 0x755   : > { %v1525_v4 = vsel %vm1517_vm13, %v14889_v58, %v9750_v18  ;;  %v1663_v31 = vadd.f32 %v1641_v56, %v1544_v27  ;;  %v1665_v49 = vadd.f32 %v14878_v39, %v1546_v40  ;;  %v1644_v63 = vsel %vm362_vm5, %v14891_v48, %v14886_v19  ;;  %v14896_v27 = vld [vmem:[#allocation12_spill] sm:$0xff]  ;;  %v14899_v58 = vld [vmem:[#allocation14_spill] sm:$0xff] }
 0x756   : > { %v9985_v62 = vpop.permute.xlu2 %2210  ;;  %v9998_v37 = vpop.permute.xlu1 %2196  ;;  %v1785_v18 = vadd.f32 %v14894_v13, %v1668_v35  ;;  %v1548_v56 = vadd.f32 %v1525_v4, %v9956_v9  ;;  %v14898_v35 = vld [vmem:[#allocation23_spill] sm:$0xff]  ;;  %v2026_v23 = vmul.f32 %v14899_v58, %v9942_v61 }
 0x757   : > { %v2195_v38 = vpop.permute.xlu0 %2194  ;;  %v1962_v9 = vsel %vm1959_vm1, %v14898_v35, %v9743_v21 }
 0x758   : > { %v2216_v12 = vsel %vm362_vm5, %v9873_v29, %v2195_v38  ;;  %v2217_v47 = vsel %vm362_vm5, %v2195_v38, %v9998_v37  ;;  %v14884_v29 = vld [vmem:[#allocation39_spill] sm:$0xff] }
 0x759   : > { %v1758_v17 = vsel %vm1753_vm0, %v14884_v29, %v14883_v32  ;;  %v2236_v44 = vadd.f32 %v2216_v12, %v2128_v15  ;;  %v2237_v7 = vadd.f32 %v2217_v47, %v2129_v14  ;;  %v14888_v38 = vld [vmem:[#allocation31_spill] sm:$0xff]  ;;  %v1664_v12 = vadd.f32 %v1642_v28, %v1545_v54  ;;  %v14892_v47 = vld [vmem:[#allocation32_spill] sm:$0xff]  ;;  %v14893_v29 = vld [vmem:[#allocation45_spill] sm:$0xff] }
 0x75a   : > { %v1756_v20 = vsel %vm1753_vm0, %v14888_v38, %v14887_v22  ;;  %v1643_v34 = vsel %vm362_vm5, %v14892_v47, %v14891_v48  ;;  %v1778_v32 = vadd.f32 %v1757_v51, %v1661_v25  ;;  %v14895_v28 = vld [vmem:[#allocation18_spill] sm:$0xff]  ;;  %v14897_v38 = vld [vmem:[#allocation16_spill] sm:$0xff]  ;;  %v1782_v51 = vadd.f32 %v14885_v55, %v1665_v49  ;;  %v14901_v25 = vld [vmem:[#allocation29_spill] sm:$0xff] }
 0x75b   : > { %v1777_v14 = vadd.f32 %v1756_v20, %v1660_v53  ;;  %v1760_v54 = vsel %vm1753_vm0, %v14896_v27, %v14895_v28  ;;  %v1761_v40 = vsel %vm1753_vm0, %v14895_v28, %v14894_v13  ;;  %v1780_v53 = vadd.f32 %v1758_v17, %v1663_v31  ;;  %v14903_v49 = vld [vmem:[#allocation44_spill] sm:$0xff] }
 0x75c   : > { %v1781_v22 = vadd.f32 %v1759_v24, %v1664_v12  ;;  %v1835_v19 = vsel %vm1392_vm15, %v14897_v38, %v9719_v60  ;;  %v1667_v20 = vadd.f32 %v1644_v63, %v1548_v56  ;;  %v1861_v60 = vadd.f32 %v14881_v57, %v1785_v18  ;;  %v14907_v63 = vld [vmem:[#allocation27_spill] sm:$0xff] }
 0x75d   : > { %v1854_v17 = vadd.f32 %v1835_v19, %v1778_v32  ;;  %v1856_v48 = vadd.f32 %v9692_v43, %v1780_v53  ;;  %v14904_v43 = vld [vmem:[#allocation24_spill] sm:$0xff] }
 0x75e   : > { %v10040_v5 = vpop.permute.xlu2 %2250  ;;  %v10048_v10 = vpop.permute.xlu1 %2202  ;;  %v1784_v4 = vadd.f32 %v1761_v40, %v1667_v20  ;;  %v1857_v47 = vadd.f32 %v9993_v45, %v1781_v22  ;;  %v1966_v45 = vsel %vm1959_vm1, %v14904_v43, %v14901_v25 }
 0x75f   : > { %v10050_v33 = vpop.permute.xlu0 %2200  ;;  %v2268_v42 = vadd.f32 %v10040_v5, %v2236_v44  ;;  %v2269_v1 = vadd.f32 %v10040_v5, %v2237_v7  ;;  %v1547_v44 = vadd.f32 %v1524_v26, %v14893_v29  ;;  %v1853_v26 = vadd.f32 %v14897_v38, %v1777_v14  ;;  %v14905_v29 = vld [vmem:[#allocation25_spill] sm:$0xff] }
 0x760   : > { %v1984_v61 = vadd.f32 %v1962_v9, %v1854_v17  ;;  %v2030_v13 = vmul.f32 %v14905_v29, %v9950_v52  ;;  %v1986_v28 = vadd.f32 %v14907_v63, %v1856_v48  ;;  %v14910_v17 = vld [vmem:[#allocation42_spill] sm:$0xff] }
 0x761   : > { %v2280_v50 = vmax.f32 %v2268_v42, 0.0  ;;  %v2281_v15 = vmax.f32 %v2269_v1, 0.0  ;;  %v1666_v39 = vadd.f32 %v1643_v34, %v1547_v44  ;;  %v2027_v42 = vmul.f32 %v14899_v58, %v9945_v6  ;;  %v14900_v1 = vld [vmem:[#allocation6_spill] sm:$0xff]  ;;  %v14906_v44 = vld [vmem:[#allocation28_spill] sm:$0xff] }
 0x762   : > { %v1967_v21 = vsel %vm1959_vm1, %v14901_v25, %v14900_v1  ;;  %v1983_v12 = vadd.f32 %v14898_v35, %v1853_v26  ;;  %v14902_v34 = vld [vmem:[#allocation30_spill] sm:$0xff] }
 0x763   : > { %v8110_v7 = vpack.i.bf16 %v2281_v15, %v2280_v50  ;;  %v1783_v24 = vadd.f32 %v1760_v54, %v1666_v39  ;;  %v2023_v6 = vmul.f32 %v14902_v34, %v9929_v36  ;;  %v2024_v57 = vmul.f32 %v14902_v34, %v9923_v11  ;;  %v14911_v1 = vld [vmem:[#allocation34_spill] sm:$0xff] }
 0x764   : > { %v2022_v50 = vmul.f32 %v9770_v41, %v14903_v49  ;;  %v1858_v15 = vadd.f32 %v9702_v8, %v1782_v51  ;;  %v2025_v14 = vmul.f32 %v14902_v34, %v14903_v49  ;;  %v2031_v36 = vmul.f32 %v14905_v29, %v14903_v49  ;;  %v14909_v51 = vld [vmem:[#allocation36_spill] sm:$0xff]  ;;  %v14915_v48 = vld [vmem:[#allocation38_spill] sm:$0xff]  ;;  %v14917_v34 = vld [vmem:[#allocation35_spill] sm:$0xff] }
 0x765   : > { %8111 = vrot.lane.b32.xlu0 %v8110_v7, %s8505_s26  ;;  %v1859_v32 = vadd.f32 %v14882_v0, %v1783_v24  ;;  %v1964_v11 = vsel %vm1959_vm1, %v14907_v63, %v14906_v44  ;;  %v1860_v41 = vadd.f32 %v10024_v30, %v1784_v4  ;;  %v2029_v8 = vmul.f32 %v14905_v29, %v9959_v2  ;;  %v14908_v0 = vld [vmem:[#allocation8_spill] sm:$0xff] }
 0x766   : > { %v10090_v55 = vpop.permute.xlu1 %2208  ;;  %v1965_v18 = vsel %vm1959_vm1, %v14906_v44, %v14908_v0  ;;  %v1991_v56 = vadd.f32 %v1967_v21, %v1861_v60  ;;  %v1987_v27 = vadd.f32 %v1964_v11, %v1857_v47  ;;  %v2034_v39 = vadd.f32 %v2022_v50, %v9977_v3  ;;  %v14913_v4 = vld [vmem:[#allocation40_spill] sm:$0xff] }
 0x767   : > { %v2207_v31 = vpop.permute.xlu0 %2206  ;;  %v1989_v54 = vadd.f32 %v14904_v43, %v1859_v32  ;;  %v1990_v7 = vadd.f32 %v1966_v45, %v1860_v41  ;;  %v1988_v30 = vadd.f32 %v1965_v18, %v1858_v15  ;;  %v2028_v2 = vmul.f32 %v14899_v58, %v14903_v49 }
 0x768   : > { %v2037_v40 = vadd.f32 %v2025_v14, %v9995_v46  ;;  %v2043_v52 = vadd.f32 %v2031_v36, %v1991_v56  ;;  %v2036_v53 = vadd.f32 %v2024_v57, %v1984_v61  ;;  %v2130_v22 = vadd.f32 %v9805_v16, %v2034_v39  ;;  %v14912_v46 = vld [vmem:[#allocation33_spill] sm:$0xff]  ;;  %v14918_v57 = vld [vmem:[#allocation43_spill] sm:$0xff] }
 0x769   : > { %v2035_v38 = vadd.f32 %v2023_v6, %v1983_v12  ;;  %v2042_v19 = vadd.f32 %v2030_v13, %v1990_v7  ;;  %v2041_v35 = vadd.f32 %v2029_v8, %v1989_v54  ;;  %v2038_v3 = vadd.f32 %v2026_v23, %v1986_v28  ;;  %v14914_v12 = vld [vmem:[#allocation37_spill] sm:$0xff] }
 0x76a   : > { %v2133_v26 = vadd.f32 %v14909_v51, %v2037_v40  ;;  %v2139_v24 = vadd.f32 %v14910_v17, %v2043_v52  ;;  %v2039_v60 = vadd.f32 %v2027_v42, %v1987_v27  ;;  %v2111_v58 = vsel %vm1517_vm13, %v14911_v1, %v14909_v51  ;;  %v14916_v42 = vld [vmem:[#allocation41_spill] sm:$0xff] }
 0x76b   : > { %v2110_v25 = vsel %vm1517_vm13, %v14912_v46, %v14911_v1  ;;  %v2238_v16 = vadd.f32 %v9998_v37, %v2130_v22  ;;  %v2040_v21 = vadd.f32 %v2028_v2, %v1988_v30  ;;  %v2113_v61 = vsel %vm1517_vm13, %v14914_v12, %v14913_v4 }
 0x76c   : > { %v2112_v23 = vsel %vm1517_vm13, %v14915_v48, %v14914_v12  ;;  %v2115_v47 = vsel %vm1517_vm13, %v14916_v42, %v14910_v17  ;;  %v2114_v6 = vsel %vm1517_vm13, %v14917_v34, %v14916_v42  ;;  %v2218_v37 = vsel %vm362_vm5, %v14918_v57, %v10050_v33  ;;  %v10187_v48 = vld [vmem:[%s14504_s2 + $0x48] sm:$0xff]  ;;  %v10205_v34 = vld [vmem:[%s14504_s2 + $0x50] sm:$0xff] }
 0x76d   : > { %v2270_v49 = vadd.f32 %v10040_v5, %v2238_v16  ;;  %v2220_v50 = vsel %vm362_vm5, %v9931_v59, %v2207_v31  ;;  %v2221_v15 = vsel %vm362_vm5, %v2207_v31, %v10090_v55  ;;  %v2131_v14 = vadd.f32 %v2110_v25, %v2035_v38 }
 0x76e   : > { %v2215_v9 = vpop.permute.xlu1 %2214  ;;  %v2219_v32 = vsel %vm362_vm5, %v10050_v33, %v10048_v10  ;;  %v2134_v43 = vadd.f32 %v2112_v23, %v2038_v3  ;;  %v2135_v45 = vadd.f32 %v2113_v61, %v2039_v60  ;;  %v2132_v29 = vadd.f32 %v2111_v58, %v2036_v53  ;;  %v10182_v61 = vld [vmem:[%s14504_s2 + $0x40] sm:$0xff]  ;;  %v10195_v23 = vld [vmem:[%s14504_s2 + $0x58] sm:$0xff] }
 0x76f   : > { %v2213_v20 = vpop.permute.xlu0 %2212  ;;  %v2138_v36 = vadd.f32 %v2115_v47, %v2042_v19  ;;  %v2137_v44 = vadd.f32 %v2114_v6, %v2041_v35  ;;  %v2136_v63 = vadd.f32 %v14913_v4, %v2040_v21  ;;  %v2239_v11 = vadd.f32 %v2218_v37, %v2131_v14  ;;  %v14919_v19 = vld [vmem:[#allocation3_spill] sm:$0xff] }
 0x770   : > { %v2242_v5 = vadd.f32 %v2220_v50, %v2134_v43  ;;  %v2243_v41 = vadd.f32 %v2221_v15, %v2135_v45  ;;  %v2223_v59 = vsel %vm362_vm5, %v2213_v20, %v2215_v9  ;;  %v2241_v8 = vadd.f32 %v10048_v10, %v2133_v26 }
 0x771   : > { %v2240_v31 = vadd.f32 %v2219_v32, %v2132_v29  ;;  %v2282_v13 = vmax.f32 %v2270_v49, 0.0  ;;  %v2222_v0 = vsel %vm362_vm5, %v9985_v62, %v2213_v20  ;;  %v2244_v56 = vadd.f32 %v10090_v55, %v2136_v63  ;;  %v2266_v62 = vpop.permute.xlu2 %2265  ;;  %v14920_v55 = vld [vmem:[#allocation4_spill] sm:$0xff] }
 0x772   : > { %v2247_v7 = vadd.f32 %v2215_v9, %v2139_v24  ;;  %v2246_v39 = vadd.f32 %v2223_v59, %v2138_v36  ;;  %v2245_v40 = vadd.f32 %v2222_v0, %v2137_v44  ;;  %vm2484_vm2 = vcmp.ge.s32.totalorder %v14919_v19, 2 }
 0x773   : > { %vm2485_vm3 = vcmp.ge.s32.totalorder %v14920_v55, 2  ;;  %v14921_v3 = vmov 0.0   ;;  %v14922_v42 = vmov 2   ;;  %v14923_v47 = vmov 1  }
 0x774   : > { %v2278_v26 = vadd.f32 %v2266_v62, %v2246_v39  ;;  %v2279_v17 = vadd.f32 %v2266_v62, %v2247_v7  ;;  %v2277_v24 = vadd.f32 %v2266_v62, %v2245_v40  ;;  %v7839_v60 = vsel %vm2484_vm2, 1.0, %v14921_v3 }
 0x775   : > { %v7840_v1 = vsel %vm2485_vm3, 1.0, %v14921_v3  ;;  %v14924_v6 = vmov 3   ;;  %v14925_v57 = vmov 4   ;;  %v14926_v37 = vmov 5  }
 0x776   : > { %v2261_v33 = vpop.permute.xlu1 %2260  ;;  %v2290_v46 = vmax.f32 %v2278_v26, 0.0  ;;  %v2291_v25 = vmax.f32 %v2279_v17, 0.0  ;;  %v2289_v16 = vmax.f32 %v2277_v24, 0.0  ;;  %v10173_v21 = vpack.i.bf16 %v7840_v1, %v7839_v60 }
 0x777   : > { %v2256_v18 = vpop.permute.xlu0 %2255  ;;  %v2274_v28 = vadd.f32 %v2261_v33, %v2242_v5  ;;  %v2275_v27 = vadd.f32 %v2261_v33, %v2243_v41  ;;  %v2276_v35 = vadd.f32 %v2261_v33, %v2244_v56  ;;  %v14927_v49 = vmov 6   ;;  %v7819_v33 = vld [vmem:[%s14506_s4 + $0x10] sm:$0xff] }
 0x778   : > { %v2271_v54 = vadd.f32 %v2256_v18, %v2239_v11  ;;  %v2272_v30 = vadd.f32 %v2256_v18, %v2240_v31  ;;  %v2273_v2 = vadd.f32 %v2256_v18, %v2241_v8  ;;  %v8135_v12 = vpack.i.bf16 %v2291_v25, %v2290_v46 }
 0x779   : > { %v2286_v52 = vmax.f32 %v2274_v28, 0.0  ;;  %v2287_v53 = vmax.f32 %v2275_v27, 0.0  ;;  %v2288_v58 = vmax.f32 %v2276_v35, 0.0  ;;  %v10226_v50 = vpop.permute.xlu2 %2305  ;;  %vm2490_vm4 = vcmp.lt.s32.totalorder %v14919_v19, 14 }
 0x77a   : > { %v2283_v10 = vmax.f32 %v2271_v54, 0.0  ;;  %v2284_v22 = vmax.f32 %v2272_v30, 0.0  ;;  %v2285_v38 = vmax.f32 %v2273_v2, 0.0  ;;  %vm2491_vm5 = vcmp.lt.s32.totalorder %v14920_v55, 14 }
 0x77b   : > { %v8125_v51 = vpack.i.bf16 %v2287_v53, %v2286_v52  ;;  %v8130_v4 = vpack.i.bf16 %v2289_v16, %v2288_v58  ;;  %v7841_v7 = vsel %vm2490_vm4, 1.0, %v14921_v3  ;;  %v7842_v39 = vsel %vm2491_vm5, 1.0, %v14921_v3 }
 0x77c   : > { %v8115_v20 = vpack.i.bf16 %v2283_v10, %v2282_v13  ;;  %v8120_v9 = vpack.i.bf16 %v2285_v38, %v2284_v22  ;;  %v10250_v30 = vpack.i.bf16 %v7842_v39, %v7841_v7  ;;  %v7820_v38 = vld [vmem:[%s14506_s4 + $0x18] sm:$0xff]  ;;  %vm2875_vm1 = vcmask 785408  }
 0x77d   : > { %8126 = vrot.lane.b32.xlu0 %v8125_v51, %s8505_s26  ;;  %vm3081_vm2 = vcmask 752640   ;;  %vm3295_vm3 = vcmask 506880  }
 0x77e   : > { %8116 = vrot.lane.b32.xlu1 %v8115_v20, %s8505_s26  ;;  %8121 = vrot.lane.b32.xlu2 %v8120_v9, %s8505_s26  ;;  %v10231_v63 = vpop.permute.xlu1 %2300 }
 0x785   : > { %8141 = vrot.lane.b32.xlu0 %v10173_v21, %s8508_s20 }
 0x786   : > { %8131 = vrot.lane.b32.xlu1 %v8130_v4, %s8505_s26  ;;  %8136 = vrot.lane.b32.xlu2 %v8135_v12, %s8505_s26 }
 0x78d   : > { %2580 = vperm.xlu0 %8146, %v10187_v48  }
 0x78e   : > { %2533 = vperm.xlu1 %8109, %v10182_v61   ;;  %2538 = vperm.xlu2 %8108, %v10187_v48  }
 0x795   : > { %8154 = vset.pattern.permute.xlu0 %v14922_v42 }
 0x796   : > { %2548 = vperm.xlu1 %8109, %v10195_v23   ;;  %8145 = vset.pattern.permute.xlu2 %v14923_v47 }
 0x797   : > { %2700 = vperm.xlu0 %8154, %v10187_v48   ;;  %2576 = vperm.xlu2 %8145, %v10182_v61  }
 0x79e   : > { %8147 = vset.pattern.permute.xlu1 %v14923_v47 }
 0x79f   : > { %2584 = vperm.xlu1 %8147, %v10205_v34   ;;  %8162 = vset.pattern.permute.xlu0 %v14924_v6 }
 0x7a0   : > { %2588 = vperm.xlu2 %8145, %v10195_v23   ;;  %2816 = vperm.xlu0 %8162, %v10187_v48  }
 0x7a7   : > { %8155 = vset.pattern.permute.xlu1 %v14922_v42 }
 0x7a8   : > { %8153 = vset.pattern.permute.xlu2 %v14922_v42  ;;  %8166 = vset.pattern.permute.xlu0 %v14925_v57 }
 0x7a9   : > { %2696 = vperm.xlu2 %8153, %v10182_v61   ;;  %2917 = vperm.xlu0 %8166, %v10205_v34  }
 0x7b1   : > { %2708 = vperm.xlu2 %8153, %v10195_v23   ;;  %8172 = vset.pattern.permute.xlu0 %v14926_v37 }
 0x7b2   : > { %3018 = vperm.xlu0 %8172, %v10182_v61  }
 0x7b9   : > { %8161 = vset.pattern.permute.xlu2 %v14924_v6 }
 0x7ba   : > { %2812 = vperm.xlu2 %8161, %v10182_v61   ;;  %8180 = vset.pattern.permute.xlu0 %v14927_v49 }
 0x7c2   : > { %2824 = vperm.xlu2 %8161, %v10195_v23  }
 0x7ca   : > { %8165 = vset.pattern.permute.xlu2 %v14925_v57 }
 0x7cb   : > { %2913 = vperm.xlu2 %8165, %v10187_v48  }
 0x7d3   : > { %8174 = vset.pattern.permute.xlu2 %v14926_v37 }
 0x7d4   : > { %8168 = vrot.lane.b32.xlu2 %v10250_v30, %s8510_s8  ;;  %s8521_s8 = smov 113  }
 0x7d7   : > { %v8112_v11 = vpop.permute.xlu0 %8111 }
 0x7d8   : > { %v8122_v15 = vpop.permute.xlu2 %8121  ;;  %v8114_v8 = vunpack.i.h.bf16 %v8112_v11  ;;  %v8113_v31 = vunpack.i.l.bf16 %v8112_v11 }
 0x7d9   : > { %v8124_v14 = vunpack.i.h.bf16 %v8122_v15  ;;  %v8123_v32 = vunpack.i.l.bf16 %v8122_v15 }
 0x7da   : > { %v2326_v54 = vsel %vm1556_vm12, %v8113_v31, %v8114_v8 }
 0x7db   : > { %v2329_v43 = vsel %vm1556_vm12, %v8123_v32, %v8124_v14 }
 0x7dc   : > { %2377 = vmatpush.msrb.mxu1 %v2329_v43  ;;  %3026 = vperm.xlu2 %8174, %v10205_v34  }
 0x7e0   : > { %v8137_v45 = vpop.permute.xlu2 %8136 }
 0x7e1   : > { %v8139_v29 = vunpack.i.h.bf16 %v8137_v45  ;;  %v8138_v36 = vunpack.i.l.bf16 %v8137_v45 }
 0x7e3   : > { %v2411_v44 = vsel %vm1556_vm12, %v8138_v36, %v8139_v29 }
 0x7e4   : > { %2453 = vmatpush.msrb.mxu3 %v2411_v44  ;;  %8182 = vset.pattern.permute.xlu2 %v14927_v49 }
 0x7e8   : > { %v10233_v5 = vpop.permute.xlu2 %2538 }
 0x7ef   : > { %v8127_v59 = vpop.permute.xlu0 %8126 }
 0x7f0   : > { %v8117_v41 = vpop.permute.xlu1 %8116  ;;  %v8129_v52 = vunpack.i.h.bf16 %v8127_v59  ;;  %v8128_v53 = vunpack.i.l.bf16 %v8127_v59 }
 0x7f1   : > { %v8119_v13 = vunpack.i.h.bf16 %v8117_v41  ;;  %v8118_v0 = vunpack.i.l.bf16 %v8117_v41  ;;  %v10238_v18 = vpop.permute.xlu2 %2576 }
 0x7f2   : > { %v2591_v27 = vmul.f32 0.0, %v10238_v18  ;;  %v2408_v20 = vsel %vm1556_vm12, %v8128_v53, %v8129_v52 }
 0x7f3   : > { %v2328_v56 = vsel %vm1556_vm12, %v8119_v13, %v8123_v32  ;;  %v2327_v28 = vsel %vm1556_vm12, %v8114_v8, %v8118_v0 }
 0x7f4   : > { %2354 = vmatpush.msrb.mxu0 %v2328_v56  ;;  %2378 = vmatpush.msrb.mxu1 %v2327_v28 }
 0x7f5   : > { %7825 = vmatmul.msk.f32.vlgmr.msrb.gmra.mxu1 %vm1211_vm9, %v7819_v33  ;;  %2615 = vrot.lane.b32.xlu1 %v2591_v27, %s8509_s14 }
 0x7f6   : > { %2355 = vmatpush.msrb.mxu0 %v2326_v54 }
 0x7f7   : > { %7823 = vmatmul.msk.f32.vlgmr.msrb.gmra.mxu0 %vm1211_vm9, %v7819_v33  ;;  %v10253_v40 = vpop.permute.xlu0 %8141 }
 0x7f8   : > { %v8132_v2 = vpop.permute.xlu1 %8131 }
 0x7f9   : > { %v8134_v10 = vunpack.i.h.bf16 %v8132_v2  ;;  %v8133_v22 = vunpack.i.l.bf16 %v8132_v2 }
 0x7fa   : > { %v10282_v1 = vpop.permute.xlu2 %2588 }
 0x7fb   : > { %v2410_v62 = vsel %vm1556_vm12, %v8134_v10, %v8138_v36  ;;  %v2409_v35 = vsel %vm1556_vm12, %v8129_v52, %v8133_v22  ;;  %v2600_v58 = vmul.f32 0.0, %v10282_v1  ;;  %vm3332_vm12 = vcmask 277504  }
 0x7fc   : > { %2430 = vmatpush.msrb.mxu2 %v2410_v62  ;;  %2454 = vmatpush.msrb.mxu3 %v2409_v35 }
 0x7fd   : > { %7826 = vmatmul.msk.f32.gmra.mxu1 %vm1211_vm9, %v7820_v38  ;;  %7829 = vmatmul.msk.f32.vlgmr.msrb.gmra.mxu3 %vm1211_vm9, %v7819_v33 }
 0x7fe   : > { %2431 = vmatpush.msrb.mxu2 %v2408_v20 }
 0x7ff   : > { %7824 = vmatmul.msk.f32.gmra.mxu0 %vm1211_vm9, %v7820_v38  ;;  %7827 = vmatmul.msk.f32.vlgmr.msrb.gmra.mxu2 %vm1211_vm9, %v7819_v33  ;;  %v10268_v26 = vpop.permute.xlu0 %2580 }
 0x800   : > { %v10266_v51 = vpop.permute.xlu1 %2533  ;;  %v2594_v17 = vmul.f32 0.0, %v10268_v26 }
 0x802   : > { %2621 = vrot.lane.b32.xlu1 %v2594_v17, %s8509_s14 }
 0x803   : > { %v10316_v13 = vpop.permute.xlu2 %2696 }
 0x805   : > { %7830 = vmatmul.msk.f32.gmra.mxu3 %vm1211_vm9, %v7820_v38 }
 0x807   : > { %7828 = vmatmul.msk.f32.gmra.mxu2 %vm1211_vm9, %v7820_v38 }
 0x808   : > { %v10275_v9 = vpop.permute.xlu1 %2548 }
 0x80b   : > { %v10330_v54 = vpop.permute.xlu2 %2708 }
 0x811   : > { %v10278_v24 = vpop.permute.xlu1 %2584 }
 0x812   : > { %v2597_v60 = vmul.f32 0.0, %v10278_v24 }
 0x814   : > { %2627 = vrot.lane.b32.xlu1 %v2597_v60, %s8509_s14  ;;  %v10340_v2 = vpop.permute.xlu2 %2812 }
 0x81c   : > { %2633 = vrot.lane.b32.xlu1 %v2600_v58, %s8509_s14  ;;  %v10344_v53 = vpop.permute.xlu2 %2824 }
 0x824   : > { %8149 = vrot.lane.b32.xlu1 %v10250_v30, %s8511_s16 }
 0x825   : > { %v10348_v22 = vpop.permute.xlu2 %2913 }
 0x82c   : > { %2704 = vperm.xlu1 %8155, %v10205_v34  }
 0x82e   : > { %v8169_v35 = vpop.permute.xlu2 %8168 }
 0x834   : > { %8163 = vset.pattern.permute.xlu1 %v14924_v6 }
 0x836   : > { %v10442_v42 = vpop.permute.xlu2 %3026 }
 0x867   : > { %v10289_v25 = vpop.permute.xlu1 %2615 }
 0x872   : > { %v2380_v46 = vpop.f32.mrf.mxu1 }
 0x873   : > { %v2381_v16 = vadd.f32 %v2380_v46, %v10231_v63  ;;  %v8171_v46 = vunpack.i.h.bf16 %v8169_v35 }
 0x874   : > { %v2357_v4 = vpop.f32.mrf.mxu0  ;;  %v10303_v45 = vpop.permute.xlu1 %2621 }
 0x875   : > { %v10292_v12 = vmax.f32 %v2381_v16, 0.0  ;;  %v2358_v15 = vadd.f32 %v2357_v4, %v10231_v63  ;;  %v10358_v16 = vunpack.i.l.bf16 %v8169_v35 }
 0x877   : > { %v10295_v14 = vmax.f32 %v2358_v15, 0.0  ;;  %v2593_v32 = vmul.f32 %v10238_v18, %v10292_v12 }
 0x879   : > { %2619 = vrot.lane.b32.xlu0 %v2593_v32, %s8509_s14  ;;  %v2592_v43 = vmul.f32 %v10238_v18, %v10295_v14  ;;  %v10322_v18 = vpop.permute.xlu0 %2700 }
 0x87b   : > { %2617 = vrot.lane.b32.xlu2 %v2592_v43, %s8509_s14 }
 0x881   : > { %v10350_v38 = vpop.permute.xlu0 %2816 }
 0x886   : > { %v10305_v29 = vpop.permute.xlu1 %2627 }
 0x889   : > { %v10354_v20 = vpop.permute.xlu0 %2917 }
 0x88e   : > { %v10307_v36 = vpop.permute.xlu1 %2633 }
 0x88f   : > { %14928 = vst [vmem:[#allocation11_spill] sm:$0xff] %v10307_v36 }
 0x896   : > { %v8150_v44 = vpop.permute.xlu1 %8149 }
 0x897   : > { %v10309_v11 = vunpack.i.h.bf16 %v8150_v44  ;;  %v8151_v41 = vunpack.i.l.bf16 %v8150_v44 }
 0x899   : > { %v10312_v59 = vsel %vm2678_vm7, %v8151_v41, %v10309_v11  ;;  %v2683_v8 = vmul.f32 0.0, %v8151_v41  ;;  %v2685_v31 = vmul.f32 %v10309_v11, %v10292_v12  ;;  %v10369_v41 = vsel %vm3000_vm10, %v10358_v16, %v8171_v46 }
 0x89b   : > { %v2711_v0 = vmul.f32 %v10316_v13, %v2683_v8  ;;  %v2713_v33 = vmul.f32 %v10316_v13, %v2685_v31  ;;  %v2714_v56 = vmul.f32 %v10322_v18, %v2683_v8  ;;  %v2720_v7 = vmul.f32 %v10330_v54, %v2683_v8  ;;  %v10375_v31 = vpop.permute.xlu0 %3018 }
 0x89d   : > { %2735 = vrot.lane.b32.xlu1 %v2711_v0, %s8503_s22  ;;  %2739 = vrot.lane.b32.xlu0 %v2713_v33, %s8503_s22  ;;  %v2383_v0 = vpop.f32.mrf.mxu1 }
 0x89e   : > { %v10326_v28 = vpop.permute.xlu1 %2704 }
 0x89f   : > { %v2717_v27 = vmul.f32 %v10326_v28, %v2683_v8  ;;  %v3006_v8 = vmul.f32 %v10369_v41, %v10292_v12 }
 0x8a1   : > { %v3034_v33 = vmul.f32 %v10375_v31, %v3006_v8 }
 0x8a5   : > { %2741 = vrot.lane.b32.xlu1 %v2714_v56, %s8503_s22  ;;  %v2384_v56 = vadd.f32 %v2383_v0, %v10226_v50 }
 0x8ad   : > { %2747 = vrot.lane.b32.xlu1 %v2717_v27, %s8503_s22 }
 0x8b5   : > { %2753 = vrot.lane.b32.xlu1 %v2720_v7, %s8503_s22  ;;  %v10382_v7 = vmax.f32 %v2384_v56, 0.0 }
 0x8bd   : > { %8157 = vrot.lane.b32.xlu1 %v10173_v21, %s8509_s14 }
 0x8c5   : > { %2820 = vperm.xlu1 %8163, %v10205_v34  }
 0x8cd   : > { %8164 = vset.pattern.permute.xlu1 %v14925_v57 }
 0x90f   : > { %v10338_v39 = vpop.permute.xlu1 %2735 }
 0x917   : > { %v10342_v52 = vpop.permute.xlu1 %2741 }
 0x91f   : > { %v10346_v10 = vpop.permute.xlu1 %2747 }
 0x920   : > { %14929 = vst [vmem:[#allocation15_spill] sm:$0xff] %v10346_v10 }
 0x927   : > { %v10352_v62 = vpop.permute.xlu1 %2753 }
 0x928   : > { %14930 = vst [vmem:[#allocation5_spill] sm:$0xff] %v10352_v62 }
 0x92f   : > { %v8158_v17 = vpop.permute.xlu1 %8157 }
 0x930   : > { %v10356_v60 = vunpack.i.h.bf16 %v8158_v17  ;;  %v8159_v58 = vunpack.i.l.bf16 %v8158_v17 }
 0x932   : > { %v10362_v4 = vsel %vm2639_vm8, %v8159_v58, %v10356_v60  ;;  %v2799_v15 = vmul.f32 0.0, %v8159_v58  ;;  %v2801_v32 = vmul.f32 %v10356_v60, %v10292_v12  ;;  %v2596_v58 = vmul.f32 %v10268_v26, %v10382_v7 }
 0x933   : > { %v2804_v0 = vmul.f32 %v10356_v60, %v10382_v7 }
 0x934   : > { %v2827_v43 = vmul.f32 %v10340_v2, %v2799_v15  ;;  %v2829_v44 = vmul.f32 %v10340_v2, %v2801_v32  ;;  %v2830_v27 = vmul.f32 %v10350_v38, %v2799_v15  ;;  %v2836_v32 = vmul.f32 %v10344_v53, %v2799_v15 }
 0x936   : > { %2851 = vrot.lane.b32.xlu1 %v2827_v43, %s8512_s18  ;;  %2855 = vrot.lane.b32.xlu0 %v2829_v44, %s8512_s18  ;;  %v2927_v43 = vmul.f32 %v10348_v22, %v10382_v7  ;;  %v2688_v44 = vmul.f32 %v10309_v11, %v10382_v7 }
 0x937   : > { %v10384_v35 = vpop.permute.xlu1 %2820 }
 0x938   : > { %v2833_v17 = vmul.f32 %v10384_v35, %v2799_v15  ;;  %v2716_v8 = vmul.f32 %v10322_v18, %v2688_v44  ;;  %v2832_v15 = vmul.f32 %v10350_v38, %v2804_v0  ;;  %v2456_v0 = vpop.f32.mrf.mxu3 }
 0x93e   : > { %2857 = vrot.lane.b32.xlu1 %v2830_v27, %s8512_s18  ;;  %3059 = vrot.lane.b32.xlu0 %v3034_v33, %s8513_s19  ;;  %v3007_v33 = vmul.f32 0.0, %v8171_v46 }
 0x940   : > { %v3035_v56 = vmul.f32 %v10375_v31, %v3007_v33 }
 0x946   : > { %2863 = vrot.lane.b32.xlu1 %v2833_v17, %s8512_s18  ;;  %2625 = vrot.lane.b32.xlu0 %v2596_v58, %s8509_s14 }
 0x94e   : > { %2869 = vrot.lane.b32.xlu1 %v2836_v32, %s8512_s18  ;;  %2946 = vrot.lane.b32.xlu0 %v2927_v43, %s8508_s20 }
 0x956   : > { %2909 = vperm.xlu1 %8164, %v10182_v61   ;;  %2745 = vrot.lane.b32.xlu0 %v2716_v8, %s8503_s22  ;;  %v2684_v8 = vmul.f32 %v10312_v59, %v10295_v14 }
 0x95e   : > { %2921 = vperm.xlu1 %8164, %v10195_v23   ;;  %2861 = vrot.lane.b32.xlu0 %v2832_v15, %s8512_s18  ;;  %v3009_v15 = vmul.f32 %v10369_v41, %v10382_v7 }
 0x966   : > { %8173 = vset.pattern.permute.xlu1 %v14926_v37  ;;  %v2457_v37 = vadd.f32 %v2456_v0, %v10231_v63 }
 0x967   : > { %3022 = vperm.xlu1 %8173, %v10187_v48  }
 0x968   : > { %v10440_v6 = vmax.f32 %v2457_v37, 0.0  ;;  %v2360_v37 = vpop.f32.mrf.mxu0 }
 0x96a   : > { %v2599_v0 = vmul.f32 %v10278_v24, %v10440_v6 }
 0x96f   : > { %3030 = vperm.xlu1 %8173, %v10195_v23  }
 0x977   : > { %3061 = vrot.lane.b32.xlu1 %v3035_v56, %s8513_s19 }
 0x978   : > { %8181 = vset.pattern.permute.xlu1 %v14927_v49  ;;  %v2712_v49 = vmul.f32 %v10316_v13, %v2684_v8  ;;  %v3041_v8 = vmul.f32 %v10442_v42, %v3007_v33 }
 0x9a8   : > { %v10412_v27 = vpop.permute.xlu1 %2851 }
 0x9b0   : > { %v10414_v17 = vpop.permute.xlu1 %2857 }
 0x9b8   : > { %v10416_v58 = vpop.permute.xlu1 %2863 }
 0x9b9   : > { %14931 = vst [vmem:[#allocation13_spill] sm:$0xff] %v10416_v58 }
 0x9c0   : > { %v10418_v32 = vpop.permute.xlu1 %2869 }
 0x9c1   : > { %14932 = vst [vmem:[#allocation26_spill] sm:$0xff] %v10418_v32 }
 0x9c8   : > { %v2910_v43 = vpop.permute.xlu1 %2909 }
 0x9c9   : > { %v2924_v44 = vmul.f32 %v2910_v43, %v10295_v14 }
 0x9cb   : > { %2940 = vrot.lane.b32.xlu2 %v2924_v44, %s8508_s20 }
 0x9d0   : > { %v10422_v46 = vpop.permute.xlu1 %2921 }
 0x9d3   : > { %8176 = vrot.lane.b32.xlu2 %v10173_v21, %s8514_s23  ;;  %v2800_v21 = vmul.f32 %v10362_v4, %v10295_v14 }
 0x9d5   : > { %v2828_v13 = vmul.f32 %v10340_v2, %v2800_v21  ;;  %v2925_v21 = vmul.f32 %v2910_v43, %v10292_v12 }
 0x9d9   : > { %v10429_v56 = vpop.permute.xlu1 %3022 }
 0x9da   : > { %v3037_v44 = vmul.f32 %v10429_v56, %v3009_v15  ;;  %v3038_v57 = vmul.f32 %v10429_v56, %v3007_v33  ;;  %v2361_v15 = vadd.f32 %v2360_v37, %v10226_v50 }
 0x9db   : > { %2737 = vrot.lane.b32.xlu2 %v2712_v49, %s8503_s22  ;;  %v2691_v49 = vmul.f32 %v10309_v11, %v10440_v6 }
 0x9dc   : > { %3067 = vrot.lane.b32.xlu1 %v3038_v57, %s8513_s19  ;;  %3065 = vrot.lane.b32.xlu0 %v3037_v44, %s8513_s19  ;;  %v3005_v57 = vmul.f32 %v10358_v16, %v10295_v14 }
 0x9dd   : > { %v2719_v44 = vmul.f32 %v10326_v28, %v2691_v49 }
 0x9de   : > { %v3033_v2 = vmul.f32 %v10375_v31, %v3005_v57  ;;  %v2807_v31 = vmul.f32 %v10356_v60, %v10440_v6 }
 0x9e0   : > { %v2835_v43 = vmul.f32 %v10384_v35, %v2807_v31 }
 0x9e3   : > { %2853 = vrot.lane.b32.xlu2 %v2828_v13, %s8512_s18  ;;  %v10462_v13 = vmax.f32 %v2361_v15, 0.0  ;;  %v3012_v15 = vmul.f32 %v10369_v41, %v10440_v6 }
 0x9e4   : > { %3073 = vrot.lane.b32.xlu1 %v3041_v8, %s8513_s19  ;;  %2631 = vrot.lane.b32.xlu0 %v2599_v0, %s8509_s14  ;;  %v2433_v8 = vpop.f32.mrf.mxu2  ;;  %v10464_v0 = vpop.permute.xlu1 %3030 }
 0x9e5   : > { %v2595_v57 = vmul.f32 %v10268_v26, %v10462_v13  ;;  %v2434_v37 = vadd.f32 %v2433_v8, %v10231_v63  ;;  %v3044_v49 = vmul.f32 %v10464_v0, %v3007_v33  ;;  %v2926_v26 = vmul.f32 %v10348_v22, %v10462_v13 }
 0x9e6   : > { %v3040_v63 = vmul.f32 %v10442_v42, %v3012_v15  ;;  %v2687_v8 = vmul.f32 %v10312_v59, %v10462_v13  ;;  %v10500_v15 = vpop.permute.xlu0 %2619 }
 0x9e8   : > { %v2715_v22 = vmul.f32 %v10322_v18, %v2687_v8 }
 0x9eb   : > { %3057 = vrot.lane.b32.xlu2 %v3033_v2, %s8513_s19  ;;  %v10476_v2 = vmax.f32 %v2434_v37, 0.0 }
 0x9ec   : > { %2942 = vrot.lane.b32.xlu1 %v2925_v21, %s8508_s20  ;;  %2751 = vrot.lane.b32.xlu0 %v2719_v44, %s8503_s22  ;;  %v2459_v44 = vpop.f32.mrf.mxu3 }
 0x9ed   : > { %v2460_v21 = vadd.f32 %v2459_v44, %v10226_v50  ;;  %v2928_v33 = vmul.f32 %v10354_v20, %v10476_v2  ;;  %v2803_v44 = vmul.f32 %v10362_v4, %v10462_v13 }
 0x9ef   : > { %v10491_v31 = vmax.f32 %v2460_v21, 0.0  ;;  %v10512_v21 = vpop.permute.xlu0 %2739 }
 0x9f1   : > { %v2931_v37 = vmul.f32 %v10422_v46, %v10491_v31 }
 0x9f3   : > { %2623 = vrot.lane.b32.xlu2 %v2595_v57, %s8509_s14  ;;  %v2436_v57 = vpop.f32.mrf.mxu2 }
 0x9f4   : > { %3079 = vrot.lane.b32.xlu1 %v3044_v49, %s8513_s19  ;;  %2867 = vrot.lane.b32.xlu0 %v2835_v43, %s8512_s18  ;;  %v2602_v43 = vmul.f32 %v10282_v1, %v10491_v31  ;;  %v2437_v49 = vadd.f32 %v2436_v57, %v10226_v50  ;;  %v2694_v50 = vmul.f32 %v10309_v11, %v10491_v31 }
 0x9f5   : > { %v2810_v57 = vmul.f32 %v10356_v60, %v10491_v31  ;;  %v2598_v11 = vmul.f32 %v10278_v24, %v10476_v2  ;;  %v2929_v60 = vmul.f32 %v10354_v20, %v10440_v6 }
 0x9f6   : > { %v10506_v18 = vmax.f32 %v2437_v49, 0.0  ;;  %v3015_v49 = vmul.f32 %v10369_v41, %v10491_v31  ;;  %v2806_v41 = vmul.f32 %v10362_v4, %v10476_v2 }
 0x9f8   : > { %v3043_v24 = vmul.f32 %v10464_v0, %v3015_v49 }
 0x9fb   : > { %2944 = vrot.lane.b32.xlu2 %v2926_v26, %s8508_s20  ;;  %v2831_v26 = vmul.f32 %v10350_v38, %v2803_v44  ;;  %v2722_v38 = vmul.f32 %v10330_v54, %v2694_v50 }
 0x9fc   : > { %2948 = vrot.lane.b32.xlu1 %v2928_v33, %s8508_s20  ;;  %3071 = vrot.lane.b32.xlu0 %v3040_v63, %s8513_s19  ;;  %v2930_v63 = vmul.f32 %v10422_v46, %v10506_v18  ;;  %v3008_v33 = vmul.f32 %v10358_v16, %v10462_v13  ;;  %v10523_v46 = vpop.permute.xlu0 %2855 }
 0x9fe   : > { %v3036_v8 = vmul.f32 %v10429_v56, %v3008_v33  ;;  %v14933_v56 = vmov 7   ;;  %v2834_v33 = vmul.f32 %v10384_v35, %v2806_v41  ;;  %v2601_v35 = vmul.f32 %v10282_v1, %v10506_v18 }
 0xa03   : > { %2743 = vrot.lane.b32.xlu2 %v2715_v22, %s8503_s22  ;;  %v2838_v22 = vmul.f32 %v10344_v53, %v2810_v57 }
 0xa04   : > { %2954 = vrot.lane.b32.xlu1 %v2931_v37, %s8508_s20  ;;  %2637 = vrot.lane.b32.xlu0 %v2602_v43, %s8509_s14  ;;  %v10535_v37 = vpop.permute.xlu2 %2617  ;;  %v10537_v43 = vpop.permute.xlu0 %3059 }
 0xa0b   : > { %2859 = vrot.lane.b32.xlu2 %v2831_v26, %s8512_s18  ;;  %v2690_v26 = vmul.f32 %v10312_v59, %v10476_v2 }
 0xa0c   : > { %3140 = vperm.xlu1 %8181, %v10187_v48   ;;  %2952 = vrot.lane.b32.xlu0 %v2930_v63, %s8508_s20  ;;  %v10550_v63 = vpop.permute.xlu0 %2625 }
 0xa0d   : > { %v2718_v50 = vmul.f32 %v10326_v28, %v2690_v26 }
 0xa13   : > { %3063 = vrot.lane.b32.xlu2 %v3036_v8, %s8513_s19 }
 0xa14   : > { %3148 = vperm.xlu1 %8181, %v10195_v23   ;;  %2757 = vrot.lane.b32.xlu0 %v2722_v38, %s8503_s22  ;;  %v10558_v8 = vpop.permute.xlu0 %2946  ;;  %v3011_v38 = vmul.f32 %v10358_v16, %v10476_v2 }
 0xa16   : > { %v3039_v57 = vmul.f32 %v10442_v42, %v3011_v38 }
 0xa1b   : > { %2629 = vrot.lane.b32.xlu2 %v2598_v11, %s8509_s14 }
 0xa1c   : > { %2873 = vrot.lane.b32.xlu0 %v2838_v22, %s8512_s18  ;;  %8185 = vset.pattern.permute.xlu1 %v14933_v56  ;;  %v10568_v11 = vpop.permute.xlu0 %2745 }
 0xa23   : > { %2950 = vrot.lane.b32.xlu2 %v2929_v60, %s8508_s20  ;;  %v2693_v60 = vmul.f32 %v10312_v59, %v10506_v18 }
 0xa24   : > { %3077 = vrot.lane.b32.xlu0 %v3043_v24, %s8513_s19  ;;  %v10579_v24 = vpop.permute.xlu0 %2861 }
 0xa25   : > { %v10546_v44 = vpop.permute.xlu2 %2940  ;;  %v2721_v42 = vmul.f32 %v10330_v54, %v2693_v60  ;;  %v3014_v54 = vmul.f32 %v10358_v16, %v10506_v18 }
 0xa27   : > { %v3042_v38 = vmul.f32 %v10464_v0, %v3014_v54 }
 0xa2b   : > { %2749 = vrot.lane.b32.xlu2 %v2718_v50, %s8503_s22  ;;  %v2809_v50 = vmul.f32 %v10362_v4, %v10506_v18 }
 0xa2c   : > { %3136 = vperm.xlu0 %8180, %v10182_v61  }
 0xa2d   : > { %v8177_v20 = vpop.permute.xlu2 %8176  ;;  %v2837_v1 = vmul.f32 %v10344_v53, %v2809_v50 }
 0xa2e   : > { %v8179_v62 = vunpack.i.h.bf16 %v8177_v20 }
 0xa33   : > { %2865 = vrot.lane.b32.xlu2 %v2834_v33, %s8512_s18 }
 0xa34   : > { %8184 = vset.pattern.permute.xlu0 %v14933_v56 }
 0xa35   : > { %v10564_v28 = vpop.permute.xlu2 %2737 }
 0xa3b   : > { %3069 = vrot.lane.b32.xlu2 %v3039_v57, %s8513_s19 }
 0xa3d   : > { %v10570_v22 = vpop.permute.xlu2 %2853 }
 0xa43   : > { %2635 = vrot.lane.b32.xlu2 %v2601_v35, %s8509_s14  ;;  %v10603_v35 = vpop.permute.xlu1 %3061 }
 0xa45   : > { %v10575_v49 = vpop.permute.xlu2 %3057 }
 0xa4b   : > { %2755 = vrot.lane.b32.xlu2 %v2721_v42, %s8503_s22  ;;  %s8515_s22 = smov 62  }
 0xa4d   : > { %v10583_v26 = vpop.permute.xlu2 %2623 }
 0xa4e   : > { %v10587_v41 = vpop.permute.xlu0 %3065  ;;  %v10610_v42 = vpop.permute.xlu1 %3067 }
 0xa53   : > { %2871 = vrot.lane.b32.xlu2 %v2837_v1, %s8512_s18 }
 0xa55   : > { %v10591_v33 = vpop.permute.xlu2 %2944 }
 0xa56   : > { %v10593_v59 = vpop.permute.xlu0 %2631  ;;  %v10617_v50 = vpop.permute.xlu1 %3073 }
 0xa57   : > { %14934 = vst [vmem:[#allocation7_spill] sm:$0xff] %v10593_v59 }
 0xa58   : > { %14938 = vst [vmem:[#allocation17_spill] sm:$0xff] %v10617_v50 }
 0xa5b   : > { %3075 = vrot.lane.b32.xlu2 %v3042_v38, %s8513_s19 }
 0xa5d   : > { %v10599_v57 = vpop.permute.xlu2 %2743 }
 0xa5e   : > { %v10601_v4 = vpop.permute.xlu0 %2751  ;;  %v10623_v38 = vpop.permute.xlu1 %2942 }
 0xa5f   : > { %14935 = vst [vmem:[#allocation39_spill] sm:$0xff] %v10601_v4  ;;  %v8178_v4 = vunpack.i.l.bf16 %v8177_v20 }
 0xa63   : > { %3144 = vperm.xlu2 %8182, %v10205_v34  }
 0xa65   : > { %v10606_v53 = vpop.permute.xlu2 %2859 }
 0xa66   : > { %v10608_v60 = vpop.permute.xlu0 %2867 }
 0xa67   : > { %14936 = vst [vmem:[#allocation9_spill] sm:$0xff] %v10608_v60  ;;  %v10631_v60 = vpop.permute.xlu1 %3079 }
 0xa68   : > { %14943 = vst [vmem:[#allocation32_spill] sm:$0xff] %v10631_v60  ;;  %v3123_v60 = vmul.f32 %v8178_v4, %v10295_v14 }
 0xa6b   : > { %8183 = vset.pattern.permute.xlu2 %v14933_v56 }
 0xa6d   : > { %v10613_v16 = vpop.permute.xlu2 %3063 }
 0xa6e   : > { %v10615_v0 = vpop.permute.xlu0 %3071 }
 0xa6f   : > { %14937 = vst [vmem:[#allocation21_spill] sm:$0xff] %v10615_v0  ;;  %v10639_v50 = vpop.permute.xlu1 %2948 }
 0xa70   : > { %14947 = vst [vmem:[#allocation12_spill] sm:$0xff] %v10639_v50 }
 0xa75   : > { %v10619_v1 = vpop.permute.xlu2 %2629 }
 0xa76   : > { %v10621_v54 = vpop.permute.xlu0 %2637 }
 0xa77   : > { %14939 = vst [vmem:[#allocation31_spill] sm:$0xff] %v10621_v54 }
 0xa7d   : > { %v10625_v3 = vpop.permute.xlu2 %2950 }
 0xa7e   : > { %14940 = vst [vmem:[#allocation20_spill] sm:$0xff] %v10625_v3  ;;  %v10627_v55 = vpop.permute.xlu0 %2952  ;;  %v10645_v3 = vpop.permute.xlu1 %2954 }
 0xa7f   : > { %14941 = vst [vmem:[#allocation10_spill] sm:$0xff] %v10627_v55  ;;  %v3119_v55 = vsel %vm3118_vm11, %v8178_v4, %v8179_v62 }
 0xa80   : > { %14950 = vst [vmem:[#allocation14_spill] sm:$0xff] %v10645_v3 }
 0xa85   : > { %v10629_v19 = vpop.permute.xlu2 %2749 }
 0xa86   : > { %14942 = vst [vmem:[#allocation22_spill] sm:$0xff] %v10629_v19  ;;  %v10633_v56 = vpop.permute.xlu0 %2757  ;;  %v3141_v20 = vpop.permute.xlu1 %3140 }
 0xa87   : > { %14944 = vst [vmem:[#allocation45_spill] sm:$0xff] %v10633_v56  ;;  %v3125_v56 = vmul.f32 0.0, %v8179_v62 }
 0xa89   : > { %v3156_v62 = vmul.f32 %v3141_v20, %v3125_v56 }
 0xa8d   : > { %v10635_v58 = vpop.permute.xlu2 %2865 }
 0xa8e   : > { %14945 = vst [vmem:[#allocation19_spill] sm:$0xff] %v10635_v58  ;;  %v10637_v0 = vpop.permute.xlu0 %2873  ;;  %v3124_v58 = vmul.f32 %v3119_v55, %v10292_v12 }
 0xa8f   : > { %14946 = vst [vmem:[#allocation18_spill] sm:$0xff] %v10637_v0 }
 0xa95   : > { %v10641_v32 = vpop.permute.xlu2 %3069 }
 0xa96   : > { %14948 = vst [vmem:[#allocation16_spill] sm:$0xff] %v10641_v32  ;;  %v10643_v10 = vpop.permute.xlu0 %3077  ;;  %v3126_v32 = vmul.f32 %v8178_v4, %v10462_v13 }
 0xa97   : > { %14949 = vst [vmem:[#allocation23_spill] sm:$0xff] %v10643_v10  ;;  %v3127_v10 = vmul.f32 %v3119_v55, %v10382_v7 }
 0xa99   : > { %v3155_v59 = vmul.f32 %v3141_v20, %v3127_v10  ;;  %v3132_v10 = vmul.f32 %v8178_v4, %v10506_v18 }
 0xa9d   : > { %v10647_v19 = vpop.permute.xlu2 %2635 }
 0xa9e   : > { %14951 = vst [vmem:[#allocation6_spill] sm:$0xff] %v10647_v19  ;;  %v3137_v0 = vpop.permute.xlu0 %3136  ;;  %v3154_v19 = vmul.f32 %v3141_v20, %v3126_v32 }
 0xa9f   : > { %v3151_v36 = vmul.f32 %v3137_v0, %v3123_v60  ;;  %v3152_v50 = vmul.f32 %v3137_v0, %v3124_v58  ;;  %v3153_v54 = vmul.f32 %v3137_v0, %v3125_v56  ;;  %v3129_v60 = vmul.f32 %v8178_v4, %v10476_v2 }
 0xaa0   : > { %v3130_v0 = vmul.f32 %v3119_v55, %v10440_v6 }
 0xaa1   : > { %3175 = vrot.lane.b32.xlu2 %v3151_v36, %s8506_s27  ;;  %3177 = vrot.lane.b32.xlu0 %v3152_v50, %s8506_s27 }
 0xaa2   : > { %3179 = vrot.lane.b32.xlu1 %v3153_v54, %s8506_s27 }
 0xaa5   : > { %v10656_v3 = vpop.permute.xlu2 %2755 }
 0xaa6   : > { %14952 = vst [vmem:[#allocation29_spill] sm:$0xff] %v10656_v3 }
 0xaa9   : > { %3181 = vrot.lane.b32.xlu2 %v3154_v19, %s8506_s27  ;;  %3183 = vrot.lane.b32.xlu0 %v3155_v59, %s8506_s27  ;;  %v3149_v19 = vpop.permute.xlu1 %3148  ;;  %v3133_v59 = vmul.f32 %v3119_v55, %v10491_v31 }
 0xaaa   : > { %3185 = vrot.lane.b32.xlu1 %v3156_v62, %s8506_s27  ;;  %v3160_v20 = vmul.f32 %v3149_v19, %v3132_v10  ;;  %v3162_v62 = vmul.f32 %v3149_v19, %v3125_v56 }
 0xaad   : > { %v10661_v36 = vpop.permute.xlu2 %2871 }
 0xaae   : > { %14953 = vst [vmem:[#allocation30_spill] sm:$0xff] %v10661_v36 }
 0xab5   : > { %v10663_v58 = vpop.permute.xlu2 %3075 }
 0xab6   : > { %14954 = vst [vmem:[#allocation44_spill] sm:$0xff] %v10663_v58  ;;  %v3161_v58 = vmul.f32 %v3149_v19, %v3133_v59 }
 0xabd   : > { %v3145_v50 = vpop.permute.xlu2 %3144 }
 0xabe   : > { %v3157_v54 = vmul.f32 %v3145_v50, %v3129_v60  ;;  %v3158_v3 = vmul.f32 %v3145_v50, %v3130_v0  ;;  %v3159_v32 = vmul.f32 %v3145_v50, %v3125_v56 }
 0xac0   : > { %3191 = vrot.lane.b32.xlu1 %v3159_v32, %s8506_s27  ;;  %3187 = vrot.lane.b32.xlu2 %v3157_v54, %s8506_s27 }
 0xac1   : > { %3189 = vrot.lane.b32.xlu0 %v3158_v3, %s8506_s27  ;;  %v14955_v3 = vmov 8  }
 0xac8   : > { %3197 = vrot.lane.b32.xlu1 %v3162_v62, %s8506_s27  ;;  %3193 = vrot.lane.b32.xlu2 %v3160_v20, %s8506_s27 }
 0xac9   : > { %3195 = vrot.lane.b32.xlu0 %v3161_v58, %s8506_s27  ;;  %s8516_s27 = smov 34  }
 0xad0   : > { %3240 = vperm.xlu1 %8185, %v10205_v34   ;;  %3232 = vperm.xlu2 %8183, %v10182_v61  }
 0xad1   : > { %3236 = vperm.xlu0 %8184, %v10187_v48  }
 0xad8   : > { %3244 = vperm.xlu2 %8183, %v10195_v23   ;;  %8194 = vset.pattern.permute.xlu1 %v14955_v3 }
 0xad9   : > { %8192 = vset.pattern.permute.xlu0 %v14955_v3 }
 0xae0   : > { %8191 = vset.pattern.permute.xlu2 %v14955_v3 }
 0xafb   : > { %v10682_v55 = vpop.permute.xlu2 %3175 }
 0xafc   : > { %14956 = vst [vmem:[#allocation24_spill] sm:$0xff] %v10682_v55 }
 0xb03   : > { %v10684_v56 = vpop.permute.xlu2 %3181 }
 0xb13   : > { %v10688_v58 = vpop.permute.xlu0 %3177 }
 0xb14   : > { %14958 = vst [vmem:[#allocation28_spill] sm:$0xff] %v10688_v58  ;;  %v10692_v0 = vpop.permute.xlu1 %3179 }
 0xb15   : > { %14960 = vst [vmem:[#allocation8_spill] sm:$0xff] %v10692_v0 }
 0xb1a   : > { %v10686_v4 = vpop.permute.xlu2 %3187 }
 0xb1b   : > { %14957 = vst [vmem:[#allocation25_spill] sm:$0xff] %v10686_v4  ;;  %v10694_v54 = vpop.permute.xlu0 %3183 }
 0xb1c   : > { %v10698_v59 = vpop.permute.xlu1 %3185 }
 0xb22   : > { %v10690_v60 = vpop.permute.xlu2 %3193 }
 0xb23   : > { %14959 = vst [vmem:[#allocation27_spill] sm:$0xff] %v10690_v60 }
 0xb2a   : > { %v3233_v50 = vpop.permute.xlu2 %3232 }
 0xb2b   : > { %v3247_v32 = vmul.f32 %v3233_v50, %v10295_v14  ;;  %v3248_v19 = vmul.f32 %v3233_v50, %v10292_v12  ;;  %v3249_v10 = vmul.f32 0.0, %v3233_v50 }
 0xb2d   : > { %3273 = vrot.lane.b32.xlu2 %v3248_v19, %s8515_s22  ;;  %3271 = vrot.lane.b32.xlu1 %v3247_v32, %s8515_s22 }
 0xb2e   : > { %3275 = vrot.lane.b32.xlu0 %v3249_v10, %s8515_s22 }
 0xb32   : > { %v10702_v62 = vpop.permute.xlu1 %3191 }
 0xb33   : > { %v10700_v20 = vpop.permute.xlu0 %3189  ;;  %14962 = vst [vmem:[#allocation42_spill] sm:$0xff] %v10702_v62  ;;  %v3245_v62 = vpop.permute.xlu2 %3244 }
 0xb34   : > { %14961 = vst [vmem:[#allocation36_spill] sm:$0xff] %v10700_v20  ;;  %v3258_v58 = vmul.f32 0.0, %v3245_v62 }
 0xb3a   : > { %v10706_v4 = vpop.permute.xlu1 %3197 }
 0xb3b   : > { %v10704_v3 = vpop.permute.xlu0 %3195  ;;  %14964 = vst [vmem:[#allocation33_spill] sm:$0xff] %v10706_v4  ;;  %v3256_v4 = vmul.f32 %v3245_v62, %v10506_v18 }
 0xb3c   : > { %14963 = vst [vmem:[#allocation34_spill] sm:$0xff] %v10704_v3  ;;  %v3257_v3 = vmul.f32 %v3245_v62, %v10491_v31 }
 0xb42   : > { %v3241_v19 = vpop.permute.xlu1 %3240 }
 0xb43   : > { %v3237_v60 = vpop.permute.xlu0 %3236  ;;  %v3255_v32 = vmul.f32 0.0, %v3241_v19  ;;  %v3253_v10 = vmul.f32 %v3241_v19, %v10476_v2  ;;  %v3254_v20 = vmul.f32 %v3241_v19, %v10440_v6 }
 0xb44   : > { %v3250_v0 = vmul.f32 %v3237_v60, %v10462_v13  ;;  %v3251_v55 = vmul.f32 %v3237_v60, %v10382_v7  ;;  %v3252_v50 = vmul.f32 0.0, %v3237_v60 }
 0xb46   : > { %3279 = vrot.lane.b32.xlu2 %v3251_v55, %s8515_s22  ;;  %3277 = vrot.lane.b32.xlu1 %v3250_v0, %s8515_s22  ;;  %v14965_v55 = vmov 0  }
 0xb47   : > { %3281 = vrot.lane.b32.xlu0 %v3252_v50, %s8515_s22 }
 0xb4e   : > { %3285 = vrot.lane.b32.xlu2 %v3254_v20, %s8515_s22  ;;  %3283 = vrot.lane.b32.xlu1 %v3253_v10, %s8515_s22 }
 0xb4f   : > { %3287 = vrot.lane.b32.xlu0 %v3255_v32, %s8515_s22 }
 0xb56   : > { %3291 = vrot.lane.b32.xlu2 %v3257_v3, %s8515_s22  ;;  %3289 = vrot.lane.b32.xlu1 %v3256_v4, %s8515_s22 }
 0xb57   : > { %3293 = vrot.lane.b32.xlu0 %v3258_v58, %s8515_s22  ;;  %s8517_s22 = smov 111  }
 0xb5e   : > { %8187 = vrot.lane.b32.xlu1 %v10250_v30, %s8516_s27  ;;  %3350 = vperm.xlu2 %8191, %v10182_v61  }
 0xb5f   : > { %3354 = vperm.xlu0 %8192, %v10187_v48  }
 0xb66   : > { %3358 = vperm.xlu1 %8194, %v10205_v34   ;;  %3362 = vperm.xlu2 %8191, %v10195_v23  }
 0xb67   : > { %8193 = vset.pattern.permute.xlu0 %v14965_v55 }
 0xb68   : > { %2543 = vperm.xlu0 %8193, %v10205_v34  }
 0xb6e   : > { %8195 = vset.pattern.permute.xlu1 %v14965_v55  ;;  %8196 = vset.pattern.permute.xlu2 %v14965_v55 }
 0xb87   : > { %v10726_v4 = vpop.permute.xlu2 %3273 }
 0xb88   : > { %14967 = vst [vmem:[#allocation37_spill] sm:$0xff] %v10726_v4 }
 0xb9f   : > { %v10724_v3 = vpop.permute.xlu1 %3271 }
 0xba0   : > { %14966 = vst [vmem:[#allocation40_spill] sm:$0xff] %v10724_v3  ;;  %v10728_v30 = vpop.permute.xlu0 %3275  ;;  %v10732_v48 = vpop.permute.xlu2 %3279 }
 0xba1   : > { %14968 = vst [vmem:[#allocation38_spill] sm:$0xff] %v10728_v30 }
 0xba8   : > { %v10738_v60 = vpop.permute.xlu2 %3285 }
 0xba9   : > { %14970 = vst [vmem:[#allocation35_spill] sm:$0xff] %v10738_v60 }
 0xbb0   : > { %v10744_v20 = vpop.permute.xlu2 %3291 }
 0xbb1   : > { %14973 = vst [vmem:[#allocation47_spill] sm:$0xff] %v10744_v20 }
 0xbb8   : > { %v10730_v61 = vpop.permute.xlu1 %3277 }
 0xbb9   : > { %v10734_v58 = vpop.permute.xlu0 %3281 }
 0xbc0   : > { %v10736_v23 = vpop.permute.xlu1 %3283 }
 0xbc1   : > { %14969 = vst [vmem:[#allocation41_spill] sm:$0xff] %v10736_v23  ;;  %v10742_v0 = vpop.permute.xlu0 %3287  ;;  %v3351_v23 = vpop.permute.xlu2 %3350 }
 0xbc2   : > { %14972 = vst [vmem:[#allocation46_spill] sm:$0xff] %v10742_v0 }
 0xbc8   : > { %v10740_v34 = vpop.permute.xlu1 %3289 }
 0xbc9   : > { %14971 = vst [vmem:[#allocation43_spill] sm:$0xff] %v10740_v34  ;;  %v10746_v32 = vpop.permute.xlu0 %3293 }
 0xbca   : > { %14974 = vst [vmem:[#allocation48_spill] sm:$0xff] %v10746_v32 }
 0xbd0   : > { %v8188_v62 = vpop.permute.xlu1 %8187 }
 0xbd1   : > { %v8190_v50 = vunpack.i.h.bf16 %v8188_v62  ;;  %v8189_v19 = vunpack.i.l.bf16 %v8188_v62  ;;  %v3355_v32 = vpop.permute.xlu0 %3354 }
 0xbd3   : > { %v3339_v10 = vmul.f32 0.0, %v8190_v50  ;;  %v3333_v55 = vsel %vm3332_vm12, %v8189_v19, %v8190_v50  ;;  %v3337_v30 = vmul.f32 %v8189_v19, %v10295_v14  ;;  %v3340_v20 = vmul.f32 %v8189_v19, %v10462_v13 }
 0xbd4   : > { %v3338_v34 = vmul.f32 %v3333_v55, %v10292_v12  ;;  %v3341_v62 = vmul.f32 %v3333_v55, %v10382_v7 }
 0xbd5   : > { %v3365_v3 = vmul.f32 %v3351_v23, %v3337_v30  ;;  %v3367_v60 = vmul.f32 %v3351_v23, %v3339_v10  ;;  %v3368_v50 = vmul.f32 %v3355_v32, %v3340_v20  ;;  %v3370_v4 = vmul.f32 %v3355_v32, %v3339_v10 }
 0xbd6   : > { %v3366_v0 = vmul.f32 %v3351_v23, %v3338_v34  ;;  %v3369_v30 = vmul.f32 %v3355_v32, %v3341_v62  ;;  %v3344_v34 = vmul.f32 %v3333_v55, %v10440_v6  ;;  %v3346_v20 = vmul.f32 %v8189_v19, %v10506_v18 }
 0xbd7   : > { %3389 = vrot.lane.b32.xlu1 %v3365_v3, %s8502_s9  ;;  %3393 = vrot.lane.b32.xlu0 %v3367_v60, %s8502_s9  ;;  %v3343_v3 = vmul.f32 %v8189_v19, %v10476_v2  ;;  %v3347_v32 = vmul.f32 %v3333_v55, %v10491_v31  ;;  %v7835_v19 = vld [vmem:[%s14505_s3 + $0x40] sm:$0xff]  ;;  %v7836_v55 = vld [vmem:[%s14505_s3 + $0x48] sm:$0xff] }
 0xbd8   : > { %3391 = vrot.lane.b32.xlu2 %v3366_v0, %s8502_s9  ;;  %v3359_v36 = vpop.permute.xlu1 %3358 }
 0xbd9   : > { %v3371_v23 = vmul.f32 %v3359_v36, %v3343_v3  ;;  %v3373_v60 = vmul.f32 %v3359_v36, %v3339_v10  ;;  %v3372_v0 = vmul.f32 %v3359_v36, %v3344_v34  ;;  %v7837_v36 = vld [vmem:[%s14505_s3 + $0x50] sm:$0xff]  ;;  %v7845_v3 = vld [vmem:[%s14507_s5 + $0x20] sm:$0xff]  ;;  %v8144_v34 = vunpack.i.h.bf16 %v10253_v40 }
 0xbdf   : > { %3399 = vrot.lane.b32.xlu0 %v3370_v4, %s8502_s9  ;;  %3395 = vrot.lane.b32.xlu1 %v3368_v50, %s8502_s9  ;;  %v3363_v4 = vpop.permute.xlu2 %3362 }
 0xbe0   : > { %3397 = vrot.lane.b32.xlu2 %v3369_v30, %s8502_s9  ;;  %v3374_v62 = vmul.f32 %v3363_v4, %v3346_v20  ;;  %v3376_v50 = vmul.f32 %v3363_v4, %v3339_v10  ;;  %v3375_v30 = vmul.f32 %v3363_v4, %v3347_v32  ;;  %v7838_v10 = vld [vmem:[%s14505_s3 + $0x58] sm:$0xff]  ;;  %v2524_v32 = vmul.f32 %v8144_v34, %v10382_v7 }
 0xbe7   : > { %3405 = vrot.lane.b32.xlu0 %v3373_v60, %s8502_s9  ;;  %3401 = vrot.lane.b32.xlu1 %v3371_v23, %s8502_s9  ;;  %v7846_v23 = vld [vmem:[%s14507_s5 + $0x28] sm:$0xff] }
 0xbe8   : > { %3403 = vrot.lane.b32.xlu2 %v3372_v0, %s8502_s9  ;;  %v8143_v0 = vunpack.i.l.bf16 %v10253_v40 }
 0xbea   : > { %v2515_v20 = vsel %vm2514_vm14, %v8143_v0, %v8144_v34  ;;  %v10793_v4 = vmul.f32 0.0, %v8143_v0  ;;  %v2762_v0 = vsel %vm1517_vm13, %v10599_v57, %v10568_v11 }
 0xbec   : > { %v2554_v40 = vmul.f32 %v10233_v5, %v10793_v4  ;;  %v2551_v7 = vmul.f32 %v10266_v51, %v10793_v4 }
 0xbef   : > { %3411 = vrot.lane.b32.xlu0 %v3376_v50, %s8502_s9  ;;  %3407 = vrot.lane.b32.xlu1 %v3374_v62, %s8502_s9  ;;  %v2523_v50 = vmul.f32 %v2515_v20, %v10462_v13  ;;  %v2544_v13 = vpop.permute.xlu0 %2543 }
 0xbf0   : > { %3409 = vrot.lane.b32.xlu2 %v3375_v30, %s8502_s9  ;;  %v2521_v30 = vmul.f32 %v8144_v34, %v10292_v12  ;;  %v2640_v12 = vsel %vm2639_vm8, %v10289_v25, %v10535_v37  ;;  %v2530_v25 = vmul.f32 %v8144_v34, %v10491_v31  ;;  %s8519_s9 = smov 127  }
 0xbf7   : > { %3457 = vperm.xlu0 %8193, %v7837_v36   ;;  %3447 = vperm.xlu1 %8195, %v7835_v19   ;;  %v2520_v36 = vmul.f32 %v2515_v20, %v10295_v14  ;;  %v2556_v19 = vmul.f32 %v10233_v5, %v2524_v32  ;;  %v2555_v14 = vmul.f32 %v10233_v5, %v2523_v50 }
 0xbf8   : > { %3452 = vperm.xlu2 %8196, %v7836_v55   ;;  %v2643_v55 = vsel %vm2639_vm8, %v10583_v26, %v10550_v63  ;;  %v2660_v5 = vadd.f32 %v2640_v12, %v2551_v7  ;;  %v2641_v50 = vsel %vm2639_vm8, %v10535_v37, %v10500_v15  ;;  %v2760_v37 = vsel %vm1517_vm13, %v10564_v28, %v10512_v21 }
 0xbf9   : > { %v2552_v32 = vmul.f32 %v10266_v51, %v2520_v36  ;;  %v2529_v36 = vmul.f32 %v2515_v20, %v10506_v18  ;;  %v2527_v7 = vmul.f32 %v8144_v34, %v10440_v6  ;;  %v2642_v6 = vsel %vm2639_vm8, %v10303_v45, %v10583_v26 }
 0xbfa   : > { %v3084_v45 = vsel %vm3081_vm2, %v10613_v16, %v10587_v41 }
 0xbfb   : > { %v2661_v12 = vadd.f32 %v2641_v50, %v2552_v32 }
 0xbff   : > { %3462 = vperm.xlu1 %8195, %v7838_v10   ;;  %8234 = vset.pattern.permute.xlu0 %v14923_v47  ;;  %v10811_v10 = vmul.f32 %v10275_v9, %v10793_v4  ;;  %v2759_v47 = vsel %vm1517_vm13, %v10338_v39, %v10564_v28  ;;  %v2876_v39 = vsel %vm2875_vm1, %v10412_v27, %v10570_v22 }
 0xc00   : > { %3497 = vperm.xlu2 %8196, %v7845_v3   ;;  %v2553_v3 = vmul.f32 %v10266_v51, %v2521_v30  ;;  %v2879_v30 = vsel %vm2875_vm1, %v10606_v53, %v10579_v24  ;;  %v2877_v27 = vsel %vm2875_vm1, %v10570_v22, %v10523_v46  ;;  %v3085_v22 = vsel %vm3081_vm2, %v10587_v41, %v10610_v42 }
 0xc01   : > { %v3202_v41 = vsel %vm1753_vm0, %v10694_v54, %v10698_v59 }
 0xc02   : > { %v2662_v51 = vadd.f32 %v10500_v15, %v2553_v3  ;;  %v2526_v3 = vmul.f32 %v2515_v20, %v10476_v2  ;;  %v2761_v20 = vsel %vm1517_vm13, %v10342_v52, %v10599_v57 }
 0xc07   : > { %3502 = vperm.xlu1 %8195, %v7846_v23   ;;  %v2665_v23 = vadd.f32 %v10550_v63, %v2556_v19 }
 0xc09   : > { %v2784_v63 = vadd.f32 %v10568_v11, %v2665_v23  ;;  %v2779_v11 = vadd.f32 %v2759_v47, %v2660_v5  ;;  %v2780_v47 = vadd.f32 %v2760_v37, %v2661_v12  ;;  %v3299_v5 = vsel %vm3295_vm3, %v10732_v48, %v10734_v58  ;;  %v14977_v58 = vld [vmem:[#allocation31_spill] sm:$0xff] }
 0xc0b   : > { %v2896_v18 = vadd.f32 %v2876_v39, %v2779_v11  ;;  %v2897_v26 = vadd.f32 %v2877_v27, %v2780_v47  ;;  %v2644_v39 = vsel %vm2639_vm8, %v10305_v29, %v10619_v1 }
 0xc0d   : > { %v2972_v42 = vadd.f32 %v10546_v44, %v2896_v18  ;;  %v14980_v18 = vld [vmem:[#allocation22_spill] sm:$0xff] }
 0xc32   : > { %v10788_v60 = vpop.permute.xlu2 %3391 }
 0xc33   : > { %14975 = vst [vmem:[#allocation49_spill] sm:$0xff] %v10788_v60  ;;  %v2664_v60 = vadd.f32 %v2643_v55, %v2555_v14  ;;  %v2901_v55 = vadd.f32 %v10579_v24, %v2784_v63  ;;  %v2781_v14 = vadd.f32 %v10512_v21, %v2662_v51  ;;  %v2562_v24 = vmul.f32 %v10275_v9, %v2530_v25 }
 0xc34   : > { %v2561_v21 = vmul.f32 %v10275_v9, %v2529_v36  ;;  %v10876_v9 = vsel %vm3081_vm2, %v10537_v43, %v10603_v35  ;;  %v10893_v35 = vsel %vm3081_vm2, %v10575_v49, %v10537_v43  ;;  %v2558_v63 = vmul.f32 %v2544_v13, %v2526_v3  ;;  %v14978_v36 = vld [vmem:[#allocation6_spill] sm:$0xff] }
 0xc35   : > { %v2783_v31 = vadd.f32 %v2762_v0, %v2664_v60  ;;  %v10853_v60 = vadd.f32 %v10523_v46, %v2781_v14  ;;  %v2977_v34 = vadd.f32 %v10558_v8, %v2901_v55  ;;  %v2957_v46 = vsel %vm2514_vm14, %v10591_v33, %v10558_v8 }
 0xc36   : > { %v2663_v0 = vadd.f32 %v2642_v6, %v2554_v40  ;;  %v3201_v8 = vsel %vm1753_vm0, %v10684_v56, %v10694_v54  ;;  %v3298_v40 = vsel %vm3295_vm3, %v10730_v61, %v10732_v48  ;;  %v2557_v54 = vmul.f32 %v2544_v13, %v10793_v4  ;;  %v14982_v6 = vld [vmem:[#allocation39_spill] sm:$0xff] }
 0xc37   : > { %v2900_v15 = vadd.f32 %v2879_v30, %v2783_v31  ;;  %v3107_v52 = vadd.f32 %v3085_v22, %v2977_v34  ;;  %v2559_v30 = vmul.f32 %v2544_v13, %v2527_v7  ;;  %v2956_v43 = vsel %vm2514_vm14, %v10546_v44, %v10623_v38  ;;  %v14976_v31 = vld [vmem:[#allocation7_spill] sm:$0xff]  ;;  %v14983_v22 = vld [vmem:[#allocation45_spill] sm:$0xff] }
 0xc38   : > { %v2782_v25 = vadd.f32 %v2761_v20, %v2663_v0  ;;  %v2878_v51 = vsel %vm2875_vm1, %v10414_v17, %v10606_v53  ;;  %v2645_v48 = vsel %vm2639_vm8, %v10619_v1, %v14976_v31  ;;  %v2671_v4 = vadd.f32 %v14977_v58, %v2562_v24  ;;  %v14979_v13 = vld [vmem:[#allocation11_spill] sm:$0xff]  ;;  %v14984_v20 = vld [vmem:[#allocation29_spill] sm:$0xff] }
 0xc39   : > { %v2976_v23 = vadd.f32 %v2957_v46, %v2900_v15  ;;  %v3224_v50 = vadd.f32 %v3202_v41, %v3107_v52  ;;  %v2646_v55 = vsel %vm2639_vm8, %v14979_v13, %v14978_v36  ;;  %v2647_v17 = vsel %vm2639_vm8, %v14978_v36, %v14977_v58  ;;  %v14981_v24 = vld [vmem:[#allocation15_spill] sm:$0xff] }
 0xc3a   : > { %v10796_v62 = vpop.permute.xlu2 %3397  ;;  %v2666_v29 = vadd.f32 %v2644_v39, %v2557_v54  ;;  %v2667_v12 = vadd.f32 %v2645_v48, %v2558_v63  ;;  %v2668_v14 = vadd.f32 %v14976_v31, %v2559_v30  ;;  %v2899_v27 = vadd.f32 %v2878_v51, %v2782_v25  ;;  %v14986_v25 = vld [vmem:[#allocation30_spill] sm:$0xff] }
 0xc3b   : > { %v3106_v57 = vadd.f32 %v3084_v45, %v2976_v23  ;;  %v3321_v44 = vadd.f32 %v3299_v5, %v3224_v50  ;;  %v2763_v47 = vsel %vm1517_vm13, %v14981_v24, %v14980_v18  ;;  %v2764_v34 = vsel %vm1517_vm13, %v14980_v18, %v14982_v6  ;;  %v14985_v23 = vld [vmem:[#allocation5_spill] sm:$0xff]  ;;  %v14996_v24 = vld [vmem:[#allocation14_spill] sm:$0xff] }
 0xc3c   : > { %v2790_v46 = vadd.f32 %v14983_v22, %v2671_v4  ;;  %v2765_v0 = vsel %vm1517_vm13, %v14985_v23, %v14984_v20  ;;  %v2670_v52 = vadd.f32 %v2647_v17, %v2561_v21  ;;  %v2785_v54 = vadd.f32 %v2763_v47, %v2666_v29  ;;  %v14988_v21 = vld [vmem:[#allocation18_spill] sm:$0xff]  ;;  %v15002_v23 = vld [vmem:[#allocation24_spill] sm:$0xff] }
 0xc3d   : > { %v3223_v59 = vadd.f32 %v3201_v8, %v3106_v57  ;;  %v2766_v57 = vsel %vm1517_vm13, %v14984_v20, %v14983_v22  ;;  %v2973_v30 = vadd.f32 %v2956_v43, %v2897_v26  ;;  %v2974_v51 = vadd.f32 %v10623_v38, %v10853_v60  ;;  %v14989_v43 = vld [vmem:[#allocation19_spill] sm:$0xff]  ;;  %v14991_v60 = vld [vmem:[#allocation9_spill] sm:$0xff]  ;;  %v14997_v47 = vld [vmem:[#allocation10_spill] sm:$0xff] }
 0xc3e   : > { %v2883_v31 = vsel %vm2875_vm1, %v14986_v25, %v14988_v21  ;;  %v3102_v48 = vadd.f32 %v10575_v49, %v2972_v42  ;;  %v2907_v58 = vadd.f32 %v14988_v21, %v2790_v46  ;;  %v2789_v4 = vadd.f32 %v2766_v57, %v2670_v52  ;;  %v14998_v22 = vld [vmem:[#allocation32_spill] sm:$0xff] }
 0xc3f   : > { %v3320_v37 = vadd.f32 %v3298_v40, %v3223_v59  ;;  %v14987_v40 = vld [vmem:[#allocation26_spill] sm:$0xff]  ;;  %v2786_v59 = vadd.f32 %v2764_v34, %v2667_v12  ;;  %v2975_v26 = vadd.f32 %v10591_v33, %v2899_v27  ;;  %v14993_v12 = vld [vmem:[#allocation21_spill] sm:$0xff]  ;;  %v14995_v27 = vld [vmem:[#allocation12_spill] sm:$0xff] }
 0xc40   : > { %v2882_v5 = vsel %vm2875_vm1, %v14987_v40, %v14986_v25  ;;  %v2906_v49 = vadd.f32 %v2883_v31, %v2789_v4  ;;  %v2983_v34 = vadd.f32 %v14996_v24, %v2907_v58  ;;  %v15001_v20 = vld [vmem:[#allocation28_spill] sm:$0xff]  ;;  %v15005_v31 = vld [vmem:[#allocation34_spill] sm:$0xff]  ;;  %v15006_v58 = vld [vmem:[#allocation27_spill] sm:$0xff] }
 0xc41   : > { %v3105_v33 = vadd.f32 %v10613_v16, %v2975_v26  ;;  %v3205_v4 = vsel %vm1753_vm0, %v15006_v58, %v15005_v31 }
 0xc42   : > { %v10834_v19 = vpop.permute.xlu2 %3403 }
 0xc49   : > { %v10859_v28 = vpop.permute.xlu1 %3389  ;;  %v10861_v2 = vpop.permute.xlu0 %3393 }
 0xc4a   : > { %v10888_v32 = vpop.permute.xlu2 %3409 }
 0xc51   : > { %v10918_v11 = vpop.permute.xlu1 %3395  ;;  %v3400_v7 = vpop.permute.xlu0 %3399 }
 0xc52   : > { %v3415_v53 = vsel %vm1392_vm15, %v10918_v11, %v10796_v62  ;;  %v3416_v1 = vsel %vm1392_vm15, %v10796_v62, %v3400_v7  ;;  %v10936_v45 = vpop.permute.xlu2 %3452  ;;  %v2669_v62 = vadd.f32 %v2646_v55, %v10811_v10  ;;  %v2787_v10 = vadd.f32 %v14982_v6, %v2668_v14 }
 0xc53   : > { %v3437_v15 = vadd.f32 %v3415_v53, %v3320_v37  ;;  %v3438_v3 = vadd.f32 %v3416_v1, %v3321_v44  ;;  %v14990_v37 = vld [vmem:[#allocation13_spill] sm:$0xff]  ;;  %v2881_v44 = vsel %vm2875_vm1, %v14989_v43, %v14991_v60  ;;  %v3104_v53 = vadd.f32 %v10876_v9, %v2974_v51  ;;  %v14999_v9 = vld [vmem:[#allocation23_spill] sm:$0xff] }
 0xc54   : > { %v2788_v39 = vadd.f32 %v2765_v0, %v2669_v62  ;;  %v2880_v38 = vsel %vm2875_vm1, %v14990_v37, %v14989_v43  ;;  %v2903_v17 = vadd.f32 %v2881_v44, %v2786_v59  ;;  %v2904_v29 = vadd.f32 %v14991_v60, %v2787_v10  ;;  %v14992_v1 = vld [vmem:[#allocation17_spill] sm:$0xff]  ;;  %v15000_v62 = vld [vmem:[#allocation44_spill] sm:$0xff]  ;;  %v15010_v44 = vld [vmem:[#allocation38_spill] sm:$0xff] }
 0xc55   : > { %v3469_v8 = vadd.f32 %v10936_v45, %v3437_v15  ;;  %v3470_v41 = vadd.f32 %v10936_v45, %v3438_v3  ;;  %v2902_v42 = vadd.f32 %v2880_v38, %v2785_v54  ;;  %v3087_v14 = vsel %vm3081_vm2, %v14993_v12, %v14992_v1  ;;  %v14994_v3 = vld [vmem:[#allocation20_spill] sm:$0xff]  ;;  %v15008_v43 = vld [vmem:[#allocation37_spill] sm:$0xff]  ;;  %v15013_v1 = vld [vmem:[#allocation42_spill] sm:$0xff] }
 0xc56   : > { %v2905_v7 = vadd.f32 %v2882_v5, %v2788_v39  ;;  %v3103_v15 = vadd.f32 %v10893_v35, %v2973_v30  ;;  %v2958_v18 = vsel %vm2514_vm14, %v14995_v27, %v14994_v3  ;;  %v2959_v6 = vsel %vm2514_vm14, %v14997_v47, %v14996_v24  ;;  %v15004_v5 = vld [vmem:[#allocation16_spill] sm:$0xff] }
 0xc57   : > { %v3481_v50 = vmax.f32 %v3469_v8, 0.0  ;;  %v3482_v63 = vmax.f32 %v3470_v41, 0.0  ;;  %v3089_v16 = vsel %vm3081_vm2, %v14999_v9, %v14998_v22  ;;  %v3088_v35 = vsel %vm3081_vm2, %v15000_v62, %v14999_v9  ;;  %v15003_v8 = vld [vmem:[#allocation8_spill] sm:$0xff]  ;;  %v15016_v22 = vld [vmem:[#allocation43_spill] sm:$0xff] }
 0xc58   : > { %v2981_v46 = vadd.f32 %v14997_v47, %v2905_v7  ;;  %v3199_v0 = vsel %vm1753_vm0, %v15002_v23, %v15001_v20  ;;  %v3200_v41 = vsel %vm1753_vm0, %v15001_v20, %v15003_v8  ;;  %v2982_v52 = vadd.f32 %v2959_v6, %v2906_v49  ;;  %v15009_v37 = vld [vmem:[#allocation40_spill] sm:$0xff] }
 0xc59   : > { %v10958_v36 = vpop.permute.xlu1 %3401  ;;  %v10960_v13 = vpop.permute.xlu0 %3405  ;;  %v8207_v55 = vpack.i.bf16 %v3482_v63, %v3481_v50  ;;  %v2978_v57 = vadd.f32 %v14995_v27, %v2902_v42  ;;  %v2979_v25 = vadd.f32 %v2958_v18, %v2903_v17  ;;  %v2980_v40 = vadd.f32 %v14994_v3, %v2904_v29  ;;  %v15011_v29 = vld [vmem:[#allocation36_spill] sm:$0xff]  ;;  %v15014_v27 = vld [vmem:[#allocation49_spill] sm:$0xff] }
 0xc5a   : > { %v3086_v54 = vsel %vm3081_vm2, %v15004_v5, %v14993_v12  ;;  %v3113_v59 = vadd.f32 %v3089_v16, %v2983_v34  ;;  %v3111_v10 = vadd.f32 %v15000_v62, %v2981_v46  ;;  %v3222_v50 = vadd.f32 %v10684_v56, %v3105_v33  ;;  %v15015_v34 = vld [vmem:[#allocation47_spill] sm:$0xff] }
 0xc5b   : > { %8208 = vrot.lane.b32.xlu1 %v8207_v55, %s8516_s27  ;;  %v3112_v63 = vadd.f32 %v3088_v35, %v2982_v52  ;;  %v3219_v30 = vadd.f32 %v15002_v23, %v3102_v48  ;;  %v3220_v51 = vadd.f32 %v3199_v0, %v3103_v15  ;;  %v3221_v39 = vadd.f32 %v3200_v41, %v3104_v53  ;;  %v15007_v55 = vld [vmem:[#allocation33_spill] sm:$0xff]  ;;  %v15017_v16 = vld [vmem:[#allocation35_spill] sm:$0xff]  ;;  %v15019_v41 = vld [vmem:[#allocation46_spill] sm:$0xff] }
 0xc5c   : > { %v3206_v26 = vsel %vm1753_vm0, %v15005_v31, %v15007_v55  ;;  %v3296_v38 = vsel %vm3295_vm3, %v15009_v37, %v15008_v43  ;;  %v3319_v56 = vadd.f32 %v10730_v61, %v3222_v50  ;;  %v3297_v48 = vsel %vm3295_vm3, %v15008_v43, %v15010_v44  ;;  %v15012_v53 = vld [vmem:[#allocation25_spill] sm:$0xff] }
 0xc5d   : > { %v3108_v7 = vadd.f32 %v15004_v5, %v2978_v57  ;;  %v3109_v49 = vadd.f32 %v3086_v54, %v2979_v25  ;;  %v3110_v42 = vadd.f32 %v3087_v14, %v2980_v40  ;;  %v3228_v17 = vadd.f32 %v15006_v58, %v3111_v10  ;;  %v15020_v40 = vld [vmem:[#allocation48_spill] sm:$0xff] }
 0xc5e   : > { %v3203_v33 = vsel %vm1753_vm0, %v15012_v53, %v15011_v29  ;;  %v3204_v12 = vsel %vm1753_vm0, %v15011_v29, %v15013_v1  ;;  %v3436_v61 = vadd.f32 %v10918_v11, %v3319_v56  ;;  %v3229_v15 = vadd.f32 %v3205_v4, %v3112_v63  ;;  %v15018_v11 = vld [vmem:[#allocation41_spill] sm:$0xff] }
 0xc5f   : > { %v3230_v3 = vadd.f32 %v3206_v26, %v3113_v59  ;;  %v3413_v18 = vsel %vm1392_vm15, %v10859_v28, %v15014_v27  ;;  %v3414_v14 = vsel %vm1392_vm15, %v15014_v27, %v10861_v2  ;;  %v3316_v24 = vadd.f32 %v15009_v37, %v3219_v30 }
 0xc60   : > { %v3317_v47 = vadd.f32 %v3296_v38, %v3220_v51  ;;  %v3318_v6 = vadd.f32 %v3297_v48, %v3221_v39  ;;  %v3302_v9 = vsel %vm3295_vm3, %v15016_v22, %v15015_v34  ;;  %v3300_v46 = vsel %vm3295_vm3, %v15018_v11, %v15017_v16 }
 0xc61   : > { %v3408_v21 = vpop.permute.xlu1 %3407  ;;  %v3412_v60 = vpop.permute.xlu0 %3411  ;;  %v3225_v62 = vadd.f32 %v15012_v53, %v3108_v7  ;;  %v3226_v35 = vadd.f32 %v3203_v33, %v3109_v49  ;;  %v3227_v20 = vadd.f32 %v3204_v12, %v3110_v42  ;;  %v3433_v23 = vadd.f32 %v10859_v28, %v3316_v24  ;;  %v15022_v24 = vld [vmem:[#allocation4_spill] sm:$0xff] }
 0xc62   : > { %v3434_v0 = vadd.f32 %v3413_v18, %v3317_v47  ;;  %v3435_v2 = vadd.f32 %v3414_v14, %v3318_v6  ;;  %v3468_v8 = vadd.f32 %v10936_v45, %v3436_v61  ;;  %v3301_v52 = vsel %vm3295_vm3, %v15017_v16, %v15019_v41  ;;  %v15021_v14 = vld [vmem:[#allocation3_spill] sm:$0xff]  ;;  %v11081_v16 = vld [vmem:[%s14504_s2 + $0x70] sm:$0xff] }
 0xc63   : > { %v3325_v57 = vadd.f32 %v15016_v22, %v3228_v17  ;;  %v3326_v25 = vadd.f32 %v3302_v9, %v3229_v15  ;;  %v3303_v5 = vsel %vm3295_vm3, %v15015_v34, %v15020_v40  ;;  %v3417_v28 = vsel %vm1392_vm15, %v10958_v36, %v10834_v19  ;;  %v11074_v22 = vld [vmem:[%s14504_s2 + $0x68] sm:$0xff] }
 0xc64   : > { %v3322_v45 = vadd.f32 %v15018_v11, %v3225_v62  ;;  %v3323_v63 = vadd.f32 %v3300_v46, %v3226_v35  ;;  %v3324_v30 = vadd.f32 %v3301_v52, %v3227_v20  ;;  %v3418_v51 = vsel %vm1392_vm15, %v10834_v19, %v10960_v13  ;;  %v11090_v11 = vld [vmem:[%s14504_s2 + $0x60] sm:$0xff]  ;;  %v11099_v35 = vld [vmem:[%s14504_s2 + $0x78] sm:$0xff] }
 0xc65   : > { %v3480_v39 = vmax.f32 %v3468_v8, 0.0  ;;  %v3419_v37 = vsel %vm1392_vm15, %v3408_v21, %v10888_v32  ;;  %v3420_v38 = vsel %vm1392_vm15, %v10888_v32, %v3412_v60  ;;  %v3327_v56 = vadd.f32 %v3303_v5, %v3230_v3 }
 0xc66   : > { %v3439_v26 = vadd.f32 %v10958_v36, %v3322_v45  ;;  %v3440_v43 = vadd.f32 %v3417_v28, %v3323_v63  ;;  %v3441_v44 = vadd.f32 %v3418_v51, %v3324_v30  ;;  %v3442_v49 = vadd.f32 %v3408_v21, %v3325_v57 }
 0xc67   : > { %v3443_v42 = vadd.f32 %v3419_v37, %v3326_v25  ;;  %v3444_v17 = vadd.f32 %v3420_v38, %v3327_v56  ;;  %vm3833_vm13 = vcmp.ge.s32.totalorder %v15021_v14, 1  ;;  %vm3834_vm15 = vcmp.ge.s32.totalorder %v15022_v24, 1 }
 0xc68   : > { %v15023_v47 = vmov 0.0   ;;  %v15024_v46 = vmov 1   ;;  %v15025_v62 = vmov 2   ;;  %v15026_v20 = vmov 3  }
 0xc69   : > { %v3448_v54 = vpop.permute.xlu1 %3447  ;;  %v3458_v55 = vpop.permute.xlu0 %3457  ;;  %v7871_v6 = vsel %vm3833_vm13, 1.0, %v15023_v47  ;;  %v7872_v34 = vsel %vm3834_vm15, 1.0, %v15023_v47  ;;  %v15028_v41 = vmov 5   ;;  %vm3839_vm0 = vcmp.lt.s32.totalorder %v15021_v14, 15 }
 0xc6a   : > { %v3465_v59 = vadd.f32 %v3448_v54, %v3433_v23  ;;  %v3466_v10 = vadd.f32 %v3448_v54, %v3434_v0  ;;  %v3467_v50 = vadd.f32 %v3448_v54, %v3435_v2  ;;  %v3471_v19 = vadd.f32 %v3458_v55, %v3439_v26  ;;  %v11113_v0 = vpop.permute.xlu2 %3497 }
 0xc6b   : > { %v3472_v13 = vadd.f32 %v3458_v55, %v3440_v43  ;;  %v3473_v29 = vadd.f32 %v3458_v55, %v3441_v44  ;;  %v11076_v9 = vpack.i.bf16 %v7872_v34, %v7871_v6  ;;  %v15027_v23 = vmov 4  }
 0xc6c   : > { %v3477_v31 = vmax.f32 %v3465_v59, 0.0  ;;  %v3478_v58 = vmax.f32 %v3466_v10, 0.0  ;;  %v3479_v4 = vmax.f32 %v3467_v50, 0.0  ;;  %v3483_v12 = vmax.f32 %v3471_v19, 0.0 }
 0xc6d   : > { %v3484_v32 = vmax.f32 %v3472_v13, 0.0  ;;  %v3485_v60 = vmax.f32 %v3473_v29, 0.0  ;;  %vm3840_vm4 = vcmp.lt.s32.totalorder %v15022_v24, 15  ;;  %v7873_v28 = vsel %vm3839_vm0, 1.0, %v15023_v47 }
 0xc6e   : > { %v8202_v48 = vpack.i.bf16 %v3480_v39, %v3479_v4  ;;  %v8197_v7 = vpack.i.bf16 %v3478_v58, %v3477_v31  ;;  %v7874_v59 = vsel %vm3840_vm4, 1.0, %v15023_v47  ;;  %v7843_v31 = vld [vmem:[%s14506_s4 + $0x20] sm:$0xff]  ;;  %vm3988_vm2 = vcmask 1039360  }
 0xc6f   : > { %v8212_v18 = vpack.i.bf16 %v3484_v32, %v3483_v12  ;;  %v11126_v10 = vpack.i.bf16 %v7874_v59, %v7873_v28  ;;  %v15030_v12 = vmov 6  }
 0xc70   : > { %8203 = vrot.lane.b32.xlu0 %v8202_v48, %s8516_s27  ;;  %8198 = vrot.lane.b32.xlu2 %v8197_v7, %s8516_s27 }
 0xc71   : > { %v3463_v36 = vpop.permute.xlu1 %3462 }
 0xc72   : > { %v3474_v53 = vadd.f32 %v3463_v36, %v3442_v49  ;;  %v3475_v33 = vadd.f32 %v3463_v36, %v3443_v42  ;;  %v3476_v1 = vadd.f32 %v3463_v36, %v3444_v17  ;;  %v7844_v49 = vld [vmem:[%s14506_s4 + $0x28] sm:$0xff] }
 0xc74   : > { %v3486_v61 = vmax.f32 %v3474_v53, 0.0  ;;  %v3487_v15 = vmax.f32 %v3475_v33, 0.0  ;;  %v3488_v3 = vmax.f32 %v3476_v1, 0.0 }
 0xc76   : > { %v8222_v21 = vpack.i.bf16 %v3488_v3, %v3487_v15  ;;  %v8217_v27 = vpack.i.bf16 %v3486_v61, %v3485_v60  ;;  %v15031_v61 = vmov 7  }
 0xc78   : > { %8223 = vrot.lane.b32.xlu1 %v8222_v21, %s8516_s27  ;;  %8218 = vrot.lane.b32.xlu0 %v8217_v27, %s8516_s27 }
 0xc79   : > { %8213 = vrot.lane.b32.xlu2 %v8212_v18, %s8516_s27  ;;  %v11116_v2 = vpop.permute.xlu1 %3502  ;;  %s283_s27 = scalar_lea.vmem %s14508_s6, %s8639_s10 }
 0xc80   : > { %3887 = vperm.xlu1 %8195, %v11074_v22   ;;  %3933 = vperm.xlu0 %8234, %v11081_v16  }
 0xc81   : > { %8228 = vrot.lane.b32.xlu2 %v11076_v9, %s8517_s22 }
 0xc88   : > { %8232 = vset.pattern.permute.xlu1 %v15024_v46  ;;  %8242 = vset.pattern.permute.xlu0 %v15025_v62 }
 0xc89   : > { %3892 = vperm.xlu2 %8196, %v11081_v16   ;;  %3925 = vperm.xlu1 %8232, %v11090_v11  }
 0xc91   : > { %3937 = vperm.xlu1 %8232, %v11099_v35   ;;  %8233 = vset.pattern.permute.xlu2 %v15024_v46 }
 0xc92   : > { %3929 = vperm.xlu2 %8233, %v11074_v22  }
 0xc99   : > { %8240 = vset.pattern.permute.xlu1 %v15025_v62 }
 0xc9a   : > { %4045 = vperm.xlu1 %8240, %v11090_v11   ;;  %8241 = vset.pattern.permute.xlu2 %v15025_v62 }
 0xca2   : > { %4057 = vperm.xlu1 %8240, %v11099_v35  }
 0xcaa   : > { %8248 = vset.pattern.permute.xlu1 %v15026_v20 }
 0xcab   : > { %4161 = vperm.xlu1 %8248, %v11090_v11  }
 0xcb3   : > { %4173 = vperm.xlu1 %8248, %v11099_v35  }
 0xcbb   : > { %8252 = vset.pattern.permute.xlu1 %v15027_v23 }
 0xcbc   : > { %4261 = vperm.xlu1 %8252, %v11074_v22  }
 0xcc4   : > { %4269 = vperm.xlu1 %8252, %v11099_v35  }
 0xcca   : > { %v8199_v8 = vpop.permute.xlu2 %8198 }
 0xccb   : > { %v8201_v45 = vunpack.i.h.bf16 %v8199_v8  ;;  %v8200_v63 = vunpack.i.l.bf16 %v8199_v8 }
 0xccc   : > { %8261 = vset.pattern.permute.xlu1 %v15028_v41 }
 0xccd   : > { %v8209_v52 = vpop.permute.xlu1 %8208  ;;  %8255 = vrot.lane.b32.xlu1 %v11126_v10, %s8518_s29  ;;  %v3523_v55 = vsel %vm3332_vm12, %v8200_v63, %v8201_v45  ;;  %s8523_s29 = smov 95  }
 0xcce   : > { %v8211_v57 = vunpack.i.h.bf16 %v8209_v52  ;;  %v8210_v25 = vunpack.i.l.bf16 %v8209_v52 }
 0xcd0   : > { %v3526_v40 = vsel %vm3332_vm12, %v8210_v25, %v8211_v57 }
 0xcd1   : > { %3574 = vmatpush.msra.mxu1 %v3526_v40 }
 0xcd3   : > { %v8214_v5 = vpop.permute.xlu2 %8213 }
 0xcd4   : > { %v8216_v26 = vunpack.i.h.bf16 %v8214_v5  ;;  %v8215_v43 = vunpack.i.l.bf16 %v8214_v5 }
 0xcd5   : > { %4374 = vperm.xlu1 %8261, %v11081_v16  }
 0xcd6   : > { %v3681_v29 = vsel %vm3332_vm12, %v8215_v43, %v8216_v26 }
 0xcdb   : > { %v11120_v54 = vpop.permute.xlu2 %8228 }
 0xcdd   : > { %8263 = vrot.lane.b32.xlu1 %v11076_v9, %s8520_s13 }
 0xcde   : > { %8269 = vset.pattern.permute.xlu1 %v15030_v12 }
 0xce2   : > { %v8204_v50 = vpop.permute.xlu0 %8203 }
 0xce3   : > { %v8206_v30 = vunpack.i.h.bf16 %v8204_v50  ;;  %v8205_v51 = vunpack.i.l.bf16 %v8204_v50  ;;  %v11129_v39 = vpop.permute.xlu2 %3892 }
 0xce5   : > { %v3525_v58 = vsel %vm3332_vm12, %v8206_v30, %v8210_v25  ;;  %v3524_v4 = vsel %vm3332_vm12, %v8201_v45, %v8205_v51  ;;  %4492 = vperm.xlu1 %8269, %v11081_v16  }
 0xce6   : > { %3551 = vmatpush.msra.mxu0 %v3525_v58  ;;  %3575 = vmatpush.msra.mxu1 %v3524_v4 }
 0xce7   : > { %7849 = vmatmul.msk.f32.vlgmr.msra.gmra.mxu1 %vm1211_vm9, %v7843_v31 }
 0xce8   : > { %3552 = vmatpush.msra.mxu0 %v3523_v55 }
 0xce9   : > { %7847 = vmatmul.msk.f32.vlgmr.msra.gmra.mxu0 %vm1211_vm9, %v7843_v31 }
 0xcea   : > { %v8224_v37 = vpop.permute.xlu1 %8223  ;;  %v8219_v38 = vpop.permute.xlu0 %8218 }
 0xceb   : > { %v8226_v56 = vunpack.i.h.bf16 %v8224_v37  ;;  %v8225_v44 = vunpack.i.l.bf16 %v8224_v37  ;;  %v8221_v48 = vunpack.i.h.bf16 %v8219_v38  ;;  %v8220_v7 = vunpack.i.l.bf16 %v8219_v38 }
 0xcec   : > { %v11143_v19 = vpop.permute.xlu2 %3929 }
 0xced   : > { %v3683_v13 = vsel %vm3332_vm12, %v8221_v48, %v8225_v44  ;;  %v3684_v42 = vsel %vm3332_vm12, %v8225_v44, %v8226_v56  ;;  %v3943_v17 = vmul.f32 0.0, %v11143_v19  ;;  %v3682_v36 = vsel %vm3332_vm12, %v8216_v26, %v8220_v7  ;;  %8270 = vset.pattern.permute.xlu1 %v15031_v61 }
 0xcee   : > { %3703 = vmatpush.msra.mxu2 %v3683_v13  ;;  %3726 = vmatpush.msra.mxu3 %v3684_v42  ;;  %vm4027_vm12 = vcmask 924672  }
 0xcef   : > { %7850 = vmatmul.msk.f32.gmra.mxu1 %vm1211_vm9, %v7844_v49  ;;  %3970 = vrot.lane.b32.xlu0 %v3943_v17, %s8519_s9 }
 0xcf0   : > { %3704 = vmatpush.msra.mxu2 %v3681_v29  ;;  %3727 = vmatpush.msra.mxu3 %v3682_v36 }
 0xcf1   : > { %7848 = vmatmul.msk.f32.gmra.mxu0 %vm1211_vm9, %v7844_v49  ;;  %7855 = vmatmul.msk.f32.vlgmr.msra.gmra.mxu2 %vm1211_vm9, %v7843_v31 }
 0xcf2   : > { %7857 = vmatmul.msk.f32.vlgmr.msra.gmra.mxu3 %vm1211_vm9, %v7843_v31  ;;  %v11155_v53 = vpop.permute.xlu1 %3887  ;;  %v11157_v33 = vpop.permute.xlu0 %3933 }
 0xcf3   : > { %15029 = vst [vmem:[#allocation7_spill] sm:$0xff] %v11155_v53  ;;  %v3946_v1 = vmul.f32 0.0, %v11157_v33 }
 0xcf7   : > { %3976 = vrot.lane.b32.xlu0 %v3946_v1, %s8519_s9 }
 0xcf9   : > { %7856 = vmatmul.msk.f32.gmra.mxu2 %vm1211_vm9, %v7844_v49 }
 0xcfa   : > { %7858 = vmatmul.msk.f32.gmra.mxu3 %vm1211_vm9, %v7844_v49 }
 0xcfb   : > { %v11166_v32 = vpop.permute.xlu1 %3925 }
 0xcfc   : > { %v3940_v60 = vmul.f32 0.0, %v11166_v32 }
 0xcfe   : > { %3964 = vrot.lane.b32.xlu2 %v3940_v60, %s8519_s9 }
 0xd03   : > { %v11171_v15 = vpop.permute.xlu1 %3937 }
 0xd04   : > { %v3949_v3 = vmul.f32 0.0, %v11171_v15 }
 0xd06   : > { %3982 = vrot.lane.b32.xlu0 %v3949_v3, %s8519_s9  ;;  %4049 = vperm.xlu2 %8241, %v11074_v22  }
 0xd0c   : > { %v11193_v4 = vpop.permute.xlu1 %4045 }
 0xd0e   : > { %8236 = vrot.lane.b32.xlu0 %v11126_v10, %s8521_s8  ;;  %8249 = vset.pattern.permute.xlu2 %v15026_v20 }
 0xd14   : > { %v11221_v13 = vpop.permute.xlu1 %4057 }
 0xd16   : > { %4053 = vperm.xlu0 %8242, %v11081_v16  }
 0xd1e   : > { %8250 = vset.pattern.permute.xlu0 %v15026_v20 }
 0xd58   : > { %v11187_v25 = vpop.permute.xlu2 %3964 }
 0xd59   : > { %15033 = vst [vmem:[#allocation6_spill] sm:$0xff] %v11187_v25 }
 0xd60   : > { %v11191_v31 = vpop.permute.xlu2 %4049 }
 0xd61   : > { %v11180_v21 = vpop.permute.xlu0 %3970 }
 0xd62   : > { %15032 = vst [vmem:[#allocation31_spill] sm:$0xff] %v11180_v21 }
 0xd64   : > { %v3577_v60 = vpop.f32.mrf.mxu1 }
 0xd65   : > { %v3578_v3 = vadd.f32 %v3577_v60, %v11113_v0 }
 0xd66   : > { %v3554_v27 = vpop.f32.mrf.mxu0 }
 0xd67   : > { %v3555_v18 = vadd.f32 %v3554_v27, %v11113_v0 }
 0xd69   : > { %v3583_v14 = vmax.f32 %v3555_v18, 0.0  ;;  %v11183_v47 = vpop.permute.xlu0 %3976 }
 0xd6b   : > { %v7851_v24 = vmul.f32 -1.442695, %v3583_v14 }
 0xd6d   : > { %8371 = vpow2.f32 %v7851_v24  ;;  %v3584_v24 = vmax.f32 %v3578_v3, 0.0 }
 0xd73   : > { %v8372_v6 = vpop.eup %8371 }
 0xd74   : > { %v3599_v34 = vadd.f32 1.0, %v8372_v6 }
 0xd76   : > { %8373 = vrcp.f32 %v3599_v34  ;;  %v3614_v45 = vand.u32 2147483648, %v3599_v34  ;;  %vm3608_vm7 = vweird.f32 %v3599_v34  ;;  %v3612_v63 = vand.u32 2147483647, %v3599_v34 }
 0xd78   : > { %v11185_v8 = vpop.permute.xlu0 %3982  ;;  %v3615_v58 = vor.u32 1.1754944e-38, %v3614_v45  ;;  %vm3613_vm11 = vcmp.eq.f32.partialorder %v3612_v63, 8.507059e+37 }
 0xd7c   : > { %v8374_v52 = vpop.eup %8373 }
 0xd7d   : > { %v3604_v57 = vmul.f32 %v8374_v52, %v3599_v34  ;;  %vm3609_vm5 = vweird.f32 %v8374_v52 }
 0xd7e   : > { %vm3610_vm10 = vmor %vm3608_vm7, %vm3609_vm5 }
 0xd7f   : > { %v3605_v40 = vsub.f32 1.0, %v3604_v57 }
 0xd80   : > { %v8237_v5 = vpop.permute.xlu0 %8236 }
 0xd81   : > { %v3606_v28 = vmul.f32 %v8374_v52, %v3605_v40  ;;  %v8238_v59 = vunpack.i.l.bf16 %v8237_v5  ;;  %v11201_v37 = vunpack.i.h.bf16 %v8237_v5 }
 0xd83   : > { %v3607_v50 = vadd.f32 %v8374_v52, %v3606_v28  ;;  %v11189_v30 = vmul.f32 0.0, %v8238_v59  ;;  %15036 = vst [vmem:[#allocation15_spill] sm:$0xff] %v11201_v37  ;;  %v11211_v44 = vsel %vm4027_vm12, %v8238_v59, %v11201_v37  ;;  %v7852_v59 = vmul.f32 -1.442695, %v3584_v24 }
 0xd84   : > { %15037 = vst [vmem:[#allocation39_spill] sm:$0xff] %v11211_v44  ;;  %vm4466_vm12 = vcmask 121856  }
 0xd85   : > { %15034 = vst [vmem:[#allocation11_spill] sm:$0xff] %v11189_v30  ;;  %v3611_v51 = vsel %vm3610_vm10, %v8374_v52, %v3607_v50  ;;  %v4063_v26 = vmul.f32 %v11191_v31, %v11189_v30  ;;  %v4060_v43 = vmul.f32 %v11193_v4, %v11189_v30  ;;  %v4069_v42 = vmul.f32 %v11221_v13, %v11189_v30  ;;  %v11250_v52 = vpop.permute.xlu1 %4161 }
 0xd86   : > { %v11195_v55 = vsel %vm3613_vm11, %v3615_v58, %v3611_v51  ;;  %8375 = vpow2.f32 %v7852_v59  ;;  %vm4348_vm11 = vcmask 7168  }
 0xd87   : > { %15035 = vst [vmem:[#allocation22_spill] sm:$0xff] %v11195_v55  ;;  %4090 = vrot.lane.b32.xlu0 %v4063_v26, %s8509_s14  ;;  %4084 = vrot.lane.b32.xlu2 %v4060_v43, %s8509_s14  ;;  %v3941_v38 = vmul.f32 %v11166_v32, %v11195_v55  ;;  %v4033_v48 = vmul.f32 %v11211_v44, %v11195_v55 }
 0xd88   : > { %v11207_v56 = vpop.permute.xlu0 %4053 }
 0xd89   : > { %3966 = vrot.lane.b32.xlu1 %v3941_v38, %s8519_s9  ;;  %v4066_v7 = vmul.f32 %v11207_v56, %v11189_v30  ;;  %v4061_v49 = vmul.f32 %v11193_v4, %v4033_v48 }
 0xd8c   : > { %v8376_v63 = vpop.eup %8375 }
 0xd8d   : > { %v11268_v51 = vpop.permute.xlu1 %4173  ;;  %v3600_v58 = vadd.f32 1.0, %v8376_v63 }
 0xd8f   : > { %4096 = vrot.lane.b32.xlu0 %v4066_v7, %s8509_s14  ;;  %4165 = vperm.xlu2 %8249, %v11074_v22   ;;  %8377 = vrcp.f32 %v3600_v58  ;;  %vm3623_vm13 = vweird.f32 %v3600_v58 }
 0xd91   : > { %4086 = vrot.lane.b32.xlu1 %v4061_v49, %s8509_s14  ;;  %v3629_v49 = vand.u32 2147483648, %v3600_v58 }
 0xd93   : > { %v3630_v3 = vor.u32 1.1754944e-38, %v3629_v49 }
 0xd95   : > { %v8378_v43 = vpop.eup %8377 }
 0xd96   : > { %vm3624_vm3 = vweird.f32 %v8378_v43 }
 0xd97   : > { %4102 = vrot.lane.b32.xlu0 %v4069_v42, %s8509_s14  ;;  %8253 = vset.pattern.permute.xlu2 %v15027_v23  ;;  %v3627_v42 = vand.u32 2147483647, %v3600_v58  ;;  %vm3625_vm15 = vmor %vm3623_vm13, %vm3624_vm3 }
 0xd99   : > { %vm3628_vm0 = vcmp.eq.f32.partialorder %v3627_v42, 8.507059e+37 }
 0xd9f   : > { %8244 = vrot.lane.b32.xlu0 %v11076_v9, %s8519_s9 }
 0xda7   : > { %4169 = vperm.xlu0 %8250, %v11081_v16  }
 0xdaf   : > { %8251 = vset.pattern.permute.xlu0 %v15027_v23  ;;  %v3729_v23 = vpop.f32.mrf.mxu3 }
 0xde1   : > { %v11237_v1 = vpop.permute.xlu2 %4084 }
 0xde2   : > { %15039 = vst [vmem:[#allocation29_spill] sm:$0xff] %v11237_v1 }
 0xde9   : > { %v11242_v9 = vpop.permute.xlu2 %4165 }
 0xdf9   : > { %v11231_v17 = vpop.permute.xlu0 %4090 }
 0xdfa   : > { %15038 = vst [vmem:[#allocation45_spill] sm:$0xff] %v11231_v17 }
 0xe01   : > { %v11233_v29 = vpop.permute.xlu0 %4096 }
 0xe09   : > { %v11235_v36 = vpop.permute.xlu0 %4102 }
 0xe11   : > { %v8245_v27 = vpop.permute.xlu0 %8244 }
 0xe12   : > { %v11240_v18 = vunpack.i.h.bf16 %v8245_v27  ;;  %v8246_v14 = vunpack.i.l.bf16 %v8245_v27 }
 0xe14   : > { %15040 = vst [vmem:[#allocation5_spill] sm:$0xff] %v11240_v18  ;;  %v11246_v6 = vsel %vm3988_vm2, %v8246_v14, %v11240_v18  ;;  %v11248_v34 = vmul.f32 0.0, %v8246_v14 }
 0xe15   : > { %15041 = vst [vmem:[#allocation30_spill] sm:$0xff] %v11246_v6  ;;  %v4149_v57 = vmul.f32 %v11246_v6, %v11195_v55 }
 0xe16   : > { %15042 = vst [vmem:[#allocation26_spill] sm:$0xff] %v11248_v34  ;;  %v4179_v40 = vmul.f32 %v11242_v9, %v11248_v34  ;;  %v4176_v5 = vmul.f32 %v11250_v52, %v11248_v34  ;;  %v4185_v26 = vmul.f32 %v11268_v51, %v11248_v34 }
 0xe17   : > { %v4177_v28 = vmul.f32 %v11250_v52, %v4149_v57  ;;  %v11290_v57 = vpop.permute.xlu1 %4261 }
 0xe18   : > { %4200 = vrot.lane.b32.xlu2 %v4176_v5, %s8497_s17  ;;  %4206 = vrot.lane.b32.xlu0 %v4179_v40, %s8497_s17 }
 0xe19   : > { %4202 = vrot.lane.b32.xlu1 %v4177_v28, %s8497_s17  ;;  %v11262_v50 = vpop.permute.xlu0 %4169 }
 0xe1a   : > { %v4182_v45 = vmul.f32 %v11262_v50, %v11248_v34 }
 0xe1f   : > { %v11292_v28 = vpop.permute.xlu1 %4269 }
 0xe20   : > { %4265 = vperm.xlu2 %8253, %v11081_v16   ;;  %4212 = vrot.lane.b32.xlu0 %v4182_v45, %s8497_s17  ;;  %v3619_v16 = vmul.f32 %v8378_v43, %v3600_v58 }
 0xe22   : > { %v3620_v38 = vsub.f32 1.0, %v3619_v16 }
 0xe24   : > { %v3621_v48 = vmul.f32 %v8378_v43, %v3620_v38 }
 0xe26   : > { %v3622_v7 = vadd.f32 %v8378_v43, %v3621_v48 }
 0xe27   : > { %v11296_v63 = vpop.permute.xlu1 %8255 }
 0xe28   : > { %8259 = vset.pattern.permute.xlu2 %v15028_v41  ;;  %4218 = vrot.lane.b32.xlu0 %v4185_v26, %s8497_s17  ;;  %v3626_v60 = vsel %vm3625_vm15, %v8378_v43, %v3622_v7  ;;  %v14647_v58 = vunpack.i.h.bf16 %v11296_v63  ;;  %v11306_v43 = vunpack.i.l.bf16 %v11296_v63  ;;  %v15050_v53 = vunpack.i.h.bf16 %v11296_v63 }
 0xe29   : > { %4366 = vperm.xlu2 %8259, %v11090_v11   ;;  %v11283_v27 = vsel %vm3628_vm0, %v3630_v3, %v3626_v60  ;;  %v3706_v3 = vpop.f32.mrf.mxu2 }
 0xe2a   : > { %15043 = vst [vmem:[#allocation18_spill] sm:$0xff] %v11283_v27  ;;  %v3942_v14 = vmul.f32 %v11166_v32, %v11283_v27  ;;  %v11303_v26 = vmul.f32 0.0, %v14647_v58  ;;  %v4353_v16 = vmul.f32 %v11306_v43, %v11195_v55 }
 0xe2b   : > { %15046 = vst [vmem:[#allocation9_spill] sm:$0xff] %v11306_v43 }
 0xe2c   : > { %15045 = vst [vmem:[#allocation13_spill] sm:$0xff] %v11303_v26 }
 0xe2f   : > { %v11312_v7 = vpop.permute.xlu1 %4374 }
 0xe30   : > { %4257 = vperm.xlu0 %8251, %v11090_v11  }
 0xe31   : > { %4378 = vperm.xlu2 %8259, %v11099_v35  }
 0xe38   : > { %8260 = vset.pattern.permute.xlu0 %v15028_v41 }
 0xe39   : > { %8267 = vset.pattern.permute.xlu2 %v15030_v12  ;;  %4370 = vperm.xlu0 %8260, %v11074_v22  }
 0xe3a   : > { %4484 = vperm.xlu2 %8267, %v11090_v11   ;;  %v3557_v11 = vpop.f32.mrf.mxu0 }
 0xe3b   : > { %v3558_v24 = vadd.f32 %v3557_v11, %v11116_v2 }
 0xe3d   : > { %v3585_v40 = vmax.f32 %v3558_v24, 0.0 }
 0xe3f   : > { %v7853_v5 = vmul.f32 -1.442695, %v3585_v40  ;;  %v3707_v40 = vadd.f32 %v3706_v3, %v11113_v0 }
 0xe41   : > { %8268 = vset.pattern.permute.xlu0 %v15030_v12  ;;  %8379 = vpow2.f32 %v7853_v5  ;;  %v11324_v5 = vpop.permute.xlu1 %8263  ;;  %v3735_v58 = vmax.f32 %v3707_v40, 0.0 }
 0xe42   : > { %4496 = vperm.xlu2 %8267, %v11099_v35   ;;  %v11327_v34 = vunpack.i.l.bf16 %v11324_v5  ;;  %v8266_v63 = vunpack.i.h.bf16 %v11324_v5 }
 0xe44   : > { %15048 = vst [vmem:[#allocation21_spill] sm:$0xff] %v11327_v34 }
 0xe47   : > { %v8380_v59 = vpop.eup %8379 }
 0xe48   : > { %v3601_v45 = vadd.f32 1.0, %v8380_v59  ;;  %v3580_v59 = vpop.f32.mrf.mxu1 }
 0xe4a   : > { %3968 = vrot.lane.b32.xlu2 %v3942_v14, %s8519_s9  ;;  %8381 = vrcp.f32 %v3601_v45  ;;  %v3644_v41 = vand.u32 2147483648, %v3601_v45  ;;  %vm3638_vm5 = vweird.f32 %v3601_v45  ;;  %v3642_v30 = vand.u32 2147483647, %v3601_v45 }
 0xe4b   : > { %8271 = vset.pattern.permute.xlu2 %v15031_v61 }
 0xe4c   : > { %vm3643_vm10 = vcmp.eq.f32.partialorder %v3642_v30, 8.507059e+37 }
 0xe50   : > { %v8382_v48 = vpop.eup %8381 }
 0xe51   : > { %v3634_v60 = vmul.f32 %v8382_v48, %v3601_v45  ;;  %vm3639_vm4 = vweird.f32 %v8382_v48 }
 0xe52   : > { %vm3640_vm7 = vmor %vm3638_vm5, %vm3639_vm4 }
 0xe53   : > { %v3635_v11 = vsub.f32 1.0, %v3634_v60  ;;  %v4471_v60 = vmul.f32 %v11327_v34, %v11195_v55 }
 0xe72   : > { %v11294_v35 = vpop.permute.xlu2 %4200 }
 0xe73   : > { %15044 = vst [vmem:[#allocation19_spill] sm:$0xff] %v11294_v35 }
 0xe7a   : > { %v11298_v32 = vpop.permute.xlu2 %4265 }
 0xe83   : > { %v11310_v38 = vpop.permute.xlu2 %4366 }
 0xe84   : > { %v4381_v49 = vmul.f32 %v11310_v38, %v4353_v16  ;;  %v4383_v42 = vmul.f32 %v11310_v38, %v11303_v26  ;;  %v3636_v16 = vmul.f32 %v8382_v48, %v3635_v11  ;;  %v7859_v11 = vmul.f32 -1.442695, %v3735_v58 }
 0xe86   : > { %4405 = vrot.lane.b32.xlu1 %v4381_v49, %s8522_s15  ;;  %4409 = vrot.lane.b32.xlu0 %v4383_v42, %s8522_s15  ;;  %v3581_v49 = vadd.f32 %v3580_v59, %v11116_v2  ;;  %v3637_v12 = vadd.f32 %v8382_v48, %v3636_v16  ;;  %v3730_v59 = vadd.f32 %v3729_v23, %v11113_v0  ;;  %v3645_v16 = vor.u32 1.1754944e-38, %v3644_v41 }
 0xe87   : > { %8383 = vpow2.f32 %v7859_v11 }
 0xe88   : > { %v3586_v20 = vmax.f32 %v3581_v49, 0.0  ;;  %v3641_v35 = vsel %vm3640_vm7, %v8382_v48, %v3637_v12  ;;  %v3736_v17 = vmax.f32 %v3730_v59, 0.0 }
 0xe8a   : > { %v11319_v14 = vpop.permute.xlu0 %4206  ;;  %v7854_v1 = vmul.f32 -1.442695, %v3586_v20  ;;  %v7860_v49 = vmul.f32 -1.442695, %v3736_v17  ;;  %v4034_v17 = vmul.f32 %v11201_v37, %v11283_v27 }
 0xe8b   : > { %15047 = vst [vmem:[#allocation17_spill] sm:$0xff] %v11319_v14  ;;  %v11321_v24 = vpop.permute.xlu2 %4378  ;;  %v11339_v14 = vsel %vm3643_vm10, %v3645_v16, %v3641_v35  ;;  %v3732_v35 = vpop.f32.mrf.mxu3 }
 0xe8c   : > { %15049 = vst [vmem:[#allocation20_spill] sm:$0xff] %v11339_v14  ;;  %v3944_v45 = vmul.f32 %v11143_v19, %v11339_v14  ;;  %8385 = vpow2.f32 %v7854_v1  ;;  %v4274_v12 = vmul.f32 %v11290_v57, %v11339_v14  ;;  %v4036_v48 = vmul.f32 %v11211_v44, %v11339_v14 }
 0xe8d   : > { %v8384_v58 = vpop.eup %8383  ;;  %8387 = vpow2.f32 %v7860_v49  ;;  %v4062_v11 = vmul.f32 %v11193_v4, %v4034_v17  ;;  %v3733_v16 = vadd.f32 %v3732_v35, %v11116_v2  ;;  %v4150_v4 = vmul.f32 %v11240_v18, %v11283_v27 }
 0xe8e   : > { %v11346_v23 = vadd.f32 1.0, %v8384_v58  ;;  %v4064_v58 = vmul.f32 %v11191_v31, %v4036_v48  ;;  %v4152_v17 = vmul.f32 %v11246_v6, %v11339_v14 }
 0xe8f   : > { %v4178_v35 = vmul.f32 %v11250_v52, %v4150_v4 }
 0xe90   : > { %8389 = vrcp.f32 %v11346_v23  ;;  %vm3760_vm13 = vweird.f32 %v11346_v23 }
 0xe92   : > { %v11330_v42 = vpop.permute.xlu0 %4212  ;;  %v8386_v41 = vpop.eup %8385 }
 0xe93   : > { %v11356_v30 = vadd.f32 1.0, %v8386_v41  ;;  %v8388_v1 = vpop.eup %8387 }
 0xe94   : > { %v11334_v3 = vpop.permute.xlu2 %4484  ;;  %v11369_v59 = vadd.f32 1.0, %v8388_v1 }
 0xe95   : > { %v4499_v40 = vmul.f32 %v11334_v3, %v4471_v60  ;;  %8391 = vrcp.f32 %v11356_v30  ;;  %vm3653_vm5 = vweird.f32 %v11356_v30 }
 0xe96   : > { %8393 = vrcp.f32 %v11369_v59 }
 0xe97   : > { %4523 = vrot.lane.b32.xlu1 %v4499_v40, %s8512_s18  ;;  %v11367_v40 = vpop.eup %8389 }
 0xe98   : > { %v3756_v49 = vmul.f32 %v11367_v40, %v11346_v23  ;;  %vm3761_vm3 = vweird.f32 %v11367_v40 }
 0xe99   : > { %vm11423_vm15 = vmor %vm3760_vm13, %vm3761_vm3 }
 0xe9a   : > { %v11341_v25 = vpop.permute.xlu0 %4218  ;;  %v3757_v1 = vsub.f32 1.0, %v3756_v49  ;;  %v11400_v49 = vsel %vm4348_vm11, %v11306_v43, %v15050_v53 }
 0xe9b   : > { %v11383_v41 = vpop.eup %8391  ;;  %15051 = vst [vmem:[#allocation12_spill] sm:$0xff] %v11400_v49 }
 0xe9c   : > { %v3649_v48 = vmul.f32 %v11383_v41, %v11356_v30  ;;  %v11395_v21 = vpop.eup %8393  ;;  %v3758_v52 = vmul.f32 %v11367_v40, %v3757_v1  ;;  %v4356_v1 = vmul.f32 %v11306_v43, %v11339_v14  ;;  %vm3654_vm0 = vweird.f32 %v11383_v41 }
 0xe9d   : > { %vm11449_vm7 = vmor %vm3653_vm5, %vm3654_vm0  ;;  %vm3776_vm10 = vweird.f32 %v11395_v21 }
 0xe9e   : > { %v3650_v4 = vsub.f32 1.0, %v3649_v48  ;;  %v3759_v53 = vadd.f32 %v11367_v40, %v3758_v52  ;;  %v3766_v48 = vand.u32 2147483648, %v11346_v23 }
 0xe9f   : > { %3972 = vrot.lane.b32.xlu1 %v3944_v45, %s8519_s9 }
 0xea2   : > { %v11348_v0 = vpop.permute.xlu0 %4257 }
 0xea3   : > { %v4272_v20 = vmul.f32 %v11348_v0, %v11195_v55 }
 0xea5   : > { %4288 = vrot.lane.b32.xlu2 %v4272_v20, %s8517_s22  ;;  %v3738_v20 = vmax.f32 %v3733_v16, 0.0  ;;  %v4180_v16 = vmul.f32 %v11242_v9, %v4152_v17 }
 0xea7   : > { %4292 = vrot.lane.b32.xlu1 %v4274_v12, %s8517_s22  ;;  %v3709_v12 = vpop.f32.mrf.mxu2 }
 0xeab   : > { %v11364_v60 = vpop.permute.xlu0 %4370 }
 0xeac   : > { %v4386_v45 = vmul.f32 %v11364_v60, %v11303_v26  ;;  %v4384_v52 = vmul.f32 %v11364_v60, %v4356_v1 }
 0xead   : > { %4088 = vrot.lane.b32.xlu2 %v4062_v11, %s8509_s14  ;;  %v4389_v11 = vmul.f32 %v11312_v7, %v11303_v26 }
 0xeae   : > { %4415 = vrot.lane.b32.xlu0 %v4386_v45, %s8522_s15  ;;  %v3710_v45 = vadd.f32 %v3709_v12, %v11116_v2  ;;  %v4354_v12 = vmul.f32 %v11400_v49, %v11283_v27 }
 0xeaf   : > { %4092 = vrot.lane.b32.xlu1 %v4064_v58, %s8509_s14  ;;  %v7862_v58 = vmul.f32 -1.442695, %v3738_v20  ;;  %v3771_v20 = vmul.f32 %v11395_v21, %v11369_v59 }
 0xeb0   : > { %v3737_v2 = vmax.f32 %v3710_v45, 0.0  ;;  %v4382_v17 = vmul.f32 %v11310_v38, %v4354_v12  ;;  %v4392_v45 = vmul.f32 %v11321_v24, %v11303_v26 }
 0xeb1   : > { %8395 = vpow2.f32 %v7862_v58  ;;  %v3764_v58 = vand.u32 2147483647, %v11346_v23  ;;  %v3763_v23 = vsel %vm11423_vm15, %v11367_v40, %v3759_v53  ;;  %v3659_v40 = vand.u32 2147483648, %v11356_v30 }
 0xeb3   : > { %vm3765_vm4 = vcmp.eq.f32.partialorder %v3764_v58, 8.507059e+37  ;;  %v3660_v12 = vor.u32 1.1754944e-38, %v3659_v40 }
 0xeb5   : > { %4204 = vrot.lane.b32.xlu2 %v4178_v35, %s8497_s17  ;;  %v3651_v35 = vmul.f32 %v11383_v41, %v3650_v4  ;;  %v11431_v4 = vsel %vm4466_vm12, %v11327_v34, %v8266_v63  ;;  %vm3775_vm12 = vweird.f32 %v11369_v59 }
 0xeb6   : > { %4421 = vrot.lane.b32.xlu0 %v4389_v11, %s8522_s15  ;;  %v7861_v11 = vmul.f32 -1.442695, %v3737_v2  ;;  %15054 = vst [vmem:[#allocation14_spill] sm:$0xff] %v11431_v4  ;;  %vm3777_vm3 = vmor %vm3775_vm12, %vm3776_vm10 }
 0xeb7   : > { %4208 = vrot.lane.b32.xlu1 %v4180_v16, %s8497_s17  ;;  %v3772_v16 = vsub.f32 1.0, %v3771_v20  ;;  %v8396_v38 = vpop.eup %8395  ;;  %v3652_v2 = vadd.f32 %v11383_v41, %v3651_v35  ;;  %v3767_v20 = vor.u32 1.1754944e-38, %v3766_v48  ;;  %v3657_v48 = vand.u32 2147483647, %v11356_v30 }
 0xeb8   : > { %8397 = vpow2.f32 %v7861_v11  ;;  %v11441_v1 = vadd.f32 1.0, %v8396_v38  ;;  %v3781_v30 = vand.u32 2147483648, %v11369_v59  ;;  %v4273_v35 = vmul.f32 %v11348_v0, %v11283_v27 }
 0xeb9   : > { %v11447_v53 = vsel %vm3765_vm4, %v3767_v20, %v3763_v23  ;;  %v3656_v58 = vsel %vm11449_vm7, %v11383_v41, %v3652_v2  ;;  %vm3658_vm11 = vcmp.eq.f32.partialorder %v3657_v48, 8.507059e+37  ;;  %v3779_v41 = vand.u32 2147483647, %v11369_v59 }
 0xeba   : > { %15055 = vst [vmem:[#allocation10_spill] sm:$0xff] %v11447_v53  ;;  %8399 = vrcp.f32 %v11441_v1  ;;  %v11469_v23 = vsel %vm3658_vm11, %v3660_v12, %v3656_v58  ;;  %v3782_v20 = vor.u32 1.1754944e-38, %v3781_v30  ;;  %v4039_v0 = vmul.f32 %v11211_v44, %v11447_v53 }
 0xebb   : > { %15058 = vst [vmem:[#allocation32_spill] sm:$0xff] %v11469_v23  ;;  %vm3780_vm13 = vcmp.eq.f32.partialorder %v3779_v41, 8.507059e+37  ;;  %v3945_v40 = vmul.f32 %v11143_v19, %v11469_v23  ;;  %v11487_v19 = vmul.f32 0.0, %v8266_v63  ;;  %v4037_v63 = vmul.f32 %v11201_v37, %v11469_v23 }
 0xebc   : > { %v3811_v30 = vand.u32 2147483648, %v11441_v1  ;;  %v4155_v41 = vmul.f32 %v11246_v6, %v11447_v53  ;;  %vm3805_vm0 = vweird.f32 %v11441_v1 }
 0xebd   : > { %4407 = vrot.lane.b32.xlu2 %v4382_v17, %s8522_s15  ;;  %v3773_v17 = vmul.f32 %v11395_v21, %v3772_v16  ;;  %15060 = vst [vmem:[#allocation44_spill] sm:$0xff] %v11487_v19 }
 0xebe   : > { %4427 = vrot.lane.b32.xlu0 %v4392_v45, %s8522_s15  ;;  %v4472_v45 = vmul.f32 %v11431_v4, %v11283_v27  ;;  %v8398_v38 = vpop.eup %8397 }
 0xebf   : > { %4411 = vrot.lane.b32.xlu1 %v4384_v52, %s8522_s15  ;;  %v3774_v16 = vadd.f32 %v11395_v21, %v3773_v17  ;;  %v3947_v52 = vmul.f32 %v11157_v33, %v11447_v53  ;;  %v3753_v17 = vadd.f32 1.0, %v8398_v38 }
 0xec0   : > { %v4500_v11 = vmul.f32 %v11334_v3, %v4472_v45  ;;  %v8400_v45 = vpop.eup %8399 }
 0xec1   : > { %v3778_v2 = vsel %vm3777_vm3, %v11395_v21, %v3774_v16  ;;  %8401 = vrcp.f32 %v3753_v17  ;;  %v3801_v21 = vmul.f32 %v8400_v45, %v11441_v1  ;;  %v4501_v16 = vmul.f32 %v11334_v3, %v11487_v19 }
 0xec2   : > { %vm3806_vm15 = vweird.f32 %v8400_v45  ;;  %v4065_v3 = vmul.f32 %v11191_v31, %v4037_v63  ;;  %v3812_v31 = vor.u32 1.1754944e-38, %v3811_v30  ;;  %vm3790_vm10 = vweird.f32 %v3753_v17  ;;  %v11536_v30 = vpop.permute.xlu1 %4492 }
 0xec3   : > { %v3802_v48 = vsub.f32 1.0, %v3801_v21  ;;  %vm3807_vm4 = vmor %vm3805_vm0, %vm3806_vm15  ;;  %v4153_v21 = vmul.f32 %v11240_v18, %v11469_v23  ;;  %vm4680_vm3 = vcmask 138240   ;;  %vm4429_vm15 = vcmask 900096  }
 0xec4   : > { %vm4643_vm0 = vcmask 777216  }
 0xec5   : > { %4525 = vrot.lane.b32.xlu2 %v4500_v11, %s8512_s18  ;;  %v4275_v11 = vmul.f32 %v11290_v57, %v11469_v23  ;;  %v3803_v38 = vmul.f32 %v8400_v45, %v3802_v48  ;;  %v4181_v48 = vmul.f32 %v11242_v9, %v4153_v21  ;;  %v4357_v9 = vmul.f32 %v11400_v49, %v11469_v23 }
 0xec6   : > { %4488 = vperm.xlu0 %8268, %v11074_v22   ;;  %v11474_v22 = vsel %vm3780_vm13, %v3782_v20, %v3778_v2  ;;  %v3809_v2 = vand.u32 2147483647, %v11441_v1  ;;  %v4276_v20 = vmul.f32 %v11298_v32, %v11447_v53  ;;  %v4359_v1 = vmul.f32 %v11306_v43, %v11447_v53 }
 0xec7   : > { %3978 = vrot.lane.b32.xlu1 %v3947_v52, %s8519_s9  ;;  %15059 = vst [vmem:[#allocation23_spill] sm:$0xff] %v11474_v22  ;;  %v4277_v59 = vmul.f32 %v11298_v32, %v11474_v22  ;;  %v8402_v58 = vpop.eup %8401  ;;  %v4067_v52 = vmul.f32 %v11207_v56, %v4039_v0  ;;  %v3804_v12 = vadd.f32 %v8400_v45, %v3803_v38  ;;  %vm14728_vm13 = vcmask 908288  }
 0xec8   : > { %v3786_v5 = vmul.f32 %v8402_v58, %v3753_v17  ;;  %vm3810_vm5 = vcmp.eq.f32.partialorder %v3809_v2, 8.507059e+37  ;;  %vm3791_vm7 = vweird.f32 %v8402_v58  ;;  %v4156_v21 = vmul.f32 %v11240_v18, %v11474_v22 }
 0xec9   : > { %vm3792_vm11 = vmor %vm3790_vm10, %vm3791_vm7 }
 0xeca   : > { %v3787_v57 = vsub.f32 1.0, %v3786_v5  ;;  %v11547_v2 = vpop.permute.xlu1 %3966 }
 0xecd   : > { %3974 = vrot.lane.b32.xlu2 %v3945_v40, %s8519_s9  ;;  %v4183_v40 = vmul.f32 %v11262_v50, %v4155_v41  ;;  %v4040_v41 = vmul.f32 %v11201_v37, %v11474_v22 }
 0xece   : > { %4290 = vrot.lane.b32.xlu0 %v4273_v35, %s8517_s22  ;;  %v3808_v35 = vsel %vm3807_vm4, %v8400_v45, %v3804_v12  ;;  %v3796_v45 = vand.u32 2147483648, %v3753_v17  ;;  %v4385_v12 = vmul.f32 %v11364_v60, %v4357_v9 }
 0xecf   : > { %4298 = vrot.lane.b32.xlu1 %v4277_v59, %s8517_s22  ;;  %8272 = vset.pattern.permute.xlu0 %v15031_v61  ;;  %v3788_v59 = vmul.f32 %v8402_v58, %v3787_v57  ;;  %v11517_v32 = vsel %vm3810_vm5, %v3812_v31, %v3808_v35  ;;  %v11531_v57 = vpop.permute.xlu2 %4496  ;;  %v4068_v35 = vmul.f32 %v11207_v56, %v4040_v41 }
 0xed0   : > { %15061 = vst [vmem:[#allocation28_spill] sm:$0xff] %v11517_v32  ;;  %v3797_v5 = vor.u32 1.1754944e-38, %v3796_v45 }
 0xed1   : > { %v3789_v0 = vadd.f32 %v8402_v58, %v3788_v59 }
 0xed2   : > { %v11560_v31 = vpop.permute.xlu1 %4086 }
 0xed3   : > { %v3793_v38 = vsel %vm3792_vm11, %v8402_v58, %v3789_v0 }
 0xed5   : > { %4294 = vrot.lane.b32.xlu2 %v4275_v11, %s8517_s22  ;;  %v4279_v11 = vmul.f32 %v11292_v28, %v11517_v32 }
 0xed6   : > { %4527 = vrot.lane.b32.xlu0 %v4501_v16, %s8512_s18  ;;  %v4387_v16 = vmul.f32 %v11312_v7, %v4359_v1  ;;  %v4184_v1 = vmul.f32 %v11262_v50, %v4156_v21 }
 0xed7   : > { %4098 = vrot.lane.b32.xlu1 %v4067_v52, %s8509_s14  ;;  %v3794_v52 = vand.u32 2147483647, %v3753_v17 }
 0xed9   : > { %vm3795_vm12 = vcmp.eq.f32.partialorder %v3794_v52, 8.507059e+37 }
 0xeda   : > { %v11528_v63 = vsel %vm3795_vm12, %v3797_v5, %v3793_v38  ;;  %v3951_v38 = vmul.f32 %v11171_v15, %v11517_v32 }
 0xedb   : > { %15062 = vst [vmem:[#allocation24_spill] sm:$0xff] %v11528_v63  ;;  %v3950_v17 = vmul.f32 %v11171_v15, %v11528_v63  ;;  %v4042_v58 = vmul.f32 %v11211_v44, %v11528_v63  ;;  %v4362_v0 = vmul.f32 %v11306_v43, %v11528_v63 }
 0xedd   : > { %4094 = vrot.lane.b32.xlu2 %v4065_v3, %s8509_s14  ;;  %v3948_v3 = vmul.f32 %v11157_v33, %v11474_v22  ;;  %v4070_v60 = vmul.f32 %v11221_v13, %v4042_v58  ;;  %v4390_v56 = vmul.f32 %v11321_v24, %v4362_v0  ;;  %v4043_v58 = vmul.f32 %v11201_v37, %v11517_v32 }
 0xede   : > { %4296 = vrot.lane.b32.xlu0 %v4276_v20, %s8517_s22  ;;  %v11549_v20 = vpop.permute.xlu2 %3968 }
 0xedf   : > { %4214 = vrot.lane.b32.xlu1 %v4183_v40, %s8497_s17  ;;  %v4158_v40 = vmul.f32 %v11246_v6, %v11528_v63 }
 0xee1   : > { %v4186_v33 = vmul.f32 %v11268_v51, %v4158_v40 }
 0xee5   : > { %4210 = vrot.lane.b32.xlu2 %v4181_v48, %s8497_s17  ;;  %v4360_v48 = vmul.f32 %v11400_v49, %v11474_v22 }
 0xee6   : > { %4302 = vrot.lane.b32.xlu0 %v4279_v11, %s8517_s22  ;;  %v11574_v11 = vpop.permute.xlu1 %4202 }
 0xee7   : > { %4417 = vrot.lane.b32.xlu1 %v4387_v16, %s8522_s15  ;;  %v4388_v16 = vmul.f32 %v11312_v7, %v4360_v48  ;;  %v4278_v7 = vmul.f32 %v11292_v28, %v11528_v63  ;;  %v4159_v28 = vmul.f32 %v11240_v18, %v11517_v32 }
 0xeed   : > { %4413 = vrot.lane.b32.xlu2 %v4385_v12, %s8522_s15 }
 0xeef   : > { %3984 = vrot.lane.b32.xlu1 %v3950_v17, %s8519_s9 }
 0xef5   : > { %3980 = vrot.lane.b32.xlu2 %v3948_v3, %s8519_s9 }
 0xef7   : > { %4104 = vrot.lane.b32.xlu1 %v4070_v60, %s8509_s14  ;;  %v4071_v60 = vmul.f32 %v11221_v13, %v4043_v58  ;;  %v4363_v13 = vmul.f32 %v11400_v49, %v11517_v32 }
 0xef8   : > { %v11580_v52 = vpop.permute.xlu1 %4405  ;;  %v11585_v5 = vpop.permute.xlu0 %4409 }
 0xef9   : > { %15064 = vst [vmem:[#allocation16_spill] sm:$0xff] %v11580_v52  ;;  %v4391_v0 = vmul.f32 %v11321_v24, %v4363_v13  ;;  %v4477_v24 = vmul.f32 %v11327_v34, %v11447_v53 }
 0xefa   : > { %15065 = vst [vmem:[#allocation34_spill] sm:$0xff] %v11585_v5 }
 0xefb   : > { %v4505_v13 = vmul.f32 %v11536_v30, %v4477_v24  ;;  %v4510_v24 = vmul.f32 %v11531_v57, %v11487_v19 }
 0xefd   : > { %4100 = vrot.lane.b32.xlu2 %v4068_v35, %s8509_s14  ;;  %v4187_v35 = vmul.f32 %v11268_v51, %v4159_v28  ;;  %v4474_v51 = vmul.f32 %v11327_v34, %v11339_v14  ;;  %v4478_v28 = vmul.f32 %v11431_v4, %v11474_v22 }
 0xeff   : > { %v11557_v59 = vpop.permute.xlu2 %4288  ;;  %4220 = vrot.lane.b32.xlu1 %v4186_v33, %s8497_s17 }
 0xf00   : > { %15063 = vst [vmem:[#allocation8_spill] sm:$0xff] %v11557_v59 }
 0xf05   : > { %4216 = vrot.lane.b32.xlu2 %v4184_v1, %s8497_s17 }
 0xf07   : > { %v11571_v45 = vpop.permute.xlu2 %4088  ;;  %4423 = vrot.lane.b32.xlu1 %v4390_v56, %s8522_s15 }
 0xf09   : > { %v11589_v12 = vpop.permute.xlu1 %4523 }
 0xf0a   : > { %15067 = vst [vmem:[#allocation33_spill] sm:$0xff] %v11589_v12 }
 0xf0d   : > { %4419 = vrot.lane.b32.xlu2 %v4388_v16, %s8522_s15 }
 0xf0f   : > { %v11578_v50 = vpop.permute.xlu2 %4204 }
 0xf11   : > { %v11600_v15 = vpop.permute.xlu1 %3972 }
 0xf15   : > { %3986 = vrot.lane.b32.xlu2 %v3951_v38, %s8519_s9  ;;  %v4475_v38 = vmul.f32 %v11431_v4, %v11469_v23 }
 0xf17   : > { %v11587_v9 = vpop.permute.xlu2 %4407 }
 0xf18   : > { %15066 = vst [vmem:[#allocation27_spill] sm:$0xff] %v11587_v9 }
 0xf19   : > { %v11611_v33 = vpop.permute.xlu1 %4292 }
 0xf1a   : > { %15071 = vst [vmem:[#allocation36_spill] sm:$0xff] %v11611_v33 }
 0xf1d   : > { %4300 = vrot.lane.b32.xlu2 %v4278_v7, %s8517_s22 }
 0xf1f   : > { %v11594_v17 = vpop.permute.xlu2 %4525 }
 0xf20   : > { %15068 = vst [vmem:[#allocation37_spill] sm:$0xff] %v11594_v17  ;;  %v11598_v3 = vpop.permute.xlu0 %4415  ;;  %v15088_v17 = vmov 0  }
 0xf21   : > { %15069 = vst [vmem:[#allocation40_spill] sm:$0xff] %v11598_v3  ;;  %v11622_v56 = vpop.permute.xlu1 %4092 }
 0xf25   : > { %4106 = vrot.lane.b32.xlu2 %v4071_v60, %s8509_s14 }
 0xf27   : > { %v11604_v41 = vpop.permute.xlu2 %3974 }
 0xf28   : > { %v11608_v40 = vpop.permute.xlu0 %4421 }
 0xf29   : > { %15070 = vst [vmem:[#allocation38_spill] sm:$0xff] %v11608_v40 }
 0xf2d   : > { %4222 = vrot.lane.b32.xlu2 %v4187_v35, %s8497_s17 }
 0xf2f   : > { %v11614_v21 = vpop.permute.xlu2 %4294 }
 0xf30   : > { %15072 = vst [vmem:[#allocation25_spill] sm:$0xff] %v11614_v21  ;;  %v11616_v1 = vpop.permute.xlu0 %4427 }
 0xf35   : > { %4425 = vrot.lane.b32.xlu2 %v4391_v0, %s8522_s15  ;;  %v4507_v0 = vmul.f32 %v11536_v30, %v11487_v19 }
 0xf37   : > { %v11624_v48 = vpop.permute.xlu2 %4094 }
 0xf38   : > { %v4489_v16 = vpop.permute.xlu0 %4488 }
 0xf39   : > { %v4502_v7 = vmul.f32 %v4489_v16, %v4474_v51  ;;  %v4504_v58 = vmul.f32 %v4489_v16, %v11487_v19  ;;  %v4503_v60 = vmul.f32 %v4489_v16, %v4475_v38  ;;  %v11643_v51 = vpop.permute.xlu1 %4208  ;;  %v4506_v16 = vmul.f32 %v11536_v30, %v4478_v28 }
 0xf3a   : > { %v4480_v38 = vmul.f32 %v11327_v34, %v11528_v63 }
 0xf3b   : > { %4533 = vrot.lane.b32.xlu0 %v4504_v58, %s8512_s18  ;;  %4529 = vrot.lane.b32.xlu1 %v4502_v7, %s8512_s18  ;;  %v4481_v58 = vmul.f32 %v11431_v4, %v11517_v32 }
 0xf3d   : > { %4531 = vrot.lane.b32.xlu2 %v4503_v60, %s8512_s18  ;;  %v4508_v60 = vmul.f32 %v11531_v57, %v4480_v38  ;;  %v4509_v30 = vmul.f32 %v11531_v57, %v4481_v58  ;;  %v8477_v38 = vld [vmem:[%s14504_s2 + $0x68] sm:$0xff] }
 0xf3f   : > { %v11638_v35 = vpop.permute.xlu2 %4210 }
 0xf40   : > { %v11710_v61 = vpop.permute.xlu0 %4290 }
 0xf41   : > { %v11659_v28 = vpop.permute.xlu1 %4411  ;;  %15081 = vst [vmem:[#allocation48_spill] sm:$0xff] %v11710_v61 }
 0xf42   : > { %15074 = vst [vmem:[#allocation49_spill] sm:$0xff] %v11659_v28 }
 0xf43   : > { %4539 = vrot.lane.b32.xlu0 %v4507_v0, %s8512_s18  ;;  %4535 = vrot.lane.b32.xlu1 %v4505_v13, %s8512_s18  ;;  %v8475_v0 = vld [vmem:[%s14504_s2 + $0x70] sm:$0xff] }
 0xf45   : > { %4537 = vrot.lane.b32.xlu2 %v4506_v16, %s8512_s18  ;;  %v11672_v16 = vld [vmem:[%s14504_s2 + $0x60] sm:$0xff] }
 0xf47   : > { %v11651_v7 = vpop.permute.xlu2 %4413 }
 0xf48   : > { %15073 = vst [vmem:[#allocation42_spill] sm:$0xff] %v11651_v7 }
 0xf49   : > { %v11675_v57 = vpop.permute.xlu1 %3978 }
 0xf4b   : > { %4545 = vrot.lane.b32.xlu0 %v4510_v24, %s8512_s18  ;;  %4541 = vrot.lane.b32.xlu1 %v4508_v60, %s8512_s18  ;;  %v8478_v60 = vld [vmem:[%s14504_s2 + $0x78] sm:$0xff]  ;;  %v15077_v24 = vmov 8  }
 0xf4d   : > { %4543 = vrot.lane.b32.xlu2 %v4509_v30, %s8512_s18 }
 0xf4f   : > { %v11664_v13 = vpop.permute.xlu2 %3980 }
 0xf50   : > { %15075 = vst [vmem:[#allocation47_spill] sm:$0xff] %v11664_v13 }
 0xf51   : > { %v11687_v30 = vpop.permute.xlu1 %4298 }
 0xf52   : > { %15078 = vst [vmem:[#allocation35_spill] sm:$0xff] %v11687_v30 }
 0xf53   : > { %4588 = vperm.xlu0 %8272, %v8475_v0   ;;  %4580 = vperm.xlu1 %8270, %v11672_v16  }
 0xf55   : > { %4584 = vperm.xlu2 %8271, %v8477_v38  }
 0xf57   : > { %v11680_v58 = vpop.permute.xlu2 %4100 }
 0xf58   : > { %15076 = vst [vmem:[#allocation43_spill] sm:$0xff] %v11680_v58 }
 0xf59   : > { %v11694_v18 = vpop.permute.xlu1 %4098 }
 0xf5b   : > { %4592 = vperm.xlu1 %8270, %v8478_v60   ;;  %8279 = vset.pattern.permute.xlu0 %v15077_v24 }
 0xf5d   : > { %8278 = vset.pattern.permute.xlu2 %v15077_v24 }
 0xf5f   : > { %v11689_v37 = vpop.permute.xlu2 %4216 }
 0xf60   : > { %15079 = vst [vmem:[#allocation41_spill] sm:$0xff] %v11689_v37 }
 0xf61   : > { %v11698_v4 = vpop.permute.xlu1 %4214 }
 0xf63   : > { %8281 = vset.pattern.permute.xlu1 %v15077_v24 }
 0xf67   : > { %v11692_v6 = vpop.permute.xlu2 %4419 }
 0xf68   : > { %15080 = vst [vmem:[#allocation46_spill] sm:$0xff] %v11692_v6  ;;  %v11716_v6 = vpop.permute.xlu0 %4527 }
 0xf69   : > { %v11702_v34 = vpop.permute.xlu1 %4417  ;;  %15082 = vst [vmem:[#allocation3_spill] sm:$0xff] %v11716_v6 }
 0xf6f   : > { %v11696_v44 = vpop.permute.xlu2 %3986 }
 0xf70   : > { %v11722_v58 = vpop.permute.xlu0 %4296 }
 0xf71   : > { %v11706_v19 = vpop.permute.xlu1 %3984 }
 0xf77   : > { %v11700_v49 = vpop.permute.xlu2 %4300 }
 0xf78   : > { %v11730_v13 = vpop.permute.xlu0 %4302 }
 0xf79   : > { %v11714_v40 = vpop.permute.xlu1 %4104 }
 0xf7f   : > { %v11704_v43 = vpop.permute.xlu2 %4106 }
 0xf81   : > { %v11720_v37 = vpop.permute.xlu1 %4220 }
 0xf87   : > { %v11708_v26 = vpop.permute.xlu2 %4222 }
 0xf89   : > { %v11726_v7 = vpop.permute.xlu1 %4423 }
 0xf8f   : > { %v11712_v24 = vpop.permute.xlu2 %4425 }
 0xf97   : > { %v11718_v30 = vpop.permute.xlu2 %4531 }
 0xf98   : > { %15083 = vst [vmem:[#allocation4_spill] sm:$0xff] %v11718_v30 }
 0xf9f   : > { %v11724_v3 = vpop.permute.xlu2 %4537 }
 0xfa0   : > { %15084 = vst [vmem:[#allocation50_spill] sm:$0xff] %v11724_v3 }
 0xfa7   : > { %v11728_v59 = vpop.permute.xlu2 %4543 }
 0xfad   : > { %v11732_v61 = vpop.permute.xlu1 %4529  ;;  %v11734_v21 = vpop.permute.xlu0 %4533 }
 0xfae   : > { %15085 = vst [vmem:[#allocation51_spill] sm:$0xff] %v11732_v61 }
 0xfaf   : > { %v4585_v28 = vpop.permute.xlu2 %4584  ;;  %15086 = vst [vmem:[#allocation52_spill] sm:$0xff] %v11734_v21 }
 0xfb0   : > { %v4598_v6 = vmul.f32 %v4585_v28, %v11339_v14 }
 0xfb2   : > { %4625 = vrot.lane.b32.xlu0 %v4598_v6, %s8523_s29 }
 0xfb5   : > { %v11738_v30 = vpop.permute.xlu1 %4535  ;;  %v11740_v12 = vpop.permute.xlu0 %4539 }
 0xfb6   : > { %15087 = vst [vmem:[#allocation53_spill] sm:$0xff] %v11740_v12 }
 0xfba   : > { %4706 = vperm.xlu0 %8279, %v8475_v0  }
 0xfbd   : > { %v11742_v3 = vpop.permute.xlu1 %4541  ;;  %v11746_v61 = vpop.permute.xlu0 %4545 }
 0xfc2   : > { %8280 = vset.pattern.permute.xlu0 %v15088_v17 }
 0xfc3   : > { %3882 = vperm.xlu0 %8280, %v11672_v16  }
 0xfc5   : > { %v4581_v5 = vpop.permute.xlu1 %4580  ;;  %v4589_v6 = vpop.permute.xlu0 %4588 }
 0xfc6   : > { %v4595_v21 = vmul.f32 %v4581_v5, %v11195_v55  ;;  %v4596_v33 = vmul.f32 %v4581_v5, %v11283_v27  ;;  %v4597_v0 = vmul.f32 0.0, %v4581_v5  ;;  %v4601_v12 = vmul.f32 %v4589_v6, %v11447_v53 }
 0xfc7   : > { %v4600_v5 = vmul.f32 0.0, %v4585_v28 }
 0xfc8   : > { %4619 = vrot.lane.b32.xlu2 %v4595_v21, %s8523_s29  ;;  %4621 = vrot.lane.b32.xlu1 %v4596_v33, %s8523_s29  ;;  %v4599_v33 = vmul.f32 %v4585_v28, %v11469_v23  ;;  %v4603_v21 = vmul.f32 0.0, %v4589_v6 }
 0xfcb   : > { %3897 = vperm.xlu0 %8280, %v8478_v60  }
 0xfcd   : > { %v4593_v52 = vpop.permute.xlu1 %4592 }
 0xfce   : > { %v4605_v9 = vmul.f32 %v4593_v52, %v11517_v32 }
 0xfd0   : > { %4623 = vrot.lane.b32.xlu2 %v4597_v0, %s8523_s29  ;;  %8274 = vrot.lane.b32.xlu1 %v11126_v10, %s8524_s30  ;;  %v4602_v10 = vmul.f32 %v4589_v6, %v11474_v22 }
 0xfd3   : > { %4631 = vrot.lane.b32.xlu0 %v4601_v12, %s8523_s29  ;;  %v4604_v12 = vmul.f32 %v4593_v52, %v11528_v63 }
 0xfd8   : > { %4710 = vperm.xlu2 %8278, %v8478_v60   ;;  %4702 = vperm.xlu1 %8281, %v8477_v38  }
 0xfdb   : > { %4639 = vrot.lane.b32.xlu0 %v4605_v9, %s8523_s29  ;;  %v4606_v9 = vmul.f32 0.0, %v4593_v52 }
 0xfe0   : > { %4698 = vperm.xlu2 %8278, %v11672_v16   ;;  %4627 = vrot.lane.b32.xlu1 %v4599_v33, %s8523_s29 }
 0xfe1   : > { %8282 = vset.pattern.permute.xlu1 %v15088_v17 }
 0xfe8   : > { %4629 = vrot.lane.b32.xlu2 %v4600_v5, %s8523_s29  ;;  %4633 = vrot.lane.b32.xlu1 %v4602_v10, %s8523_s29 }
 0xfe9   : > { %8283 = vset.pattern.permute.xlu2 %v15088_v17 }
 0xff0   : > { %4637 = vrot.lane.b32.xlu2 %v4604_v12, %s8523_s29  ;;  %4641 = vrot.lane.b32.xlu1 %v4606_v9, %s8523_s29 }
 0xff8   : > { %4635 = vrot.lane.b32.xlu2 %v4603_v21, %s8523_s29 }
0x1022   : > { %v11771_v16 = vpop.permute.xlu2 %4619 }
0x1023   : > { %15089 = vst [vmem:[#allocation54_spill] sm:$0xff] %v11771_v16 }
0x1024   : > { %v11777_v33 = vpop.permute.xlu0 %4625 }
0x1025   : > { %15092 = vst [vmem:[#allocation57_spill] sm:$0xff] %v11777_v33 }
0x102a   : > { %v11775_v38 = vpop.permute.xlu2 %4623 }
0x102b   : > { %15091 = vst [vmem:[#allocation56_spill] sm:$0xff] %v11775_v38 }
0x102c   : > { %v4707_v33 = vpop.permute.xlu0 %4706 }
0x1032   : > { %v4711_v10 = vpop.permute.xlu2 %4710 }
0x103a   : > { %v11773_v28 = vpop.permute.xlu1 %4621 }
0x103b   : > { %15090 = vst [vmem:[#allocation55_spill] sm:$0xff] %v11773_v28 }
0x1042   : > { %v8275_v60 = vpop.permute.xlu1 %8274 }
0x1043   : > { %v8277_v0 = vunpack.i.h.bf16 %v8275_v60  ;;  %v11779_v5 = vunpack.i.l.bf16 %v8275_v60 }
0x1045   : > { %15093 = vst [vmem:[#allocation58_spill] sm:$0xff] %v11779_v5  ;;  %v11781_v52 = vmul.f32 0.0, %v8277_v0  ;;  %v11785_v6 = vsel %vm4680_vm3, %v11779_v5, %v8277_v0  ;;  %v4694_v12 = vmul.f32 %v11779_v5, %v11528_v63  ;;  %v4691_v0 = vmul.f32 %v11779_v5, %v11447_v53 }
0x1046   : > { %15095 = vst [vmem:[#allocation60_spill] sm:$0xff] %v11785_v6  ;;  %v4695_v21 = vmul.f32 %v11785_v6, %v11517_v32  ;;  %v4692_v38 = vmul.f32 %v11785_v6, %v11474_v22 }
0x1047   : > { %15094 = vst [vmem:[#allocation59_spill] sm:$0xff] %v11781_v52  ;;  %v4724_v9 = vmul.f32 %v4711_v10, %v11781_v52  ;;  %v4722_v17 = vmul.f32 %v4711_v10, %v4694_v12  ;;  %v4721_v16 = vmul.f32 %v4707_v33, %v11781_v52  ;;  %v4719_v28 = vmul.f32 %v4707_v33, %v4691_v0 }
0x1048   : > { %v4723_v60 = vmul.f32 %v4711_v10, %v4695_v21  ;;  %v4720_v12 = vmul.f32 %v4707_v33, %v4692_v38  ;;  %v4688_v10 = vmul.f32 %v11779_v5, %v11339_v14  ;;  %v7870_v21 = vld [vmem:[%s14505_s3 + $0x78] sm:$0xff]  ;;  %v4689_v38 = vmul.f32 %v11785_v6, %v11469_v23 }
0x1049   : > { %4759 = vrot.lane.b32.xlu2 %v4724_v9, %s8508_s20  ;;  %4755 = vrot.lane.b32.xlu0 %v4722_v17, %s8508_s20 }
0x104a   : > { %4757 = vrot.lane.b32.xlu1 %v4723_v60, %s8508_s20  ;;  %v4703_v17 = vpop.permute.xlu1 %4702  ;;  %v7869_v60 = vld [vmem:[%s14505_s3 + $0x70] sm:$0xff] }
0x104b   : > { %v4716_v9 = vmul.f32 %v4703_v17, %v4688_v10  ;;  %v4718_v33 = vmul.f32 %v4703_v17, %v11781_v52  ;;  %v4686_v10 = vmul.f32 %v11785_v6, %v11283_v27 }
0x1051   : > { %4753 = vrot.lane.b32.xlu2 %v4721_v16, %s8508_s20  ;;  %4749 = vrot.lane.b32.xlu0 %v4719_v28, %s8508_s20  ;;  %v4685_v16 = vmul.f32 %v11779_v5, %v11195_v55  ;;  %v4699_v28 = vpop.permute.xlu2 %4698 }
0x1052   : > { %4751 = vrot.lane.b32.xlu1 %v4720_v12, %s8508_s20  ;;  %v4717_v12 = vmul.f32 %v4703_v17, %v4689_v38  ;;  %v7889_v17 = vld [vmem:[%s14507_s5 + $0x30] sm:$0xff]  ;;  %v7908_v38 = vld [vmem:[%s14504_s2 + $0x88] sm:$0xff] }
0x1053   : > { %v4713_v0 = vmul.f32 %v4699_v28, %v4685_v16  ;;  %v7867_v16 = vld [vmem:[%s14505_s3 + $0x60] sm:$0xff] }
0x1059   : > { %4743 = vrot.lane.b32.xlu2 %v4716_v9, %s8508_s20  ;;  %4810 = vperm.xlu0 %8280, %v7870_v21   ;;  %v4715_v9 = vmul.f32 %v4699_v28, %v11781_v52  ;;  %v7868_v21 = vld [vmem:[%s14505_s3 + $0x68] sm:$0xff]  ;;  %v11866_v6 = vpop.permute.xlu2 %4629 }
0x105a   : > { %4805 = vperm.xlu1 %8282, %v7869_v60   ;;  %v4714_v60 = vmul.f32 %v4699_v28, %v4686_v10  ;;  %v7907_v28 = vld [vmem:[%s14504_s2 + $0x80] sm:$0xff]  ;;  %v8230_v10 = vunpack.i.l.bf16 %v11120_v54  ;;  %15101 = vst [vmem:[#allocation66_spill] sm:$0xff] %v11866_v6 }
0x1061   : > { %4747 = vrot.lane.b32.xlu2 %v4718_v33, %s8508_s20  ;;  %4737 = vrot.lane.b32.xlu0 %v4713_v0, %s8508_s20  ;;  %v11843_v33 = vpop.permute.xlu0 %3882 }
0x1062   : > { %4745 = vrot.lane.b32.xlu1 %v4717_v12, %s8508_s20  ;;  %v11845_v12 = vpop.permute.xlu1 %4627 }
0x1063   : > { %15096 = vst [vmem:[#allocation61_spill] sm:$0xff] %v11845_v12 }
0x1069   : > { %4741 = vrot.lane.b32.xlu2 %v4715_v9, %s8508_s20  ;;  %4800 = vperm.xlu0 %8280, %v7868_v21   ;;  %v3898_v0 = vpop.permute.xlu0 %3897  ;;  %v11849_v9 = vunpack.i.h.bf16 %v11120_v54 }
0x106a   : > { %4739 = vrot.lane.b32.xlu1 %v4714_v60, %s8508_s20  ;;  %v11853_v60 = vmul.f32 0.0, %v8230_v10 }
0x106b   : > { %15097 = vst [vmem:[#allocation62_spill] sm:$0xff] %v11849_v9 }
0x106c   : > { %15098 = vst [vmem:[#allocation63_spill] sm:$0xff] %v11853_v60  ;;  %v3909_v54 = vmul.f32 %v3898_v0, %v11853_v60 }
0x1071   : > { %5361 = vperm.xlu2 %8283, %v7889_v17   ;;  %8290 = vset.pattern.permute.xlu0 %v15024_v46  ;;  %v11851_v21 = vpop.permute.xlu0 %4631  ;;  %v11857_v17 = vsel %vm14728_vm13, %v8230_v10, %v11849_v9 }
0x1072   : > { %4795 = vperm.xlu1 %8282, %v7867_v16   ;;  %5962 = vperm.xlu0 %8290, %v7908_v38   ;;  %15099 = vst [vmem:[#allocation64_spill] sm:$0xff] %v11857_v17  ;;  %v11859_v16 = vpop.permute.xlu1 %4633 }
0x1073   : > { %15100 = vst [vmem:[#allocation65_spill] sm:$0xff] %v11859_v16 }
0x1079   : > { %5920 = vperm.xlu2 %8283, %v7908_v38   ;;  %v3878_v38 = vmul.f32 %v11857_v17, %v11528_v63  ;;  %v4640_v16 = vpop.permute.xlu0 %4639 }
0x107a   : > { %5915 = vperm.xlu1 %8282, %v7907_v28   ;;  %8314 = vset.pattern.permute.xlu0 %v15025_v62  ;;  %v3995_v62 = vsel %vm3988_vm2, %v11185_v8, %v11706_v19 }
0x107b   : > { %v3910_v5 = vmul.f32 %v3898_v0, %v3878_v38  ;;  %v4018_v10 = vadd.f32 %v3995_v62, %v3909_v54  ;;  %v4642_v38 = vpop.permute.xlu1 %4641  ;;  %v4436_v54 = vsel %vm4429_vm15, %v11726_v7, %v11712_v24 }
0x1081   : > { %8289 = vset.pattern.permute.xlu2 %v15024_v46  ;;  %v3996_v46 = vsel %vm3988_vm2, %v11706_v19, %v11696_v44 }
0x1082   : > { %5958 = vperm.xlu2 %8289, %v7907_v28   ;;  %v3879_v28 = vmul.f32 %v11849_v9, %v11517_v32  ;;  %v4019_v12 = vadd.f32 %v3996_v46, %v3910_v5  ;;  %v4114_v32 = vsel %vm2639_vm8, %v11235_v36, %v11714_v40  ;;  %v4230_v46 = vsel %vm598_vm6, %v11341_v25, %v11720_v37 }
0x1083   : > { %v4137_v6 = vadd.f32 %v4114_v32, %v4018_v10  ;;  %v4231_v36 = vsel %vm598_vm6, %v11720_v37, %v11708_v26  ;;  %v3993_v37 = vsel %vm3988_vm2, %v11183_v47, %v11675_v57 }
0x1084   : > { %v3911_v52 = vmul.f32 %v3898_v0, %v3879_v28  ;;  %v4115_v0 = vsel %vm2639_vm8, %v11714_v40, %v11704_v43  ;;  %v4638_v28 = vpop.permute.xlu2 %4637 }
0x1085   : > { %v4138_v8 = vadd.f32 %v4115_v0, %v4019_v12 }
0x1086   : > { %v4020_v63 = vadd.f32 %v11696_v44, %v3911_v52  ;;  %v4253_v44 = vadd.f32 %v4230_v46, %v4137_v6 }
0x1087   : > { %v4254_v19 = vadd.f32 %v4231_v36, %v4138_v8  ;;  %v4228_v8 = vsel %vm598_vm6, %v11330_v42, %v11698_v4  ;;  %v4651_v42 = vsel %vm4643_vm0, %v4640_v16, %v4642_v38 }
0x1088   : > { %v4139_v62 = vadd.f32 %v11704_v43, %v4020_v63  ;;  %v4329_v40 = vadd.f32 %v11700_v49, %v4253_v44  ;;  %v4307_v43 = vsel %vm14728_vm13, %v11700_v49, %v11730_v13  ;;  %v4112_v49 = vsel %vm2639_vm8, %v11233_v29, %v11694_v18 }
0x1089   : > { %v4330_v52 = vadd.f32 %v4307_v43, %v4254_v19  ;;  %v3872_v29 = vmul.f32 %v11857_v17, %v11339_v14  ;;  %v4650_v44 = vsel %vm4643_vm0, %v4638_v28, %v4640_v16  ;;  %v3873_v43 = vmul.f32 %v11849_v9, %v11469_v23  ;;  %v15103_v16 = vld [vmem:[#allocation31_spill] sm:$0xff]  ;;  %v15119_v23 = vld [vmem:[#allocation25_spill] sm:$0xff] }
0x108a   : > { %v4255_v32 = vadd.f32 %v11708_v26, %v4139_v62  ;;  %v3906_v26 = vmul.f32 %v11129_v39, %v11853_v60  ;;  %v4459_v6 = vadd.f32 %v11726_v7, %v4329_v40  ;;  %v3991_v38 = vsel %vm3988_vm2, %v15103_v16, %v11600_v15 }
0x108b   : > { %v4460_v47 = vadd.f32 %v4436_v54, %v4330_v52  ;;  %v3875_v54 = vmul.f32 %v11857_v17, %v11447_v53 }
0x108c   : > { %v11893_v12 = vpop.permute.xlu2 %4635  ;;  %v4331_v25 = vadd.f32 %v11730_v13, %v4255_v32  ;;  %v4437_v13 = vsel %vm4429_vm15, %v11712_v24, %v11616_v1  ;;  %v4015_v10 = vadd.f32 %v3993_v37, %v3906_v26  ;;  %v4576_v7 = vadd.f32 %v11742_v3, %v4459_v6  ;;  %v15102_v37 = vld [vmem:[#allocation7_spill] sm:$0xff] }
0x108d   : > { %v4554_v1 = vsel %vm2875_vm1, %v11728_v59, %v11746_v61  ;;  %v4553_v24 = vsel %vm2875_vm1, %v11742_v3, %v11728_v59  ;;  %v3903_v59 = vmul.f32 %v15102_v37, %v11853_v60 }
0x108e   : > { %v4461_v0 = vadd.f32 %v4437_v13, %v4331_v25  ;;  %v4134_v46 = vadd.f32 %v4112_v49, %v4015_v10  ;;  %v4577_v19 = vadd.f32 %v4553_v24, %v4460_v47  ;;  %v4673_v3 = vadd.f32 %v4638_v28, %v4576_v7  ;;  %v15104_v28 = vld [vmem:[#allocation45_spill] sm:$0xff] }
0x108f   : > { %v3904_v49 = vmul.f32 %v15102_v37, %v3872_v29  ;;  %v11950_v29 = vmul.f32 %v11849_v9, %v11283_v27  ;;  %v11954_v7 = vmul.f32 %v11857_v17, %v11195_v55  ;;  %v15120_v55 = vld [vmem:[#allocation49_spill] sm:$0xff]  ;;  %v15126_v17 = vld [vmem:[#allocation40_spill] sm:$0xff] }
0x1090   : > { %v4250_v36 = vadd.f32 %v4228_v8, %v4134_v46  ;;  %v4578_v32 = vadd.f32 %v4554_v1, %v4461_v0  ;;  %v4674_v26 = vadd.f32 %v4650_v44, %v4577_v19  ;;  %v4110_v8 = vsel %vm2639_vm8, %v15104_v28, %v11622_v56 }
0x1091   : > { %v3905_v46 = vmul.f32 %v15102_v37, %v3873_v43 }
0x1092   : > { %v4675_v6 = vadd.f32 %v4651_v42, %v4578_v32  ;;  %v4326_v13 = vadd.f32 %v11722_v58, %v4250_v36  ;;  %v15105_v36 = vld [vmem:[#allocation6_spill] sm:$0xff]  ;;  %v4012_v32 = vadd.f32 %v3991_v38, %v3903_v59  ;;  %v15111_v38 = vld [vmem:[#allocation19_spill] sm:$0xff] }
0x1093   : > { %v11966_v19 = vsel %vm3988_vm2, %v15105_v36, %v11547_v2 }
0x1094   : > { %v4456_v24 = vadd.f32 %v11702_v34, %v4326_v13  ;;  %v4131_v16 = vadd.f32 %v4110_v8, %v4012_v32 }
0x10a3   : > { %v4760_v40 = vpop.permute.xlu2 %4759 }
0x10bb   : > { %v4756_v5 = vpop.permute.xlu0 %4755 }
0x10bc   : > { %v4758_v63 = vpop.permute.xlu1 %4757  ;;  %v4790_v10 = vadd.f32 %v4756_v5, %v4673_v3  ;;  %v4573_v3 = vadd.f32 %v11738_v30, %v4456_v24  ;;  %v4227_v24 = vsel %vm598_vm6, %v11643_v51, %v11638_v35 }
0x10bd   : > { %v4767_v52 = vsel %vm2514_vm14, %v4756_v5, %v4758_v63  ;;  %v4768_v25 = vsel %vm2514_vm14, %v4758_v63, %v4760_v40  ;;  %v3876_v63 = vmul.f32 %v11849_v9, %v11474_v22  ;;  %v3907_v40 = vmul.f32 %v11129_v39, %v3875_v54  ;;  %v15127_v9 = vld [vmem:[#allocation43_spill] sm:$0xff] }
0x10be   : > { %v4791_v47 = vadd.f32 %v4767_v52, %v4674_v26  ;;  %v4792_v0 = vadd.f32 %v4768_v25, %v4675_v6  ;;  %v3992_v52 = vsel %vm3988_vm2, %v11600_v15, %v11604_v41  ;;  %v15106_v25 = vld [vmem:[#allocation17_spill] sm:$0xff]  ;;  %v11994_v54 = vsel %vm598_vm6, %v15111_v38, %v11574_v11 }
0x10bf   : > { %v3908_v43 = vmul.f32 %v11129_v39, %v3876_v63  ;;  %v4226_v37 = vsel %vm598_vm6, %v15106_v25, %v11643_v51  ;;  %v15108_v6 = vld [vmem:[#allocation29_spill] sm:$0xff]  ;;  %v4111_v63 = vsel %vm2639_vm8, %v11622_v56, %v11624_v48  ;;  %v4670_v13 = vadd.f32 %v11851_v21, %v4573_v3  ;;  %v15113_v3 = vld [vmem:[#allocation16_spill] sm:$0xff] }
0x10c0   : > { %v11983_v59 = vsel %vm2639_vm8, %v15108_v6, %v11560_v31  ;;  %v4247_v28 = vadd.f32 %v4226_v37, %v4131_v16  ;;  %v12014_v56 = vsel %vm2639_vm8, %v11560_v31, %v11571_v45  ;;  %v12030_v31 = vsel %vm598_vm6, %v11574_v11, %v11578_v50  ;;  %v15112_v37 = vld [vmem:[#allocation27_spill] sm:$0xff] }
0x10c1   : > { %v12035_v51 = vsel %vm4429_vm15, %v15113_v3, %v15112_v37 }
0x10c3   : > { %v11914_v62 = vpop.permute.xlu0 %4749 }
0x10c4   : > { %v11931_v61 = vpop.permute.xlu1 %4751  ;;  %v4787_v36 = vadd.f32 %v11914_v62, %v4670_v13 }
0x10cb   : > { %v4811_v1 = vpop.permute.xlu0 %4810 }
0x10cc   : > { %v11957_v5 = vadd.f32 %v4811_v1, %v4790_v10  ;;  %v11959_v44 = vadd.f32 %v4811_v1, %v4791_v47  ;;  %v11961_v42 = vadd.f32 %v4811_v1, %v4792_v0  ;;  %v12005_v47 = vsel %vm3988_vm2, %v11547_v2, %v11549_v20  ;;  %v12009_v1 = vpop.permute.xlu1 %4805 }
0x10cd   : > { %v4013_v0 = vadd.f32 %v3992_v52, %v3904_v49  ;;  %v4014_v49 = vadd.f32 %v11604_v41, %v3905_v46  ;;  %v12039_v41 = vadd.f32 %v12009_v1, %v4787_v36  ;;  %v15115_v46 = vld [vmem:[#allocation36_spill] sm:$0xff] }
0x10ce   : > { %v11978_v26 = vmul.f32 0.70710677, %v11957_v5  ;;  %v11986_v39 = vmul.f32 0.70710677, %v11959_v44  ;;  %v11989_v15 = vmul.f32 0.70710677, %v11961_v42  ;;  %v4323_v16 = vadd.f32 %v15115_v46, %v4247_v28 }
0x10cf   : > { %v4132_v32 = vadd.f32 %v4111_v63, %v4013_v0  ;;  %15114 = vst [vmem:[#allocation6_spill] sm:$0xff] %v12039_v41  ;;  %v4133_v38 = vadd.f32 %v11624_v48, %v4014_v49  ;;  %v15117_v0 = vld [vmem:[#allocation37_spill] sm:$0xff]  ;;  %v4305_v36 = vsel %vm14728_vm13, %v15115_v46, %v15119_v23  ;;  %v12069_v53 = vmul.f32 0.70710677, %v12039_v41  ;;  %v15124_v46 = vld [vmem:[#allocation8_spill] sm:$0xff] }
0x10d0   : > { %15107 = vst [vmem:[#allocation7_spill] sm:$0xff] %v11978_v26  ;;  %v5209_v10 = vmul.f32 %v11978_v26, %v11978_v26  ;;  %v5249_v8 = vmul.f32 %v11986_v39, %v11986_v39  ;;  %v5289_v25 = vmul.f32 %v11989_v15, %v11989_v15  ;;  %v12058_v48 = vadd.f32 %v15120_v55, %v4323_v16 }
0x10d1   : > { %15109 = vst [vmem:[#allocation31_spill] sm:$0xff] %v11986_v39  ;;  %v4248_v63 = vadd.f32 %v4227_v24, %v4132_v32  ;;  %v4249_v24 = vadd.f32 %v11638_v35, %v4133_v38 }
0x10d2   : > { %15110 = vst [vmem:[#allocation45_spill] sm:$0xff] %v11989_v15  ;;  %v12020_v2 = vmin.f32 %v5209_v10, 16.0  ;;  %v12023_v52 = vmin.f32 %v5249_v8, 16.0  ;;  %v15116_v10 = vld [vmem:[#allocation34_spill] sm:$0xff]  ;;  %v15118_v8 = vld [vmem:[#allocation33_spill] sm:$0xff]  ;;  %v12061_v32 = vmin.f32 %v5289_v25, 16.0  ;;  %v4113_v15 = vsel %vm2639_vm8, %v11694_v18, %v15127_v9 }
0x10d3   : > { %v12047_v11 = vsel %vm4429_vm15, %v15112_v37, %v15116_v10  ;;  %v12052_v27 = vsel %vm2875_vm1, %v15118_v8, %v15117_v0  ;;  %v15121_v37 = vld [vmem:[#allocation47_spill] sm:$0xff]  ;;  %15122 = vst [vmem:[#allocation17_spill] sm:$0xff] %v12069_v53  ;;  %v4324_v35 = vadd.f32 %v4305_v36, %v4248_v63 }
0x10d4   : > { %v5222_v6 = vmul.f32 3.8918573e-05, %v12020_v2  ;;  %v5262_v13 = vmul.f32 3.8918573e-05, %v12023_v52  ;;  %v3994_v10 = vsel %vm3988_vm2, %v11675_v57, %v15121_v37  ;;  %v5211_v14 = vmul.f32 2.1237322e-06, %v12020_v2 }
0x10d5   : > { %v4017_v25 = vadd.f32 %v15121_v37, %v3908_v43  ;;  %v4016_v26 = vadd.f32 %v3994_v10, %v3907_v40  ;;  %v5251_v43 = vmul.f32 2.1237322e-06, %v12023_v52  ;;  %v5302_v36 = vmul.f32 3.8918573e-05, %v12061_v32 }
0x10d6   : > { %v5223_v28 = vadd.f32 0.001143296, %v5222_v6  ;;  %v5263_v49 = vadd.f32 0.001143296, %v5262_v13  ;;  %v15123_v6 = vld [vmem:[#allocation48_spill] sm:$0xff]  ;;  %v15125_v13 = vld [vmem:[#allocation42_spill] sm:$0xff]  ;;  %v4325_v40 = vadd.f32 %v15119_v23, %v4249_v24  ;;  %v3900_v10 = vmul.f32 %v11843_v33, %v11853_v60 }
0x10d7   : > { %v12074_v16 = vsel %vm14728_vm13, %v15124_v46, %v15123_v6  ;;  %v4432_v57 = vsel %vm4429_vm15, %v15120_v55, %v15125_v13  ;;  %v4136_v63 = vadd.f32 %v15127_v9, %v4017_v25  ;;  %v5212_v37 = vadd.f32 0.00028619796, %v5211_v14  ;;  %v15129_v23 = vld [vmem:[#allocation35_spill] sm:$0xff] }
0x10d8   : > { %v5224_v22 = vmul.f32 %v5223_v28, %v12020_v2  ;;  %v5264_v38 = vmul.f32 %v5263_v49, %v12023_v52  ;;  %v4433_v28 = vsel %vm4429_vm15, %v15125_v13, %v15126_v17  ;;  %v15128_v49 = vld [vmem:[#allocation41_spill] sm:$0xff]  ;;  %v5291_v41 = vmul.f32 2.1237322e-06, %v12061_v32 }
0x10d9   : > { %v4229_v55 = vsel %vm598_vm6, %v11698_v4, %v15128_v49  ;;  %v5089_v17 = vmul.f32 %v12069_v53, %v12069_v53  ;;  %v4135_v13 = vadd.f32 %v4113_v15, %v4016_v26  ;;  %v4252_v18 = vadd.f32 %v15128_v49, %v4136_v63 }
0x10da   : > { %v5225_v39 = vadd.f32 0.014752088, %v5224_v22  ;;  %v3902_v22 = vmul.f32 %v11843_v33, %v11950_v29  ;;  %v5265_v9 = vadd.f32 0.014752088, %v5264_v38  ;;  %v3901_v14 = vmul.f32 %v11843_v33, %v11954_v7 }
0x10db   : > { %v12105_v25 = vadd.f32 %v4432_v57, %v4324_v35  ;;  %v4251_v53 = vadd.f32 %v4229_v55, %v4135_v13  ;;  %v5252_v26 = vadd.f32 0.00028619796, %v5251_v43  ;;  %v5303_v15 = vadd.f32 0.001143296, %v5302_v36  ;;  %v15130_v35 = vld [vmem:[#allocation46_spill] sm:$0xff] }
0x10dc   : > { %v5226_v4 = vmul.f32 %v5225_v39, %v12020_v2  ;;  %v12107_v63 = vadd.f32 %v4433_v28, %v4325_v40  ;;  %v5213_v29 = vmul.f32 %v5212_v37, %v12020_v2  ;;  %v5292_v38 = vadd.f32 0.00028619796, %v5291_v41  ;;  %v15131_v55 = vld [vmem:[#allocation38_spill] sm:$0xff] }
0x10dd   : > { %v12110_v49 = vmin.f32 %v5089_v17, 16.0  ;;  %v4306_v24 = vsel %vm14728_vm13, %v11722_v58, %v15129_v23  ;;  %v4328_v33 = vadd.f32 %v15129_v23, %v4252_v18  ;;  %v4011_v7 = vadd.f32 %v11549_v20, %v3902_v22 }
0x10de   : > { %v5266_v39 = vmul.f32 %v5265_v9, %v12023_v52  ;;  %v4434_v57 = vsel %vm4429_vm15, %v11702_v34, %v15130_v35  ;;  %v4009_v28 = vadd.f32 %v11966_v19, %v3900_v10  ;;  %v4010_v41 = vadd.f32 %v12005_v47, %v3901_v14  ;;  %v15132_v19 = vld [vmem:[#allocation3_spill] sm:$0xff] }
0x10df   : > { %v5227_v43 = vadd.f32 0.112945676, %v5226_v4  ;;  %v4327_v36 = vadd.f32 %v4306_v24, %v4251_v53  ;;  %v4435_v58 = vsel %vm4429_vm15, %v15130_v35, %v15131_v55  ;;  %v5253_v37 = vmul.f32 %v5252_v26, %v12023_v52  ;;  %v15133_v26 = vld [vmem:[#allocation52_spill] sm:$0xff]  ;;  %v15137_v35 = vld [vmem:[#allocation53_spill] sm:$0xff] }
0x10e0   : > { %v5304_v20 = vmul.f32 %v5303_v15, %v12061_v32  ;;  %v5214_v17 = vadd.f32 0.0036580483, %v5213_v29  ;;  %v5293_v13 = vmul.f32 %v5292_v38, %v12061_v32  ;;  %v5091_v18 = vmul.f32 2.1237322e-06, %v12110_v49  ;;  %v15134_v15 = vld [vmem:[#allocation4_spill] sm:$0xff]  ;;  %v15135_v38 = vld [vmem:[#allocation50_spill] sm:$0xff] }
0x10e1   : > { %v5102_v34 = vmul.f32 3.8918573e-05, %v12110_v49  ;;  %v12134_v47 = vsel %vm2875_vm1, %v15117_v0, %v15132_v19  ;;  %v4457_v53 = vadd.f32 %v4434_v57, %v4327_v36  ;;  %v4130_v22 = vadd.f32 %v11571_v45, %v4011_v7 }
0x10e2   : > { %v5267_v9 = vadd.f32 0.112945676, %v5266_v39  ;;  %v4458_v40 = vadd.f32 %v4435_v58, %v4328_v33  ;;  %v4128_v10 = vadd.f32 %v11983_v59, %v4009_v28  ;;  %v4129_v14 = vadd.f32 %v12014_v56, %v4010_v41  ;;  %v15136_v59 = vld [vmem:[#allocation51_spill] sm:$0xff] }
0x10e3   : > { %v5228_v4 = vmul.f32 %v5227_v43, %v12020_v2  ;;  %v4550_v29 = vsel %vm2875_vm1, %v15134_v15, %v15133_v26  ;;  %v4551_v0 = vsel %vm2875_vm1, %v11738_v30, %v15135_v38  ;;  %v5254_v23 = vadd.f32 0.0036580483, %v5253_v37  ;;  %v15138_v43 = vld [vmem:[#allocation65_spill] sm:$0xff] }
0x10e4   : > { %v5305_v24 = vadd.f32 0.014752088, %v5304_v20  ;;  %v5215_v45 = vmul.f32 %v5214_v17, %v12020_v2  ;;  %v5294_v7 = vadd.f32 0.0036580483, %v5293_v13  ;;  %v5092_v33 = vadd.f32 0.00028619796, %v5091_v18 }
0x10e5   : > { %v5103_v39 = vadd.f32 0.001143296, %v5102_v34  ;;  %v4549_v56 = vsel %vm2875_vm1, %v15136_v59, %v15134_v15  ;;  %v4552_v57 = vsel %vm2875_vm1, %v15135_v38, %v15137_v35  ;;  %v4246_v28 = vadd.f32 %v11578_v50, %v4130_v22 }
0x10e6   : > { %v5268_v41 = vmul.f32 %v5267_v9, %v12023_v52  ;;  %v4245_v30 = vadd.f32 %v12030_v31, %v4129_v14  ;;  %v4648_v36 = vsel %vm4643_vm0, %v11851_v21, %v15138_v43  ;;  %v5229_v55 = vadd.f32 0.4994258, %v5228_v4 }
0x10e7   : > { %v4244_v58 = vadd.f32 %v11994_v54, %v4128_v10  ;;  %v4574_v37 = vadd.f32 %v4551_v0, %v4457_v53  ;;  %v4765_v20 = vsel %vm2514_vm14, %v11914_v62, %v11931_v61  ;;  %v5255_v17 = vmul.f32 %v5254_v23, %v12023_v52  ;;  %v4754_v53 = vpop.permute.xlu2 %4753 }
0x10e8   : > { %v5306_v50 = vmul.f32 %v5305_v24, %v12061_v32  ;;  %v5216_v13 = vadd.f32 0.05243302, %v5215_v45  ;;  %v5295_v18 = vmul.f32 %v5294_v7, %v12061_v32  ;;  %v5093_v31 = vmul.f32 %v5092_v33, %v12110_v49 }
0x10e9   : > { %v5104_v34 = vmul.f32 %v5103_v39, %v12110_v49  ;;  %v4575_v21 = vadd.f32 %v4552_v57, %v4458_v40  ;;  %v4322_v19 = vadd.f32 %v15123_v6, %v4246_v28  ;;  %v4671_v54 = vadd.f32 %v4648_v36, %v4574_v37  ;;  %v15141_v36 = vld [vmem:[#allocation55_spill] sm:$0xff]  ;;  %v15143_v37 = vld [vmem:[#allocation61_spill] sm:$0xff] }
0x10ea   : > { %v5269_v22 = vadd.f32 0.4994258, %v5268_v41  ;;  %v4321_v9 = vadd.f32 %v12074_v16, %v4245_v30  ;;  %v4649_v62 = vsel %vm4643_vm0, %v15138_v43, %v11893_v12  ;;  %v5230_v10 = vmul.f32 %v5229_v55, %v12020_v2  ;;  %v15142_v55 = vld [vmem:[#allocation54_spill] sm:$0xff] }
0x10eb   : > { %v4320_v14 = vadd.f32 %v15124_v46, %v4244_v58  ;;  %v4766_v4 = vsel %vm2514_vm14, %v11931_v61, %v4754_v53  ;;  %v4788_v26 = vadd.f32 %v4765_v20, %v4671_v54  ;;  %v5256_v40 = vadd.f32 0.05243302, %v5255_v17 }
0x10ec   : > { %v5307_v15 = vadd.f32 0.112945676, %v5306_v50  ;;  %v5217_v6 = vmul.f32 %v5216_v13, %v12020_v2  ;;  %v5296_v38 = vadd.f32 0.05243302, %v5295_v18  ;;  %v5094_v0 = vadd.f32 0.0036580483, %v5093_v31  ;;  %v12215_v31 = vpop.permute.xlu0 %4737 }
0x10ed   : > { %v5105_v23 = vadd.f32 0.014752088, %v5104_v34  ;;  %v4570_v16 = vadd.f32 %v15136_v59, %v12058_v48  ;;  %v4672_v24 = vadd.f32 %v4649_v62, %v4575_v21  ;;  %v5270_v12 = vmul.f32 %v5269_v22, %v12023_v52  ;;  %v15145_v34 = vld [vmem:[#allocation56_spill] sm:$0xff]  ;;  %v15146_v22 = vld [vmem:[#allocation66_spill] sm:$0xff] }
0x10ee   : > { %v12182_v45 = vadd.f32 %v12009_v1, %v4788_v26  ;;  %v4572_v46 = vadd.f32 %v4550_v29, %v12107_v63  ;;  %v4452_v61 = vadd.f32 %v12047_v11, %v4322_v19  ;;  %v4451_v7 = vadd.f32 %v12035_v51, %v4321_v9 }
0x10ef   : > { %v12187_v33 = vadd.f32 1.0, %v5230_v10  ;;  %v4789_v39 = vadd.f32 %v4766_v4, %v4672_v24  ;;  %v5257_v35 = vmul.f32 %v5256_v40, %v12023_v52  ;;  %v5308_v57 = vmul.f32 %v5307_v15, %v12061_v32  ;;  %v4744_v20 = vpop.permute.xlu2 %4743 }
0x10f0   : > { %15139 = vst [vmem:[#allocation29_spill] sm:$0xff] %v12182_v45  ;;  %v4450_v48 = vadd.f32 %v15113_v3, %v4320_v14  ;;  %v5218_v59 = vadd.f32 0.18741608, %v5217_v6  ;;  %v5297_v28 = vmul.f32 %v5296_v38, %v12061_v32  ;;  %v5095_v41 = vmul.f32 %v5094_v0, %v12110_v49 }
0x10f1   : > { %v5106_v63 = vmul.f32 %v5105_v23, %v12110_v49  ;;  %v4571_v11 = vadd.f32 %v4549_v56, %v12105_v25  ;;  %v12196_v29 = vadd.f32 1.0, %v5270_v12  ;;  %v12199_v51 = vadd.f32 %v12009_v1, %v4789_v39  ;;  %v15144_v25 = vld [vmem:[#allocation57_spill] sm:$0xff]  ;;  %v4746_v39 = vpop.permute.xlu1 %4745 }
0x10f2   : > { %v12202_v30 = vmul.f32 0.70710677, %v12182_v45  ;;  %v4569_v43 = vadd.f32 %v12134_v47, %v4452_v61  ;;  %v4568_v3 = vadd.f32 %v12052_v27, %v4451_v7  ;;  %v4644_v58 = vsel %vm4643_vm0, %v15142_v55, %v15141_v36 }
0x10f3   : > { %15140 = vst [vmem:[#allocation19_spill] sm:$0xff] %v12199_v51  ;;  %8403 = vrcp.f32 %v12187_v33  ;;  %v4646_v56 = vsel %vm4643_vm0, %v15144_v25, %v15143_v37  ;;  %v5258_v1 = vadd.f32 0.18741608, %v5257_v35  ;;  %v5309_v17 = vadd.f32 0.4994258, %v5308_v57 }
0x10f4   : > { %v4567_v50 = vadd.f32 %v15118_v8, %v4450_v48  ;;  %v5219_v13 = vmul.f32 %v5218_v59, %v12020_v2  ;;  %v5298_v47 = vadd.f32 0.18741608, %v5297_v28  ;;  %v5096_v18 = vadd.f32 0.05243302, %v5095_v41 }
0x10f5   : > { %v5107_v27 = vadd.f32 0.112945676, %v5106_v63  ;;  %v4645_v21 = vsel %vm4643_vm0, %v15141_v36, %v15145_v34  ;;  %8405 = vrcp.f32 %v12196_v29  ;;  %v12222_v19 = vmul.f32 0.70710677, %v12199_v51 }
0x10f6   : > { %v5129_v54 = vmul.f32 %v12202_v30, %v12202_v30  ;;  %v4667_v8 = vadd.f32 %v15144_v25, %v4570_v16  ;;  %v12227_v2 = vadd.f32 %v4644_v58, %v4568_v3  ;;  %v12229_v53 = vadd.f32 %v4645_v21, %v4569_v43 }
0x10f7   : > { %v4647_v9 = vsel %vm4643_vm0, %v15143_v37, %v15146_v22  ;;  %v4668_v62 = vadd.f32 %v4646_v56, %v4571_v11  ;;  %v5259_v10 = vmul.f32 %v5258_v1, %v12023_v52  ;;  %v5310_v14 = vmul.f32 %v5309_v17, %v12061_v32  ;;  %v4748_v63 = vpop.permute.xlu2 %4747  ;;  %v4801_v56 = vpop.permute.xlu0 %4800  ;;  %v15149_v17 = vld [vmem:[#allocation31_spill] sm:$0xff] }
0x10f8   : > { %v4664_v4 = vadd.f32 %v15142_v55, %v4567_v50  ;;  %v5220_v40 = vadd.f32 1.1283791, %v5219_v13  ;;  %v5299_v15 = vmul.f32 %v5298_v47, %v12061_v32  ;;  %v5097_v6 = vmul.f32 %v5096_v18, %v12110_v49  ;;  %v15147_v32 = vld [vmem:[#allocation6_spill] sm:$0xff]  ;;  %v15150_v47 = vld [vmem:[#allocation45_spill] sm:$0xff] }
0x10f9   : > { %v12237_v26 = vpop.eup %8403  ;;  %v5108_v38 = vmul.f32 %v5107_v27, %v12110_v49  ;;  %v4669_v0 = vadd.f32 %v4647_v9, %v4572_v46  ;;  %v4784_v23 = vadd.f32 %v4744_v20, %v4667_v8  ;;  %v12242_v16 = vmin.f32 %v5129_v54, 16.0 }
0x10fa   : > { %v5169_v52 = vmul.f32 %v12222_v19, %v12222_v19  ;;  %v12247_v24 = vmul.f32 0.5, %v11957_v5  ;;  %v12250_v12 = vmul.f32 0.5, %v11959_v44  ;;  %v12253_v61 = vmul.f32 0.5, %v11961_v42  ;;  %v15148_v44 = vld [vmem:[#allocation7_spill] sm:$0xff] }
0x10fb   : > { %v12256_v7 = vmul.f32 0.5, %v15147_v32  ;;  %v12258_v46 = vpop.eup %8405  ;;  %v5233_v35 = vmul.f32 %v12237_v26, %v12187_v33  ;;  %v5260_v57 = vadd.f32 1.1283791, %v5259_v10  ;;  %v12262_v48 = vadd.f32 1.0, %v5310_v14 }
0x10fc   : > { %v12265_v5 = vadd.f32 %v12215_v31, %v4664_v4  ;;  %v12268_v59 = vmul.f32 %v5220_v40, %v15148_v44  ;;  %v5300_v42 = vadd.f32 1.1283791, %v5299_v15  ;;  %v5098_v28 = vadd.f32 0.18741608, %v5097_v6 }
0x10fd   : > { %v5109_v41 = vadd.f32 0.4994258, %v5108_v38  ;;  %v5241_v11 = vand.u32 2147483647, %v12187_v33  ;;  %v5142_v43 = vmul.f32 3.8918573e-05, %v12242_v16  ;;  %v4763_v36 = vsel %vm2514_vm14, %v4744_v20, %v4746_v39 }
0x10fe   : > { %v12272_v3 = vmin.f32 %v5169_v52, 16.0  ;;  %v5243_v55 = vand.u32 2147483648, %v12187_v33  ;;  %v5273_v58 = vmul.f32 %v12258_v46, %v12196_v29  ;;  %v5131_v37 = vmul.f32 2.1237322e-06, %v12242_v16 }
0x10ff   : > { %v4764_v25 = vsel %vm2514_vm14, %v4746_v39, %v4748_v63  ;;  %v5234_v1 = vsub.f32 1.0, %v5233_v35  ;;  %v12281_v50 = vmul.f32 %v5260_v57, %v15149_v17  ;;  %v5281_v13 = vand.u32 2147483647, %v12196_v29 }
0x1100   : > { %8407 = vrcp.f32 %v12262_v48  ;;  %v5283_v20 = vand.u32 2147483648, %v12196_v29  ;;  %v12287_v18 = vmul.f32 %v5300_v42, %v15150_v47  ;;  %v5110_v27 = vmul.f32 %v5109_v41, %v12110_v49 }
0x1101   : > { %v4785_v34 = vadd.f32 %v4763_v36, %v4668_v62  ;;  %vm5237_vm4 = vweird.f32 %v12187_v33  ;;  %v5143_v21 = vadd.f32 0.001143296, %v5142_v43  ;;  %v5182_v54 = vmul.f32 3.8918573e-05, %v12272_v3 }
0x1102   : > { %v4786_v8 = vadd.f32 %v4764_v25, %v4669_v0  ;;  %v12292_v22 = vadd.f32 %v4801_v56, %v4784_v23  ;;  %v5244_v9 = vor.u32 1.1754944e-38, %v5243_v55  ;;  %v5274_v10 = vsub.f32 1.0, %v5273_v58 }
0x1103   : > { %v5132_v14 = vadd.f32 0.00028619796, %v5131_v37  ;;  %v12294_v4 = vadd.f32 %v4801_v56, %v4785_v34  ;;  %v5235_v40 = vmul.f32 %v12237_v26, %v5234_v1  ;;  %v5099_v15 = vmul.f32 %v5098_v28, %v12110_v49 }
0x1104   : > { %v12298_v6 = vadd.f32 %v4801_v56, %v4786_v8  ;;  %v12301_v62 = vmul.f32 0.70710677, %v12292_v22  ;;  %v12303_v38 = vor.u32 1.1754944e-38, %v5283_v20  ;;  %v5321_v0 = vand.u32 2147483647, %v12262_v48  ;;  %v12345_v20 = vpop.permute.xlu1 %4739 }
0x1105   : > { %v5323_v23 = vand.u32 2147483648, %v12262_v48  ;;  %v12308_v52 = vmul.f32 0.70710677, %v12294_v4  ;;  %vm12312_vm5 = vcmp.eq.f32.partialorder %v5241_v11, 8.507059e+37  ;;  %vm5277_vm7 = vweird.f32 %v12196_v29 }
0x1106   : > { %v12310_v32 = vpop.eup %8407  ;;  %v12317_v49 = vadd.f32 1.0, %v5110_v27  ;;  %v5144_v35 = vmul.f32 %v5143_v21, %v12242_v16  ;;  %v5183_v57 = vadd.f32 0.001143296, %v5182_v54  ;;  %v12321_v44 = vmul.f32 0.70710677, %v12298_v6 }
0x1107   : > { %v5275_v42 = vmul.f32 %v12258_v46, %v5274_v10  ;;  %v5133_v28 = vmul.f32 %v5132_v14, %v12242_v16  ;;  %v4969_v41 = vmul.f32 %v12301_v62, %v12301_v62  ;;  %v5009_v63 = vmul.f32 %v12308_v52, %v12308_v52 }
0x1108   : > { %v5236_v11 = vadd.f32 %v12237_v26, %v5235_v40  ;;  %vm5238_vm10 = vweird.f32 %v12237_v26  ;;  %v5100_v43 = vadd.f32 1.1283791, %v5099_v15  ;;  %v5049_v36 = vmul.f32 %v12321_v44, %v12321_v44  ;;  %v15157_v15 = vld [vmem:[#allocation17_spill] sm:$0xff] }
0x1109   : > { %v5313_v55 = vmul.f32 %v12310_v32, %v12262_v48  ;;  %v12335_v58 = vor.u32 1.1754944e-38, %v5323_v23  ;;  %v12337_v37 = vmin.f32 %v4969_v41, 16.0  ;;  %v12339_v25 = vmin.f32 %v5009_v63, 16.0  ;;  %vm12349_vm11 = vmor %vm5237_vm4, %vm5238_vm10 }
0x110a   : > { %8409 = vrcp.f32 %v12317_v49  ;;  %v5145_v56 = vadd.f32 0.014752088, %v5144_v35  ;;  %v5184_v1 = vmul.f32 %v5183_v57, %v12272_v3  ;;  %v12343_v17 = vmin.f32 %v5049_v36, 16.0 }
0x110b   : > { %v5276_v27 = vadd.f32 %v12258_v46, %v5275_v42  ;;  %vm5278_vm12 = vweird.f32 %v12258_v46  ;;  %vm12355_vm13 = vcmp.eq.f32.partialorder %v5281_v13, 8.507059e+37  ;;  %v5123_v21 = vand.u32 2147483648, %v12317_v49 }
0x110c   : > { %v5134_v54 = vadd.f32 0.0036580483, %v5133_v28  ;;  %v5240_v8 = vsel %vm12349_vm11, %v12237_v26, %v5236_v11  ;;  %v4982_v33 = vmul.f32 3.8918573e-05, %v12337_v37  ;;  %v5011_v10 = vmul.f32 2.1237322e-06, %v12339_v25  ;;  %vm12379_vm10 = vmor %vm5277_vm7, %vm5278_vm12 }
0x110d   : > { %v5022_v14 = vmul.f32 3.8918573e-05, %v12339_v25  ;;  %v5314_v40 = vsub.f32 1.0, %v5313_v55  ;;  %v12367_v23 = vmul.f32 %v5100_v43, %v15157_v15  ;;  %v5051_v35 = vmul.f32 2.1237322e-06, %v12343_v17 }
0x110e   : > { %vm5318_vm4 = vweird.f32 %v12310_v32  ;;  %v5146_v57 = vmul.f32 %v5145_v56, %v12242_v16  ;;  %v5185_v42 = vadd.f32 0.014752088, %v5184_v1  ;;  %v5012_v26 = vadd.f32 0.00028619796, %v5011_v10 }
0x110f   : > { %v5245_v28 = vsel %vm12312_vm5, %v5244_v9, %v5240_v8  ;;  %v12383_v63 = vor.u32 1.1754944e-38, %v5123_v21  ;;  %v5135_v11 = vmul.f32 %v5134_v54, %v12242_v16  ;;  %v5023_v43 = vadd.f32 0.001143296, %v5022_v14 }
0x1110   : > { %v12386_v36 = vpop.eup %8409  ;;  %v5280_v39 = vsel %vm12379_vm10, %v12258_v46, %v5276_v27  ;;  %vm5317_vm5 = vweird.f32 %v12262_v48  ;;  %v5171_v9 = vmul.f32 2.1237322e-06, %v12272_v3  ;;  %v4983_v29 = vadd.f32 0.001143296, %v4982_v33 }
0x1111   : > { %v5013_v55 = vmul.f32 %v5012_v26, %v12339_v25  ;;  %v5315_v56 = vmul.f32 %v12310_v32, %v5314_v40  ;;  %v5024_v1 = vmul.f32 %v5023_v43, %v12339_v25  ;;  %v5052_v47 = vadd.f32 0.00028619796, %v5051_v35  ;;  %v4796_v26 = vpop.permute.xlu1 %4795 }
0x1112   : > { %v5062_v21 = vmul.f32 3.8918573e-05, %v12343_v17  ;;  %v5246_v54 = vmul.f32 %v5245_v28, %v12268_v59  ;;  %v5147_v8 = vadd.f32 0.112945676, %v5146_v57  ;;  %v5186_v10 = vmul.f32 %v5185_v42, %v12272_v3 }
0x1113   : > { %v5014_v46 = vadd.f32 0.0036580483, %v5013_v55  ;;  %v5113_v27 = vmul.f32 %v12386_v36, %v12317_v49  ;;  %v12401_v14 = vadd.f32 0.05243302, %v5135_v11  ;;  %v5025_v33 = vadd.f32 0.014752088, %v5024_v1 }
0x1114   : > { %v5063_v15 = vadd.f32 0.001143296, %v5062_v21  ;;  %v5285_v40 = vsel %vm12355_vm13, %v12303_v38, %v5280_v39  ;;  %vm12408_vm7 = vcmp.eq.f32.partialorder %v5321_v0, 8.507059e+37  ;;  %v5172_v59 = vadd.f32 0.00028619796, %v5171_v9  ;;  %vm12430_vm13 = vmor %vm5317_vm5, %vm5318_vm4 }
0x1115   : > { %v4984_v57 = vmul.f32 %v4983_v29, %v12337_v37  ;;  %v5053_v42 = vmul.f32 %v5052_v47, %v12343_v17  ;;  %v5316_v28 = vadd.f32 %v12310_v32, %v5315_v56  ;;  %v5015_v41 = vmul.f32 %v5014_v46, %v12339_v25 }
0x1116   : > { %v5026_v11 = vmul.f32 %v5025_v33, %v12339_v25  ;;  %v5064_v38 = vmul.f32 %v5063_v15, %v12343_v17  ;;  %v7884_v34 = vclamps-f32 %v5246_v54, 1.0  ;;  %v5148_v0 = vmul.f32 %v5147_v8, %v12242_v16 }
0x1117   : > { %v5187_v43 = vadd.f32 0.112945676, %v5186_v10  ;;  %v4761_v39 = vsel %vm2514_vm14, %v12215_v31, %v12345_v20  ;;  %v5114_v9 = vsub.f32 1.0, %v5113_v27  ;;  %v12423_v1 = vadd.f32 %v4796_v26, %v12265_v5 }
0x1118   : > { %v5027_v29 = vadd.f32 0.112945676, %v5026_v11  ;;  %v5065_v55 = vadd.f32 0.014752088, %v5064_v38  ;;  %v5286_v56 = vmul.f32 %v5285_v40, %v12281_v50  ;;  %v4985_v47 = vadd.f32 0.014752088, %v4984_v57 }
0x1119   : > { %v5016_v21 = vadd.f32 0.05243302, %v5015_v41  ;;  %v5054_v46 = vadd.f32 0.0036580483, %v5053_v42  ;;  %v5173_v31 = vmul.f32 %v5172_v59, %v12272_v3  ;;  %v4782_v10 = vadd.f32 %v4761_v39, %v12227_v2 }
0x111a   : > { %v5028_v8 = vmul.f32 %v5027_v29, %v12339_v25  ;;  %v5066_v5 = vmul.f32 %v5065_v55, %v12343_v17  ;;  %v5320_v50 = vsel %vm12430_vm13, %v12310_v32, %v5316_v28  ;;  %v5149_v27 = vadd.f32 0.4994258, %v5148_v0  ;;  %v4742_v28 = vpop.permute.xlu2 %4741 }
0x111b   : > { %v5188_v33 = vmul.f32 %v5187_v43, %v12272_v3  ;;  %v4971_v48 = vmul.f32 2.1237322e-06, %v12337_v37  ;;  %v12443_v57 = vadd.f32 %v4796_v26, %v4782_v10  ;;  %v12446_v59 = vmul.f32 0.70710677, %v12423_v1 }
0x111c   : > { %v5029_v15 = vadd.f32 0.4994258, %v5028_v8  ;;  %v5067_v40 = vadd.f32 0.112945676, %v5066_v5  ;;  %v7885_v42 = vclamps-f32 %v5286_v56, 1.0  ;;  %vm5117_vm11 = vweird.f32 %v12317_v49 }
0x111d   : > { %v4986_v2 = vmul.f32 %v4985_v47, %v12337_v37  ;;  %v5017_v41 = vmul.f32 %v5016_v21, %v12339_v25  ;;  %v5055_v32 = vmul.f32 %v5054_v46, %v12343_v17  ;;  %v5325_v11 = vsel %vm12408_vm7, %v12335_v58, %v5320_v50 }
0x111e   : > { %v12455_v38 = vadd.f32 1.0, %v7884_v34  ;;  %v5115_v0 = vmul.f32 %v12386_v36, %v5114_v9  ;;  %v5030_v43 = vmul.f32 %v5029_v15, %v12339_v25  ;;  %v5150_v39 = vmul.f32 %v5149_v27, %v12242_v16 }
0x111f   : > { %v5189_v29 = vadd.f32 0.4994258, %v5188_v33  ;;  %v4972_v55 = vadd.f32 0.00028619796, %v4971_v48  ;;  %v4762_v56 = vsel %vm2514_vm14, %v12345_v20, %v4742_v28  ;;  %v5068_v21 = vmul.f32 %v5067_v40, %v12343_v17 }
0x1120   : > { %v12462_v47 = vadd.f32 1.0, %v5030_v43  ;;  %v12466_v35 = vmul.f32 0.70710677, %v12443_v57  ;;  %v4849_v58 = vmul.f32 %v12446_v59, %v12446_v59  ;;  %vm5118_vm12 = vweird.f32 %v12386_v36 }
0x1121   : > { %v4987_v34 = vadd.f32 0.112945676, %v4986_v2  ;;  %v5018_v9 = vadd.f32 0.18741608, %v5017_v41  ;;  %v5056_v46 = vadd.f32 0.05243302, %v5055_v32  ;;  %v12472_v54 = vmul.f32 %v5325_v11, %v12287_v18  ;;  %vm12498_vm4 = vmor %vm5117_vm11, %vm5118_vm12 }
0x1122   : > { %v5174_v8 = vadd.f32 0.0036580483, %v5173_v31  ;;  %8411 = vrcp.f32 %v12462_v47  ;;  %v4783_v20 = vadd.f32 %v4762_v56, %v12229_v53  ;;  %v12476_v5 = vadd.f32 1.0, %v7885_v42 }
0x1123   : > { %v12479_v10 = vadd.f32 %v12386_v36, %v5115_v0  ;;  %v12481_v50 = vadd.f32 1.0, %v5150_v39  ;;  %v5190_v27 = vmul.f32 %v5189_v29, %v12272_v3  ;;  %v5069_v33 = vadd.f32 0.4994258, %v5068_v21 }
0x1124   : > { %v12484_v48 = vadd.f32 %v4796_v26, %v4783_v20  ;;  %v12486_v15 = vmin.f32 %v4849_v58, 16.0  ;;  %v4889_v18 = vmul.f32 %v12466_v35, %v12466_v35  ;;  %v4973_v31 = vmul.f32 %v4972_v55, %v12337_v37 }
0x1125   : > { %v4988_v53 = vmul.f32 %v4987_v34, %v12337_v37  ;;  %v5019_v40 = vmul.f32 %v5018_v9, %v12339_v25  ;;  %v5057_v42 = vmul.f32 %v5056_v46, %v12343_v17  ;;  %v5070_v2 = vmul.f32 %v5069_v33, %v12343_v17 }
0x1126   : > { %v4851_v41 = vmul.f32 2.1237322e-06, %v12486_v15  ;;  %v4862_v32 = vmul.f32 3.8918573e-05, %v12486_v15  ;;  %v12505_v28 = vmin.f32 %v4889_v18, 16.0  ;;  %8413 = vrcp.f32 %v12481_v50 }
0x1127   : > { %v12514_v0 = vmul.f32 %v5174_v8, %v12272_v3  ;;  %v12516_v39 = vadd.f32 1.0, %v5190_v27  ;;  %v12518_v29 = vadd.f32 1.0, %v5070_v2  ;;  %v12521_v55 = vmul.f32 0.70710677, %v12484_v48 }
0x1128   : > { %v8412_v43 = vpop.eup %8411  ;;  %v4852_v56 = vadd.f32 0.00028619796, %v4851_v41  ;;  %v12523_v21 = vadd.f32 0.0036580483, %v4973_v31  ;;  %v4863_v34 = vadd.f32 0.001143296, %v4862_v32  ;;  %vm5037_vm5 = vweird.f32 %v12462_v47 }
0x1129   : > { %v5033_v58 = vmul.f32 %v8412_v43, %v12462_v47  ;;  %v4891_v9 = vmul.f32 2.1237322e-06, %v12505_v28  ;;  %v4989_v46 = vadd.f32 0.4994258, %v4988_v53  ;;  %v5020_v20 = vadd.f32 1.1283791, %v5019_v40 }
0x112a   : > { %v5058_v8 = vadd.f32 0.18741608, %v5057_v42  ;;  %8415 = vrcp.f32 %v12518_v29  ;;  %v5041_v33 = vand.u32 2147483647, %v12462_v47  ;;  %v4853_v18 = vmul.f32 %v4852_v56, %v12486_v15 }
0x112b   : > { %v5034_v27 = vsub.f32 1.0, %v5033_v58  ;;  %v4864_v2 = vmul.f32 %v4863_v34, %v12486_v15  ;;  %v5043_v31 = vand.u32 2147483648, %v12462_v47  ;;  %v4892_v41 = vadd.f32 0.00028619796, %v4891_v9 }
0x112c   : > { %v4902_v25 = vmul.f32 3.8918573e-05, %v12505_v28  ;;  %v4929_v32 = vmul.f32 %v12521_v55, %v12521_v55  ;;  %v12535_v53 = vpop.eup %8413  ;;  %vm5038_vm10 = vweird.f32 %v8412_v43  ;;  %v4854_v42 = vadd.f32 0.0036580483, %v4853_v18 }
0x112d   : > { %v5035_v40 = vmul.f32 %v8412_v43, %v5034_v27  ;;  %v4865_v58 = vadd.f32 0.014752088, %v4864_v2  ;;  %v4990_v11 = vmul.f32 %v4989_v46, %v12337_v37  ;;  %v5059_v56 = vmul.f32 %v5058_v8, %v12343_v17  ;;  %vm5039_vm7 = vmor %vm5037_vm5, %vm5038_vm10 }
0x112e   : > { %v4893_v34 = vmul.f32 %v4892_v41, %v12505_v28  ;;  %v4903_v13 = vadd.f32 0.001143296, %v4902_v25  ;;  %v5021_v9 = vmul.f32 %v5020_v20, %v12308_v52  ;;  %v5044_v27 = vor.u32 1.1754944e-38, %v5043_v31 }
0x112f   : > { %v5036_v60 = vadd.f32 %v8412_v43, %v5035_v40  ;;  %v4866_v51 = vmul.f32 %v4865_v58, %v12486_v15  ;;  %v4855_v18 = vmul.f32 %v4854_v42, %v12486_v15  ;;  %v12545_v46 = vmin.f32 %v4929_v32, 16.0 }
0x1130   : > { %v8416_v45 = vpop.eup %8415  ;;  %v4904_v2 = vmul.f32 %v4903_v13, %v12505_v28  ;;  %vm5042_vm13 = vcmp.eq.f32.partialorder %v5041_v33, 8.507059e+37  ;;  %v4894_v8 = vadd.f32 0.0036580483, %v4893_v34  ;;  %v12548_v52 = vadd.f32 1.0, %v4990_v11 }
0x1131   : > { %v5040_v17 = vsel %vm5039_vm7, %v8412_v43, %v5036_v60  ;;  %v5073_v25 = vmul.f32 %v8416_v45, %v12518_v29  ;;  %v5060_v47 = vadd.f32 1.1283791, %v5059_v56  ;;  %v4867_v41 = vadd.f32 0.112945676, %v4866_v51 }
0x1132   : > { %v5045_v20 = vsel %vm5042_vm13, %v5044_v27, %v5040_v17  ;;  %v15166_v40 = vand.u32 2147483647, %v12317_v49  ;;  %v5081_v32 = vand.u32 2147483647, %v12518_v29  ;;  %v4905_v60 = vadd.f32 0.014752088, %v4904_v2 }
0x1133   : > { %v5046_v42 = vmul.f32 %v5045_v20, %v5021_v9  ;;  %v5074_v13 = vsub.f32 1.0, %v5073_v25  ;;  %v5083_v43 = vand.u32 2147483648, %v12518_v29  ;;  %v4856_v33 = vadd.f32 0.05243302, %v4855_v18 }
0x1134   : > { %vm12552_vm11 = vcmp.eq.f32.partialorder %v15166_v40, 8.507059e+37  ;;  %v4868_v11 = vmul.f32 %v4867_v41, %v12486_v15  ;;  %v4931_v58 = vmul.f32 2.1237322e-06, %v12545_v46  ;;  %vm5078_vm12 = vweird.f32 %v8416_v45 }
0x1135   : > { %v5075_v56 = vmul.f32 %v8416_v45, %v5074_v13  ;;  %v4895_v51 = vmul.f32 %v4894_v8, %v12505_v28  ;;  %v4906_v49 = vmul.f32 %v4905_v60, %v12505_v28  ;;  %8417 = vrcp.f32 %v12548_v52 }
0x1136   : > { %v5061_v34 = vmul.f32 %v5060_v47, %v12321_v44  ;;  %vm5077_vm10 = vweird.f32 %v12518_v29  ;;  %v4869_v9 = vadd.f32 0.4994258, %v4868_v11  ;;  %v7879_v27 = vclamps-f32 %v5046_v42, 1.0 }
0x1137   : > { %v5076_v2 = vadd.f32 %v8416_v45, %v5075_v56  ;;  %v4907_v18 = vadd.f32 0.112945676, %v4906_v49  ;;  %v4942_v17 = vmul.f32 3.8918573e-05, %v12545_v46  ;;  %vm5079_vm5 = vmor %vm5077_vm10, %vm5078_vm12  ;;  %vm5082_vm7 = vcmp.eq.f32.partialorder %v5081_v32, 8.507059e+37 }
0x1138   : > { %v5084_v25 = vor.u32 1.1754944e-38, %v5083_v43  ;;  %v4857_v20 = vmul.f32 %v4856_v33, %v12486_v15  ;;  %v4870_v8 = vmul.f32 %v4869_v9, %v12486_v15  ;;  %v4896_v40 = vadd.f32 0.05243302, %v4895_v51 }
0x1139   : > { %v5080_v41 = vsel %vm5079_vm5, %v8416_v45, %v5076_v2  ;;  %v4908_v13 = vmul.f32 %v4907_v18, %v12505_v28  ;;  %v4932_v44 = vadd.f32 0.00028619796, %v4931_v58  ;;  %8419 = vrcp.f32 %v12516_v39 }
0x113a   : > { %v4975_v29 = vmul.f32 %v12523_v21, %v12337_v37  ;;  %v5085_v47 = vsel %vm5082_vm7, %v5084_v25, %v5080_v41  ;;  %v12572_v42 = vadd.f32 1.0, %v4870_v8  ;;  %v5333_v32 = vadd.f32 1.0, %v7879_v27 }
0x113b   : > { %v5086_v60 = vmul.f32 %v5085_v47, %v5061_v34  ;;  %v4909_v43 = vadd.f32 0.4994258, %v4908_v13  ;;  %v4943_v11 = vadd.f32 0.001143296, %v4942_v17  ;;  %v12574_v33 = vpop.eup %8417  ;;  %v15169_v45 = vsel %vm12498_vm4, %v12386_v36, %v12479_v10 }
0x113c   : > { %v5125_v58 = vsel %vm12552_vm11, %v12383_v63, %v15169_v45  ;;  %v4829_v21 = vmul.f32 0.5, %v12294_v4  ;;  %v4858_v56 = vadd.f32 0.18741608, %v4857_v20  ;;  %8421 = vrcp.f32 %v12572_v42 }
0x113d   : > { %v7880_v51 = vclamps-f32 %v5086_v60, 1.0  ;;  %v4897_v49 = vmul.f32 %v4896_v40, %v12505_v28  ;;  %v4910_v34 = vmul.f32 %v4909_v43, %v12505_v28  ;;  %v4933_v9 = vmul.f32 %v4932_v44, %v12545_v46 }
0x113e   : > { %v15170_v26 = vclamps-f32 %v12472_v54, 1.0  ;;  %v4830_v36 = vmul.f32 0.5, %v12298_v6  ;;  %v4976_v10 = vadd.f32 0.05243302, %v4975_v29  ;;  %v4944_v63 = vmul.f32 %v4943_v11, %v12545_v46 }
0x113f   : > { %v4993_v4 = vmul.f32 %v12574_v33, %v12548_v52  ;;  %v5334_v31 = vadd.f32 1.0, %v7880_v51  ;;  %v5345_v2 = vmul.f32 %v5333_v32, %v4829_v21  ;;  %v12595_v18 = vadd.f32 1.0, %v4910_v34  ;;  %v12597_v17 = vpop.eup %8419 }
0x1140   : > { %v5340_v27 = vadd.f32 1.0, %v15170_v26  ;;  %v12601_v25 = vmul.f32 %v12455_v38, %v12247_v24  ;;  %v5126_v54 = vmul.f32 %v5125_v58, %v12367_v23  ;;  %v4859_v6 = vmul.f32 %v4858_v56, %v12486_v15 }
0x1141   : > { %v4945_v20 = vadd.f32 0.014752088, %v4944_v63  ;;  %v5346_v8 = vmul.f32 %v5334_v31, %v4830_v36  ;;  %v4898_v41 = vadd.f32 0.18741608, %v4897_v49  ;;  %8423 = vrcp.f32 %v12595_v18 }
0x1142   : > { %v4934_v40 = vadd.f32 0.0036580483, %v4933_v9  ;;  %v8422_v13 = vpop.eup %8421  ;;  %v12608_v44 = vmul.f32 %v12476_v5, %v12250_v12  ;;  %v12611_v29 = vadd.f32 0.05243302, %v12514_v0  ;;  %v4977_v24 = vmul.f32 %v4976_v10, %v12337_v37 }
0x1143   : > { %v4946_v23 = vmul.f32 %v4945_v20, %v12545_v46  ;;  %v12616_v38 = vmul.f32 %v5340_v27, %v12253_v61  ;;  %v4994_v15 = vsub.f32 1.0, %v4993_v4  ;;  %v4873_v47 = vmul.f32 %v8422_v13, %v12572_v42 }
0x1144   : > { %v8297_v60 = vpack.i.bf16 %v5346_v8, %v5345_v2  ;;  %v12621_v32 = vmul.f32 %v12535_v53, %v12481_v50  ;;  %v12625_v12 = vmul.f32 %v12597_v17, %v12516_v39  ;;  %v4860_v5 = vadd.f32 1.1283791, %v4859_v6 }
0x1145   : > { %v4947_v0 = vadd.f32 0.112945676, %v4946_v23  ;;  %v4874_v43 = vsub.f32 1.0, %v4873_v47  ;;  %v4899_v11 = vmul.f32 %v4898_v41, %v12505_v28  ;;  %v4935_v61 = vmul.f32 %v4934_v40, %v12545_v46 }
0x1146   : > { %8298 = vrot.lane.b32.xlu0 %v8297_v60, %s8524_s30  ;;  %v7881_v45 = vclamps-f32 %v5126_v54, 1.0  ;;  %v4978_v58 = vadd.f32 0.18741608, %v4977_v24  ;;  %v4881_v21 = vand.u32 2147483647, %v12572_v42  ;;  %v4883_v56 = vand.u32 2147483648, %v12572_v42 }
0x1147   : > { %v4948_v51 = vmul.f32 %v4947_v0, %v12545_v46  ;;  %v8424_v49 = vpop.eup %8423  ;;  %v4995_v34 = vmul.f32 %v12574_v33, %v4994_v15  ;;  %v4875_v9 = vmul.f32 %v8422_v13, %v4874_v43  ;;  %vm4878_vm4 = vweird.f32 %v8422_v13 }
0x1148   : > { %v5335_v26 = vadd.f32 1.0, %v7881_v45  ;;  %v4861_v28 = vmul.f32 %v4860_v5, %v12446_v59  ;;  %vm4877_vm13 = vweird.f32 %v12572_v42  ;;  %v4913_v27 = vmul.f32 %v8424_v49, %v12595_v18  ;;  %v12644_v59 = vld [vmem:[%s14504_s2 + $0x90] sm:$0xff] }
0x1149   : > { %v4949_v36 = vadd.f32 0.4994258, %v4948_v51  ;;  %v4876_v10 = vadd.f32 %v8422_v13, %v4875_v9  ;;  %v4900_v63 = vadd.f32 1.1283791, %v4899_v11  ;;  %v4936_v4 = vadd.f32 0.05243302, %v4935_v61  ;;  %vm4879_vm11 = vmor %vm4877_vm13, %vm4878_vm4 }
0x114a   : > { %v12638_v31 = vmul.f32 %v5335_v26, %v12256_v7  ;;  %vm4882_vm12 = vcmp.eq.f32.partialorder %v4881_v21, 8.507059e+37  ;;  %v4884_v2 = vor.u32 1.1754944e-38, %v4883_v56  ;;  %v4914_v54 = vsub.f32 1.0, %v4913_v27 }
0x114b   : > { %v4950_v6 = vmul.f32 %v4949_v36, %v12545_v46  ;;  %v4880_v42 = vsel %vm4879_vm11, %v8422_v13, %v4876_v10  ;;  %v4921_v20 = vand.u32 2147483647, %v12595_v18  ;;  %v4923_v8 = vand.u32 2147483648, %v12595_v18 }
0x114c   : > { %v8307_v7 = vpack.i.bf16 %v12638_v31, %v12616_v38  ;;  %v4885_v41 = vsel %vm4882_vm12, %v4884_v2, %v4880_v42  ;;  %v4915_v40 = vmul.f32 %v8424_v49, %v4914_v54  ;;  %vm4918_vm10 = vweird.f32 %v8424_v49  ;;  %v12758_v38 = vpop.permute.xlu0 %5962 }
0x114d   : > { %v12650_v24 = vadd.f32 1.0, %v4950_v6  ;;  %v4979_v23 = vmul.f32 %v4978_v58, %v12337_v37  ;;  %vm4998_vm5 = vweird.f32 %v12574_v33  ;;  %v4886_v15 = vmul.f32 %v4885_v41, %v4861_v28 }
0x114e   : > { %v4937_v47 = vmul.f32 %v4936_v4, %v12545_v46  ;;  %6074 = vperm.xlu0 %8314, %v12644_v59   ;;  %v4996_v13 = vadd.f32 %v12574_v33, %v4995_v34  ;;  %v4916_v60 = vadd.f32 %v8424_v49, %v4915_v40  ;;  %vm4917_vm7 = vweird.f32 %v12595_v18 }
0x114f   : > { %8425 = vrcp.f32 %v12650_v24  ;;  %vm4997_vm4 = vweird.f32 %v12548_v52  ;;  %v5003_v5 = vand.u32 2147483648, %v12548_v52  ;;  %vm4919_vm13 = vmor %vm4917_vm7, %vm4918_vm10  ;;  %v4924_v37 = vor.u32 1.1754944e-38, %v4923_v8 }
0x1150   : > { %v7875_v0 = vclamps-f32 %v4886_v15, 1.0  ;;  %v5001_v43 = vand.u32 2147483647, %v12548_v52  ;;  %v4901_v11 = vmul.f32 %v4900_v63, %v12466_v35  ;;  %v4920_v61 = vsel %vm4919_vm13, %v8424_v49, %v4916_v60  ;;  %vm12667_vm12 = vmor %vm4997_vm4, %vm4998_vm5 }
0x1151   : > { %vm4922_vm11 = vcmp.eq.f32.partialorder %v4921_v20, 8.507059e+37  ;;  %v5137_v45 = vmul.f32 %v12401_v14, %v12242_v16  ;;  %v4938_v21 = vadd.f32 0.18741608, %v4937_v47  ;;  %v4980_v56 = vadd.f32 1.1283791, %v4979_v23 }
0x1152   : > { %v4925_v58 = vsel %vm4922_vm11, %v4924_v37, %v4920_v61  ;;  %v5000_v52 = vsel %vm12667_vm12, %v12574_v33, %v4996_v13  ;;  %v5329_v35 = vadd.f32 1.0, %v7875_v0  ;;  %v5154_v49 = vsub.f32 1.0, %v12621_v32 }
0x1153   : > { %v4926_v51 = vmul.f32 %v4925_v58, %v4901_v11  ;;  %v5177_v14 = vmul.f32 %v12611_v29, %v12272_v3  ;;  %v5004_v34 = vor.u32 1.1754944e-38, %v5003_v5  ;;  %v8315_v9 = vpack.i.bf16 %v12608_v44, %v12601_v25  ;;  %v7887_v11 = vld [vmem:[%s14506_s4 + $0x30] sm:$0xff] }
0x1154   : > { %v5194_v28 = vsub.f32 1.0, %v12625_v12  ;;  %vm5002_vm10 = vcmp.eq.f32.partialorder %v5001_v43, 8.507059e+37  ;;  %v4825_v27 = vmul.f32 0.5, %v12423_v1  ;;  %v5138_v10 = vadd.f32 0.18741608, %v5137_v45 }
0x1155   : > { %v8426_v26 = vpop.eup %8425  ;;  %v7876_v36 = vclamps-f32 %v4926_v51, 1.0  ;;  %v5005_v33 = vsel %vm5002_vm10, %v5004_v34, %v5000_v52  ;;  %v4939_v63 = vmul.f32 %v4938_v21, %v12545_v46  ;;  %v4981_v29 = vmul.f32 %v4980_v56, %v12301_v62  ;;  %v12723_v52 = vld [vmem:[%s14504_s2 + $0x98] sm:$0xff] }
0x1156   : > { %v4953_v32 = vmul.f32 %v8426_v26, %v12650_v24  ;;  %8316 = vrot.lane.b32.xlu0 %v8315_v9, %s8524_s30  ;;  %v4826_v4 = vmul.f32 0.5, %v12443_v57  ;;  %v5341_v44 = vmul.f32 %v5329_v35, %v4825_v27  ;;  %v15173_v2 = vmov 3   ;;  %v12730_v27 = vpop.permute.xlu2 %5361 }
0x1157   : > { %v5330_v25 = vadd.f32 1.0, %v7876_v36  ;;  %8320 = vset.pattern.permute.xlu0 %v15173_v2  ;;  %v5155_v12 = vmul.f32 %v12535_v53, %v5154_v49  ;;  %v5178_v1 = vadd.f32 0.18741608, %v5177_v14  ;;  %v5195_v6 = vmul.f32 %v12597_v17, %v5194_v28 }
0x1158   : > { %v4954_v54 = vsub.f32 1.0, %v4953_v32  ;;  %v5006_v42 = vmul.f32 %v5005_v33, %v4981_v29  ;;  %v4963_v46 = vand.u32 2147483648, %v12650_v24  ;;  %v4940_v8 = vadd.f32 1.1283791, %v4939_v63 }
0x1159   : > { %v5342_v20 = vmul.f32 %v5330_v25, %v4826_v4  ;;  %vm4958_vm5 = vweird.f32 %v8426_v26  ;;  %v4961_v62 = vand.u32 2147483647, %v12650_v24  ;;  %v5139_v57 = vmul.f32 %v5138_v10, %v12242_v16  ;;  %v15179_v25 = vld [vmem:[#allocation19_spill] sm:$0xff] }
0x115a   : > { %v4955_v41 = vmul.f32 %v8426_v26, %v4954_v54  ;;  %vm5157_vm7 = vweird.f32 %v12481_v50  ;;  %vm5158_vm4 = vweird.f32 %v12535_v53  ;;  %v5179_v23 = vmul.f32 %v5178_v1, %v12272_v3 }
0x115b   : > { %v8284_v40 = vpack.i.bf16 %v5342_v20, %v5341_v44  ;;  %vm4957_vm13 = vweird.f32 %v12650_v24  ;;  %v5156_v47 = vadd.f32 %v12535_v53, %v5155_v12  ;;  %v5196_v13 = vadd.f32 %v12597_v17, %v5195_v6  ;;  %v12754_v20 = vld [vmem:[%s14504_s2 + $0x88] sm:$0xff] }
0x115c   : > { %v4956_v15 = vadd.f32 %v8426_v26, %v4955_v41  ;;  %vm5198_vm11 = vweird.f32 %v12597_v17  ;;  %vm4959_vm12 = vmor %vm4957_vm13, %vm4958_vm5  ;;  %v4964_v60 = vor.u32 1.1754944e-38, %v4963_v46  ;;  %v7878_v16 = vclamps-f32 %v5006_v42, 1.0 }
0x115d   : > { %8285 = vrot.lane.b32.xlu1 %v8284_v40, %s8524_s30  ;;  %v4941_v5 = vmul.f32 %v4940_v8, %v12521_v55  ;;  %vm4962_vm10 = vcmp.eq.f32.partialorder %v4961_v62, 8.507059e+37  ;;  %v5161_v3 = vand.u32 2147483647, %v12481_v50  ;;  %v5163_v0 = vand.u32 2147483648, %v12481_v50  ;;  %vm12708_vm5 = vmor %vm5157_vm7, %vm5158_vm4 }
0x115e   : > { %v4960_v37 = vsel %vm4959_vm12, %v8426_v26, %v4956_v15  ;;  %v5203_v24 = vand.u32 2147483648, %v12516_v39  ;;  %vm5197_vm13 = vweird.f32 %v12516_v39  ;;  %v5201_v55 = vand.u32 2147483647, %v12516_v39  ;;  %v12765_v15 = vpop.permute.xlu1 %5915 }
0x115f   : > { %v4965_v43 = vsel %vm4962_vm10, %v4964_v60, %v4960_v37  ;;  %v5140_v45 = vadd.f32 1.1283791, %v5139_v57  ;;  %v5180_v18 = vadd.f32 1.1283791, %v5179_v23  ;;  %vm5199_vm12 = vmor %vm5197_vm13, %vm5198_vm11  ;;  %v5160_v58 = vsel %vm12708_vm5, %v12535_v53, %v5156_v47  ;;  %15181 = vst [vmem:[#allocation16_spill] sm:$0xff] %v12765_v15 }
0x1160   : > { %v4966_v61 = vmul.f32 %v4965_v43, %v4941_v5  ;;  %v5200_v50 = vsel %vm5199_vm12, %v12597_v17, %v5196_v13  ;;  %v5332_v21 = vadd.f32 1.0, %v7878_v16  ;;  %vm5162_vm7 = vcmp.eq.f32.partialorder %v5161_v3, 8.507059e+37 }
0x1161   : > { %v5164_v39 = vor.u32 1.1754944e-38, %v5163_v0  ;;  %v5204_v51 = vor.u32 1.1754944e-38, %v5203_v24  ;;  %vm5202_vm4 = vcmp.eq.f32.partialorder %v5201_v55, 8.507059e+37  ;;  %v4828_v35 = vmul.f32 0.5, %v12292_v22 }
0x1162   : > { %v7877_v56 = vclamps-f32 %v4966_v61, 1.0  ;;  %v4827_v49 = vmul.f32 0.5, %v12484_v48  ;;  %v5141_v17 = vmul.f32 %v5140_v45, %v12202_v30  ;;  %v5181_v9 = vmul.f32 %v5180_v18, %v12222_v19  ;;  %v12735_v30 = vpop.permute.xlu2 %5920  ;;  %v15178_v19 = vld [vmem:[#allocation29_spill] sm:$0xff] }
0x1163   : > { %v5165_v34 = vsel %vm5162_vm7, %v5164_v39, %v5160_v58  ;;  %v5205_v53 = vsel %vm5202_vm4, %v5204_v51, %v5200_v50  ;;  %v5344_v26 = vmul.f32 %v5332_v21, %v4828_v35  ;;  %v15176_v63 = vmov 1   ;;  %15177 = vst [vmem:[#allocation27_spill] sm:$0xff] %v12735_v30  ;;  %v15184_v50 = vld [vmem:[#allocation11_spill] sm:$0xff] }
0x1164   : > { %v5331_v14 = vadd.f32 1.0, %v7877_v56  ;;  %v5166_v36 = vmul.f32 %v5165_v34, %v5141_v17  ;;  %v5206_v10 = vmul.f32 %v5205_v53, %v5181_v9  ;;  %v4832_v4 = vmul.f32 0.5, %v15178_v19 }
0x1165   : > { %5930 = vperm.xlu1 %8282, %v12723_v52   ;;  %v4833_v44 = vmul.f32 0.5, %v15179_v25  ;;  %v15180_v54 = vmov 2   ;;  %v5976_v31 = vmul.f32 0.0, %v12758_v38  ;;  %v15193_v19 = vmov 0  }
0x1166   : > { %v5343_v28 = vmul.f32 %v5331_v14, %v4827_v49  ;;  %v7882_v22 = vclamps-f32 %v5166_v36, 1.0  ;;  %v7883_v48 = vclamps-f32 %v5206_v10, 1.0  ;;  %v12802_v36 = vld [vmem:[%s14504_s2 + $0x80] sm:$0xff]  ;;  %v15185_v10 = vmov 4  }
0x1168   : > { %v8292_v33 = vpack.i.bf16 %v5344_v26, %v5343_v28  ;;  %v5336_v32 = vadd.f32 1.0, %v7882_v22  ;;  %v5337_v29 = vadd.f32 1.0, %v7883_v48  ;;  %v15187_v22 = vmov 6  }
0x116a   : > { %8293 = vrot.lane.b32.xlu2 %v8292_v33, %s8524_s30  ;;  %v5348_v12 = vmul.f32 %v5336_v32, %v4832_v4  ;;  %v5349_v1 = vmul.f32 %v5337_v29, %v4833_v44  ;;  %v12745_v42 = vpop.permute.xlu2 %5958  ;;  %v15186_v33 = vmov 5  }
0x116b   : > { %v5973_v46 = vmul.f32 0.0, %v12745_v42 }
0x116c   : > { %v8302_v6 = vpack.i.bf16 %v5349_v1, %v5348_v12 }
0x116d   : > { %8291 = vset.pattern.permute.xlu1 %v15176_v63  ;;  %v15190_v63 = vmov 7  }
0x116e   : > { %5966 = vperm.xlu1 %8291, %v12644_v59  }
0x1172   : > { %5970 = vperm.xlu2 %8289, %v12723_v52  }
0x1176   : > { %8308 = vrot.lane.b32.xlu1 %v8307_v7, %s8524_s30 }
0x1177   : > { %8312 = vset.pattern.permute.xlu1 %v15180_v54 }
0x117a   : > { %8303 = vrot.lane.b32.xlu2 %v8302_v6, %s8524_s30 }
0x117b   : > { %8313 = vset.pattern.permute.xlu2 %v15180_v54 }
0x117e   : > { %5997 = vrot.lane.b32.xlu1 %v5973_v46, %s8519_s9 }
0x1182   : > { %6070 = vperm.xlu2 %8313, %v12754_v20  }
0x1186   : > { %6003 = vrot.lane.b32.xlu1 %v5976_v31, %s8519_s9  ;;  %v7888_v31 = vld [vmem:[%s14506_s4 + $0x38] sm:$0xff] }
0x118a   : > { %8322 = vset.pattern.permute.xlu2 %v15173_v2 }
0x11b8   : > { %v8299_v7 = vpop.permute.xlu0 %8298 }
0x11b9   : > { %v8301_v8 = vunpack.i.h.bf16 %v8299_v7  ;;  %v8300_v41 = vunpack.i.l.bf16 %v8299_v7 }
0x11bb   : > { %v5390_v62 = vsel %vm4680_vm3, %v8300_v41, %v8301_v8  ;;  %v15198_v8 = vld [vmem:[#allocation13_spill] sm:$0xff] }
0x11bc   : > { %5438 = vmatpush.msrb.mxu1 %v5390_v62  ;;  %v7890_v62 = vld [vmem:[%s14507_s5 + $0x38] sm:$0xff] }
0x11c0   : > { %v12763_v57 = vpop.permute.xlu0 %6074 }
0x11c1   : > { %v6087_v51 = vmul.f32 %v12763_v57, %v15184_v50 }
0x11c4   : > { %v8294_v40 = vpop.permute.xlu2 %8293 }
0x11c5   : > { %v8296_v23 = vunpack.i.h.bf16 %v8294_v40  ;;  %v8295_v0 = vunpack.i.l.bf16 %v8294_v40 }
0x11c7   : > { %v5389_v47 = vsel %vm4680_vm3, %v8296_v23, %v8300_v41  ;;  %v15200_v23 = vld [vmem:[#allocation44_spill] sm:$0xff] }
0x11c8   : > { %5415 = vmatpush.msrb.mxu0 %v5389_v47  ;;  %v8317_v13 = vpop.permute.xlu0 %8316 }
0x11c9   : > { %v8319_v60 = vunpack.i.h.bf16 %v8317_v13  ;;  %v8318_v16 = vunpack.i.l.bf16 %v8317_v13 }
0x11cb   : > { %v5643_v5 = vsel %vm4680_vm3, %v8318_v16, %v8319_v60 }
0x11cc   : > { %v12769_v37 = vpop.permute.xlu2 %5970  ;;  %5663 = vmatpush.msrb.mxu2 %v5643_v5 }
0x11cd   : > { %15182 = vst [vmem:[#allocation36_spill] sm:$0xff] %v12769_v37  ;;  %v5982_v35 = vmul.f32 0.0, %v12769_v37 }
0x11cf   : > { %v8286_v3 = vpop.permute.xlu1 %8285 }
0x11d0   : > { %v8288_v24 = vunpack.i.h.bf16 %v8286_v3  ;;  %v8287_v43 = vunpack.i.l.bf16 %v8286_v3  ;;  %v15204_v3 = vld [vmem:[#allocation26_spill] sm:$0xff] }
0x11d2   : > { %v5387_v55 = vsel %vm4680_vm3, %v8287_v43, %v8288_v24  ;;  %v5388_v61 = vsel %vm4680_vm3, %v8288_v24, %v8295_v0 }
0x11d3   : > { %5416 = vmatpush.msrb.mxu0 %v5387_v55  ;;  %5439 = vmatpush.msrb.mxu1 %v5388_v61 }
0x11d4   : > { %v8304_v45 = vpop.permute.xlu2 %8303  ;;  %7891 = vmatmul.msk.f32.vlgmr.msrb.gmra.mxu0 %vm1211_vm9, %v7887_v11  ;;  %7893 = vmatmul.msk.f32.vlgmr.msrb.gmra.mxu1 %vm1211_vm9, %v7887_v11 }
0x11d5   : > { %v8306_v14 = vunpack.i.h.bf16 %v8304_v45  ;;  %v8305_v34 = vunpack.i.l.bf16 %v8304_v45 }
0x11d7   : > { %v12778_v18 = vpop.permute.xlu1 %5930  ;;  %v5642_v28 = vsel %vm4680_vm3, %v8305_v34, %v8306_v14 }
0x11d8   : > { %15183 = vst [vmem:[#allocation34_spill] sm:$0xff] %v12778_v18 }
0x11dc   : > { %v12780_v58 = vpop.permute.xlu2 %6070  ;;  %7892 = vmatmul.msk.f32.gmra.mxu0 %vm1211_vm9, %v7888_v31  ;;  %7894 = vmatmul.msk.f32.gmra.mxu1 %vm1211_vm9, %v7888_v31 }
0x11dd   : > { %v6084_v21 = vmul.f32 %v12780_v58, %v15184_v50 }
0x11df   : > { %6111 = vrot.lane.b32.xlu0 %v6084_v21, %s8509_s14 }
0x11e0   : > { %v12785_v56 = vpop.permute.xlu1 %5966 }
0x11e1   : > { %v5979_v39 = vmul.f32 0.0, %v12785_v56 }
0x11e3   : > { %6009 = vrot.lane.b32.xlu1 %v5979_v39, %s8519_s9 }
0x11e7   : > { %6117 = vrot.lane.b32.xlu0 %v6087_v51, %s8509_s14 }
0x11e8   : > { %v8309_v49 = vpop.permute.xlu1 %8308 }
0x11e9   : > { %v8311_v53 = vunpack.i.h.bf16 %v8309_v49  ;;  %v8310_v17 = vunpack.i.l.bf16 %v8309_v49 }
0x11eb   : > { %6015 = vrot.lane.b32.xlu1 %v5982_v35, %s8519_s9  ;;  %v5641_v9 = vsel %vm4680_vm3, %v8311_v53, %v8305_v34  ;;  %v5644_v26 = vsel %vm4680_vm3, %v8319_v60, %v8310_v17 }
0x11ec   : > { %5664 = vmatpush.msrb.mxu2 %v5641_v9  ;;  %5686 = vmatpush.msrb.mxu3 %v5644_v26 }
0x11ed   : > { %7899 = vmatmul.msk.f32.vlgmr.msrb.gmra.mxu2 %vm1211_vm9, %v7887_v11 }
0x11ee   : > { %5687 = vmatpush.msrb.mxu3 %v5642_v28 }
0x11ef   : > { %7901 = vmatmul.msk.f32.vlgmr.msrb.gmra.mxu3 %vm1211_vm9, %v7887_v11 }
0x11f0   : > { %v12820_v48 = vpop.permute.xlu1 %5997 }
0x11f1   : > { %15189 = vst [vmem:[#allocation37_spill] sm:$0xff] %v12820_v48 }
0x11f3   : > { %6066 = vperm.xlu1 %8312, %v12802_v36  }
0x11f5   : > { %7900 = vmatmul.msk.f32.gmra.mxu2 %vm1211_vm9, %v7888_v31 }
0x11f7   : > { %7902 = vmatmul.msk.f32.gmra.mxu3 %vm1211_vm9, %v7888_v31 }
0x11f8   : > { %v12824_v32 = vpop.permute.xlu1 %6003 }
0x11f9   : > { %15191 = vst [vmem:[#allocation33_spill] sm:$0xff] %v12824_v32 }
0x11fb   : > { %6078 = vperm.xlu1 %8312, %v12723_v52  }
0x1203   : > { %8321 = vset.pattern.permute.xlu1 %v15173_v2  ;;  %v15188_v2 = vmov 8  }
0x1204   : > { %6178 = vperm.xlu1 %8321, %v12754_v20  }
0x120c   : > { %6186 = vperm.xlu1 %8321, %v12723_v52  }
0x1214   : > { %8324 = vset.pattern.permute.xlu1 %v15185_v10 }
0x1215   : > { %6278 = vperm.xlu1 %8324, %v12644_v59  }
0x121d   : > { %8326 = vset.pattern.permute.xlu1 %v15186_v33 }
0x121e   : > { %6378 = vperm.xlu1 %8326, %v12644_v59  }
0x1226   : > { %8328 = vset.pattern.permute.xlu1 %v15187_v22 }
0x1227   : > { %6486 = vperm.xlu1 %8328, %v12644_v59  }
0x122f   : > { %8330 = vset.pattern.permute.xlu1 %v15186_v33 }
0x1230   : > { %6374 = vperm.xlu1 %8330, %v12754_v20  }
0x1238   : > { %6370 = vperm.xlu1 %8330, %v12802_v36  }
0x1240   : > { %8333 = vset.pattern.permute.xlu1 %v15188_v2 }
0x1241   : > { %6690 = vperm.xlu1 %8333, %v12644_v59  }
0x1249   : > { %8336 = vset.pattern.permute.xlu1 %v15190_v63 }
0x124a   : > { %6574 = vperm.xlu1 %8336, %v12802_v36  }
0x1251   : > { %v12882_v13 = vpop.permute.xlu0 %6111  ;;  %v5418_v55 = vpop.f32.mrf.mxu0 }
0x1252   : > { %8338 = vset.pattern.permute.xlu1 %v15188_v2  ;;  %15201 = vst [vmem:[#allocation40_spill] sm:$0xff] %v12882_v13  ;;  %v12902_v61 = vadd.f32 %v5418_v55, %v12730_v27  ;;  %v5441_v21 = vpop.f32.mrf.mxu1 }
0x1253   : > { %6682 = vperm.xlu1 %8338, %v12802_v36   ;;  %v12914_v51 = vadd.f32 %v5441_v21, %v12730_v27 }
0x1255   : > { %v12828_v29 = vpop.permute.xlu1 %6009  ;;  %v12919_v49 = vmul.f32 0.70710677, %v12914_v51 }
0x1256   : > { %15192 = vst [vmem:[#allocation25_spill] sm:$0xff] %v12828_v29 }
0x1257   : > { %v5495_v53 = vmul.f32 %v12919_v49, %v12919_v49 }
0x1259   : > { %v12884_v60 = vpop.permute.xlu0 %6117  ;;  %v12930_v26 = vmin.f32 %v5495_v53, 16.0 }
0x125a   : > { %15202 = vst [vmem:[#allocation43_spill] sm:$0xff] %v12884_v60 }
0x125b   : > { %8340 = vset.pattern.permute.xlu1 %v15193_v19 }
0x125d   : > { %v12831_v4 = vpop.permute.xlu1 %6015 }
0x125e   : > { %15194 = vst [vmem:[#allocation49_spill] sm:$0xff] %v12831_v4 }
0x1265   : > { %v12833_v25 = vpop.permute.xlu1 %6066 }
0x1266   : > { %v6081_v44 = vmul.f32 %v12833_v25, %v15184_v50 }
0x1268   : > { %6105 = vrot.lane.b32.xlu2 %v6081_v44, %s8509_s14 }
0x126d   : > { %v12838_v12 = vpop.permute.xlu1 %6078 }
0x126e   : > { %15195 = vst [vmem:[#allocation47_spill] sm:$0xff] %v12838_v12  ;;  %v6090_v1 = vmul.f32 %v12838_v12, %v15184_v50  ;;  %v12907_v50 = vmul.f32 0.70710677, %v12902_v61 }
0x1270   : > { %6182 = vperm.xlu2 %8322, %v12644_v59   ;;  %6123 = vrot.lane.b32.xlu0 %v6090_v1, %s8509_s14  ;;  %v5455_v39 = vmul.f32 %v12907_v50, %v12907_v50  ;;  %v12928_v17 = vpop.f32.mrf.mxu2 }
0x1272   : > { %v12916_v35 = vmin.f32 %v5455_v39, 16.0  ;;  %v5497_v39 = vmul.f32 2.1237322e-06, %v12930_v26 }
0x1274   : > { %v5468_v34 = vmul.f32 3.8918573e-05, %v12916_v35 }
0x1276   : > { %v12844_v54 = vpop.permute.xlu1 %6178  ;;  %v5469_v9 = vadd.f32 0.001143296, %v5468_v34 }
0x1277   : > { %v6192_v24 = vmul.f32 %v12844_v54, %v15204_v3 }
0x1278   : > { %8325 = vset.pattern.permute.xlu2 %v15186_v33  ;;  %6174 = vperm.xlu0 %8320, %v12802_v36   ;;  %v5470_v33 = vmul.f32 %v5469_v9, %v12916_v35  ;;  %v5669_v44 = vpop.f32.mrf.mxu2 }
0x127a   : > { %v5471_v1 = vadd.f32 0.014752088, %v5470_v33 }
0x127c   : > { %v5472_v55 = vmul.f32 %v5471_v1, %v12916_v35  ;;  %v5498_v1 = vadd.f32 0.00028619796, %v5497_v39 }
0x127e   : > { %v12848_v6 = vpop.permute.xlu1 %6186  ;;  %v5499_v39 = vmul.f32 %v5498_v1, %v12930_v26 }
0x127f   : > { %15196 = vst [vmem:[#allocation48_spill] sm:$0xff] %v12848_v6 }
0x1280   : > { %8323 = vset.pattern.permute.xlu0 %v15185_v10  ;;  %v12934_v10 = vpop.f32.mrf.mxu3 }
0x1281   : > { %6282 = vperm.xlu0 %8323, %v12723_v52  }
0x1287   : > { %v12852_v46 = vpop.permute.xlu1 %6278 }
0x1289   : > { %6274 = vperm.xlu0 %8323, %v12754_v20  }
0x1290   : > { %v12862_v7 = vpop.permute.xlu1 %6378 }
0x1291   : > { %15197 = vst [vmem:[#allocation8_spill] sm:$0xff] %v12862_v7  ;;  %v6393_v41 = vmul.f32 %v12862_v7, %v15198_v8  ;;  %6270 = vperm.xlu0 %8323, %v12802_v36  }
0x1293   : > { %6425 = vrot.lane.b32.xlu1 %v6393_v41, %s8522_s15 }
0x1299   : > { %8331 = vset.pattern.permute.xlu0 %v15188_v2  ;;  %v12877_v40 = vpop.permute.xlu1 %6486 }
0x129a   : > { %6694 = vperm.xlu0 %8331, %v12723_v52   ;;  %15199 = vst [vmem:[#allocation42_spill] sm:$0xff] %v12877_v40  ;;  %v6501_v47 = vmul.f32 %v12877_v40, %v15200_v23 }
0x12a2   : > { %8334 = vset.pattern.permute.xlu0 %v15190_v63 }
0x12a3   : > { %6578 = vperm.xlu0 %8334, %v12754_v20  }
0x12ab   : > { %8335 = vset.pattern.permute.xlu0 %v15193_v19 }
0x12ac   : > { %5366 = vperm.xlu0 %8335, %v7890_v62  }
0x12b4   : > { %5925 = vperm.xlu0 %8335, %v12644_v59  }
0x12bc   : > { %6533 = vrot.lane.b32.xlu0 %v6501_v47, %s8512_s18 }
0x12e2   : > { %v12886_v16 = vpop.permute.xlu0 %6123 }
0x12e3   : > { %15203 = vst [vmem:[#allocation41_spill] sm:$0xff] %v12886_v16 }
0x12ea   : > { %v12888_v5 = vpop.permute.xlu0 %6174 }
0x12eb   : > { %v6189_v0 = vmul.f32 %v12888_v5, %v15204_v3 }
0x12ed   : > { %6213 = vrot.lane.b32.xlu2 %v6189_v0, %s8497_s17  ;;  %v5692_v0 = vpop.f32.mrf.mxu3 }
0x12f3   : > { %v12895_v43 = vpop.permute.xlu0 %6282 }
0x12f4   : > { %15205 = vst [vmem:[#allocation35_spill] sm:$0xff] %v12895_v43 }
0x12f5   : > { %6219 = vrot.lane.b32.xlu2 %v6192_v24, %s8497_s17  ;;  %v5444_v24 = vpop.f32.mrf.mxu1 }
0x12fb   : > { %v12898_v11 = vpop.permute.xlu0 %6274 }
0x12fd   : > { %6382 = vperm.xlu2 %8325, %v12723_v52  }
0x1303   : > { %v12904_v45 = vpop.permute.xlu0 %6270 }
0x1305   : > { %8327 = vset.pattern.permute.xlu2 %v15187_v22 }
0x1306   : > { %6490 = vperm.xlu2 %8327, %v12723_v52  }
0x130c   : > { %v12921_v14 = vpop.permute.xlu0 %6694 }
0x130e   : > { %8329 = vset.pattern.permute.xlu2 %v15190_v63  ;;  %v5421_v63 = vpop.f32.mrf.mxu0 }
0x130f   : > { %6586 = vperm.xlu2 %8329, %v12723_v52   ;;  %v5508_v52 = vmul.f32 3.8918573e-05, %v12930_v26 }
0x1311   : > { %v5509_v31 = vadd.f32 0.001143296, %v5508_v52 }
0x1313   : > { %v5510_v21 = vmul.f32 %v5509_v31, %v12930_v26 }
0x1315   : > { %v12932_v28 = vpop.permute.xlu0 %6578 }
0x1317   : > { %6582 = vperm.xlu2 %8329, %v12644_v59   ;;  %v5457_v59 = vmul.f32 2.1237322e-06, %v12916_v35 }
0x1319   : > { %v5458_v52 = vadd.f32 0.00028619796, %v5457_v59 }
0x131b   : > { %v5459_v59 = vmul.f32 %v5458_v52, %v12916_v35 }
0x131d   : > { %v5460_v32 = vadd.f32 0.0036580483, %v5459_v59 }
0x131e   : > { %v5367_v41 = vpop.permute.xlu0 %5366 }
0x131f   : > { %v12939_v62 = vadd.f32 %v5421_v63, %v5367_v41  ;;  %v12941_v47 = vadd.f32 %v5669_v44, %v5367_v41  ;;  %8332 = vset.pattern.permute.xlu2 %v15187_v22  ;;  %v12952_v53 = vadd.f32 %v5692_v0, %v5367_v41  ;;  %v12957_v22 = vadd.f32 %v5444_v24, %v5367_v41 }
0x1320   : > { %6482 = vperm.xlu2 %8332, %v12754_v20   ;;  %v5473_v63 = vadd.f32 0.112945676, %v5472_v55  ;;  %v5511_v44 = vadd.f32 0.014752088, %v5510_v21 }
0x1321   : > { %v12950_v34 = vmul.f32 0.70710677, %v12941_v47  ;;  %v12955_v9 = vmul.f32 0.70710677, %v12939_v62  ;;  %v12964_v16 = vmul.f32 0.70710677, %v12952_v53 }
0x1322   : > { %v12969_v4 = vmul.f32 0.70710677, %v12957_v22  ;;  %v5474_v55 = vmul.f32 %v5473_v63, %v12916_v35  ;;  %v5512_v21 = vmul.f32 %v5511_v44, %v12930_v26  ;;  %v5500_v44 = vadd.f32 0.0036580483, %v5499_v39 }
0x1323   : > { %v5783_v33 = vmul.f32 %v12950_v34, %v12950_v34  ;;  %v5535_v0 = vmul.f32 %v12955_v9, %v12955_v9  ;;  %v5823_v60 = vmul.f32 %v12964_v16, %v12964_v16 }
0x1324   : > { %v5575_v13 = vmul.f32 %v12969_v4, %v12969_v4  ;;  %v5475_v63 = vadd.f32 0.4994258, %v5474_v55  ;;  %v5513_v48 = vadd.f32 0.112945676, %v5512_v21  ;;  %v12999_v21 = vpop.permute.xlu2 %6105 }
0x1325   : > { %v12961_v31 = vmin.f32 %v5783_v33, 16.0  ;;  %v12980_v29 = vmin.f32 %v5535_v0, 16.0  ;;  %v12986_v1 = vmin.f32 %v5823_v60, 16.0  ;;  %v5501_v60 = vmul.f32 %v5500_v44, %v12930_v26  ;;  %15206 = vst [vmem:[#allocation46_spill] sm:$0xff] %v12999_v21 }
0x1326   : > { %v5476_v59 = vmul.f32 %v5475_v63, %v12916_v35  ;;  %v5514_v55 = vmul.f32 %v5513_v48, %v12930_v26  ;;  %v6198_v44 = vmul.f32 %v12848_v6, %v15204_v3 }
0x1327   : > { %v5785_v41 = vmul.f32 2.1237322e-06, %v12961_v31  ;;  %v5796_v24 = vmul.f32 3.8918573e-05, %v12961_v31  ;;  %v5825_v43 = vmul.f32 2.1237322e-06, %v12986_v1 }
0x1328   : > { %6478 = vperm.xlu2 %8332, %v12802_v36   ;;  %v5515_v63 = vadd.f32 0.4994258, %v5514_v55  ;;  %v5502_v48 = vadd.f32 0.05243302, %v5501_v60 }
0x1329   : > { %v5786_v33 = vadd.f32 0.00028619796, %v5785_v41  ;;  %v5797_v18 = vadd.f32 0.001143296, %v5796_v24  ;;  %v5548_v41 = vmul.f32 3.8918573e-05, %v12980_v29 }
0x132a   : > { %v12989_v24 = vmin.f32 %v5575_v13, 16.0  ;;  %v5836_v13 = vmul.f32 3.8918573e-05, %v12986_v1 }
0x132b   : > { %v5787_v36 = vmul.f32 %v5786_v33, %v12961_v31  ;;  %v5798_v52 = vmul.f32 %v5797_v18, %v12961_v31  ;;  %v5461_v18 = vmul.f32 %v5460_v32, %v12916_v35  ;;  %v5549_v39 = vadd.f32 0.001143296, %v5548_v41 }
0x132c   : > { %v5837_v12 = vadd.f32 0.001143296, %v5836_v13 }
0x132d   : > { %v5799_v15 = vadd.f32 0.014752088, %v5798_v52  ;;  %v5788_v0 = vadd.f32 0.0036580483, %v5787_v36  ;;  %v5826_v36 = vadd.f32 0.00028619796, %v5825_v43  ;;  %v5550_v21 = vmul.f32 %v5549_v39, %v12980_v29  ;;  %v13020_v39 = vpop.permute.xlu2 %6182 }
0x132e   : > { %v5462_v32 = vadd.f32 0.05243302, %v5461_v18  ;;  %v13004_v52 = vadd.f32 1.0, %v5476_v59  ;;  %v5516_v43 = vmul.f32 %v5515_v63, %v12930_v26  ;;  %v5503_v18 = vmul.f32 %v5502_v48, %v12930_v26  ;;  %15207 = vst [vmem:[#allocation38_spill] sm:$0xff] %v13020_v39 }
0x132f   : > { %v5800_v30 = vmul.f32 %v5799_v15, %v12961_v31  ;;  %v5588_v15 = vmul.f32 3.8918573e-05, %v12989_v24  ;;  %v5789_v33 = vmul.f32 %v5788_v0, %v12961_v31  ;;  %v5827_v0 = vmul.f32 %v5826_v36, %v12986_v1 }
0x1330   : > { %8337 = vset.pattern.permute.xlu2 %v15188_v2  ;;  %8427 = vrcp.f32 %v13004_v52  ;;  %v5838_v55 = vmul.f32 %v5837_v12, %v12986_v1  ;;  %v5551_v60 = vadd.f32 0.014752088, %v5550_v21  ;;  %v13023_v36 = vadd.f32 1.0, %v5516_v43 }
0x1331   : > { %6686 = vperm.xlu2 %8337, %v12754_v20   ;;  %v5801_v2 = vadd.f32 0.112945676, %v5800_v30  ;;  %v5589_v41 = vadd.f32 0.001143296, %v5588_v15  ;;  %v5790_v37 = vadd.f32 0.05243302, %v5789_v33  ;;  %v5463_v30 = vmul.f32 %v5462_v32, %v12916_v35 }
0x1332   : > { %v5828_v33 = vadd.f32 0.0036580483, %v5827_v0  ;;  %v5504_v32 = vadd.f32 0.18741608, %v5503_v18  ;;  %v5839_v48 = vadd.f32 0.014752088, %v5838_v55  ;;  %v6195_v12 = vmul.f32 %v13020_v39, %v15204_v3 }
0x1333   : > { %v5802_v20 = vmul.f32 %v5801_v2, %v12961_v31  ;;  %v5590_v13 = vmul.f32 %v5589_v41, %v12989_v24  ;;  %v5791_v15 = vmul.f32 %v5790_v37, %v12961_v31  ;;  %v5464_v2 = vadd.f32 0.18741608, %v5463_v30 }
0x1334   : > { %v5840_v37 = vmul.f32 %v5839_v48, %v12986_v1  ;;  %v5505_v3 = vmul.f32 %v5504_v32, %v12930_v26  ;;  %vm5483_vm12 = vweird.f32 %v13004_v52 }
0x1335   : > { %v5803_v7 = vadd.f32 0.4994258, %v5802_v20  ;;  %v5792_v21 = vadd.f32 0.18741608, %v5791_v15  ;;  %v5465_v41 = vmul.f32 %v5464_v2, %v12916_v35 }
0x1336   : > { %v13025_v20 = vpop.eup %8427  ;;  %v5841_v18 = vadd.f32 0.112945676, %v5840_v37  ;;  %v13041_v48 = vadd.f32 1.1283791, %v5505_v3  ;;  %v5487_v3 = vand.u32 2147483647, %v13004_v52 }
0x1337   : > { %v5804_v59 = vmul.f32 %v5803_v7, %v12961_v31  ;;  %v5591_v7 = vadd.f32 0.014752088, %v5590_v13  ;;  %v5479_v0 = vmul.f32 %v13025_v20, %v13004_v52  ;;  %v5466_v15 = vadd.f32 1.1283791, %v5465_v41 }
0x1338   : > { %vm5484_vm7 = vweird.f32 %v13025_v20  ;;  %vm13081_vm4 = vcmp.eq.f32.partialorder %v5487_v3, 8.507059e+37  ;;  %v5527_v3 = vand.u32 2147483647, %v13023_v36 }
0x1339   : > { %6231 = vrot.lane.b32.xlu2 %v6198_v44, %s8497_s17  ;;  %v5805_v63 = vadd.f32 1.0, %v5804_v59  ;;  %v5829_v44 = vmul.f32 %v5828_v33, %v12986_v1  ;;  %v5592_v43 = vmul.f32 %v5591_v7, %v12989_v24  ;;  %v5793_v59 = vmul.f32 %v5792_v21, %v12961_v31 }
0x133a   : > { %8339 = vset.pattern.permute.xlu2 %v15193_v19  ;;  %v5552_v19 = vmul.f32 %v5551_v60, %v12980_v29  ;;  %v5842_v60 = vmul.f32 %v5841_v18, %v12986_v1  ;;  %v5480_v33 = vsub.f32 1.0, %v5479_v0  ;;  %v5537_v18 = vmul.f32 2.1237322e-06, %v12980_v29 }
0x133b   : > { %8429 = vrcp.f32 %v5805_v63  ;;  %v5830_v55 = vadd.f32 0.05243302, %v5829_v44  ;;  %v5794_v7 = vadd.f32 1.1283791, %v5793_v59  ;;  %vm5811_vm11 = vweird.f32 %v5805_v63 }
0x133c   : > { %8431 = vrcp.f32 %v13023_v36  ;;  %v5553_v30 = vadd.f32 0.112945676, %v5552_v19  ;;  %v5843_v32 = vadd.f32 0.4994258, %v5842_v60  ;;  %v5817_v31 = vand.u32 2147483648, %v5805_v63 }
0x133d   : > { %v5831_v21 = vmul.f32 %v5830_v55, %v12986_v1  ;;  %v5815_v37 = vand.u32 2147483647, %v5805_v63  ;;  %v5481_v0 = vmul.f32 %v13025_v20, %v5480_v33  ;;  %v5795_v33 = vmul.f32 %v5794_v7, %v12950_v34 }
0x133e   : > { %v5554_v2 = vmul.f32 %v5553_v30, %v12980_v29  ;;  %v5844_v41 = vmul.f32 %v5843_v32, %v12986_v1  ;;  %v5577_v32 = vmul.f32 2.1237322e-06, %v12989_v24  ;;  %v5818_v6 = vor.u32 1.1754944e-38, %v5817_v31 }
0x133f   : > { %vm13069_vm13 = vcmp.eq.f32.partialorder %v5815_v37, 8.507059e+37  ;;  %v5489_v34 = vand.u32 2147483648, %v13004_v52 }
0x1340   : > { %v13060_v60 = vadd.f32 1.0, %v5844_v41  ;;  %v5578_v41 = vadd.f32 0.00028619796, %v5577_v32  ;;  %v5697_v32 = vmul.f32 0.5, %v12941_v47 }
0x1341   : > { %6225 = vrot.lane.b32.xlu2 %v6195_v12, %s8497_s17  ;;  %v8430_v13 = vpop.eup %8429  ;;  %v5593_v12 = vadd.f32 0.112945676, %v5592_v43  ;;  %v13056_v43 = vadd.f32 %v12928_v17, %v12730_v27 }
0x1342   : > { %v13043_v35 = vpop.eup %8431  ;;  %v5807_v26 = vmul.f32 %v8430_v13, %v5805_v63  ;;  %vm5812_vm10 = vweird.f32 %v8430_v13  ;;  %8433 = vrcp.f32 %v13060_v60  ;;  %v5855_v47 = vand.u32 2147483647, %v13060_v60 }
0x1343   : > { %v5519_v30 = vmul.f32 %v13043_v35, %v13023_v36  ;;  %v5594_v59 = vmul.f32 %v5593_v12, %v12989_v24  ;;  %vm13065_vm5 = vmor %vm5811_vm11, %vm5812_vm10  ;;  %v5832_v12 = vadd.f32 0.18741608, %v5831_v21  ;;  %v13078_v63 = vmul.f32 0.70710677, %v13056_v43 }
0x1344   : > { %v5808_v44 = vsub.f32 1.0, %v5807_v26  ;;  %v5555_v26 = vadd.f32 0.4994258, %v5554_v2  ;;  %v5467_v2 = vmul.f32 %v5466_v15, %v12907_v50  ;;  %v5482_v50 = vadd.f32 %v13025_v20, %v5481_v0  ;;  %vm13107_vm10 = vmor %vm5483_vm12, %vm5484_vm7 }
0x1345   : > { %v5520_v31 = vsub.f32 1.0, %v5519_v30  ;;  %v5538_v15 = vadd.f32 0.00028619796, %v5537_v18  ;;  %vm5523_vm11 = vweird.f32 %v13023_v36  ;;  %v5703_v0 = vmul.f32 %v13078_v63, %v13078_v63 }
0x1346   : > { %v5809_v55 = vmul.f32 %v8430_v13, %v5808_v44  ;;  %v5595_v44 = vadd.f32 0.4994258, %v5594_v59  ;;  %v5556_v39 = vmul.f32 %v5555_v26, %v12980_v29  ;;  %v5833_v59 = vmul.f32 %v5832_v12, %v12986_v1 }
0x1347   : > { %v13046_v19 = vpop.permute.xlu2 %6213  ;;  %v13101_v18 = vadd.f32 %v12934_v10, %v12730_v27  ;;  %v5521_v1 = vmul.f32 %v13043_v35, %v5520_v31  ;;  %v5486_v27 = vsel %vm13107_vm10, %v13025_v20, %v5482_v50  ;;  %v5539_v10 = vmul.f32 %v5538_v15, %v12980_v29 }
0x1348   : > { %15208 = vst [vmem:[#allocation3_spill] sm:$0xff] %v13046_v19  ;;  %v5810_v17 = vadd.f32 %v8430_v13, %v5809_v55  ;;  %v5490_v19 = vor.u32 1.1754944e-38, %v5489_v34  ;;  %v5596_v26 = vmul.f32 %v5595_v44, %v12989_v24  ;;  %v13120_v12 = vadd.f32 1.0, %v5556_v39 }
0x1349   : > { %v5857_v31 = vand.u32 2147483648, %v13060_v60  ;;  %v5522_v20 = vadd.f32 %v13043_v35, %v5521_v1  ;;  %vm5524_vm12 = vweird.f32 %v13043_v35 }
0x134a   : > { %v5814_v21 = vsel %vm13065_vm5, %v8430_v13, %v5810_v17  ;;  %v5529_v13 = vand.u32 2147483648, %v13023_v36  ;;  %v5579_v17 = vmul.f32 %v5578_v41, %v12989_v24  ;;  %vm5851_vm5 = vweird.f32 %v13060_v60  ;;  %vm13147_vm10 = vmor %vm5523_vm11, %vm5524_vm12 }
0x134b   : > { %v5819_v55 = vsel %vm13069_vm13, %v5818_v6, %v5814_v21  ;;  %v8434_v6 = vpop.eup %8433  ;;  %v5834_v21 = vadd.f32 1.1283791, %v5833_v59  ;;  %v13127_v50 = vadd.f32 1.0, %v5596_v26  ;;  %v5491_v41 = vsel %vm13081_vm4, %v5490_v19, %v5486_v27 }
0x134c   : > { %v5820_v30 = vmul.f32 %v5819_v55, %v5795_v33  ;;  %v5847_v52 = vmul.f32 %v8434_v6, %v13060_v60  ;;  %vm5852_vm13 = vweird.f32 %v8434_v6  ;;  %v13135_v55 = vmin.f32 %v5703_v0, 16.0 }
0x134d   : > { %v5540_v60 = vadd.f32 0.0036580483, %v5539_v10  ;;  %v5580_v40 = vadd.f32 0.0036580483, %v5579_v17  ;;  %vm13139_vm7 = vmor %vm5851_vm5, %vm5852_vm13  ;;  %v5858_v26 = vor.u32 1.1754944e-38, %v5857_v31  ;;  %8435 = vrcp.f32 %v13120_v12 }
0x134e   : > { %v7905_v33 = vclamps-f32 %v5820_v30, 1.0  ;;  %v5848_v44 = vsub.f32 1.0, %v5847_v52  ;;  %v5835_v19 = vmul.f32 %v5834_v21, %v12964_v16  ;;  %vm5856_vm4 = vcmp.eq.f32.partialorder %v5855_v47, 8.507059e+37  ;;  %v13163_v16 = vpop.permute.xlu1 %6374 }
0x134f   : > { %v13087_v37 = vpop.permute.xlu2 %6219  ;;  %v5492_v27 = vmul.f32 %v5491_v41, %v5467_v2  ;;  %v5526_v10 = vsel %vm13147_vm10, %v13043_v35, %v5522_v20  ;;  %8437 = vrcp.f32 %v13127_v50  ;;  %v5530_v17 = vor.u32 1.1754944e-38, %v5529_v13 }
0x1350   : > { %15215 = vst [vmem:[#allocation52_spill] sm:$0xff] %v13087_v37  ;;  %v5865_v34 = vadd.f32 1.0, %v7905_v33  ;;  %v5849_v30 = vmul.f32 %v8434_v6, %v5848_v44  ;;  %vm5528_vm11 = vcmp.eq.f32.partialorder %v5527_v3, 8.507059e+37  ;;  %v5507_v2 = vmul.f32 %v13041_v48, %v12919_v49  ;;  %v15223_v3 = vld [vmem:[#allocation21_spill] sm:$0xff] }
0x1351   : > { %v5531_v31 = vsel %vm5528_vm11, %v5530_v17, %v5526_v10  ;;  %v5581_v35 = vmul.f32 %v5580_v40, %v12989_v24  ;;  %v7895_v47 = vclamps-f32 %v5492_v27, 1.0  ;;  %v5716_v20 = vmul.f32 3.8918573e-05, %v13135_v55 }
0x1352   : > { %v13129_v15 = vmul.f32 %v5865_v34, %v5697_v32  ;;  %v15220_v32 = vld [vmem:[#allocation9_spill] sm:$0xff]  ;;  %v5850_v0 = vadd.f32 %v8434_v6, %v5849_v30  ;;  %v5541_v34 = vmul.f32 %v5540_v60, %v12980_v29  ;;  %v13171_v13 = vmul.f32 0.70710677, %v13101_v18 }
0x1353   : > { %v13175_v41 = vpop.eup %8435  ;;  %v6390_v30 = vmul.f32 %v13163_v16, %v15198_v8  ;;  %v5698_v49 = vmul.f32 0.5, %v12952_v53  ;;  %v5532_v40 = vmul.f32 %v5531_v31, %v5507_v2  ;;  %v5582_v7 = vadd.f32 0.05243302, %v5581_v35  ;;  %v15225_v35 = vld [vmem:[#allocation12_spill] sm:$0xff] }
0x1354   : > { %v6366_v33 = vmul.f32 %v15220_v32, %v13129_v15  ;;  %v5854_v52 = vsel %vm13139_vm7, %v8434_v6, %v5850_v0  ;;  %v6474_v6 = vmul.f32 %v15223_v3, %v13129_v15  ;;  %v5542_v1 = vadd.f32 0.05243302, %v5541_v34 }
0x1355   : > { %v5859_v21 = vsel %vm5856_vm4, %v5858_v26, %v5854_v52  ;;  %v13180_v60 = vpop.eup %8437  ;;  %v5615_v0 = vadd.f32 1.0, %v7895_v47  ;;  %v5717_v27 = vadd.f32 0.001143296, %v5716_v20  ;;  %v5743_v10 = vmul.f32 %v13171_v13, %v13171_v13  ;;  %v15226_v47 = vld [vmem:[#allocation14_spill] sm:$0xff] }
0x1356   : > { %v5860_v44 = vmul.f32 %v5859_v21, %v5835_v19  ;;  %v5559_v53 = vmul.f32 %v13175_v41, %v13120_v12  ;;  %v5599_v17 = vmul.f32 %v13180_v60, %v13127_v50  ;;  %v5447_v34 = vmul.f32 0.5, %v12902_v61 }
0x1357   : > { %v13131_v39 = vpop.permute.xlu2 %6382  ;;  %v7896_v21 = vclamps-f32 %v5532_v40, 1.0  ;;  %v5543_v2 = vmul.f32 %v5542_v1, %v12980_v29  ;;  %v5583_v31 = vmul.f32 %v5582_v7, %v12989_v24  ;;  %vm5563_vm5 = vweird.f32 %v13120_v12 }
0x1358   : > { %v6396_v59 = vmul.f32 %v13131_v39, %v15198_v8  ;;  %v13159_v36 = vmul.f32 %v13131_v39, %v6366_v33  ;;  %v7906_v48 = vclamps-f32 %v5860_v44, 1.0  ;;  %vm5564_vm13 = vweird.f32 %v13175_v41 }
0x1359   : > { %v5616_v1 = vadd.f32 1.0, %v7896_v21  ;;  %v5584_v37 = vadd.f32 0.18741608, %v5583_v31  ;;  %vm5603_vm12 = vweird.f32 %v13127_v50  ;;  %vm5604_vm7 = vweird.f32 %v13180_v60  ;;  %vm13239_vm10 = vmor %vm5563_vm5, %vm5564_vm13 }
0x135a   : > { %6431 = vrot.lane.b32.xlu2 %v6396_v59, %s8522_s15  ;;  %v5866_v19 = vadd.f32 1.0, %v7906_v48  ;;  %v13205_v48 = vmin.f32 %v5743_v10, 16.0  ;;  %vm13248_vm4 = vmor %vm5603_vm12, %vm5604_vm7 }
0x135c   : > { %v13193_v52 = vmul.f32 %v5866_v19, %v5698_v49  ;;  %v5560_v49 = vsub.f32 1.0, %v5559_v53  ;;  %v5544_v19 = vadd.f32 0.18741608, %v5543_v2  ;;  %v5448_v53 = vmul.f32 0.5, %v12914_v51  ;;  %v15228_v2 = vld [vmem:[#allocation39_spill] sm:$0xff] }
0x135e   : > { %v6367_v44 = vmul.f32 %v13193_v52, %v15225_v35  ;;  %v6475_v20 = vmul.f32 %v13193_v52, %v15226_v47  ;;  %v13226_v21 = vmul.f32 %v5616_v1, %v5448_v53  ;;  %v5545_v51 = vmul.f32 %v5544_v19, %v12980_v29 }
0x135f   : > { %v5567_v1 = vand.u32 2147483647, %v13120_v12 }
0x1360   : > { %v6491_v59 = vpop.permute.xlu2 %6490  ;;  %v13208_v61 = vmul.f32 %v13131_v39, %v6367_v44  ;;  %v5756_v39 = vmul.f32 3.8918573e-05, %v13205_v48  ;;  %v5546_v53 = vadd.f32 1.1283791, %v5545_v51 }
0x1361   : > { %v13182_v26 = vmul.f32 %v6491_v59, %v6474_v6  ;;  %v6504_v33 = vmul.f32 %v6491_v59, %v15200_v23  ;;  %v13202_v6 = vmul.f32 %v5615_v0, %v5447_v34  ;;  %v13210_v40 = vmul.f32 %v6491_v59, %v6475_v20 }
0x1362   : > { %6419 = vrot.lane.b32.xlu2 %v6390_v30, %s8522_s15  ;;  %v5718_v30 = vmul.f32 %v5717_v27, %v13135_v55  ;;  %v5757_v44 = vadd.f32 0.001143296, %v5756_v39  ;;  %v5569_v20 = vand.u32 2147483648, %v13120_v12  ;;  %v5975_v12 = vmul.f32 %v12745_v42, %v13226_v21 }
0x1363   : > { %15224 = vst [vmem:[#allocation4_spill] sm:$0xff] %v13182_v26  ;;  %6539 = vrot.lane.b32.xlu1 %v6504_v33, %s8512_s18  ;;  %v5600_v33 = vsub.f32 1.0, %v5599_v17  ;;  %v6285_v7 = vmul.f32 %v12904_v45, %v13202_v6  ;;  %v5561_v17 = vmul.f32 %v13175_v41, %v5560_v49  ;;  %v6054_v31 = vmul.f32 %v13202_v6, %v15228_v2 }
0x1364   : > { %v5719_v59 = vadd.f32 0.014752088, %v5718_v30  ;;  %v5609_v30 = vand.u32 2147483648, %v13127_v50  ;;  %vm5568_vm11 = vcmp.eq.f32.partialorder %v5567_v1, 8.507059e+37  ;;  %v15234_v1 = vld [vmem:[#allocation30_spill] sm:$0xff] }
0x1365   : > { %v5601_v34 = vmul.f32 %v13180_v60, %v5600_v33  ;;  %v5562_v49 = vadd.f32 %v13175_v41, %v5561_v17 }
0x1367   : > { %v5602_v29 = vadd.f32 %v13180_v60, %v5601_v34  ;;  %v5758_v34 = vmul.f32 %v5757_v44, %v13205_v48 }
0x1369   : > { %v6587_v26 = vpop.permute.xlu2 %6586 }
0x136a   : > { %v13215_v0 = vmul.f32 %v6587_v26, %v13129_v15  ;;  %v13218_v27 = vmul.f32 %v6587_v26, %v13193_v52  ;;  %v6600_v10 = vmul.f32 0.0, %v6587_v26  ;;  %v5585_v26 = vmul.f32 %v5584_v37, %v12989_v24 }
0x136b   : > { %6301 = vrot.lane.b32.xlu1 %v6285_v7, %s8517_s22  ;;  %v5607_v24 = vand.u32 2147483647, %v13127_v50  ;;  %v6082_v37 = vmul.f32 %v12833_v25, %v6054_v31  ;;  %v5720_v7 = vmul.f32 %v5719_v59, %v13135_v55  ;;  %v5570_v50 = vor.u32 1.1754944e-38, %v5569_v20 }
0x136c   : > { %15227 = vst [vmem:[#allocation50_spill] sm:$0xff] %v13218_v27  ;;  %6635 = vrot.lane.b32.xlu0 %v6600_v10, %s8523_s29  ;;  %v5586_v39 = vadd.f32 1.1283791, %v5585_v26  ;;  %v5610_v27 = vor.u32 1.1754944e-38, %v5609_v30  ;;  %v5566_v59 = vsel %vm13239_vm10, %v13175_v41, %v5562_v49  ;;  %v5606_v31 = vsel %vm13248_vm4, %v13180_v60, %v5602_v29  ;;  %v15233_v30 = vld [vmem:[#allocation5_spill] sm:$0xff] }
0x136d   : > { %vm5608_vm5 = vcmp.eq.f32.partialorder %v5607_v24, 8.507059e+37  ;;  %v5721_v51 = vadd.f32 0.112945676, %v5720_v7  ;;  %v5547_v26 = vmul.f32 %v5546_v53, %v12955_v9  ;;  %v5759_v20 = vadd.f32 0.014752088, %v5758_v34  ;;  %v15235_v7 = vld [vmem:[#allocation59_spill] sm:$0xff] }
0x136e   : > { %v5587_v44 = vmul.f32 %v5586_v39, %v12969_v4  ;;  %v6163_v33 = vmul.f32 %v15233_v30, %v13226_v21  ;;  %v5571_v41 = vsel %vm5568_vm11, %v5570_v50, %v5566_v59  ;;  %v5611_v49 = vsel %vm5608_vm5, %v5610_v27, %v5606_v31 }
0x136f   : > { %v5722_v60 = vmul.f32 %v5721_v51, %v13135_v55  ;;  %v6708_v9 = vmul.f32 %v12921_v14, %v15235_v7  ;;  %v5572_v19 = vmul.f32 %v5571_v41, %v5547_v26  ;;  %v5760_v39 = vmul.f32 %v5759_v20, %v13205_v48 }
0x1370   : > { %v6191_v29 = vmul.f32 %v12888_v5, %v6163_v33  ;;  %v5612_v4 = vmul.f32 %v5611_v49, %v5587_v44  ;;  %v6357_v59 = vmul.f32 %v15220_v32, %v13202_v6  ;;  %v6358_v31 = vmul.f32 %v13226_v21, %v15225_v35 }
0x1371   : > { %v13252_v10 = vpop.permute.xlu2 %6582  ;;  %v5723_v27 = vadd.f32 0.4994258, %v5722_v60  ;;  %v5761_v50 = vadd.f32 0.112945676, %v5760_v39  ;;  %v5449_v33 = vmul.f32 0.5, %v12939_v62  ;;  %v5450_v49 = vmul.f32 0.5, %v12957_v22 }
0x1372   : > { %v6597_v17 = vmul.f32 0.0, %v13252_v10  ;;  %v7898_v34 = vclamps-f32 %v5612_v4, 1.0  ;;  %v6466_v4 = vmul.f32 %v13226_v21, %v15226_v47  ;;  %v5745_v39 = vmul.f32 2.1237322e-06, %v13205_v48 }
0x1373   : > { %6107 = vrot.lane.b32.xlu1 %v6082_v37, %s8509_s14  ;;  %v6162_v37 = vmul.f32 %v13202_v6, %v15234_v1  ;;  %v5724_v51 = vmul.f32 %v5723_v27, %v13135_v55  ;;  %v6465_v27 = vmul.f32 %v15223_v3, %v13202_v6 }
0x1374   : > { %6629 = vrot.lane.b32.xlu2 %v6597_v17, %s8523_s29  ;;  %6001 = vrot.lane.b32.xlu0 %v5975_v12, %s8519_s9  ;;  %v6371_v17 = vpop.permute.xlu1 %6370  ;;  %v7897_v12 = vclamps-f32 %v5572_v19, 1.0 }
0x1375   : > { %v6190_v24 = vmul.f32 %v12888_v5, %v6162_v37  ;;  %v5705_v5 = vmul.f32 2.1237322e-06, %v13135_v55  ;;  %v6385_v26 = vmul.f32 %v6371_v17, %v6357_v59  ;;  %v6386_v44 = vmul.f32 %v6371_v17, %v6358_v31  ;;  %v15237_v59 = vld [vmem:[#allocation60_spill] sm:$0xff] }
0x1376   : > { %v6387_v20 = vmul.f32 %v6371_v17, %v15198_v8  ;;  %v5617_v41 = vadd.f32 1.0, %v7897_v12  ;;  %v5618_v37 = vadd.f32 1.0, %v7898_v34 }
0x1378   : > { %v13299_v19 = vmul.f32 %v5617_v41, %v5449_v33  ;;  %v13301_v8 = vmul.f32 %v5618_v37, %v5450_v49 }
0x137a   : > { %v13278_v53 = vpop.permute.xlu2 %6482  ;;  %v6673_v31 = vmul.f32 %v13301_v8, %v15237_v59 }
0x137b   : > { %6217 = vrot.lane.b32.xlu1 %v6191_v29, %s8497_s17  ;;  %v5706_v29 = vadd.f32 0.00028619796, %v5705_v5  ;;  %v6498_v12 = vmul.f32 %v13278_v53, %v15200_v23  ;;  %v15236_v5 = vld [vmem:[#allocation58_spill] sm:$0xff] }
0x137c   : > { %6743 = vrot.lane.b32.xlu2 %v6708_v9, %s8508_s20  ;;  %6215 = vrot.lane.b32.xlu0 %v6190_v24, %s8497_s17  ;;  %v5762_v24 = vmul.f32 %v5761_v50, %v13205_v48  ;;  %v13297_v9 = vadd.f32 1.0, %v5724_v51  ;;  %v6672_v50 = vmul.f32 %v15236_v5, %v13299_v19 }
0x137d   : > { %v5707_v62 = vmul.f32 %v5706_v29, %v13135_v55 }
0x137e   : > { %v5763_v22 = vadd.f32 0.4994258, %v5762_v24  ;;  %8439 = vrcp.f32 %v13297_v9  ;;  %v13331_v24 = vpop.permute.xlu1 %6690  ;;  %vm5731_vm12 = vweird.f32 %v13297_v9 }
0x137f   : > { %v5708_v51 = vadd.f32 0.0036580483, %v5707_v62 }
0x1381   : > { %v5709_v37 = vmul.f32 %v5708_v51, %v13135_v55 }
0x1382   : > { %v6479_v60 = vpop.permute.xlu2 %6478 }
0x1383   : > { %6411 = vrot.lane.b32.xlu1 %v6386_v44, %s8522_s15  ;;  %v6494_v17 = vmul.f32 %v6479_v60, %v6466_v4  ;;  %v6493_v34 = vmul.f32 %v6479_v60, %v6465_v27  ;;  %v6705_v4 = vmul.f32 %v13331_v24, %v15235_v7  ;;  %v5710_v27 = vadd.f32 0.05243302, %v5709_v37 }
0x1384   : > { %6413 = vrot.lane.b32.xlu2 %v6387_v20, %s8522_s15  ;;  %6409 = vrot.lane.b32.xlu0 %v6385_v26, %s8522_s15  ;;  %v5764_v26 = vmul.f32 %v5763_v22, %v13205_v48  ;;  %v5746_v20 = vadd.f32 0.00028619796, %v5745_v39  ;;  %v8440_v49 = vpop.eup %8439  ;;  %v6593_v22 = vmul.f32 %v12932_v28, %v13301_v8  ;;  %v5978_v39 = vmul.f32 %v12758_v38, %v13301_v8 }
0x1385   : > { %v6495_v37 = vmul.f32 %v6479_v60, %v15200_v23  ;;  %vm5732_vm13 = vweird.f32 %v8440_v49  ;;  %v5737_v60 = vand.u32 2147483648, %v13297_v9 }
0x1386   : > { %v13329_v29 = vadd.f32 1.0, %v5764_v26  ;;  %v5747_v62 = vmul.f32 %v5746_v20, %v13205_v48  ;;  %vm5733_vm7 = vmor %vm5731_vm12, %vm5732_vm13  ;;  %vm15257_vm12 = vcmask 908288  }
0x1388   : > { %8441 = vrcp.f32 %v13329_v29  ;;  %vm5771_vm11 = vweird.f32 %v13329_v29 }
0x138b   : > { %v13317_v44 = vpop.permute.xlu2 %6686  ;;  %6519 = vrot.lane.b32.xlu1 %v6494_v17, %s8512_s18  ;;  %v5727_v17 = vmul.f32 %v8440_v49, %v13297_v9 }
0x138c   : > { %v13321_v33 = vmul.f32 %v13317_v44, %v6672_v50  ;;  %v13324_v41 = vmul.f32 %v13317_v44, %v6673_v31  ;;  %6527 = vrot.lane.b32.xlu2 %v6498_v12, %s8512_s18  ;;  %6517 = vrot.lane.b32.xlu0 %v6493_v34, %s8512_s18  ;;  %v5748_v12 = vadd.f32 0.0036580483, %v5747_v62  ;;  %v6057_v34 = vmul.f32 %v13299_v19, %v15228_v2 }
0x138d   : > { %v5711_v50 = vmul.f32 %v5710_v27, %v13135_v55  ;;  %v5728_v31 = vsub.f32 1.0, %v5727_v17  ;;  %v6288_v62 = vmul.f32 %v12898_v11, %v13301_v8  ;;  %v6166_v27 = vmul.f32 %v15233_v30, %v13301_v8 }
0x138e   : > { %15238 = vst [vmem:[#allocation51_spill] sm:$0xff] %v13321_v33  ;;  %v5749_v51 = vmul.f32 %v5748_v12, %v13205_v48  ;;  %v8442_v26 = vpop.eup %8441  ;;  %v6085_v20 = vmul.f32 %v12780_v58, %v6057_v34 }
0x138f   : > { %v5767_v33 = vmul.f32 %v8442_v26, %v13329_v29  ;;  %vm5772_vm4 = vweird.f32 %v8442_v26 }
0x1390   : > { %vm5773_vm5 = vmor %vm5771_vm11, %vm5772_vm4 }
0x1391   : > { %v5768_v34 = vsub.f32 1.0, %v5767_v33 }
0x1393   : > { %6621 = vrot.lane.b32.xlu1 %v6593_v22, %s8523_s29  ;;  %v5712_v22 = vadd.f32 0.18741608, %v5711_v50  ;;  %v5735_v50 = vand.u32 2147483647, %v13297_v9  ;;  %v6361_v9 = vmul.f32 %v13301_v8, %v15225_v35 }
0x1394   : > { %6737 = vrot.lane.b32.xlu2 %v6705_v4, %s8508_s20  ;;  %6007 = vrot.lane.b32.xlu0 %v5978_v39, %s8519_s9  ;;  %v5729_v4 = vmul.f32 %v8440_v49, %v5728_v31  ;;  %v5750_v39 = vadd.f32 0.05243302, %v5749_v51  ;;  %v6194_v31 = vmul.f32 %v12844_v54, %v6166_v27  ;;  %v6594_v51 = vmul.f32 0.0, %v12932_v28 }
0x1395   : > { %v5713_v17 = vmul.f32 %v5712_v22, %v13135_v55  ;;  %vm5736_vm10 = vcmp.eq.f32.partialorder %v5735_v50, 8.507059e+37 }
0x1396   : > { %v5730_v23 = vadd.f32 %v8440_v49, %v5729_v4  ;;  %v5751_v12 = vmul.f32 %v5750_v39, %v13205_v48  ;;  %v5769_v4 = vmul.f32 %v8442_v26, %v5768_v34  ;;  %v6165_v39 = vmul.f32 %v13299_v19, %v15234_v1  ;;  %v13381_v34 = vpop.permute.xlu2 %6231 }
0x1397   : > { %v5714_v55 = vadd.f32 1.1283791, %v5713_v17 }
0x1398   : > { %v5752_v22 = vadd.f32 0.18741608, %v5751_v12  ;;  %v5770_v27 = vadd.f32 %v8442_v26, %v5769_v4  ;;  %v5775_v12 = vand.u32 2147483647, %v13329_v29  ;;  %v6193_v50 = vmul.f32 %v12844_v54, %v6165_v39  ;;  %v15239_v39 = vld [vmem:[#allocation15_spill] sm:$0xff] }
0x1399   : > { %v6469_v54 = vmul.f32 %v13301_v8, %v15226_v47 }
0x139a   : > { %vm5776_vm13 = vcmp.eq.f32.partialorder %v5775_v12, 8.507059e+37 }
0x139b   : > { %6113 = vrot.lane.b32.xlu1 %v6085_v20, %s8509_s14  ;;  %v6592_v20 = vmul.f32 %v12932_v28, %v13299_v19  ;;  %v5715_v28 = vmul.f32 %v5714_v55, %v13078_v63  ;;  %v5974_v63 = vmul.f32 %v12745_v42, %v13202_v6 }
0x139c   : > { %6521 = vrot.lane.b32.xlu2 %v6495_v37, %s8512_s18  ;;  %6307 = vrot.lane.b32.xlu0 %v6288_v62, %s8517_s22  ;;  %v5734_v37 = vsel %vm5733_vm7, %v8440_v49, %v5730_v23  ;;  %v5738_v62 = vor.u32 1.1754944e-38, %v5737_v60  ;;  %v5753_v49 = vmul.f32 %v5752_v22, %v13205_v48  ;;  %v5777_v23 = vand.u32 2147483648, %v13329_v29  ;;  %vm15264_vm7 = vmmov %vm15257_vm12 }
0x139d   : > { %v6389_v60 = vmul.f32 %v13163_v16, %v6361_v9  ;;  %v6360_v29 = vmul.f32 %v15220_v32, %v13299_v19  ;;  %v6286_v22 = vmul.f32 %v12904_v45, %v13226_v21  ;;  %v5695_v9 = vmul.f32 0.5, %v13056_v43  ;;  %vm15272_vm4 = vmmov %vm15264_vm7 }
0x139e   : > { %v5739_v33 = vsel %vm5736_vm10, %v5738_v62, %v5734_v37  ;;  %v5754_v48 = vadd.f32 1.1283791, %v5753_v49  ;;  %v6497_v62 = vmul.f32 %v13278_v53, %v6469_v54  ;;  %v6468_v45 = vmul.f32 %v15223_v3, %v13299_v19  ;;  %vm15268_vm10 = vmmov %vm15264_vm7 }
0x139f   : > { %v5740_v17 = vmul.f32 %v5739_v33, %v5715_v28  ;;  %v6388_v4 = vmul.f32 %v13163_v16, %v6360_v29  ;;  %v13400_v33 = vpop.permute.xlu2 %6225  ;;  %v6055_v28 = vmul.f32 %v15239_v39, %v13226_v21  ;;  %v13445_v29 = vpop.permute.xlu0 %5925 }
0x13a0   : > { %v5755_v42 = vmul.f32 %v5754_v48, %v13171_v13 }
0x13a1   : > { %v6083_v16 = vmul.f32 %v12833_v25, %v6055_v28 }
0x13a3   : > { %6223 = vrot.lane.b32.xlu1 %v6194_v31, %s8497_s17  ;;  %v5774_v31 = vsel %vm5773_vm5, %v8442_v26, %v5770_v27 }
0x13a4   : > { %6623 = vrot.lane.b32.xlu2 %v6594_v51, %s8523_s29  ;;  %6619 = vrot.lane.b32.xlu0 %v6592_v20, %s8523_s29  ;;  %v7903_v51 = vclamps-f32 %v5740_v17, 1.0  ;;  %v5778_v20 = vor.u32 1.1754944e-38, %v5777_v23  ;;  %v6496_v17 = vmul.f32 %v13278_v53, %v6468_v45  ;;  %v13414_v23 = vpop.permute.xlu1 %6574 }
0x13a6   : > { %v5779_v55 = vsel %vm5776_vm13, %v5778_v20, %v5774_v31  ;;  %v5863_v37 = vadd.f32 1.0, %v7903_v51 }
0x13a7   : > { %v5780_v26 = vmul.f32 %v5779_v55, %v5755_v42  ;;  %v6058_v42 = vmul.f32 %v15239_v39, %v13301_v8 }
0x13a8   : > { %v13404_v13 = vmul.f32 %v5863_v37, %v5695_v9  ;;  %v15240_v37 = vld [vmem:[#allocation38_spill] sm:$0xff] }
0x13a9   : > { %v7904_v49 = vclamps-f32 %v5780_v26, 1.0 }
0x13aa   : > { %v6289_v43 = vmul.f32 %v12852_v46, %v13404_v13  ;;  %v6060_v48 = vmul.f32 %v13404_v13, %v15228_v2  ;;  %v6595_v20 = vmul.f32 %v13252_v10, %v13404_v13 }
0x13ab   : > { %6417 = vrot.lane.b32.xlu1 %v6389_v60, %s8522_s15  ;;  %v5864_v27 = vadd.f32 1.0, %v7904_v49  ;;  %v5696_v60 = vmul.f32 0.5, %v13101_v18  ;;  %v13471_v49 = vpop.permute.xlu0 %6533 }
0x13ac   : > { %6221 = vrot.lane.b32.xlu0 %v6193_v50, %s8497_s17  ;;  %5999 = vrot.lane.b32.xlu2 %v5974_v63, %s8519_s9  ;;  %v5977_v63 = vmul.f32 %v12758_v38, %v13299_v19  ;;  %v13433_v18 = vpop.permute.xlu1 %6682  ;;  %v6088_v51 = vmul.f32 %v12763_v57, %v6060_v48  ;;  %v6287_v38 = vmul.f32 %v12898_v11, %v13299_v19 }
0x13ad   : > { %v13422_v50 = vmul.f32 %v5864_v27, %v5696_v60  ;;  %v6168_v11 = vmul.f32 %v13404_v13, %v15234_v1 }
0x13af   : > { %v6596_v25 = vmul.f32 %v13252_v10, %v13422_v50  ;;  %v5981_v53 = vmul.f32 %v12785_v56, %v13422_v50  ;;  %v6169_v10 = vmul.f32 %v15233_v30, %v13422_v50  ;;  %v6196_v26 = vmul.f32 %v15240_v37, %v6168_v11 }
0x13b0   : > { %v6364_v28 = vmul.f32 %v13422_v50, %v15225_v35 }
0x13b3   : > { %6525 = vrot.lane.b32.xlu1 %v6497_v62, %s8512_s18  ;;  %v6197_v62 = vmul.f32 %v15240_v37, %v6169_v10  ;;  %v15246_v10 = vld [vmem:[#allocation36_spill] sm:$0xff]  ;;  %v6063_v37 = vmul.f32 %v13129_v15, %v15228_v2  ;;  %v6172_v2 = vmul.f32 %v15233_v30, %v13193_v52 }
0x13b4   : > { %6415 = vrot.lane.b32.xlu0 %v6388_v4, %s8522_s15  ;;  %6303 = vrot.lane.b32.xlu2 %v6286_v22, %s8517_s22  ;;  %v13418_v12 = vpop.permute.xlu2 %6431  ;;  %v13449_v55 = vpop.permute.xlu1 %6425  ;;  %v6086_v22 = vmul.f32 %v12780_v58, %v6058_v42  ;;  %v6471_v4 = vmul.f32 %v15223_v3, %v13404_v13  ;;  %v6061_v42 = vmul.f32 %v15239_v39, %v13422_v50 }
0x13bb   : > { %6309 = vrot.lane.b32.xlu1 %v6289_v43, %s8517_s22  ;;  %v15243_v43 = vld [vmem:[#allocation42_spill] sm:$0xff] }
0x13bc   : > { %6523 = vrot.lane.b32.xlu0 %v6496_v17, %s8512_s18  ;;  %6109 = vrot.lane.b32.xlu2 %v6083_v16, %s8509_s14  ;;  %v13437_v31 = vpop.permute.xlu2 %6419  ;;  %v6499_v58 = vmul.f32 %v15243_v43, %v6471_v4  ;;  %v15244_v16 = vld [vmem:[#allocation8_spill] sm:$0xff]  ;;  %v5980_v17 = vmul.f32 %v12785_v56, %v13404_v13  ;;  %v6290_v56 = vmul.f32 %v12852_v46, %v13422_v50 }
0x13bd   : > { %v6392_v27 = vmul.f32 %v15244_v16, %v6364_v28  ;;  %v5984_v46 = vmul.f32 %v15246_v10, %v13193_v52 }
0x13c3   : > { %6627 = vrot.lane.b32.xlu1 %v6596_v25, %s8523_s29  ;;  %v6676_v25 = vmul.f32 %v13422_v50, %v15237_v59 }
0x13c4   : > { %6013 = vrot.lane.b32.xlu0 %v5981_v53, %s8519_s9  ;;  %6005 = vrot.lane.b32.xlu2 %v5977_v63, %s8519_s9  ;;  %v6675_v53 = vmul.f32 %v15236_v5, %v13404_v13 }
0x13c5   : > { %v6704_v63 = vmul.f32 %v13331_v24, %v6676_v25 }
0x13c6   : > { %v6703_v48 = vmul.f32 %v13331_v24, %v6675_v53  ;;  %v6089_v24 = vmul.f32 %v12763_v57, %v6061_v42 }
0x13cb   : > { %6119 = vrot.lane.b32.xlu1 %v6088_v51, %s8509_s14 }
0x13cc   : > { %6625 = vrot.lane.b32.xlu0 %v6595_v20, %s8523_s29  ;;  %6305 = vrot.lane.b32.xlu2 %v6287_v38, %s8517_s22 }
0x13ce   : > { %v13451_v54 = vpop.permute.xlu2 %6629 }
0x13d3   : > { %6229 = vrot.lane.b32.xlu1 %v6197_v62, %s8497_s17  ;;  %v6363_v62 = vmul.f32 %v15220_v32, %v13404_v13 }
0x13d4   : > { %6227 = vrot.lane.b32.xlu0 %v6196_v26, %s8497_s17  ;;  %6115 = vrot.lane.b32.xlu2 %v6086_v22, %s8509_s14 }
0x13d5   : > { %v13467_v9 = vpop.permute.xlu1 %6539  ;;  %v6391_v28 = vmul.f32 %v15244_v16, %v6363_v62  ;;  %v15250_v62 = vld [vmem:[#allocation62_spill] sm:$0xff] }
0x13d6   : > { %15241 = vst [vmem:[#allocation53_spill] sm:$0xff] %v13467_v9  ;;  %v13473_v45 = vpop.permute.xlu2 %6743 }
0x13d7   : > { %15242 = vst [vmem:[#allocation65_spill] sm:$0xff] %v13473_v45 }
0x13db   : > { %6529 = vrot.lane.b32.xlu1 %v6499_v58, %s8512_s18  ;;  %v15248_v58 = vld [vmem:[#allocation35_spill] sm:$0xff] }
0x13dc   : > { %6423 = vrot.lane.b32.xlu0 %v6392_v27, %s8522_s15  ;;  %6011 = vrot.lane.b32.xlu2 %v5980_v17, %s8519_s9  ;;  %v6292_v27 = vmul.f32 %v15248_v58, %v13193_v52  ;;  %v6472_v17 = vmul.f32 %v13422_v50, %v15226_v47 }
0x13dd   : > { %v13482_v3 = vpop.permute.xlu1 %6301 }
0x13de   : > { %v13484_v35 = vpop.permute.xlu0 %6635  ;;  %v6414_v60 = vpop.permute.xlu2 %6413 }
0x13df   : > { %15245 = vst [vmem:[#allocation55_spill] sm:$0xff] %v13484_v35 }
0x13e3   : > { %6735 = vrot.lane.b32.xlu1 %v6704_v63, %s8508_s20  ;;  %v6171_v63 = vmul.f32 %v13129_v15, %v15234_v1 }
0x13e4   : > { %6733 = vrot.lane.b32.xlu0 %v6703_v48, %s8508_s20  ;;  %6311 = vrot.lane.b32.xlu2 %v6290_v56, %s8517_s22  ;;  %v15249_v48 = vld [vmem:[#allocation48_spill] sm:$0xff] }
0x13e5   : > { %v13497_v51 = vpop.permute.xlu1 %6107  ;;  %v6200_v42 = vmul.f32 %v15249_v48, %v6172_v2  ;;  %v6199_v30 = vmul.f32 %v15249_v48, %v6171_v63 }
0x13e6   : > { %v13499_v20 = vpop.permute.xlu2 %6527  ;;  %v13501_v38 = vpop.permute.xlu0 %6001 }
0x13eb   : > { %6631 = vrot.lane.b32.xlu1 %v13215_v0, %s8523_s29  ;;  %v15247_v0 = vld [vmem:[#allocation47_spill] sm:$0xff] }
0x13ec   : > { %6019 = vrot.lane.b32.xlu0 %v5984_v46, %s8519_s9  ;;  %6121 = vrot.lane.b32.xlu2 %v6089_v24, %s8509_s14  ;;  %v6091_v4 = vmul.f32 %v15247_v0, %v6063_v37  ;;  %v6500_v46 = vmul.f32 %v15243_v43, %v6472_v17  ;;  %v5906_v43 = vmul.f32 %v15250_v62, %v13301_v8  ;;  %v15252_v8 = vld [vmem:[#allocation63_spill] sm:$0xff] }
0x13ed   : > { %v13512_v11 = vpop.permute.xlu1 %6217 }
0x13ee   : > { %v13518_v26 = vpop.permute.xlu2 %6737  ;;  %v6216_v22 = vpop.permute.xlu0 %6215 }
0x13ef   : > { %v13522_v57 = vsel %vm598_vm6, %v6216_v22, %v13512_v11 }
0x13f3   : > { %6125 = vrot.lane.b32.xlu1 %v6091_v4, %s8509_s14  ;;  %v5983_v4 = vmul.f32 %v15246_v10, %v13129_v15 }
0x13f4   : > { %6315 = vrot.lane.b32.xlu0 %v6292_v27, %s8517_s22  ;;  %6421 = vrot.lane.b32.xlu2 %v6391_v28, %s8522_s15  ;;  %v15251_v27 = vld [vmem:[#allocation27_spill] sm:$0xff] }
0x13f5   : > { %v6412_v32 = vpop.permute.xlu1 %6411 }
0x13f6   : > { %v13536_v25 = vsel %vm4429_vm15, %v6412_v32, %v6414_v60  ;;  %v6522_v16 = vpop.permute.xlu2 %6521  ;;  %v6410_v53 = vpop.permute.xlu0 %6409 }
0x13f7   : > { %v13541_v56 = vsel %vm4429_vm15, %v6410_v53, %v6412_v32  ;;  %v5938_v32 = vmul.f32 %v15251_v27, %v5906_v43 }
0x13fb   : > { %6235 = vrot.lane.b32.xlu1 %v6200_v42, %s8497_s17 }
0x13fc   : > { %6233 = vrot.lane.b32.xlu0 %v6199_v30, %s8497_s17  ;;  %6531 = vrot.lane.b32.xlu2 %v6500_v46, %s8512_s18  ;;  %v6589_v30 = vmul.f32 %v13414_v23, %v13202_v6 }
0x13fd   : > { %v6520_v47 = vpop.permute.xlu1 %6519 }
0x13fe   : > { %v13550_v60 = vsel %vm2875_vm1, %v6520_v47, %v6522_v16  ;;  %v6624_v1 = vpop.permute.xlu2 %6623  ;;  %v6518_v24 = vpop.permute.xlu0 %6517  ;;  %v15253_v16 = vld [vmem:[#allocation16_spill] sm:$0xff] }
0x13ff   : > { %v13553_v37 = vsel %vm2875_vm1, %v6518_v24, %v6520_v47  ;;  %v5933_v63 = vmul.f32 %v15253_v16, %v15252_v8  ;;  %v15255_v47 = vld [vmem:[#allocation46_spill] sm:$0xff] }
0x1403   : > { %6429 = vrot.lane.b32.xlu1 %v13208_v61, %s8522_s15  ;;  %v15254_v61 = vld [vmem:[#allocation37_spill] sm:$0xff] }
0x1404   : > { %6427 = vrot.lane.b32.xlu0 %v13159_v36, %s8522_s15  ;;  %6017 = vrot.lane.b32.xlu2 %v5983_v4, %s8519_s9  ;;  %v6291_v4 = vmul.f32 %v15248_v58, %v13129_v15  ;;  %v6678_v58 = vmul.f32 %v15236_v5, %v13129_v15 }
0x1405   : > { %v6622_v28 = vpop.permute.xlu1 %6621 }
0x1406   : > { %v13566_v2 = vsel %vm4643_vm0, %v6622_v28, %v6624_v1  ;;  %v13568_v17 = vpop.permute.xlu0 %6007  ;;  %v6000_v10 = vpop.permute.xlu2 %5999  ;;  %v6129_v1 = vsel %vm2639_vm8, %v15255_v47, %v13497_v51 }
0x1407   : > { %v13573_v48 = vadd.f32 %v13568_v17, %v5938_v32  ;;  %v6021_v36 = vsel %vm3988_vm2, %v15254_v61, %v6000_v10  ;;  %v6022_v42 = vsel %vm3988_vm2, %v6000_v10, %v13501_v38  ;;  %v15256_v32 = vld [vmem:[#allocation3_spill] sm:$0xff]  ;;  %v6679_v10 = vmul.f32 %v13193_v52, %v15237_v59 }
0x1408   : > { %v6041_v46 = vadd.f32 %v6021_v36, %v5933_v63  ;;  %v6237_v45 = vsel %vm598_vm6, %v15256_v32, %v6216_v22 }
0x140a   : > { %v6149_v43 = vadd.f32 %v6129_v1, %v6041_v46 }
0x140b   : > { %6613 = vrot.lane.b32.xlu1 %v6589_v30, %s8523_s29  ;;  %v15258_v30 = vld [vmem:[#allocation64_spill] sm:$0xff] }
0x140c   : > { %v6257_v61 = vadd.f32 %v6237_v45, %v6149_v43  ;;  %6537 = vrot.lane.b32.xlu0 %v13210_v40, %s8512_s18  ;;  %6313 = vrot.lane.b32.xlu2 %v6291_v4, %s8517_s22  ;;  %v5903_v45 = vmul.f32 %v15250_v62, %v13226_v21  ;;  %v5902_v47 = vmul.f32 %v13202_v6, %v15258_v30 }
0x140d   : > { %v13592_v63 = vpop.permute.xlu1 %6113  ;;  %v6707_v43 = vmul.f32 %v12921_v14, %v6679_v10  ;;  %v6706_v4 = vmul.f32 %v12921_v14, %v6678_v58 }
0x140e   : > { %v13596_v36 = vpop.permute.xlu0 %6307  ;;  %v6304_v46 = vpop.permute.xlu2 %6303  ;;  %v6333_v22 = vadd.f32 %v13482_v3, %v6257_v61  ;;  %v5935_v35 = vmul.f32 %v15253_v16, %v5903_v45  ;;  %v5934_v61 = vmul.f32 %v15253_v16, %v5902_v47 }
0x140f   : > { %v6317_v40 = vsel %vm15257_vm12, %v13482_v3, %v6304_v46  ;;  %v15259_v3 = vld [vmem:[#allocation50_spill] sm:$0xff] }
0x1410   : > { %v6453_v1 = vadd.f32 %v6410_v53, %v6333_v22  ;;  %v6043_v9 = vadd.f32 %v13501_v38, %v5935_v35  ;;  %v6042_v10 = vadd.f32 %v6022_v42, %v5934_v61  ;;  %v6591_v35 = vmul.f32 0.0, %v13414_v23  ;;  %v7914_v42 = vld [vmem:[%s14505_s3 + $0x98] sm:$0xff] }
0x1411   : > { %v5936_v61 = vmul.f32 %v15251_v27, %v15252_v8 }
0x1412   : > { %v13609_v32 = vadd.f32 %v6518_v24, %v6453_v1  ;;  %v6064_v24 = vmul.f32 %v15239_v39, %v13193_v52 }
0x1413   : > { %6741 = vrot.lane.b32.xlu1 %v6707_v43, %s8508_s20 }
0x1414   : > { %6739 = vrot.lane.b32.xlu0 %v6706_v4, %s8508_s20  ;;  %6633 = vrot.lane.b32.xlu2 %v15259_v3, %s8523_s29  ;;  %v6092_v39 = vmul.f32 %v15247_v0, %v6064_v24 }
0x1415   : > { %v13618_v53 = vpop.permute.xlu1 %6223 }
0x1416   : > { %v13620_v22 = vpop.permute.xlu0 %6619  ;;  %v6110_v14 = vpop.permute.xlu2 %6109 }
0x1417   : > { %v13626_v58 = vsel %vm4643_vm0, %v13620_v22, %v6622_v28  ;;  %v6130_v16 = vsel %vm2639_vm8, %v13497_v51, %v6110_v14  ;;  %v6151_v45 = vadd.f32 %v6110_v14, %v6043_v9  ;;  %v5905_v28 = vmul.f32 %v13299_v19, %v15258_v30 }
0x1418   : > { %v6150_v47 = vadd.f32 %v6130_v16, %v6042_v10 }
0x1419   : > { %v6259_v38 = vadd.f32 %v13512_v11, %v6151_v45 }
0x141a   : > { %v6258_v1 = vadd.f32 %v13522_v57, %v6150_v47  ;;  %v5937_v57 = vmul.f32 %v15251_v27, %v5905_v28  ;;  %v15261_v27 = vld [vmem:[#allocation40_spill] sm:$0xff] }
0x141b   : > { %v6335_v43 = vadd.f32 %v6304_v46, %v6259_v38  ;;  %6617 = vrot.lane.b32.xlu1 %v6591_v35, %s8523_s29  ;;  %v15260_v46 = vld [vmem:[#allocation33_spill] sm:$0xff]  ;;  %v6131_v45 = vsel %vm2639_vm8, %v15261_v27, %v13592_v63  ;;  %v15262_v35 = vld [vmem:[#allocation52_spill] sm:$0xff] }
0x141c   : > { %v6334_v9 = vadd.f32 %v6317_v40, %v6258_v1  ;;  %6794 = vperm.xlu0 %8335, %v7914_v42   ;;  %6127 = vrot.lane.b32.xlu2 %v6092_v39, %s8509_s14  ;;  %v6670_v39 = vmul.f32 %v13226_v21, %v15237_v59 }
0x141d   : > { %v6418_v51 = vpop.permute.xlu1 %6417  ;;  %v6455_v11 = vadd.f32 %v13536_v25, %v6335_v43 }
0x141e   : > { %v6222_v4 = vpop.permute.xlu0 %6221  ;;  %v6006_v0 = vpop.permute.xlu2 %6005  ;;  %v6454_v3 = vadd.f32 %v13541_v56, %v6334_v9  ;;  %v6702_v56 = vmul.f32 %v13317_v44, %v15235_v7 }
0x141f   : > { %v6240_v19 = vsel %vm598_vm6, %v6222_v4, %v13618_v53  ;;  %v6023_v40 = vsel %vm3988_vm2, %v15260_v46, %v6006_v0  ;;  %v6024_v10 = vsel %vm3988_vm2, %v6006_v0, %v13568_v17  ;;  %v13656_v16 = vadd.f32 %v13550_v60, %v6455_v11 }
0x1420   : > { %v6044_v14 = vadd.f32 %v6023_v40, %v5936_v61  ;;  %v6045_v25 = vadd.f32 %v6024_v10, %v5937_v57  ;;  %v13653_v24 = vadd.f32 %v13553_v37, %v6454_v3  ;;  %v6239_v38 = vsel %vm598_vm6, %v15262_v35, %v6222_v4  ;;  %v15263_v37 = vld [vmem:[#allocation4_spill] sm:$0xff] }
0x1421   : > { %v6698_v11 = vmul.f32 %v13433_v18, %v6670_v39  ;;  %v7912_v10 = vld [vmem:[%s14505_s3 + $0x88] sm:$0xff] }
0x1422   : > { %v6152_v47 = vadd.f32 %v6131_v45, %v6044_v14  ;;  %v15265_v45 = vld [vmem:[#allocation51_spill] sm:$0xff] }
0x1423   : > { %6731 = vrot.lane.b32.xlu1 %v6702_v56, %s8508_s20 }
0x1424   : > { %6729 = vrot.lane.b32.xlu0 %v13324_v41, %s8508_s20  ;;  %6535 = vrot.lane.b32.xlu2 %v15263_v37, %s8512_s18  ;;  %v6260_v60 = vadd.f32 %v6239_v38, %v6152_v47  ;;  %v6669_v41 = vmul.f32 %v15236_v5, %v13202_v6 }
0x1425   : > { %v6526_v17 = vpop.permute.xlu1 %6525 }
0x1426   : > { %v6544_v44 = vsel %vm2875_vm1, %v6526_v17, %v13499_v20  ;;  %v6416_v42 = vpop.permute.xlu0 %6415  ;;  %v6306_v1 = vpop.permute.xlu2 %6305  ;;  %v6590_v20 = vmul.f32 %v13414_v23, %v13226_v21  ;;  %v6697_v61 = vmul.f32 %v13433_v18, %v6669_v41  ;;  %v7911_v23 = vld [vmem:[%s14505_s3 + $0x80] sm:$0xff] }
0x1427   : > { %v6435_v28 = vsel %vm4429_vm15, %v6416_v42, %v6418_v51  ;;  %v6318_v43 = vsel %vm15264_vm7, %v6306_v1, %v13596_v36  ;;  %v6336_v9 = vadd.f32 %v6306_v1, %v6260_v60  ;;  %v15266_v60 = vld [vmem:[#allocation25_spill] sm:$0xff]  ;;  %v15267_v41 = vld [vmem:[#allocation43_spill] sm:$0xff] }
0x1429   : > { %v6456_v4 = vadd.f32 %v6416_v42, %v6336_v9 }
0x142b   : > { %6723 = vrot.lane.b32.xlu1 %v6698_v11, %s8508_s20 }
0x142c   : > { %6721 = vrot.lane.b32.xlu0 %v6697_v61, %s8508_s20  ;;  %6615 = vrot.lane.b32.xlu2 %v6590_v20, %s8523_s29 }
0x142d   : > { %v6310_v59 = vpop.permute.xlu1 %6309 }
0x142e   : > { %v6524_v57 = vpop.permute.xlu0 %6523  ;;  %v6116_v0 = vpop.permute.xlu2 %6115 }
0x142f   : > { %v6543_v3 = vsel %vm2875_vm1, %v6524_v57, %v6526_v17  ;;  %v6564_v6 = vadd.f32 %v6524_v57, %v6456_v4  ;;  %v6132_v5 = vsel %vm2639_vm8, %v13592_v63, %v6116_v0  ;;  %v6154_v46 = vadd.f32 %v6116_v0, %v13573_v48 }
0x1430   : > { %v6153_v21 = vadd.f32 %v6132_v5, %v6045_v25  ;;  %v5909_v63 = vmul.f32 %v15250_v62, %v13422_v50  ;;  %v5908_v25 = vmul.f32 %v13404_v13, %v15258_v30  ;;  %v5939_v50 = vmul.f32 %v13445_v29, %v15252_v8 }
0x1431   : > { %v6262_v40 = vadd.f32 %v13618_v53, %v6154_v46  ;;  %v13698_v14 = vadd.f32 %v13620_v22, %v6564_v6  ;;  %v6436_v53 = vsel %vm4429_vm15, %v6418_v51, %v13437_v31  ;;  %v6699_v0 = vmul.f32 %v13433_v18, %v15235_v7 }
0x1432   : > { %v6261_v56 = vadd.f32 %v6240_v19, %v6153_v21  ;;  %v5941_v22 = vmul.f32 %v13445_v29, %v5909_v63 }
0x1433   : > { %v6338_v48 = vadd.f32 %v13596_v36, %v6262_v40  ;;  %6779 = vperm.xlu1 %8340, %v7911_v23   ;;  %v5940_v36 = vmul.f32 %v13445_v29, %v5908_v25 }
0x1434   : > { %v6337_v27 = vadd.f32 %v6318_v43, %v6261_v56  ;;  %6784 = vperm.xlu0 %8335, %v7912_v10   ;;  %6727 = vrot.lane.b32.xlu2 %v15265_v45, %s8508_s20  ;;  %v7913_v43 = vld [vmem:[%s14505_s3 + $0x90] sm:$0xff] }
0x1435   : > { %v6458_v19 = vadd.f32 %v6436_v53, %v6338_v48  ;;  %v6628_v47 = vpop.permute.xlu1 %6627 }
0x1436   : > { %v6014_v35 = vpop.permute.xlu0 %6013  ;;  %v6012_v38 = vpop.permute.xlu2 %6011  ;;  %v6457_v13 = vadd.f32 %v6435_v28, %v6337_v27 }
0x1437   : > { %v6049_v37 = vadd.f32 %v6014_v35, %v5941_v22  ;;  %v6025_v31 = vsel %vm3988_vm2, %v15266_v60, %v6012_v38  ;;  %v6026_v51 = vsel %vm3988_vm2, %v6012_v38, %v6014_v35  ;;  %v6566_v17 = vadd.f32 %v6544_v44, %v6458_v19 }
0x1438   : > { %v6047_v42 = vadd.f32 %v6025_v31, %v5939_v50  ;;  %v6048_v1 = vadd.f32 %v6026_v51, %v5940_v36  ;;  %v6565_v39 = vadd.f32 %v6543_v3, %v6457_v13 }
0x1439   : > { %v13720_v9 = vadd.f32 %v13566_v2, %v6566_v17 }
0x143a   : > { %v13723_v29 = vadd.f32 %v13626_v58, %v6565_v39 }
0x143c   : > { %6789 = vperm.xlu2 %8339, %v7913_v43  }
0x143d   : > { %v6120_v28 = vpop.permute.xlu1 %6119 }
0x143e   : > { %v6133_v11 = vsel %vm2639_vm8, %v15267_v41, %v6120_v28  ;;  %v6626_v4 = vpop.permute.xlu0 %6625  ;;  %v6312_v44 = vpop.permute.xlu2 %6311 }
0x143f   : > { %v6155_v20 = vadd.f32 %v6133_v11, %v6047_v42  ;;  %v6641_v61 = vsel %vm4643_vm0, %v6626_v4, %v6628_v47  ;;  %v6319_v57 = vsel %vm15268_vm10, %v6310_v59, %v6312_v44 }
0x1444   : > { %6725 = vrot.lane.b32.xlu2 %v6699_v0, %s8508_s20 }
0x1445   : > { %v6230_v2 = vpop.permute.xlu1 %6229 }
0x1446   : > { %v6228_v58 = vpop.permute.xlu0 %6227  ;;  %v6122_v3 = vpop.permute.xlu2 %6121 }
0x1447   : > { %v6241_v6 = vsel %vm598_vm6, %v13400_v33, %v6228_v58  ;;  %v6242_v5 = vsel %vm598_vm6, %v6228_v58, %v6230_v2  ;;  %v6134_v46 = vsel %vm2639_vm8, %v6120_v28, %v6122_v3  ;;  %v6157_v21 = vadd.f32 %v6122_v3, %v6049_v37 }
0x1448   : > { %v6263_v23 = vadd.f32 %v6241_v6, %v6155_v20  ;;  %v6156_v40 = vadd.f32 %v6134_v46, %v6048_v1 }
0x1449   : > { %v6265_v10 = vadd.f32 %v6230_v2, %v6157_v21 }
0x144a   : > { %v6264_v56 = vadd.f32 %v6242_v5, %v6156_v40  ;;  %v6339_v63 = vadd.f32 %v6310_v59, %v6263_v23 }
0x144b   : > { %v6341_v48 = vadd.f32 %v6312_v44, %v6265_v10 }
0x144c   : > { %v6340_v7 = vadd.f32 %v6319_v57, %v6264_v56  ;;  %v15270_v56 = vld [vmem:[#allocation49_spill] sm:$0xff] }
0x144d   : > { %v6530_v18 = vpop.permute.xlu1 %6529 }
0x144e   : > { %v6424_v25 = vpop.permute.xlu0 %6423  ;;  %v6422_v53 = vpop.permute.xlu2 %6421 }
0x144f   : > { %v6438_v27 = vsel %vm4429_vm15, %v6424_v25, %v13449_v55  ;;  %v6437_v33 = vsel %vm4429_vm15, %v6422_v53, %v6424_v25  ;;  %v6459_v45 = vadd.f32 %v6422_v53, %v6339_v63  ;;  %v6642_v55 = vsel %vm4643_vm0, %v6628_v47, %v13451_v54 }
0x1450   : > { %v6461_v22 = vadd.f32 %v6438_v27, %v6341_v48  ;;  %v6460_v19 = vadd.f32 %v6437_v33, %v6340_v7  ;;  %v5912_v47 = vmul.f32 %v15250_v62, %v13193_v52 }
0x1451   : > { %v6567_v50 = vadd.f32 %v6530_v18, %v6459_v45 }
0x1453   : > { %v6663_v36 = vadd.f32 %v6626_v4, %v6567_v50 }
0x1455   : > { %v6736_v35 = vpop.permute.xlu1 %6735 }
0x1456   : > { %v6734_v38 = vpop.permute.xlu0 %6733  ;;  %v6532_v13 = vpop.permute.xlu2 %6531  ;;  %v6750_v1 = vsel %vm2514_vm14, %v6736_v35, %v13518_v26  ;;  %v5911_v26 = vmul.f32 %v13129_v15, %v15258_v30  ;;  %v15271_v30 = vld [vmem:[#allocation41_spill] sm:$0xff] }
0x1457   : > { %v13739_v37 = vadd.f32 %v6734_v38, %v6663_v36  ;;  %v6545_v59 = vsel %vm2875_vm1, %v6530_v18, %v6532_v13  ;;  %v6546_v60 = vsel %vm2875_vm1, %v6532_v13, %v13471_v49  ;;  %v6749_v39 = vsel %vm2514_vm14, %v6734_v38, %v6736_v35 }
0x1458   : > { %v6568_v31 = vadd.f32 %v6545_v59, %v6460_v19  ;;  %v6569_v51 = vadd.f32 %v6546_v60, %v6461_v22 }
0x145a   : > { %v6664_v17 = vadd.f32 %v6641_v61, %v6568_v31  ;;  %v6665_v42 = vadd.f32 %v6642_v55, %v6569_v51  ;;  %v15269_v61 = vld [vmem:[#allocation34_spill] sm:$0xff]  ;;  %v15273_v31 = vld [vmem:[#allocation53_spill] sm:$0xff] }
0x145b   : > { %v5944_v2 = vmul.f32 %v15269_v61, %v5912_v47  ;;  %v5943_v3 = vmul.f32 %v15269_v61, %v5911_v26  ;;  %v5942_v15 = vmul.f32 %v15269_v61, %v15252_v8 }
0x145c   : > { %v13749_v43 = vadd.f32 %v6749_v39, %v6664_v17  ;;  %v13751_v28 = vadd.f32 %v6750_v1, %v6665_v42 }
0x145d   : > { %v6632_v41 = vpop.permute.xlu1 %6631 }
0x145e   : > { %v6020_v11 = vpop.permute.xlu0 %6019  ;;  %v6018_v4 = vpop.permute.xlu2 %6017 }
0x145f   : > { %v6028_v58 = vsel %vm3988_vm2, %v6018_v4, %v6020_v11  ;;  %v6052_v6 = vadd.f32 %v6020_v11, %v5944_v2  ;;  %v6027_v52 = vsel %vm3988_vm2, %v15270_v56, %v6018_v4 }
0x1460   : > { %v6051_v46 = vadd.f32 %v6028_v58, %v5943_v3  ;;  %v6050_v7 = vadd.f32 %v6027_v52, %v5942_v15 }
0x1465   : > { %v6126_v49 = vpop.permute.xlu1 %6125 }
0x1466   : > { %v6316_v44 = vpop.permute.xlu0 %6315  ;;  %v6314_v20 = vpop.permute.xlu2 %6313  ;;  %v6135_v63 = vsel %vm2639_vm8, %v15271_v30, %v6126_v49 }
0x1467   : > { %v6158_v27 = vadd.f32 %v6135_v63, %v6050_v7  ;;  %v6320_v45 = vsel %vm15272_vm4, %v6314_v20, %v6316_v44 }
0x146d   : > { %v6236_v57 = vpop.permute.xlu1 %6235 }
0x146e   : > { %v6234_v0 = vpop.permute.xlu0 %6233  ;;  %v6634_v54 = vpop.permute.xlu2 %6633 }
0x146f   : > { %v6244_v48 = vsel %vm598_vm6, %v6234_v0, %v6236_v57  ;;  %v6243_v53 = vsel %vm598_vm6, %v13381_v34, %v6234_v0 }
0x1470   : > { %v6266_v50 = vadd.f32 %v6243_v53, %v6158_v27 }
0x1472   : > { %v6342_v34 = vadd.f32 %v6314_v20, %v6266_v50  ;;  %v15275_v20 = vld [vmem:[#allocation65_spill] sm:$0xff] }
0x1475   : > { %v6430_v5 = vpop.permute.xlu1 %6429 }
0x1476   : > { %v6428_v21 = vpop.permute.xlu0 %6427  ;;  %v6128_v23 = vpop.permute.xlu2 %6127  ;;  %v6440_v38 = vsel %vm4429_vm15, %v6430_v5, %v13418_v12  ;;  %v6643_v12 = vsel %vm4643_vm0, %v6632_v41, %v6634_v54 }
0x1477   : > { %v6136_v40 = vsel %vm2639_vm8, %v6126_v49, %v6128_v23  ;;  %v6160_v10 = vadd.f32 %v6128_v23, %v6052_v6  ;;  %v6439_v13 = vsel %vm4429_vm15, %v6428_v21, %v6430_v5  ;;  %v15274_v49 = vld [vmem:[#allocation55_spill] sm:$0xff] }
0x1478   : > { %v6159_v62 = vadd.f32 %v6136_v40, %v6051_v46 }
0x1479   : > { %v6268_v25 = vadd.f32 %v6236_v57, %v6160_v10 }
0x147a   : > { %v6267_v18 = vadd.f32 %v6244_v48, %v6159_v62 }
0x147b   : > { %v6344_v36 = vadd.f32 %v6316_v44, %v6268_v25  ;;  %v6644_v44 = vsel %vm4643_vm0, %v6634_v54, %v15274_v49 }
0x147c   : > { %v6343_v35 = vadd.f32 %v6320_v45, %v6267_v18 }
0x147d   : > { %v13770_v33 = vpop.permute.xlu1 %6613  ;;  %v6464_v59 = vadd.f32 %v6440_v38, %v6344_v36 }
0x147e   : > { %v13775_v22 = vadd.f32 %v13770_v33, %v13609_v32  ;;  %v6538_v8 = vpop.permute.xlu0 %6537  ;;  %v6536_v19 = vpop.permute.xlu2 %6535  ;;  %v6463_v60 = vadd.f32 %v6439_v13, %v6343_v35  ;;  %v6462_v32 = vadd.f32 %v6428_v21, %v6342_v34 }
0x147f   : > { %v6548_v51 = vsel %vm2875_vm1, %v6538_v8, %v15273_v31  ;;  %v6547_v55 = vsel %vm2875_vm1, %v6536_v19, %v6538_v8 }
0x1480   : > { %v6572_v1 = vadd.f32 %v6548_v51, %v6464_v59  ;;  %v6570_v39 = vadd.f32 %v6536_v19, %v6462_v32  ;;  %v6571_v11 = vadd.f32 %v6547_v55, %v6463_v60 }
0x1482   : > { %v6668_v47 = vadd.f32 %v6644_v44, %v6572_v1  ;;  %v6666_v26 = vadd.f32 %v6632_v41, %v6570_v39  ;;  %v6667_v61 = vadd.f32 %v6643_v12, %v6571_v11 }
0x1485   : > { %v6742_v4 = vpop.permute.xlu1 %6741 }
0x1486   : > { %v6740_v17 = vpop.permute.xlu0 %6739  ;;  %v13783_v42 = vpop.permute.xlu2 %6615  ;;  %v6752_v57 = vsel %vm2514_vm14, %v6742_v4, %v15275_v20 }
0x1487   : > { %v6751_v0 = vsel %vm2514_vm14, %v6740_v17, %v6742_v4  ;;  %v6776_v2 = vadd.f32 %v6752_v57, %v6668_v47  ;;  %v6774_v58 = vadd.f32 %v6740_v17, %v6666_v26 }
0x1488   : > { %v6775_v3 = vadd.f32 %v6751_v0, %v6667_v61 }
0x148e   : > { %v6795_v6 = vpop.permute.xlu0 %6794  ;;  %v13797_v23 = vpop.permute.xlu2 %6727 }
0x148f   : > { %v13791_v5 = vadd.f32 %v6795_v6, %v6774_v58  ;;  %v13793_v46 = vadd.f32 %v6795_v6, %v6775_v3  ;;  %v13795_v21 = vadd.f32 %v6795_v6, %v6776_v2 }
0x1491   : > { %v13800_v54 = vmul.f32 0.70710677, %v13791_v5  ;;  %v13803_v40 = vmul.f32 0.70710677, %v13793_v46  ;;  %v13806_v41 = vmul.f32 0.70710677, %v13795_v21 }
0x1493   : > { %v7193_v10 = vmul.f32 %v13800_v54, %v13800_v54  ;;  %v7233_v56 = vmul.f32 %v13803_v40, %v13803_v40  ;;  %v7273_v52 = vmul.f32 %v13806_v41, %v13806_v41 }
0x1495   : > { %v13814_v62 = vmin.f32 %v7193_v10, 16.0  ;;  %v13816_v15 = vmin.f32 %v7233_v56, 16.0  ;;  %v13818_v30 = vmin.f32 %v7273_v52, 16.0 }
0x1496   : > { %v13826_v50 = vpop.permute.xlu2 %6789 }
0x1497   : > { %v7195_v63 = vmul.f32 2.1237322e-06, %v13814_v62  ;;  %v7206_v48 = vmul.f32 3.8918573e-05, %v13814_v62  ;;  %v7235_v7 = vmul.f32 2.1237322e-06, %v13816_v15  ;;  %v13834_v60 = vadd.f32 %v13826_v50, %v13739_v37 }
0x1498   : > { %v7246_v18 = vmul.f32 3.8918573e-05, %v13816_v15  ;;  %v7286_v27 = vmul.f32 3.8918573e-05, %v13818_v30  ;;  %v7275_v19 = vmul.f32 2.1237322e-06, %v13818_v30  ;;  %v13840_v39 = vadd.f32 %v13826_v50, %v13749_v43 }
0x1499   : > { %v7196_v25 = vadd.f32 0.00028619796, %v7195_v63  ;;  %v7207_v53 = vadd.f32 0.001143296, %v7206_v48  ;;  %v7236_v45 = vadd.f32 0.00028619796, %v7235_v7 }
0x149a   : > { %v7247_v8 = vadd.f32 0.001143296, %v7246_v18  ;;  %v7287_v38 = vadd.f32 0.001143296, %v7286_v27  ;;  %v7276_v55 = vadd.f32 0.00028619796, %v7275_v19 }
0x149b   : > { %v7197_v36 = vmul.f32 %v7196_v25, %v13814_v62  ;;  %v7208_v35 = vmul.f32 %v7207_v53, %v13814_v62  ;;  %v7237_v31 = vmul.f32 %v7236_v45, %v13816_v15  ;;  %v13845_v37 = vmul.f32 0.70710677, %v13834_v60  ;;  %v6618_v25 = vpop.permute.xlu1 %6617 }
0x149c   : > { %v7248_v13 = vmul.f32 %v7247_v8, %v13816_v15  ;;  %v7288_v59 = vmul.f32 %v7287_v38, %v13818_v30  ;;  %v7277_v20 = vmul.f32 %v7276_v55, %v13818_v30  ;;  %v13851_v43 = vmul.f32 0.70710677, %v13840_v39 }
0x149d   : > { %v7209_v34 = vadd.f32 0.014752088, %v7208_v35  ;;  %v7198_v32 = vadd.f32 0.0036580483, %v7197_v36  ;;  %v7238_v49 = vadd.f32 0.0036580483, %v7237_v31  ;;  %v7073_v58 = vmul.f32 %v13845_v37, %v13845_v37 }
0x149e   : > { %v7249_v51 = vadd.f32 0.014752088, %v7248_v13  ;;  %v7289_v1 = vadd.f32 0.014752088, %v7288_v59  ;;  %v7278_v6 = vadd.f32 0.0036580483, %v7277_v20  ;;  %v7113_v63 = vmul.f32 %v13851_v43, %v13851_v43 }
0x149f   : > { %v7210_v17 = vmul.f32 %v7209_v34, %v13814_v62  ;;  %v7199_v57 = vmul.f32 %v7198_v32, %v13814_v62  ;;  %v7239_v52 = vmul.f32 %v7238_v49, %v13816_v15  ;;  %v13862_v18 = vmin.f32 %v7073_v58, 16.0 }
0x14a0   : > { %v7250_v11 = vmul.f32 %v7249_v51, %v13816_v15  ;;  %v7290_v12 = vmul.f32 %v7289_v1, %v13818_v30  ;;  %v7279_v45 = vmul.f32 %v7278_v6, %v13818_v30  ;;  %v13871_v36 = vmin.f32 %v7113_v63, 16.0 }
0x14a1   : > { %v7211_v4 = vadd.f32 0.112945676, %v7210_v17  ;;  %v7200_v10 = vadd.f32 0.05243302, %v7199_v57  ;;  %v7240_v19 = vadd.f32 0.05243302, %v7239_v52  ;;  %v6637_v13 = vsel %vm4643_vm0, %v13770_v33, %v13783_v42 }
0x14a2   : > { %v7251_v44 = vadd.f32 0.112945676, %v7250_v11  ;;  %v7291_v47 = vadd.f32 0.112945676, %v7290_v12  ;;  %v7075_v38 = vmul.f32 2.1237322e-06, %v13862_v18  ;;  %v6638_v34 = vsel %vm4643_vm0, %v13783_v42, %v6618_v25 }
0x14a3   : > { %v7212_v0 = vmul.f32 %v7211_v4, %v13814_v62  ;;  %v7201_v8 = vmul.f32 %v7200_v10, %v13814_v62  ;;  %v7086_v59 = vmul.f32 3.8918573e-05, %v13862_v18  ;;  %v7241_v51 = vmul.f32 %v7240_v19, %v13816_v15 }
0x14a4   : > { %v7252_v26 = vmul.f32 %v7251_v44, %v13816_v15  ;;  %v7292_v2 = vmul.f32 %v7291_v47, %v13818_v30  ;;  %v7280_v55 = vadd.f32 0.05243302, %v7279_v45  ;;  %v7126_v32 = vmul.f32 3.8918573e-05, %v13871_v36 }
0x14a5   : > { %v7213_v61 = vadd.f32 0.4994258, %v7212_v0  ;;  %v7202_v31 = vadd.f32 0.18741608, %v7201_v8  ;;  %v7076_v1 = vadd.f32 0.00028619796, %v7075_v38  ;;  %v13892_v42 = vadd.f32 %v6637_v13, %v13653_v24 }
0x14a6   : > { %v7253_v3 = vadd.f32 0.4994258, %v7252_v26  ;;  %v7293_v7 = vadd.f32 0.4994258, %v7292_v2  ;;  %v7087_v4 = vadd.f32 0.001143296, %v7086_v59  ;;  %v13895_v44 = vadd.f32 %v6638_v34, %v13656_v16  ;;  %v6730_v2 = vpop.permute.xlu0 %6729 }
0x14a7   : > { %v7214_v56 = vmul.f32 %v7213_v61, %v13814_v62  ;;  %v7115_v12 = vmul.f32 2.1237322e-06, %v13871_v36  ;;  %v7127_v33 = vadd.f32 0.001143296, %v7126_v32  ;;  %v13899_v20 = vadd.f32 %v13797_v23, %v13698_v14  ;;  %v6732_v61 = vpop.permute.xlu1 %6731 }
0x14a8   : > { %v7254_v48 = vmul.f32 %v7253_v3, %v13816_v15  ;;  %v7294_v35 = vmul.f32 %v7293_v7, %v13818_v30  ;;  %v13903_v57 = vadd.f32 %v13826_v50, %v13751_v28  ;;  %v7203_v0 = vmul.f32 %v7202_v31, %v13814_v62 }
0x14a9   : > { %v13864_v53 = vadd.f32 1.0, %v7214_v56  ;;  %v7242_v47 = vadd.f32 0.18741608, %v7241_v51  ;;  %v7281_v26 = vmul.f32 %v7280_v55, %v13818_v30  ;;  %v7088_v24 = vmul.f32 %v7087_v4, %v13862_v18 }
0x14aa   : > { %v13866_v27 = vadd.f32 1.0, %v7254_v48  ;;  %v13884_v17 = vadd.f32 1.0, %v7294_v35  ;;  %v7077_v14 = vmul.f32 %v7076_v1, %v13862_v18  ;;  %v7128_v58 = vmul.f32 %v7127_v33, %v13871_v36 }
0x14ab   : > { %8443 = vrcp.f32 %v13864_v53  ;;  %v13914_v28 = vmul.f32 0.5, %v13791_v5  ;;  %v7089_v50 = vadd.f32 0.014752088, %v7088_v24  ;;  %v7116_v3 = vadd.f32 0.00028619796, %v7115_v12 }
0x14ac   : > { %8445 = vrcp.f32 %v13866_v27  ;;  %v13919_v6 = vmul.f32 0.5, %v13793_v46  ;;  %v6747_v10 = vsel %vm2514_vm14, %v13797_v23, %v6730_v2  ;;  %v6748_v56 = vsel %vm2514_vm14, %v6730_v2, %v6732_v61 }
0x14ad   : > { %8447 = vrcp.f32 %v13884_v17  ;;  %v7129_v52 = vadd.f32 0.014752088, %v7128_v58  ;;  %v7204_v63 = vadd.f32 1.1283791, %v7203_v0  ;;  %v7243_v48 = vmul.f32 %v7242_v47, %v13816_v15 }
0x14ae   : > { %v7282_v7 = vadd.f32 0.18741608, %v7281_v26  ;;  %v13926_v5 = vmul.f32 0.70710677, %v13903_v57  ;;  %v7078_v45 = vadd.f32 0.0036580483, %v7077_v14  ;;  %v7090_v8 = vmul.f32 %v7089_v50, %v13862_v18 }
0x14af   : > { %v7130_v46 = vmul.f32 %v7129_v52, %v13871_v36  ;;  %v13931_v19 = vmul.f32 0.5, %v13795_v21  ;;  %v13934_v35 = vadd.f32 %v6747_v10, %v13723_v29  ;;  %v7117_v38 = vmul.f32 %v7116_v3, %v13871_v36  ;;  %v6724_v33 = vpop.permute.xlu1 %6723  ;;  %v6722_v10 = vpop.permute.xlu0 %6721 }
0x14b0   : > { %v13940_v13 = vadd.f32 %v6748_v56, %v13720_v9  ;;  %v13943_v34 = vmul.f32 0.5, %v13834_v60  ;;  %v7091_v59 = vadd.f32 0.112945676, %v7090_v8  ;;  %v7244_v51 = vadd.f32 1.1283791, %v7243_v48 }
0x14b1   : > { %v13886_v11 = vpop.eup %8443  ;;  %v7131_v31 = vadd.f32 0.112945676, %v7130_v46  ;;  %v13946_v21 = vmul.f32 %v7282_v7, %v13818_v30  ;;  %v13949_v55 = vmul.f32 0.5, %v13840_v39  ;;  %v7153_v29 = vmul.f32 %v13926_v5, %v13926_v5 }
0x14b2   : > { %v13889_v49 = vpop.eup %8445  ;;  %v7217_v16 = vmul.f32 %v13886_v11, %v13864_v53  ;;  %v13954_v32 = vmul.f32 %v7204_v63, %v13800_v54  ;;  %v7079_v60 = vmul.f32 %v7078_v45, %v13862_v18  ;;  %v7092_v1 = vmul.f32 %v7091_v59, %v13862_v18 }
0x14b3   : > { %v7257_v62 = vmul.f32 %v13889_v49, %v13866_v27  ;;  %v13937_v15 = vpop.eup %8447  ;;  %v7118_v12 = vadd.f32 0.0036580483, %v7117_v38  ;;  %v7132_v39 = vmul.f32 %v7131_v31, %v13871_v36  ;;  %vm7221_vm6 = vweird.f32 %v13864_v53  ;;  %v6726_v31 = vpop.permute.xlu2 %6725 }
0x14b4   : > { %v7218_v25 = vsub.f32 1.0, %v7217_v16  ;;  %v7297_v30 = vmul.f32 %v13937_v15, %v13884_v17  ;;  %v7225_v54 = vand.u32 2147483647, %v13864_v53  ;;  %v7227_v0 = vand.u32 2147483648, %v13864_v53 }
0x14b5   : > { %v7258_v23 = vsub.f32 1.0, %v7257_v62  ;;  %v7093_v47 = vadd.f32 0.4994258, %v7092_v1  ;;  %vm7222_vm8 = vweird.f32 %v13886_v11  ;;  %v7265_v26 = vand.u32 2147483647, %v13866_v27 }
0x14b6   : > { %v7219_v9 = vmul.f32 %v13886_v11, %v7218_v25  ;;  %v7133_v61 = vadd.f32 0.4994258, %v7132_v39  ;;  %v13968_v2 = vmin.f32 %v7153_v29, 16.0  ;;  %vm7262_vm1 = vweird.f32 %v13889_v49  ;;  %vm13985_vm15 = vmor %vm7221_vm6, %vm7222_vm8 }
0x14b7   : > { %v7259_v4 = vmul.f32 %v13889_v49, %v7258_v23  ;;  %v7080_v16 = vadd.f32 0.05243302, %v7079_v60  ;;  %v7094_v14 = vmul.f32 %v7093_v47, %v13862_v18  ;;  %v7298_v62 = vsub.f32 1.0, %v7297_v30 }
0x14b8   : > { %v7220_v24 = vadd.f32 %v13886_v11, %v7219_v9  ;;  %v7119_v50 = vmul.f32 %v7118_v12, %v13871_v36  ;;  %v7134_v3 = vmul.f32 %v7133_v61, %v13871_v36  ;;  %v7245_v56 = vmul.f32 %v7244_v51, %v13803_v40 }
0x14b9   : > { %v7260_v58 = vadd.f32 %v13889_v49, %v7259_v4  ;;  %vm7261_vm2 = vweird.f32 %v13866_v27  ;;  %v7267_v52 = vand.u32 2147483648, %v13866_v27  ;;  %v13979_v63 = vadd.f32 1.0, %v7094_v14  ;;  %v6780_v4 = vpop.permute.xlu1 %6779 }
0x14ba   : > { %vm13989_vm0 = vcmp.eq.f32.partialorder %v7225_v54, 8.507059e+37  ;;  %v7228_v25 = vor.u32 1.1754944e-38, %v7227_v0  ;;  %v13993_v40 = vadd.f32 1.0, %v7134_v3  ;;  %v7166_v45 = vmul.f32 3.8918573e-05, %v13968_v2  ;;  %vm14001_vm11 = vmor %vm7261_vm2, %vm7262_vm1 }
0x14bb   : > { %v7224_v27 = vsel %vm13985_vm15, %v13886_v11, %v7220_v24  ;;  %vm14005_vm5 = vcmp.eq.f32.partialorder %v7265_v26, 8.507059e+37  ;;  %v7081_v46 = vmul.f32 %v7080_v16, %v13862_v18  ;;  %v6745_v23 = vsel %vm2514_vm14, %v6722_v10, %v6724_v33 }
0x14bc   : > { %v7264_v38 = vsel %vm14001_vm11, %v13889_v49, %v7260_v58  ;;  %v7299_v11 = vmul.f32 %v13937_v15, %v7298_v62  ;;  %8449 = vrcp.f32 %v13979_v63  ;;  %v7120_v59 = vadd.f32 0.05243302, %v7119_v50 }
0x14bd   : > { %v7268_v51 = vor.u32 1.1754944e-38, %v7267_v52  ;;  %v7305_v29 = vand.u32 2147483647, %v13884_v17  ;;  %v7307_v9 = vand.u32 2147483648, %v13884_v17  ;;  %v7155_v60 = vmul.f32 2.1237322e-06, %v13968_v2 }
0x14be   : > { %v7229_v1 = vsel %vm13989_vm0, %v7228_v25, %v7224_v27  ;;  %vm7302_vm13 = vweird.f32 %v13937_v15  ;;  %8451 = vrcp.f32 %v13993_v40  ;;  %v7167_v49 = vadd.f32 0.001143296, %v7166_v45 }
0x14bf   : > { %v7269_v30 = vsel %vm14005_vm5, %v7268_v51, %v7264_v38  ;;  %v6765_v12 = vadd.f32 %v6722_v10, %v13775_v22  ;;  %v6766_v39 = vadd.f32 %v6745_v23, %v13892_v42  ;;  %v6746_v54 = vsel %vm2514_vm14, %v6724_v33, %v6726_v31 }
0x14c0   : > { %v7300_v0 = vadd.f32 %v13937_v15, %v7299_v11  ;;  %v7082_v47 = vadd.f32 0.18741608, %v7081_v46  ;;  %v7121_v26 = vmul.f32 %v7120_v59, %v13871_v36  ;;  %v7168_v61 = vmul.f32 %v7167_v49, %v13968_v2 }
0x14c1   : > { %v7156_v24 = vadd.f32 0.00028619796, %v7155_v60  ;;  %v6767_v16 = vadd.f32 %v6746_v54, %v13895_v44  ;;  %v14032_v14 = vadd.f32 %v6780_v4, %v6765_v12  ;;  %v14034_v58 = vadd.f32 %v6780_v4, %v6766_v39 }
0x14c2   : > { %v14036_v62 = vpop.eup %8449  ;;  %v7230_v22 = vmul.f32 %v7229_v1, %v13954_v32  ;;  %v7270_v42 = vmul.f32 %v7269_v30, %v7245_v56  ;;  %vm7301_vm14 = vweird.f32 %v13884_v17  ;;  %v7169_v33 = vadd.f32 0.014752088, %v7168_v61 }
0x14c3   : > { %v7284_v50 = vadd.f32 1.1283791, %v13946_v21  ;;  %vm14043_vm12 = vmor %vm7301_vm14, %vm7302_vm13  ;;  %vm14047_vm7 = vcmp.eq.f32.partialorder %v7305_v29, 8.507059e+37  ;;  %v7308_v10 = vor.u32 1.1754944e-38, %v7307_v9  ;;  %v14051_v52 = vadd.f32 %v6780_v4, %v6767_v16 }
0x14c4   : > { %v14053_v32 = vpop.eup %8451  ;;  %v7304_v17 = vsel %vm14043_vm12, %v13937_v15, %v7300_v0  ;;  %v7083_v21 = vmul.f32 %v7082_v47, %v13862_v18  ;;  %v7122_v56 = vadd.f32 0.18741608, %v7121_v26  ;;  %v7170_v48 = vmul.f32 %v7169_v33, %v13968_v2 }
0x14c5   : > { %v7097_v7 = vmul.f32 %v14036_v62, %v13979_v63  ;;  %v7157_v25 = vmul.f32 %v7156_v24, %v13968_v2  ;;  %v14064_v45 = vmul.f32 0.70710677, %v14032_v14  ;;  %v14067_v27 = vmul.f32 0.70710677, %v14034_v58 }
0x14c6   : > { %v7924_v53 = vclamps-f32 %v7230_v22, 1.0  ;;  %v7925_v8 = vclamps-f32 %v7270_v42, 1.0  ;;  %v7171_v46 = vadd.f32 0.112945676, %v7170_v48  ;;  %v14070_v15 = vmul.f32 0.70710677, %v14051_v52 }
0x14c7   : > { %v7309_v18 = vsel %vm14047_vm7, %v7308_v10, %v7304_v17  ;;  %v7137_v23 = vmul.f32 %v14053_v32, %v13993_v40  ;;  %v6833_v38 = vmul.f32 %v14064_v45, %v14064_v45  ;;  %v6873_v11 = vmul.f32 %v14067_v27, %v14067_v27 }
0x14c8   : > { %v7285_v59 = vmul.f32 %v7284_v50, %v13806_v41  ;;  %v7084_v31 = vadd.f32 1.1283791, %v7083_v21  ;;  %v7172_v51 = vmul.f32 %v7171_v46, %v13968_v2  ;;  %v6913_v29 = vmul.f32 %v14070_v15, %v14070_v15 }
0x14c9   : > { %v7098_v9 = vsub.f32 1.0, %v7097_v7  ;;  %v7158_v60 = vadd.f32 0.0036580483, %v7157_v25  ;;  %v14084_v1 = vmin.f32 %v6833_v38, 16.0  ;;  %v14086_v49 = vmin.f32 %v6873_v11, 16.0 }
0x14ca   : > { %v7310_v4 = vmul.f32 %v7309_v18, %v7285_v59  ;;  %v7322_v30 = vadd.f32 1.0, %v7924_v53  ;;  %v14089_v12 = vmul.f32 0.5, %v13903_v57  ;;  %v7173_v39 = vadd.f32 0.4994258, %v7172_v51 }
0x14cb   : > { %v14091_v54 = vadd.f32 1.0, %v7925_v8  ;;  %v7123_v41 = vmul.f32 %v7122_v56, %v13871_v36  ;;  %v7138_v0 = vsub.f32 1.0, %v7137_v23  ;;  %v6846_v47 = vmul.f32 3.8918573e-05, %v14084_v1 }
0x14cc   : > { %v14096_v26 = vmul.f32 %v7084_v31, %v13845_v37  ;;  %v7174_v61 = vmul.f32 %v7173_v39, %v13968_v2  ;;  %v6875_v24 = vmul.f32 2.1237322e-06, %v14086_v49  ;;  %v14100_v16 = vmin.f32 %v6913_v29, 16.0 }
0x14cd   : > { %v7099_v57 = vmul.f32 %v14036_v62, %v7098_v9  ;;  %v7159_v22 = vmul.f32 %v7158_v60, %v13968_v2  ;;  %v6847_v42 = vadd.f32 0.001143296, %v6846_v47  ;;  %v6886_v33 = vmul.f32 3.8918573e-05, %v14086_v49 }
0x14ce   : > { %v7926_v36 = vclamps-f32 %v7310_v4, 1.0  ;;  %v14106_v50 = vmul.f32 %v7322_v30, %v13914_v28  ;;  %v14108_v3 = vadd.f32 1.0, %v7174_v61  ;;  %v6876_v37 = vadd.f32 0.00028619796, %v6875_v24 }
0x14cf   : > { %v7124_v44 = vadd.f32 1.1283791, %v7123_v41  ;;  %v7139_v10 = vmul.f32 %v14053_v32, %v7138_v0  ;;  %v6848_v17 = vmul.f32 %v6847_v42, %v14084_v1  ;;  %v6887_v21 = vadd.f32 0.001143296, %v6886_v33  ;;  %v6785_v33 = vpop.permute.xlu0 %6784 }
0x14d0   : > { %vm7101_vm10 = vweird.f32 %v13979_v63  ;;  %v7105_v56 = vand.u32 2147483647, %v13979_v63  ;;  %8453 = vrcp.f32 %v14108_v3  ;;  %v6915_v48 = vmul.f32 2.1237322e-06, %v14100_v16 }
0x14d1   : > { %v7100_v28 = vadd.f32 %v14036_v62, %v7099_v57  ;;  %vm7102_vm4 = vweird.f32 %v14036_v62  ;;  %v7160_v7 = vadd.f32 0.05243302, %v7159_v22  ;;  %v6849_v25 = vadd.f32 0.014752088, %v6848_v17 }
0x14d2   : > { %v14118_v53 = vadd.f32 1.0, %v7926_v36  ;;  %v7107_v8 = vand.u32 2147483648, %v13979_v63  ;;  %v6877_v46 = vmul.f32 %v6876_v37, %v14086_v49  ;;  %v6888_v18 = vmul.f32 %v6887_v21, %v14086_v49  ;;  %vm14129_vm8 = vmor %vm7101_vm10, %vm7102_vm4 }
0x14d3   : > { %v7125_v23 = vmul.f32 %v7124_v44, %v13851_v43  ;;  %v7140_v38 = vadd.f32 %v14053_v32, %v7139_v10  ;;  %vm7142_vm6 = vweird.f32 %v14053_v32  ;;  %v6850_v11 = vmul.f32 %v6849_v25, %v14084_v1 }
0x14d4   : > { %vm7141_vm1 = vweird.f32 %v13993_v40  ;;  %v7147_v31 = vand.u32 2147483648, %v13993_v40  ;;  %v6889_v51 = vadd.f32 0.014752088, %v6888_v18  ;;  %v6916_v29 = vadd.f32 0.00028619796, %v6915_v48 }
0x14d5   : > { %v7104_v43 = vsel %vm14129_vm8, %v14036_v62, %v7100_v28  ;;  %v7145_v9 = vand.u32 2147483647, %v13993_v40  ;;  %v7161_v60 = vmul.f32 %v7160_v7, %v13968_v2  ;;  %v6878_v4 = vadd.f32 0.0036580483, %v6877_v46  ;;  %vm14142_vm2 = vmor %vm7141_vm1, %vm7142_vm6 }
0x14d6   : > { %v14140_v63 = vpop.eup %8453  ;;  %v7108_v30 = vor.u32 1.1754944e-38, %v7107_v8  ;;  %v6851_v41 = vadd.f32 0.112945676, %v6850_v11  ;;  %v6890_v0 = vmul.f32 %v6889_v51, %v14086_v49  ;;  %v6926_v47 = vmul.f32 3.8918573e-05, %v14100_v16 }
0x14d7   : > { %vm7106_vm15 = vcmp.eq.f32.partialorder %v7105_v56, 8.507059e+37  ;;  %v7144_v40 = vsel %vm14142_vm2, %v14053_v32, %v7140_v38  ;;  %v7177_v62 = vmul.f32 %v14140_v63, %v14108_v3  ;;  %v6835_v61 = vmul.f32 2.1237322e-06, %v14084_v1 }
0x14d8   : > { %v7109_v24 = vsel %vm7106_vm15, %v7108_v30, %v7104_v43  ;;  %v7148_v57 = vor.u32 1.1754944e-38, %v7147_v31  ;;  %v6891_v22 = vadd.f32 0.112945676, %v6890_v0  ;;  %v6917_v42 = vmul.f32 %v6916_v29, %v14100_v16 }
0x14d9   : > { %vm7146_vm0 = vcmp.eq.f32.partialorder %v7145_v9, 8.507059e+37  ;;  %v7162_v36 = vadd.f32 0.18741608, %v7161_v60  ;;  %v7178_v37 = vsub.f32 1.0, %v7177_v62  ;;  %v6879_v44 = vmul.f32 %v6878_v4, %v14086_v49 }
0x14da   : > { %v7149_v10 = vsel %vm7146_vm0, %v7148_v57, %v7144_v40  ;;  %v6852_v17 = vmul.f32 %v6851_v41, %v14084_v1  ;;  %v6892_v32 = vmul.f32 %v6891_v22, %v14086_v49  ;;  %v6927_v21 = vadd.f32 0.001143296, %v6926_v47 }
0x14db   : > { %v7110_v56 = vmul.f32 %v7109_v24, %v14096_v26  ;;  %v7179_v48 = vmul.f32 %v14140_v63, %v7178_v37  ;;  %v6836_v28 = vadd.f32 0.00028619796, %v6835_v61  ;;  %v14161_v7 = vadd.f32 %v6785_v33, %v13899_v20 }
0x14dc   : > { %v6893_v25 = vadd.f32 0.4994258, %v6892_v32  ;;  %v6918_v8 = vadd.f32 0.0036580483, %v6917_v42  ;;  %v6928_v46 = vmul.f32 %v6927_v21, %v14100_v16  ;;  %v14165_v18 = vadd.f32 %v6785_v33, %v13934_v35 }
0x14dd   : > { %v7150_v38 = vmul.f32 %v7149_v10, %v7125_v23  ;;  %v7163_v11 = vmul.f32 %v7162_v36, %v13968_v2  ;;  %vm7182_vm11 = vweird.f32 %v14140_v63  ;;  %v6880_v59 = vadd.f32 0.05243302, %v6879_v44 }
0x14de   : > { %v7180_v26 = vadd.f32 %v14140_v63, %v7179_v48  ;;  %v6853_v31 = vadd.f32 0.4994258, %v6852_v17  ;;  %v6894_v51 = vmul.f32 %v6893_v25, %v14086_v49  ;;  %v6929_v20 = vadd.f32 0.014752088, %v6928_v46 }
0x14df   : > { %v7921_v29 = vclamps-f32 %v7110_v56, 1.0  ;;  %v7187_v43 = vand.u32 2147483648, %v14108_v3  ;;  %v6837_v9 = vmul.f32 %v6836_v28, %v14084_v1  ;;  %v14174_v35 = vadd.f32 %v6785_v33, %v13940_v13 }
0x14e0   : > { %vm7181_vm5 = vweird.f32 %v14108_v3  ;;  %v7185_v2 = vand.u32 2147483647, %v14108_v3  ;;  %v6919_v23 = vmul.f32 %v6918_v8, %v14100_v16  ;;  %v14180_v60 = vmul.f32 0.70710677, %v14161_v7 }
0x14e1   : > { %vm14182_vm13 = vmor %vm7181_vm5, %vm7182_vm11  ;;  %v6881_v30 = vmul.f32 %v6880_v59, %v14086_v49  ;;  %v14187_v39 = vadd.f32 1.0, %v6894_v51  ;;  %v6930_v13 = vmul.f32 %v6929_v20, %v14100_v16  ;;  %v14191_v41 = vmul.f32 0.70710677, %v14165_v18 }
0x14e2   : > { %v7922_v0 = vclamps-f32 %v7150_v38, 1.0  ;;  %v7164_v3 = vadd.f32 1.1283791, %v7163_v11  ;;  %v7184_v47 = vsel %vm14182_vm13, %v14140_v63, %v7180_v26  ;;  %v6854_v40 = vmul.f32 %v6853_v31, %v14084_v1 }
0x14e3   : > { %v7188_v62 = vor.u32 1.1754944e-38, %v7187_v43  ;;  %v7319_v61 = vadd.f32 1.0, %v7921_v29  ;;  %v6838_v24 = vadd.f32 0.0036580483, %v6837_v9  ;;  %8455 = vrcp.f32 %v14187_v39 }
0x14e4   : > { %vm7186_vm14 = vcmp.eq.f32.partialorder %v7185_v2, 8.507059e+37  ;;  %v6920_v57 = vadd.f32 0.05243302, %v6919_v23  ;;  %v6931_v22 = vadd.f32 0.112945676, %v6930_v13  ;;  %v6953_v42 = vmul.f32 %v14180_v60, %v14180_v60 }
0x14e5   : > { %v14202_v33 = vmul.f32 %v14091_v54, %v13919_v6  ;;  %v7189_v36 = vsel %vm7186_vm14, %v7188_v62, %v7184_v47  ;;  %v6882_v37 = vadd.f32 0.18741608, %v6881_v30  ;;  %v6993_v63 = vmul.f32 %v14191_v41, %v14191_v41 }
0x14e6   : > { %v14208_v44 = vmul.f32 %v14118_v53, %v13931_v19  ;;  %v7165_v10 = vmul.f32 %v7164_v3, %v13926_v5  ;;  %v14211_v17 = vadd.f32 1.0, %v6854_v40  ;;  %v14214_v32 = vmul.f32 0.70710677, %v14174_v35 }
0x14e7   : > { %v7320_v21 = vadd.f32 1.0, %v7922_v0  ;;  %v6932_v6 = vmul.f32 %v6931_v22, %v14100_v16  ;;  %v14217_v54 = vmin.f32 %v6953_v42, 16.0  ;;  %v14219_v56 = vmin.f32 %v6993_v63, 16.0 }
0x14e8   : > { %v7190_v48 = vmul.f32 %v7189_v36, %v7165_v10  ;;  %v14222_v28 = vmul.f32 %v7319_v61, %v13943_v34  ;;  %v6839_v19 = vmul.f32 %v6838_v24, %v14084_v1  ;;  %v6921_v5 = vmul.f32 %v6920_v57, %v14100_v16 }
0x14e9   : > { %v8456_v53 = vpop.eup %8455  ;;  %v6883_v25 = vmul.f32 %v6882_v37, %v14086_v49  ;;  %v6933_v8 = vadd.f32 0.4994258, %v6932_v6  ;;  %v6955_v46 = vmul.f32 2.1237322e-06, %v14217_v54  ;;  %v6966_v38 = vmul.f32 3.8918573e-05, %v14217_v54 }
0x14ea   : > { %8457 = vrcp.f32 %v14211_v17  ;;  %v6897_v11 = vmul.f32 %v8456_v53, %v14187_v39  ;;  %v6995_v59 = vmul.f32 2.1237322e-06, %v14219_v56  ;;  %v7033_v34 = vmul.f32 %v14214_v32, %v14214_v32 }
0x14eb   : > { %v6934_v26 = vmul.f32 %v6933_v8, %v14100_v16  ;;  %v6956_v31 = vadd.f32 0.00028619796, %v6955_v46  ;;  %v6967_v51 = vadd.f32 0.001143296, %v6966_v38  ;;  %v7006_v49 = vmul.f32 3.8918573e-05, %v14219_v56 }
0x14ec   : > { %v7923_v20 = vclamps-f32 %v7190_v48, 1.0  ;;  %v6898_v29 = vsub.f32 1.0, %v6897_v11  ;;  %v6922_v43 = vadd.f32 0.18741608, %v6921_v5  ;;  %v6996_v9 = vadd.f32 0.00028619796, %v6995_v59 }
0x14ed   : > { %v14236_v2 = vadd.f32 1.0, %v6934_v26  ;;  %v6957_v23 = vmul.f32 %v6956_v31, %v14217_v54  ;;  %v6968_v4 = vmul.f32 %v6967_v51, %v14217_v54  ;;  %v7007_v30 = vadd.f32 0.001143296, %v7006_v49 }
0x14ee   : > { %v6899_v13 = vmul.f32 %v8456_v53, %v6898_v29  ;;  %vm6902_vm12 = vweird.f32 %v8456_v53  ;;  %v6907_v0 = vand.u32 2147483648, %v14187_v39  ;;  %v14241_v3 = vmin.f32 %v7033_v34, 16.0 }
0x14ef   : > { %v6840_v47 = vadd.f32 0.05243302, %v6839_v19  ;;  %v6905_v40 = vand.u32 2147483647, %v14187_v39  ;;  %8459 = vrcp.f32 %v14236_v2  ;;  %v6997_v62 = vmul.f32 %v6996_v9, %v14219_v56 }
0x14f0   : > { %v14246_v61 = vpop.eup %8457  ;;  %v6884_v24 = vadd.f32 1.1283791, %v6883_v25  ;;  %v6900_v57 = vadd.f32 %v8456_v53, %v6899_v13  ;;  %vm6901_vm7 = vweird.f32 %v14187_v39  ;;  %v6958_v22 = vadd.f32 0.0036580483, %v6957_v23 }
0x14f1   : > { %v14250_v42 = vmul.f32 %v7320_v21, %v13949_v55  ;;  %vm6903_vm10 = vmor %vm6901_vm7, %vm6902_vm12  ;;  %v6923_v36 = vmul.f32 %v6922_v43, %v14100_v16  ;;  %v6969_v37 = vadd.f32 0.014752088, %v6968_v4  ;;  %v7008_v63 = vmul.f32 %v7007_v30, %v14219_v56 }
0x14f2   : > { %v7321_v10 = vadd.f32 1.0, %v7923_v20  ;;  %v6904_v6 = vsel %vm6903_vm10, %v8456_v53, %v6900_v57  ;;  %v6908_v48 = vor.u32 1.1754944e-38, %v6907_v0  ;;  %v7035_v19 = vmul.f32 2.1237322e-06, %v14241_v3 }
0x14f3   : > { %vm6906_vm4 = vcmp.eq.f32.partialorder %v6905_v40, 8.507059e+37  ;;  %v6970_v5 = vmul.f32 %v6969_v37, %v14217_v54  ;;  %v6998_v25 = vadd.f32 0.0036580483, %v6997_v62  ;;  %v7009_v39 = vadd.f32 0.014752088, %v7008_v63 }
0x14f4   : > { %v6841_v8 = vmul.f32 %v6840_v47, %v14084_v1  ;;  %v6885_v55 = vmul.f32 %v6884_v24, %v14067_v27  ;;  %v6909_v21 = vsel %vm6906_vm4, %v6908_v48, %v6904_v6  ;;  %v6959_v16 = vmul.f32 %v6958_v22, %v14217_v54 }
0x14f5   : > { %v8460_v46 = vpop.eup %8459  ;;  %v14261_v38 = vmul.f32 %v14246_v61, %v14211_v17  ;;  %v6971_v53 = vadd.f32 0.112945676, %v6970_v5  ;;  %v7010_v11 = vmul.f32 %v7009_v39, %v14219_v56  ;;  %v7046_v59 = vmul.f32 3.8918573e-05, %v14241_v3 }
0x14f6   : > { %v7333_v34 = vmul.f32 %v7321_v10, %v14089_v12  ;;  %v6924_v26 = vadd.f32 1.1283791, %v6923_v36  ;;  %v6937_v31 = vmul.f32 %v8460_v46, %v14236_v2  ;;  %v7036_v51 = vadd.f32 0.00028619796, %v7035_v19 }
0x14f7   : > { %v6910_v27 = vmul.f32 %v6909_v21, %v6885_v55  ;;  %v6972_v49 = vmul.f32 %v6971_v53, %v14217_v54  ;;  %v6999_v20 = vmul.f32 %v6998_v25, %v14219_v56  ;;  %v7011_v29 = vadd.f32 0.112945676, %v7010_v11 }
0x14f8   : > { %v6938_v43 = vsub.f32 1.0, %v6937_v31  ;;  %vm6941_vm6 = vweird.f32 %v14236_v2  ;;  %v6960_v9 = vadd.f32 0.05243302, %v6959_v16  ;;  %v7047_v23 = vadd.f32 0.001143296, %v7046_v59 }
0x14f9   : > { %v6945_v4 = vand.u32 2147483647, %v14236_v2  ;;  %v6947_v30 = vand.u32 2147483648, %v14236_v2  ;;  %v6973_v12 = vadd.f32 0.4994258, %v6972_v49  ;;  %v7012_v13 = vmul.f32 %v7011_v29, %v14219_v56 }
0x14fa   : > { %v6939_v0 = vmul.f32 %v8460_v46, %v6938_v43  ;;  %vm6942_vm8 = vweird.f32 %v8460_v46  ;;  %v7037_v47 = vmul.f32 %v7036_v51, %v14241_v3  ;;  %v7048_v40 = vmul.f32 %v7047_v23, %v14241_v3 }
0x14fb   : > { %v7916_v62 = vclamps-f32 %v6910_v27, 1.0  ;;  %v6974_v24 = vmul.f32 %v6973_v12, %v14217_v54  ;;  %v7000_v57 = vadd.f32 0.05243302, %v6999_v20  ;;  %v7013_v22 = vadd.f32 0.4994258, %v7012_v13  ;;  %vm6943_vm1 = vmor %vm6941_vm6, %vm6942_vm8 }
0x14fc   : > { %v6940_v36 = vadd.f32 %v8460_v46, %v6939_v0  ;;  %v6961_v37 = vmul.f32 %v6960_v9, %v14217_v54  ;;  %v7049_v63 = vadd.f32 0.014752088, %v7048_v40  ;;  %v8351_v10 = vpack.i.bf16 %v14202_v33, %v14106_v50 }
0x14fd   : > { %v6925_v6 = vmul.f32 %v6924_v26, %v14070_v15  ;;  %v6948_v48 = vor.u32 1.1754944e-38, %v6947_v30  ;;  %v14282_v19 = vadd.f32 1.0, %v6974_v24  ;;  %v7014_v5 = vmul.f32 %v7013_v22, %v14219_v56 }
0x14fe   : > { %v6944_v25 = vsel %vm6943_vm1, %v8460_v46, %v6940_v36  ;;  %vm6946_vm2 = vcmp.eq.f32.partialorder %v6945_v4, 8.507059e+37  ;;  %v7050_v39 = vmul.f32 %v7049_v63, %v14241_v3  ;;  %8352 = vrot.lane.b32.xlu2 %v8351_v10, %s8524_s30  ;;  %v8341_v55 = vpack.i.bf16 %v7333_v34, %v14250_v42 }
0x14ff   : > { %v6949_v21 = vsel %vm6946_vm2, %v6948_v48, %v6944_v25  ;;  %8461 = vrcp.f32 %v14282_v19  ;;  %v7001_v15 = vmul.f32 %v7000_v57, %v14219_v56  ;;  %v7038_v50 = vadd.f32 0.0036580483, %v7037_v47 }
0x1500   : > { %v6950_v33 = vmul.f32 %v6949_v21, %v6925_v6  ;;  %v7314_v2 = vadd.f32 1.0, %v7916_v62  ;;  %v6962_v16 = vadd.f32 0.18741608, %v6961_v37  ;;  %8342 = vrot.lane.b32.xlu1 %v8341_v55, %s8524_s30  ;;  %v14291_v53 = vadd.f32 1.0, %v7014_v5 }
0x1501   : > { %v7051_v46 = vadd.f32 0.112945676, %v7050_v39  ;;  %v8346_v11 = vpack.i.bf16 %v14222_v28, %v14208_v44  ;;  %v6810_v59 = vmul.f32 0.5, %v14034_v58  ;;  %v6811_v42 = vmul.f32 0.5, %v14051_v52 }
0x1502   : > { %v6842_v34 = vadd.f32 0.18741608, %v6841_v8  ;;  %v7917_v26 = vclamps-f32 %v6950_v33, 1.0  ;;  %v6858_v31 = vsub.f32 1.0, %v14261_v38  ;;  %v7002_v51 = vadd.f32 0.18741608, %v7001_v15 }
0x1503   : > { %8463 = vrcp.f32 %v14291_v53  ;;  %v7039_v27 = vmul.f32 %v7038_v50, %v14241_v3  ;;  %8347 = vrot.lane.b32.xlu0 %v8346_v11, %s8524_s30  ;;  %v7326_v20 = vmul.f32 %v7314_v2, %v6810_v59  ;;  %v6963_v29 = vmul.f32 %v6962_v16, %v14217_v54 }
0x1504   : > { %v7315_v49 = vadd.f32 1.0, %v7917_v26  ;;  %v7052_v44 = vmul.f32 %v7051_v46, %v14241_v3  ;;  %v6843_v52 = vmul.f32 %v6842_v34, %v14084_v1  ;;  %vm6861_vm15 = vweird.f32 %v14211_v17 }
0x1505   : > { %v8462_v58 = vpop.eup %8461  ;;  %v6859_v38 = vmul.f32 %v14246_v61, %v6858_v31  ;;  %v7003_v43 = vmul.f32 %v7002_v51, %v14219_v56  ;;  %v7040_v9 = vadd.f32 0.05243302, %v7039_v27  ;;  %v6865_v4 = vand.u32 2147483647, %v14211_v17 }
0x1506   : > { %v7327_v28 = vmul.f32 %v7315_v49, %v6811_v42  ;;  %v6977_v8 = vmul.f32 %v8462_v58, %v14282_v19  ;;  %v7053_v23 = vadd.f32 0.4994258, %v7052_v44  ;;  %v6964_v30 = vadd.f32 1.1283791, %v6963_v29 }
0x1507   : > { %v6867_v0 = vand.u32 2147483648, %v14211_v17  ;;  %v6985_v1 = vand.u32 2147483647, %v14282_v19  ;;  %v6987_v47 = vand.u32 2147483648, %v14282_v19  ;;  %vm6862_vm0 = vweird.f32 %v14246_v61 }
0x1508   : > { %v6978_v54 = vsub.f32 1.0, %v6977_v8  ;;  %v8366_v12 = vpack.i.bf16 %v7327_v28, %v7326_v20  ;;  %v7054_v40 = vmul.f32 %v7053_v23, %v14241_v3  ;;  %vm6982_vm11 = vweird.f32 %v8462_v58  ;;  %vm14326_vm7 = vmor %vm6861_vm15, %vm6862_vm0 }
0x1509   : > { %v8464_v13 = vpop.eup %8463  ;;  %v6860_v24 = vadd.f32 %v14246_v61, %v6859_v38  ;;  %v7004_v57 = vadd.f32 1.1283791, %v7003_v43  ;;  %v7041_v22 = vmul.f32 %v7040_v9, %v14241_v3  ;;  %v6965_v37 = vmul.f32 %v6964_v30, %v14180_v60 }
0x150a   : > { %v6979_v62 = vmul.f32 %v8462_v58, %v6978_v54  ;;  %v7017_v56 = vmul.f32 %v8464_v13, %v14291_v53  ;;  %8367 = vrot.lane.b32.xlu1 %v8366_v12, %s8524_s30  ;;  %v7055_v36 = vadd.f32 1.0, %v7054_v40  ;;  %vm6981_vm5 = vweird.f32 %v14282_v19  ;;  %v7929_v40 = vld [vmem:[%s14507_s5 + $0x40] sm:$0xff] }
0x150b   : > { %vm6983_vm13 = vmor %vm6981_vm5, %vm6982_vm11  ;;  %vm6986_vm14 = vcmp.eq.f32.partialorder %v6985_v1, 8.507059e+37  ;;  %v6988_v6 = vor.u32 1.1754944e-38, %v6987_v47  ;;  %v7027_v48 = vand.u32 2147483648, %v14291_v53  ;;  %vm7022_vm12 = vweird.f32 %v8464_v13 }
0x150c   : > { %v6980_v63 = vadd.f32 %v8462_v58, %v6979_v62  ;;  %v7018_v10 = vsub.f32 1.0, %v7017_v56  ;;  %8465 = vrcp.f32 %v7055_v36  ;;  %v7025_v39 = vand.u32 2147483647, %v14291_v53 }
0x150d   : > { %v6844_v55 = vadd.f32 1.1283791, %v6843_v52  ;;  %v7042_v21 = vadd.f32 0.18741608, %v7041_v22  ;;  %v6864_v15 = vsel %vm14326_vm7, %v14246_v61, %v6860_v24  ;;  %vm7021_vm10 = vweird.f32 %v14291_v53 }
0x150e   : > { %v6984_v5 = vsel %vm6983_vm13, %v8462_v58, %v6980_v63  ;;  %v7019_v25 = vmul.f32 %v8464_v13, %v7018_v10  ;;  %vm6866_vm4 = vcmp.eq.f32.partialorder %v6865_v4, 8.507059e+37  ;;  %v6868_v2 = vor.u32 1.1754944e-38, %v6867_v0  ;;  %vm7023_vm6 = vmor %vm7021_vm10, %vm7022_vm12 }
0x150f   : > { %v6989_v19 = vsel %vm6986_vm14, %v6988_v6, %v6984_v5  ;;  %v7028_v16 = vor.u32 1.1754944e-38, %v7027_v48  ;;  %v7005_v17 = vmul.f32 %v7004_v57, %v14191_v41  ;;  %vm7026_vm8 = vcmp.eq.f32.partialorder %v7025_v39, 8.507059e+37  ;;  %v7927_v6 = vld [vmem:[%s14506_s4 + $0x40] sm:$0xff] }
0x1510   : > { %v6990_v50 = vmul.f32 %v6989_v19, %v6965_v37  ;;  %v7020_v33 = vadd.f32 %v8464_v13, %v7019_v25  ;;  %v6869_v42 = vsel %vm6866_vm4, %v6868_v2, %v6864_v15  ;;  %v7043_v26 = vmul.f32 %v7042_v21, %v14241_v3  ;;  %v7928_v21 = vld [vmem:[%s14506_s4 + $0x48] sm:$0xff] }
0x1511   : > { %v6845_v61 = vmul.f32 %v6844_v55, %v14064_v45  ;;  %v6812_v49 = vmul.f32 0.5, %v14161_v7  ;;  %v6813_v44 = vmul.f32 0.5, %v14165_v18  ;;  %v7065_v58 = vand.u32 2147483647, %v7055_v36 }
0x1512   : > { %v7918_v46 = vclamps-f32 %v6990_v50, 1.0  ;;  %v7024_v11 = vsel %vm7023_vm6, %v8464_v13, %v7020_v33  ;;  %v8466_v59 = vpop.eup %8465  ;;  %v7044_v41 = vadd.f32 1.1283791, %v7043_v26  ;;  %v7067_v52 = vand.u32 2147483648, %v7055_v36 }
0x1513   : > { %v7029_v34 = vsel %vm7026_vm8, %v7028_v16, %v7024_v11  ;;  %v7057_v51 = vmul.f32 %v8466_v59, %v7055_v36  ;;  %v6870_v53 = vmul.f32 %v6869_v42, %v6845_v61  ;;  %vm7062_vm1 = vweird.f32 %v8466_v59 }
0x1514   : > { %v7030_v31 = vmul.f32 %v7029_v34, %v7005_v17  ;;  %v7316_v27 = vadd.f32 1.0, %v7918_v46  ;;  %vm7061_vm2 = vweird.f32 %v7055_v36  ;;  %v7068_v9 = vor.u32 1.1754944e-38, %v7067_v52 }
0x1515   : > { %v7058_v29 = vsub.f32 1.0, %v7057_v51  ;;  %v7915_v3 = vclamps-f32 %v6870_v53, 1.0  ;;  %vm7063_vm15 = vmor %vm7061_vm2, %vm7062_vm1  ;;  %v7045_v23 = vmul.f32 %v7044_v41, %v14214_v32  ;;  %vm7066_vm0 = vcmp.eq.f32.partialorder %v7065_v58, 8.507059e+37 }
0x1516   : > { %v7919_v20 = vclamps-f32 %v7030_v31, 1.0  ;;  %v7328_v38 = vmul.f32 %v7316_v27, %v6812_v49  ;;  %v6809_v12 = vmul.f32 0.5, %v14032_v14  ;;  %v6814_v1 = vmul.f32 0.5, %v14174_v35 }
0x1517   : > { %v7059_v28 = vmul.f32 %v8466_v59, %v7058_v29  ;;  %v7313_v18 = vadd.f32 1.0, %v7915_v3 }
0x1518   : > { %v7317_v8 = vadd.f32 1.0, %v7919_v20 }
0x1519   : > { %v7060_v43 = vadd.f32 %v8466_v59, %v7059_v28  ;;  %v7325_v0 = vmul.f32 %v7313_v18, %v6809_v12 }
0x151a   : > { %v7329_v45 = vmul.f32 %v7317_v8, %v6813_v44 }
0x151b   : > { %v7064_v7 = vsel %vm7063_vm15, %v8466_v59, %v7060_v43 }
0x151c   : > { %v8356_v4 = vpack.i.bf16 %v7329_v45, %v7328_v38  ;;  %v7069_v30 = vsel %vm7066_vm0, %v7068_v9, %v7064_v7 }
0x151d   : > { %v7070_v54 = vmul.f32 %v7069_v30, %v7045_v23 }
0x151e   : > { %8357 = vrot.lane.b32.xlu2 %v8356_v4, %s8524_s30 }
0x151f   : > { %v7920_v13 = vclamps-f32 %v7070_v54, 1.0 }
0x1521   : > { %v7318_v47 = vadd.f32 1.0, %v7920_v13 }
0x1523   : > { %v7330_v32 = vmul.f32 %v7318_v47, %v6814_v1 }
0x1525   : > { %v8361_v62 = vpack.i.bf16 %v7325_v0, %v7330_v32 }
0x1526   : > { %7345 = vperm.xlu2 %8339, %v7929_v40  }
0x1527   : > { %8362 = vrot.lane.b32.xlu0 %v8361_v62, %s8524_s30 }
0x1558   : > { %v8353_v56 = vpop.permute.xlu2 %8352 }
0x1559   : > { %v8355_v24 = vunpack.i.h.bf16 %v8353_v56  ;;  %v8354_v57 = vunpack.i.l.bf16 %v8353_v56 }
0x155b   : > { %v7536_v22 = vsel %vm4680_vm3, %v8354_v57, %v8355_v24 }
0x155c   : > { %7556 = vmatpush.msra.mxu2 %v7536_v22 }
0x1572   : > { %v8343_v14 = vpop.permute.xlu1 %8342 }
0x1573   : > { %v8344_v36 = vunpack.i.l.bf16 %v8343_v14  ;;  %v8345_v35 = vunpack.i.h.bf16 %v8343_v14 }
0x1575   : > { %v8348_v37 = vpop.permute.xlu0 %8347  ;;  %v7535_v60 = vsel %vm4680_vm3, %v8344_v36, %v8345_v35 }
0x1576   : > { %v8350_v63 = vunpack.i.h.bf16 %v8348_v37  ;;  %v8349_v10 = vunpack.i.l.bf16 %v8348_v37 }
0x1578   : > { %v8358_v48 = vpop.permute.xlu2 %8357  ;;  %v7534_v5 = vsel %vm4680_vm3, %v8350_v63, %v8344_v36  ;;  %v7537_v25 = vsel %vm4680_vm3, %v8355_v24, %v8349_v10 }
0x1579   : > { %v8360_v39 = vunpack.i.h.bf16 %v8358_v48  ;;  %v8359_v55 = vunpack.i.l.bf16 %v8358_v48  ;;  %7557 = vmatpush.msra.mxu2 %v7534_v5  ;;  %7578 = vmatpush.msra.mxu3 %v7537_v25 }
0x157a   : > { %7937 = vmatmul.msk.f32.vlgmr.msra.gmra.mxu2 %vm1211_vm9, %v7927_v6 }
0x157b   : > { %v7372_v19 = vsel %vm4680_vm3, %v8359_v55, %v8360_v39  ;;  %7579 = vmatpush.msra.mxu3 %v7535_v60 }
0x157c   : > { %7398 = vmatpush.msra.mxu0 %v7372_v19  ;;  %7939 = vmatmul.msk.f32.vlgmr.msra.gmra.mxu3 %vm1211_vm9, %v7927_v6  ;;  %v8368_v15 = vpop.permute.xlu1 %8367 }
0x157d   : > { %v8369_v50 = vunpack.i.l.bf16 %v8368_v15  ;;  %v8370_v2 = vunpack.i.h.bf16 %v8368_v15 }
0x157f   : > { %v7371_v59 = vsel %vm4680_vm3, %v8369_v50, %v8370_v2 }
0x1580   : > { %v7346_v42 = vpop.permute.xlu2 %7345 }
0x1582   : > { %7938 = vmatmul.msk.f32.gmra.mxu2 %vm1211_vm9, %v7928_v21 }
0x1584   : > { %7940 = vmatmul.msk.f32.gmra.mxu3 %vm1211_vm9, %v7928_v21 }
0x1599   : > { %v8363_v33 = vpop.permute.xlu0 %8362 }
0x159a   : > { %v8365_v16 = vunpack.i.h.bf16 %v8363_v33  ;;  %v8364_v46 = vunpack.i.l.bf16 %v8363_v33 }
0x159c   : > { %v7370_v17 = vsel %vm4680_vm3, %v8365_v16, %v8369_v50  ;;  %v7373_v11 = vsel %vm4680_vm3, %v8360_v39, %v8364_v46 }
0x159d   : > { %7399 = vmatpush.msra.mxu0 %v7370_v17  ;;  %7420 = vmatpush.msra.mxu1 %v7373_v11 }
0x159e   : > { %7931 = vmatmul.msk.f32.vlgmr.msra.gmra.mxu0 %vm1211_vm9, %v7927_v6 }
0x159f   : > { %7421 = vmatpush.msra.mxu1 %v7371_v59 }
0x15a0   : > { %7933 = vmatmul.msk.f32.vlgmr.msra.gmra.mxu1 %vm1211_vm9, %v7927_v6 }
0x15a6   : > { %7932 = vmatmul.msk.f32.gmra.mxu0 %vm1211_vm9, %v7928_v21 }
0x15a8   : > { %7934 = vmatmul.msk.f32.gmra.mxu1 %vm1211_vm9, %v7928_v21 }
0x15fd   : > { %v7559_v34 = vpop.f32.mrf.mxu2 }
0x15fe   : > { %v14369_v26 = vadd.f32 %v7559_v34, %v7346_v42 }
0x15ff   : > { %v7581_v61 = vpop.f32.mrf.mxu3 }
0x1600   : > { %v14372_v31 = vmul.f32 0.70710677, %v14369_v26  ;;  %v14374_v51 = vadd.f32 %v7581_v61, %v7346_v42 }
0x1602   : > { %v7590_v27 = vmul.f32 %v14372_v31, %v14372_v31  ;;  %v14379_v53 = vmul.f32 0.70710677, %v14374_v51 }
0x1604   : > { %v14381_v49 = vmin.f32 %v7590_v27, 16.0  ;;  %v7630_v20 = vmul.f32 %v14379_v53, %v14379_v53 }
0x1605   : > { %v7562_v29 = vpop.f32.mrf.mxu2 }
0x1606   : > { %v7603_v44 = vmul.f32 3.8918573e-05, %v14381_v49  ;;  %v14386_v41 = vmin.f32 %v7630_v20, 16.0  ;;  %v7592_v4 = vmul.f32 2.1237322e-06, %v14381_v49 }
0x1607   : > { %v7584_v58 = vpop.f32.mrf.mxu3 }
0x1608   : > { %v7604_v52 = vadd.f32 0.001143296, %v7603_v44  ;;  %v7643_v28 = vmul.f32 3.8918573e-05, %v14386_v41  ;;  %v7632_v18 = vmul.f32 2.1237322e-06, %v14386_v41 }
0x1609   : > { %v7593_v0 = vadd.f32 0.00028619796, %v7592_v4 }
0x160a   : > { %v7605_v8 = vmul.f32 %v7604_v52, %v14381_v49  ;;  %v7644_v38 = vadd.f32 0.001143296, %v7643_v28  ;;  %v7633_v47 = vadd.f32 0.00028619796, %v7632_v18 }
0x160b   : > { %v7594_v62 = vmul.f32 %v7593_v0, %v14381_v49 }
0x160c   : > { %v7606_v3 = vadd.f32 0.014752088, %v7605_v8  ;;  %v7645_v43 = vmul.f32 %v7644_v38, %v14386_v41  ;;  %v7634_v24 = vmul.f32 %v7633_v47, %v14386_v41 }
0x160d   : > { %v7595_v14 = vadd.f32 0.0036580483, %v7594_v62 }
0x160e   : > { %v7607_v45 = vmul.f32 %v7606_v3, %v14381_v49  ;;  %v7646_v9 = vadd.f32 0.014752088, %v7645_v43  ;;  %v7635_v35 = vadd.f32 0.0036580483, %v7634_v24 }
0x160f   : > { %v7596_v48 = vmul.f32 %v7595_v14, %v14381_v49 }
0x1610   : > { %v7608_v23 = vadd.f32 0.112945676, %v7607_v45  ;;  %v7647_v7 = vmul.f32 %v7646_v9, %v14386_v41  ;;  %v7636_v25 = vmul.f32 %v7635_v35, %v14386_v41 }
0x1611   : > { %v7597_v15 = vadd.f32 0.05243302, %v7596_v48 }
0x1612   : > { %v7609_v30 = vmul.f32 %v7608_v23, %v14381_v49  ;;  %v7648_v54 = vadd.f32 0.112945676, %v7647_v7  ;;  %v7637_v46 = vadd.f32 0.05243302, %v7636_v25 }
0x1613   : > { %v7598_v58 = vmul.f32 %v7597_v15, %v14381_v49 }
0x1614   : > { %v7610_v12 = vadd.f32 0.4994258, %v7609_v30  ;;  %v7649_v13 = vmul.f32 %v7648_v54, %v14386_v41  ;;  %v7638_v52 = vmul.f32 %v7637_v46, %v14386_v41 }
0x1615   : > { %v7599_v4 = vadd.f32 0.18741608, %v7598_v58 }
0x1616   : > { %v7611_v1 = vmul.f32 %v7610_v12, %v14381_v49  ;;  %v7650_v40 = vadd.f32 0.4994258, %v7649_v13  ;;  %v7639_v30 = vadd.f32 0.18741608, %v7638_v52 }
0x1618   : > { %v7651_v32 = vmul.f32 %v7650_v40, %v14386_v41  ;;  %v14400_v56 = vadd.f32 1.0, %v7611_v1  ;;  %v7640_v62 = vmul.f32 %v7639_v30, %v14386_v41 }
0x161a   : > { %v14403_v22 = vadd.f32 1.0, %v7651_v32  ;;  %8467 = vrcp.f32 %v14400_v56  ;;  %v7600_v32 = vmul.f32 %v7599_v4, %v14381_v49  ;;  %vm7618_vm3 = vweird.f32 %v14400_v56 }
0x161b   : > { %v7401_v57 = vpop.f32.mrf.mxu0  ;;  %v7622_v35 = vand.u32 2147483647, %v14400_v56  ;;  %v7624_v48 = vand.u32 2147483648, %v14400_v56 }
0x161c   : > { %v14405_v36 = vadd.f32 %v7401_v57, %v7346_v42  ;;  %8469 = vrcp.f32 %v14403_v22  ;;  %vm7658_vm13 = vweird.f32 %v14403_v22  ;;  %v7664_v15 = vand.u32 2147483648, %v14403_v22 }
0x161d   : > { %v7423_v37 = vpop.f32.mrf.mxu1  ;;  %vm7623_vm12 = vcmp.eq.f32.partialorder %v7622_v35, 8.507059e+37 }
0x161e   : > { %v14408_v63 = vadd.f32 %v7423_v37, %v7346_v42  ;;  %v14411_v10 = vmul.f32 0.70710677, %v14405_v36 }
0x1620   : > { %v14415_v6 = vmul.f32 0.70710677, %v14408_v63  ;;  %v7432_v5 = vmul.f32 %v14411_v10, %v14411_v10  ;;  %v14425_v19 = vpop.eup %8467 }
0x1621   : > { %v7614_v59 = vmul.f32 %v14425_v19, %v14400_v56  ;;  %vm7619_vm9 = vweird.f32 %v14425_v19 }
0x1622   : > { %v7472_v39 = vmul.f32 %v14415_v6, %v14415_v6  ;;  %v14423_v55 = vmin.f32 %v7432_v5, 16.0  ;;  %v14431_v16 = vpop.eup %8469  ;;  %vm14463_vm5 = vmor %vm7618_vm3, %vm7619_vm9 }
0x1623   : > { %v7404_v60 = vpop.f32.mrf.mxu0  ;;  %v7654_v20 = vmul.f32 %v14431_v16, %v14403_v22  ;;  %v7615_v38 = vsub.f32 1.0, %v7614_v59  ;;  %vm7659_vm11 = vweird.f32 %v14431_v16 }
0x1624   : > { %v14427_v21 = vmin.f32 %v7472_v39, 16.0  ;;  %v7434_v50 = vmul.f32 2.1237322e-06, %v14423_v55  ;;  %v7445_v33 = vmul.f32 3.8918573e-05, %v14423_v55  ;;  %vm7660_vm14 = vmor %vm7658_vm13, %vm7659_vm11  ;;  %v7428_v60 = vmul.f32 0.5, %v14405_v36 }
0x1625   : > { %v7426_v2 = vpop.f32.mrf.mxu1  ;;  %v7655_v9 = vsub.f32 1.0, %v7654_v20  ;;  %v7616_v54 = vmul.f32 %v14425_v19, %v7615_v38  ;;  %v7601_v39 = vadd.f32 1.1283791, %v7600_v32 }
0x1626   : > { %v7474_v17 = vmul.f32 2.1237322e-06, %v14427_v21  ;;  %v7485_v11 = vmul.f32 3.8918573e-05, %v14427_v21  ;;  %v7435_v42 = vadd.f32 0.00028619796, %v7434_v50 }
0x1627   : > { %v7446_v34 = vadd.f32 0.001143296, %v7445_v33  ;;  %v7656_v1 = vmul.f32 %v14431_v16, %v7655_v9  ;;  %v7617_v57 = vadd.f32 %v14425_v19, %v7616_v54  ;;  %v7662_v33 = vand.u32 2147483647, %v14403_v22 }
0x1628   : > { %v7475_v61 = vadd.f32 0.00028619796, %v7474_v17  ;;  %v7486_v27 = vadd.f32 0.001143296, %v7485_v11  ;;  %v7436_v29 = vmul.f32 %v7435_v42, %v14423_v55  ;;  %v7625_v17 = vor.u32 1.1754944e-38, %v7624_v48 }
0x1629   : > { %v7447_v44 = vmul.f32 %v7446_v34, %v14423_v55  ;;  %v7657_v25 = vadd.f32 %v14431_v16, %v7656_v1  ;;  %v7621_v56 = vsel %vm14463_vm5, %v14425_v19, %v7617_v57  ;;  %v7641_v11 = vadd.f32 1.1283791, %v7640_v62 }
0x162a   : > { %v7476_v28 = vmul.f32 %v7475_v61, %v14427_v21  ;;  %v7487_v8 = vmul.f32 %v7486_v27, %v14427_v21  ;;  %v7437_v3 = vadd.f32 0.0036580483, %v7436_v29  ;;  %v7626_v61 = vsel %vm7623_vm12, %v7625_v17, %v7621_v56  ;;  %v15298_v17 = vld [vmem:[#allocation24_spill] sm:$0xff] }
0x162b   : > { %v7448_v43 = vadd.f32 0.014752088, %v7447_v44  ;;  %v7661_v42 = vsel %vm7660_vm14, %v14431_v16, %v7657_v25  ;;  %v7665_v27 = vor.u32 1.1754944e-38, %v7664_v15  ;;  %v7602_v20 = vmul.f32 %v7601_v39, %v14372_v31 }
0x162c   : > { %v7488_v45 = vadd.f32 0.014752088, %v7487_v8  ;;  %v7477_v7 = vadd.f32 0.0036580483, %v7476_v28  ;;  %v7438_v12 = vmul.f32 %v7437_v3, %v14423_v55  ;;  %vm7663_vm7 = vcmp.eq.f32.partialorder %v7662_v33, 8.507059e+37 }
0x162d   : > { %v7449_v23 = vmul.f32 %v7448_v43, %v14423_v55  ;;  %v7666_v22 = vsel %vm7663_vm7, %v7665_v27, %v7661_v42  ;;  %v7627_v29 = vmul.f32 %v7626_v61, %v7602_v20  ;;  %v7642_v44 = vmul.f32 %v7641_v11, %v14379_v53  ;;  %v15299_v11 = vld [vmem:[#allocation10_spill] sm:$0xff]  ;;  %v15300_v27 = vld [vmem:[#allocation28_spill] sm:$0xff] }
0x162e   : > { %v7489_v18 = vmul.f32 %v7488_v45, %v14427_v21  ;;  %v7478_v40 = vmul.f32 %v7477_v7, %v14427_v21  ;;  %v7439_v14 = vadd.f32 0.05243302, %v7438_v12  ;;  %v7586_v1 = vmul.f32 0.5, %v14369_v26 }
0x162f   : > { %v7450_v13 = vadd.f32 0.112945676, %v7449_v23  ;;  %v7667_v28 = vmul.f32 %v7666_v22, %v7642_v44  ;;  %v7941_v3 = vclamps-f32 %v7627_v29, 1.0  ;;  %v7587_v57 = vmul.f32 0.5, %v14374_v51  ;;  %v15302_v22 = vld [vmem:[#allocation20_spill] sm:$0xff]  ;;  %v15303_v44 = vld [vmem:[#allocation22_spill] sm:$0xff] }
0x1630   : > { %v7490_v0 = vadd.f32 0.112945676, %v7489_v18  ;;  %v7479_v41 = vadd.f32 0.05243302, %v7478_v40  ;;  %v7440_v2 = vmul.f32 %v7439_v14, %v14423_v55 }
0x1631   : > { %v7451_v47 = vmul.f32 %v7450_v13, %v14423_v55  ;;  %v7942_v31 = vclamps-f32 %v7667_v28, 1.0  ;;  %v7670_v53 = vadd.f32 1.0, %v7941_v3  ;;  %v15304_v3 = vld [vmem:[#allocation32_spill] sm:$0xff] }
0x1632   : > { %v7491_v24 = vmul.f32 %v7490_v0, %v14427_v21  ;;  %v7480_v34 = vmul.f32 %v7479_v41, %v14427_v21  ;;  %v7441_v19 = vadd.f32 0.18741608, %v7440_v2  ;;  %v7429_v2 = vmul.f32 0.5, %v14408_v63 }
0x1633   : > { %v7452_v37 = vadd.f32 0.4994258, %v7451_v47 }
0x1634   : > { %v7492_v5 = vadd.f32 0.4994258, %v7491_v24  ;;  %v7481_v58 = vadd.f32 0.18741608, %v7480_v34  ;;  %v7442_v8 = vmul.f32 %v7441_v19, %v14423_v55  ;;  %v7672_v24 = vmul.f32 %v7670_v53, %v7586_v1  ;;  %v15301_v19 = vld [vmem:[#allocation23_spill] sm:$0xff] }
0x1635   : > { %v7453_v49 = vmul.f32 %v7452_v37, %v14423_v55 }
0x1636   : > { %v7493_v50 = vmul.f32 %v7492_v5, %v14427_v21  ;;  %v7482_v43 = vmul.f32 %v7481_v58, %v14427_v21  ;;  %v7443_v23 = vadd.f32 1.1283791, %v7442_v8  ;;  %v7671_v21 = vadd.f32 1.0, %v7942_v31 }
0x1637   : > { %v7454_v46 = vadd.f32 1.0, %v7453_v49  ;;  %v7690_v41 = vperm.slane %v7672_v24, 0  ;;  %v7694_v39 = vperm.slane %v7672_v24, 1 }
0x1638   : > { %v7494_v59 = vadd.f32 1.0, %v7493_v50  ;;  %v7483_v54 = vadd.f32 1.1283791, %v7482_v43  ;;  %v7444_v47 = vmul.f32 %v7443_v23, %v14411_v10  ;;  %v7673_v26 = vmul.f32 %v7671_v21, %v7587_v57 }
0x1639   : > { %8471 = vrcp.f32 %v7454_v46  ;;  %v7466_v7 = vand.u32 2147483648, %v7454_v46  ;;  %v7464_v30 = vand.u32 2147483647, %v7454_v46  ;;  %vm7460_vm4 = vweird.f32 %v7454_v46 }
0x163a   : > { %8473 = vrcp.f32 %v7494_v59  ;;  %v7506_v12 = vand.u32 2147483648, %v7494_v59  ;;  %v7504_v0 = vand.u32 2147483647, %v7494_v59  ;;  %vm7500_vm2 = vweird.f32 %v7494_v59 }
0x163b   : > { %v7467_v40 = vor.u32 1.1754944e-38, %v7466_v7  ;;  %vm7465_vm1 = vcmp.eq.f32.partialorder %v7464_v30, 8.507059e+37  ;;  %v7484_v48 = vmul.f32 %v7483_v54, %v14415_v6  ;;  %v7691_v56 = vperm.slane %v7673_v26, 0 }
0x163c   : > { %v7507_v37 = vor.u32 1.1754944e-38, %v7506_v12  ;;  %vm7505_vm0 = vcmp.eq.f32.partialorder %v7504_v0, 8.507059e+37  ;;  %v7695_v51 = vperm.slane %v7673_v26, 1  ;;  %v7692_v6 = vmul.f32 %v7690_v41, %v15298_v17 }
0x163d   : > { %v7693_v20 = vmul.f32 %v7691_v56, %v15300_v27 }
0x163e   : > { %v7697_v36 = vmul.f32 %v7695_v51, %v15301_v19 }
0x163f   : > { %v8472_v52 = vpop.eup %8471 }
0x1640   : > { %v7456_v16 = vmul.f32 %v8472_v52, %v7454_v46  ;;  %v8474_v38 = vpop.eup %8473  ;;  %vm7461_vm10 = vweird.f32 %v8472_v52  ;;  %v7699_v31 = vadd.f32 %v7697_v36, %v7693_v20  ;;  %v7701_v23 = vmul.f32 %v7697_v36, %v7693_v20 }
0x1641   : > { %v7496_v9 = vmul.f32 %v8474_v38, %v7494_v59  ;;  %vm7501_vm6 = vweird.f32 %v8474_v38  ;;  %vm7462_vm8 = vmor %vm7460_vm4, %vm7461_vm10  ;;  %v7696_v59 = vmul.f32 %v7694_v39, %v15299_v11 }
0x1642   : > { %v7457_v45 = vsub.f32 1.0, %v7456_v16  ;;  %vm7502_vm15 = vmor %vm7500_vm2, %vm7501_vm6  ;;  %v7703_v54 = vadd.f32 %v7701_v23, %v7699_v31 }
0x1643   : > { %v7497_v18 = vsub.f32 1.0, %v7496_v9  ;;  %v7698_v63 = vadd.f32 %v7696_v59, %v7692_v6  ;;  %v7700_v8 = vmul.f32 %v7696_v59, %v7692_v6 }
0x1644   : > { %v7458_v4 = vmul.f32 %v8472_v52, %v7457_v45  ;;  %v15305_v45 = vld [vmem:[#allocation18_spill] sm:$0xff]  ;;  %7944 = vst [vmem:[%s283_s27 + $0x18] sm:$0xff] %v7703_v54 }
0x1645   : > { %v7498_v55 = vmul.f32 %v8474_v38, %v7497_v18  ;;  %v7702_v18 = vadd.f32 %v7700_v8, %v7698_v63 }
0x1646   : > { %v7459_v13 = vadd.f32 %v8472_v52, %v7458_v4 }
0x1647   : > { %v7499_v62 = vadd.f32 %v8474_v38, %v7498_v55  ;;  %7943 = vst [vmem:[%s283_s27 + $0x10] sm:$0xff] %v7702_v18 }
0x1648   : > { %v7463_v32 = vsel %vm7462_vm8, %v8472_v52, %v7459_v13 }
0x1649   : > { %v7468_v14 = vsel %vm7465_vm1, %v7467_v40, %v7463_v32  ;;  %v7503_v5 = vsel %vm7502_vm15, %v8474_v38, %v7499_v62 }
0x164a   : > { %v7469_v35 = vmul.f32 %v7468_v14, %v7444_v47  ;;  %v7508_v25 = vsel %vm7505_vm0, %v7507_v37, %v7503_v5 }
0x164b   : > { %v7509_v49 = vmul.f32 %v7508_v25, %v7484_v48 }
0x164c   : > { %v7935_v10 = vclamps-f32 %v7469_v35, 1.0 }
0x164d   : > { %v7936_v50 = vclamps-f32 %v7509_v49, 1.0 }
0x164e   : > { %v7512_v15 = vadd.f32 1.0, %v7935_v10 }
0x164f   : > { %v7513_v46 = vadd.f32 1.0, %v7936_v50 }
0x1650   : > { %v7514_v33 = vmul.f32 %v7512_v15, %v7428_v60 }
0x1651   : > { %v7515_v61 = vmul.f32 %v7513_v46, %v7429_v2 }
0x1652   : > { %v7674_v42 = vperm.slane %v7514_v33, 0  ;;  %v7678_v34 = vperm.slane %v7514_v33, 1 }
0x1653   : > { %v7675_v52 = vperm.slane %v7515_v61, 0  ;;  %v7679_v28 = vperm.slane %v7515_v61, 1 }
0x1654   : > { %v7676_v29 = vmul.f32 %v7674_v42, %v15302_v22  ;;  %v7680_v58 = vmul.f32 %v7678_v34, %v15303_v44 }
0x1655   : > { %v7677_v43 = vmul.f32 %v7675_v52, %v15304_v3  ;;  %v7681_v9 = vmul.f32 %v7679_v28, %v15305_v45 }
0x1656   : > { %v7682_v16 = vadd.f32 %v7680_v58, %v7676_v29  ;;  %v7684_v38 = vmul.f32 %v7680_v58, %v7676_v29 }
0x1657   : > { %v7683_v4 = vadd.f32 %v7681_v9, %v7677_v43  ;;  %v7685_v30 = vmul.f32 %v7681_v9, %v7677_v43 }
0x1658   : > { %v7686_v7 = vadd.f32 %v7684_v38, %v7682_v16 }
0x1659   : > { %v7687_v53 = vadd.f32 %v7685_v30, %v7683_v4 }
0x165a   : > { %7688 = vst [vmem:[%s283_s27] sm:$0xff] %v7686_v7 }
0x165b   : > { %7689 = vst [vmem:[%s283_s27 + $0x8] sm:$0xff] %v7687_v53 }
0x165c PF: > { %s16_s21 = sadd.s32 1, %s8487_s21  }
0x165d   : > { %p13_p4 = scmp.ge.s32.totalorder %s16_s21, 4  }
0x165f   :  { %15 = sbr.rel (!%p13_p4) target bundleno = 1 (0x1), region = 96 }

</bundles_post_ra>
